<compile_context>
chip_gen: v7x
topology: tpu7x:2x2x1
jax: 0.10.0
libtpu: 0.0.40
codegen_flags: <defaults>
</compile_context>

<pallas_src>
import math
from functools import partial

import jax
import jax.numpy as jnp
from jax.experimental import pallas as pl
from jax.experimental.pallas import tpu as pltpu


# Flattened per-layer parameter order (must match the kernel unpacking).
_ENC_KEYS = ("wqkv", "bqkv", "wo", "bo", "ln1_g", "ln1_b",
             "w1", "b1", "w2", "b2", "ln2_g", "ln2_b")
_DEC_KEYS = ("s_wqkv", "s_bqkv", "s_wo", "s_bo", "ln1_g", "ln1_b",
             "c_wq", "c_bq", "c_wkv", "c_bkv", "c_wo", "c_bo",
             "ln2_g", "ln2_b",
             "w1", "b1", "w2", "b2", "ln3_g", "ln3_b")


# --------------------------- in-kernel helpers ------------------------------

def _layernorm(z, g, b):
    mu = jnp.mean(z, axis=-1, keepdims=True)
    var = jnp.mean((z - mu) * (z - mu), axis=-1, keepdims=True)
    return (z - mu) * jax.lax.rsqrt(var + 1e-5) * g + b


def _gelu(h):
    # exact (erf) GELU == torch.nn.GELU() default
    return 0.5 * h * (1.0 + jax.lax.erf(h * (1.0 / math.sqrt(2.0))))


def _softmax_lastdim(s):
    m = jnp.max(s, axis=-1, keepdims=True)
    e = jnp.exp(s - m)
    return e * pl.reciprocal(jnp.sum(e, axis=-1, keepdims=True), approx=True)


def _mha_shared_kv(q_all, k_all, v_all, key_mask, wo, H, dk):
    """Attention where K/V are shared by every query row (encoder self-attn,
    decoder cross-attn).  q_all: (M, H*dk); k_all/v_all: (Skv, H*dk);
    key_mask broadcastable to (M, Skv).  Per head, (p @ v) is projected through
    the matching W_o row-slice and accumulated -> no head concat.  No bias."""
    scale = 1.0 / math.sqrt(dk)
    acc = None
    for h in range(H):
        sl = slice(h * dk, (h + 1) * dk)
        q, k, v = q_all[:, sl], k_all[:, sl], v_all[:, sl]
        s = jax.lax.dot_general(q, k, (((1,), (1,)), ((), ())),
                                preferred_element_type=jnp.float32) * scale
        s = jnp.where(key_mask == 0, jnp.float32(-1e9), s)
        p = _softmax_lastdim(s)
        o = jnp.dot(p, v, preferred_element_type=jnp.float32)
        contrib = jnp.dot(o, wo[sl, :], preferred_element_type=jnp.float32)
        acc = contrib if acc is None else acc + contrib
    return acc


def _mha_self_batched(qkv, mask2d, wo, B, S, H, dk):
    """Decoder masked self-attention over a flattened (B*S, 3*H*dk) QKV block.
    mask2d: (S, S) shared across batch rows and heads.  Returns (B*S, H*dk)
    already projected through wo (no bias, no head concat)."""
    scale = 1.0 / math.sqrt(dk)
    d = H * dk
    acc = None
    for h in range(H):
        q = qkv[:, h * dk:(h + 1) * dk].reshape(B, S, dk)
        k = qkv[:, d + h * dk: d + (h + 1) * dk].reshape(B, S, dk)
        v = qkv[:, 2 * d + h * dk: 2 * d + (h + 1) * dk].reshape(B, S, dk)
        s = jax.lax.dot_general(q, k, (((2,), (2,)), ((0,), (0,))),
                                preferred_element_type=jnp.float32) * scale
        s = jnp.where(mask2d[None] == 0, jnp.float32(-1e9), s)
        p = _softmax_lastdim(s)
        o = jax.lax.dot_general(p, v, (((2,), (1,)), ((0,), (0,))),
                                preferred_element_type=jnp.float32)
        contrib = jnp.dot(o.reshape(B * S, dk), wo[h * dk:(h + 1) * dk, :],
                          preferred_element_type=jnp.float32)
        acc = contrib if acc is None else acc + contrib
    return acc


# ----------------------------- fused kernels --------------------------------

def _encoder_stack_kernel(H, dk, num_layers, *refs):
    """Whole encoder stack in one kernel invocation."""
    src_x_ref, mask_ref = refs[0], refs[1]
    out_ref = refs[-1]
    wrefs = refs[2:-1]
    d = H * dk
    P = len(_ENC_KEYS)

    x = src_x_ref[0]                 # (S, d)
    key_mask = mask_ref[...]         # (1, S) int32: key-padding mask (src token ids)

    for l in range(num_layers):
        (wqkv, bqkv, wo, bo, ln1g, ln1b,
         w1, b1, w2, b2, ln2g, ln2b) = wrefs[l * P:(l + 1) * P]
        qkv = jnp.dot(x, wqkv[...], preferred_element_type=jnp.float32) + bqkv[...]
        attn = _mha_shared_kv(qkv[:, :d], qkv[:, d:2 * d], qkv[:, 2 * d:],
                              key_mask, wo[...], H, dk) + bo[...]
        x = _layernorm(x + attn, ln1g[...], ln1b[...])
        h = _gelu(jnp.dot(x, w1[...], preferred_element_type=jnp.float32) + b1[...])
        ff = jnp.dot(h, w2[...], preferred_element_type=jnp.float32) + b2[...]
        x = _layernorm(x + ff, ln2g[...], ln2b[...])

    out_ref[0] = x


def _decoder_stack_kernel(H, dk, num_layers, Bh, S, *refs):
    """Whole decoder stack (+ fused final logits projection) in one kernel.
    Each grid step processes Bh decoder batch rows, flattened to (Bh*S, d)."""
    tgt_ref, enc_ref, tmask_ref, smask_ref = refs[:4]
    out_ref = refs[-1]
    wrefs = refs[4:-1]
    d = H * dk
    P = len(_DEC_KEYS)

    xf = tgt_ref[...]                # (Bh*S, d)  flattened batch x seq
    enc = enc_ref[0]                 # (S, d)     shared encoder output
    tmask = tmask_ref[...]           # (S, S)     causal-ish tgt mask
    smask = smask_ref[...]           # (1, S)     key-padding mask (src token ids)

    for l in range(num_layers):
        (s_wqkv, s_bqkv, s_wo, s_bo, ln1g, ln1b,
         c_wq, c_bq, c_wkv, c_bkv, c_wo, c_bo, ln2g, ln2b,
         w1, b1, w2, b2, ln3g, ln3b) = wrefs[l * P:(l + 1) * P]

        # --- masked self-attention (fused QKV, M = Bh*S) ---
        qkv = jnp.dot(xf, s_wqkv[...], preferred_element_type=jnp.float32) + s_bqkv[...]
        a = _mha_self_batched(qkv, tmask, s_wo[...], Bh, S, H, dk) + s_bo[...]
        xf = _layernorm(xf + a, ln1g[...], ln1b[...])

        # --- cross-attention: KV of the shared encoder output computed ONCE ---
        q_all = jnp.dot(xf, c_wq[...], preferred_element_type=jnp.float32) + c_bq[...]
        kv = jnp.dot(enc, c_wkv[...], preferred_element_type=jnp.float32) + c_bkv[...]
        a = _mha_shared_kv(q_all, kv[:, :d], kv[:, d:], smask, c_wo[...], H, dk) + c_bo[...]
        xf = _layernorm(xf + a, ln2g[...], ln2b[...])

        # --- FFN ---
        h = _gelu(jnp.dot(xf, w1[...], preferred_element_type=jnp.float32) + b1[...])
        ff = jnp.dot(h, w2[...], preferred_element_type=jnp.float32) + b2[...]
        xf = _layernorm(xf + ff, ln3g[...], ln3b[...])

    # --- fused final logits projection ---
    ff_w_ref = wrefs[num_layers * P]
    ff_b_ref = wrefs[num_layers * P + 1]
    out_ref[...] = (jnp.dot(xf, ff_w_ref[...], preferred_element_type=jnp.float32)
                    + ff_b_ref[...])


# ------------------------------ wrappers ------------------------------------

def _const_spec(a):
    """Full-array block whose index_map ignores the grid index -> fetched once
    and kept VMEM-resident across all grid steps (no repeat DMA)."""
    zeros = (0,) * a.ndim
    return pl.BlockSpec(a.shape, lambda i, _z=zeros: _z)


def encoder_stack(params, src_x, src_mask_i, H, dk, num_layers):
    _, S, d = src_x.shape
    arrays = [src_x, src_mask_i]
    for l in range(num_layers):
        for k in _ENC_KEYS:
            arrays.append(params["enc"][l][k])
    specs = [_const_spec(a) for a in arrays]
    return pl.pallas_call(
        partial(_encoder_stack_kernel, H, dk, num_layers),
        out_shape=jax.ShapeDtypeStruct((1, S, d), jnp.float32),
        grid=(1,),
        in_specs=specs,
        out_specs=pl.BlockSpec((1, S, d), lambda i: (0, 0, 0)),
        compiler_params=pltpu.CompilerParams(
            dimension_semantics=("arbitrary",)),
    )(*arrays)


def decoder_stack(params, tgt_flat, enc_out, tgt_mask_i, src_mask_i,
                  H, dk, num_layers, num_tokens, batch_splits=2):
    BS, d = tgt_flat.shape
    S = enc_out.shape[1]
    B = BS // S
    split = batch_splits if (batch_splits > 0 and B % batch_splits == 0) else 1
    Bh = B // split

    arrays = [tgt_flat, enc_out, tgt_mask_i, src_mask_i]
    for l in range(num_layers):
        for k in _DEC_KEYS:
            arrays.append(params["dec"][l][k])
    arrays.append(params["ff_w"])
    arrays.append(params["ff_b"])

    specs = ([pl.BlockSpec((Bh * S, d), lambda i: (i, 0))]
             + [_const_spec(a) for a in arrays[1:]])

    return pl.pallas_call(
        partial(_decoder_stack_kernel, H, dk, num_layers, Bh, S),
        out_shape=jax.ShapeDtypeStruct((BS, num_tokens), jnp.float32),
        grid=(split,),
        in_specs=specs,
        out_specs=pl.BlockSpec((Bh * S, num_tokens), lambda i: (i, 0)),
        compiler_params=pltpu.CompilerParams(
            dimension_semantics=("parallel",)),
    )(*arrays)


# ------------------------------ forward -------------------------------------

def transformer_forward(params, src, tgt, *, seq_length, d_model, num_heads,
                        num_tokens, num_layers=2):
    S, d, H = seq_length, d_model, num_heads
    dk = d // H

    # ----- generate_mask (exact PyTorch semantics, incl. bitwise & with bool) ---
    nopeak = 1 - jnp.triu(jnp.ones((S, S), jnp.int32), k=1)           # lower-tri 1/0
    tgt_mask = jnp.bitwise_and(tgt.astype(jnp.int32)[:, None, :],
                               nopeak[None])[0]                       # (S, S) ints
    src_mask = src                                                    # (1, S) token ids

    src_mask_i = src_mask.astype(jnp.int32)                           # key padding
    tgt_mask_i = tgt_mask.astype(jnp.int32)

    # ----- embeddings + positional encoding (tiny integer gathers; XLA glue) ----
    emb, pe = params["emb"], params["pe"]
    src_x = emb[src_mask] + pe[None, :, :]                            # (1, S, d)
    tgt_x = (emb[tgt_mask] + pe[None, :S, :]).reshape(S * S, d)       # (S*S, d), batch=S

    enc_out = encoder_stack(params, src_x, src_mask_i, H, dk, num_layers)
    logits = decoder_stack(params, tgt_x, enc_out, tgt_mask_i, src_mask_i,
                           H, dk, num_layers, num_tokens)
    return logits.reshape(S, S, num_tokens)


# --------------------------- deterministic params ---------------------------

def init_params(key, num_tokens, seq_length, d_model, d_ff, num_layers=2):
    keys = iter(jax.random.split(key, 256))

    def rnd(shape):
        return jax.random.normal(next(keys), shape, jnp.float32) * 0.02

    def lin(in_f, out_f):
        # weights stored pre-transposed (in, out); biases stored as (1, out)
        return rnd((in_f, out_f)), rnd((1, out_f))

    def ones():
        return jnp.ones((1, d_model), jnp.float32)

    def zeros():
        return jnp.zeros((1, d_model), jnp.float32)

    def attn_params():
        wq, bq = lin(d_model, d_model)
        wk, bk = lin(d_model, d_model)
        wv, bv = lin(d_model, d_model)
        wo, bo = lin(d_model, d_model)
        return wq, bq, wk, bk, wv, bv, wo, bo

    def enc_p():
        wq, bq, wk, bk, wv, bv, wo, bo = attn_params()
        w1, b1 = lin(d_model, d_ff)
        w2, b2 = lin(d_ff, d_model)
        return {"wqkv": jnp.concatenate([wq, wk, wv], axis=1),
                "bqkv": jnp.concatenate([bq, bk, bv], axis=1),
                "wo": wo, "bo": bo,
                "ln1_g": ones(), "ln1_b": zeros(),
                "w1": w1, "b1": b1, "w2": w2, "b2": b2,
                "ln2_g": ones(), "ln2_b": zeros()}

    def dec_p():
        swq, sbq, swk, sbk, swv, sbv, swo, sbo = attn_params()
        cwq, cbq, cwk, cbk, cwv, cbv, cwo, cbo = attn_params()
        w1, b1 = lin(d_model, d_ff)
        w2, b2 = lin(d_ff, d_model)
        return {"s_wqkv": jnp.concatenate([swq, swk, swv], axis=1),
                "s_bqkv": jnp.concatenate([sbq, sbk, sbv], axis=1),
                "s_wo": swo, "s_bo": sbo,
                "ln1_g": ones(), "ln1_b": zeros(),
                "c_wq": cwq, "c_bq": cbq,
                "c_wkv": jnp.concatenate([cwk, cwv], axis=1),
                "c_bkv": jnp.concatenate([cbk, cbv], axis=1),
                "c_wo": cwo, "c_bo": cbo,
                "ln2_g": ones(), "ln2_b": zeros(),
                "w1": w1, "b1": b1, "w2": w2, "b2": b2,
                "ln3_g": ones(), "ln3_b": zeros()}

    emb = rnd((num_tokens, d_model))
    ff_w, ff_b = lin(d_model, num_tokens)

    # sinusoidal positional encoding (same formula as the PyTorch module)
    position = jnp.arange(seq_length, dtype=jnp.float32)[:, None]
    div_term = jnp.exp(jnp.arange(0, d_model, 2, dtype=jnp.float32)
                       * (-math.log(10000.0) / d_model))
    pe = jnp.zeros((seq_length, d_model), jnp.float32)
    pe = pe.at[:, 0::2].set(jnp.sin(position * div_term))
    pe = pe.at[:, 1::2].set(jnp.cos(position * div_term))

    return {"emb": emb, "pe": pe, "ff_w": ff_w, "ff_b": ff_b,
            "enc": [enc_p() for _ in range(num_layers)],
            "dec": [dec_p() for _ in range(num_layers)]}


# --------------------------------- main --------------------------------------

if __name__ == "__main__":
    num_tokens, seq_length, d_model = 16, 8, 32
    num_heads, d_ff = 2, 512

    key = jax.random.PRNGKey(0)
    k_params, k_src, k_tgt = jax.random.split(key, 3)
    params = init_params(k_params, num_tokens, seq_length, d_model, d_ff)

    # token-id inputs, batch size 1 (required by the module's own mask broadcasting)
    src = jax.random.randint(k_src, (1, seq_length), 0, num_tokens, dtype=jnp.int32)
    tgt = jax.random.randint(k_tgt, (1, seq_length), 0, num_tokens, dtype=jnp.int32)

    fwd = jax.jit(partial(transformer_forward,
                          seq_length=seq_length, d_model=d_model,
                          num_heads=num_heads, num_tokens=num_tokens))
    out = jax.block_until_ready(fwd(params, src, tgt))
    assert out.shape == (seq_length, seq_length, num_tokens), out.shape
    assert bool(jnp.all(jnp.isfinite(out)))
    print("KERNEL_OK")
</pallas_src>

<mosaic_0001>
module attributes {stable_mosaic.version = 11 : i64} {
  func.func @_encoder_stack_kernel(%arg0: i32, %arg1: memref<1x8x32xf32, #tpu.memory_space<vmem>>, %arg2: memref<1x8xi32, #tpu.memory_space<vmem>>, %arg3: memref<32x96xf32, #tpu.memory_space<vmem>>, %arg4: memref<1x96xf32, #tpu.memory_space<vmem>>, %arg5: memref<32x32xf32, #tpu.memory_space<vmem>>, %arg6: memref<1x32xf32, #tpu.memory_space<vmem>>, %arg7: memref<1x32xf32, #tpu.memory_space<vmem>>, %arg8: memref<1x32xf32, #tpu.memory_space<vmem>>, %arg9: memref<32x512xf32, #tpu.memory_space<vmem>>, %arg10: memref<1x512xf32, #tpu.memory_space<vmem>>, %arg11: memref<512x32xf32, #tpu.memory_space<vmem>>, %arg12: memref<1x32xf32, #tpu.memory_space<vmem>>, %arg13: memref<1x32xf32, #tpu.memory_space<vmem>>, %arg14: memref<1x32xf32, #tpu.memory_space<vmem>>, %arg15: memref<32x96xf32, #tpu.memory_space<vmem>>, %arg16: memref<1x96xf32, #tpu.memory_space<vmem>>, %arg17: memref<32x32xf32, #tpu.memory_space<vmem>>, %arg18: memref<1x32xf32, #tpu.memory_space<vmem>>, %arg19: memref<1x32xf32, #tpu.memory_space<vmem>>, %arg20: memref<1x32xf32, #tpu.memory_space<vmem>>, %arg21: memref<32x512xf32, #tpu.memory_space<vmem>>, %arg22: memref<1x512xf32, #tpu.memory_space<vmem>>, %arg23: memref<512x32xf32, #tpu.memory_space<vmem>>, %arg24: memref<1x32xf32, #tpu.memory_space<vmem>>, %arg25: memref<1x32xf32, #tpu.memory_space<vmem>>, %arg26: memref<1x32xf32, #tpu.memory_space<vmem>>, %arg27: memref<1x8x32xf32, #tpu.memory_space<vmem>>) attributes {dimension_semantics = [#tpu.dimension_semantics<arbitrary>], iteration_bounds = array<i64: 1>, scalar_prefetch = 0 : i64, scratch_operands = 0 : i64, tpu.core_type = #tpu.core_type<tc>, window_params = [{pipeline_mode = #tpu.pipeline_mode<synchronous>, transform_indices = @transform_0, window_bounds = array<i64: 1, 8, 32>}, {pipeline_mode = #tpu.pipeline_mode<synchronous>, transform_indices = @transform_1, window_bounds = array<i64: 1, 8>}, {pipeline_mode = #tpu.pipeline_mode<synchronous>, transform_indices = @transform_2, window_bounds = array<i64: 32, 96>}, {pipeline_mode = #tpu.pipeline_mode<synchronous>, transform_indices = @transform_3, window_bounds = array<i64: 1, 96>}, {pipeline_mode = #tpu.pipeline_mode<synchronous>, transform_indices = @transform_4, window_bounds = array<i64: 32, 32>}, {pipeline_mode = #tpu.pipeline_mode<synchronous>, transform_indices = @transform_5, window_bounds = array<i64: 1, 32>}, {pipeline_mode = #tpu.pipeline_mode<synchronous>, transform_indices = @transform_6, window_bounds = array<i64: 1, 32>}, {pipeline_mode = #tpu.pipeline_mode<synchronous>, transform_indices = @transform_7, window_bounds = array<i64: 1, 32>}, {pipeline_mode = #tpu.pipeline_mode<synchronous>, transform_indices = @transform_8, window_bounds = array<i64: 32, 512>}, {pipeline_mode = #tpu.pipeline_mode<synchronous>, transform_indices = @transform_9, window_bounds = array<i64: 1, 512>}, {pipeline_mode = #tpu.pipeline_mode<synchronous>, transform_indices = @transform_10, window_bounds = array<i64: 512, 32>}, {pipeline_mode = #tpu.pipeline_mode<synchronous>, transform_indices = @transform_11, window_bounds = array<i64: 1, 32>}, {pipeline_mode = #tpu.pipeline_mode<synchronous>, transform_indices = @transform_12, window_bounds = array<i64: 1, 32>}, {pipeline_mode = #tpu.pipeline_mode<synchronous>, transform_indices = @transform_13, window_bounds = array<i64: 1, 32>}, {pipeline_mode = #tpu.pipeline_mode<synchronous>, transform_indices = @transform_14, window_bounds = array<i64: 32, 96>}, {pipeline_mode = #tpu.pipeline_mode<synchronous>, transform_indices = @transform_15, window_bounds = array<i64: 1, 96>}, {pipeline_mode = #tpu.pipeline_mode<synchronous>, transform_indices = @transform_16, window_bounds = array<i64: 32, 32>}, {pipeline_mode = #tpu.pipeline_mode<synchronous>, transform_indices = @transform_17, window_bounds = array<i64: 1, 32>}, {pipeline_mode = #tpu.pipeline_mode<synchronous>, transform_indices = @transform_18, window_bounds = array<i64: 1, 32>}, {pipeline_mode = #tpu.pipeline_mode<synchronous>, transform_indices = @transform_19, window_bounds = array<i64: 1, 32>}, {pipeline_mode = #tpu.pipeline_mode<synchronous>, transform_indices = @transform_20, window_bounds = array<i64: 32, 512>}, {pipeline_mode = #tpu.pipeline_mode<synchronous>, transform_indices = @transform_21, window_bounds = array<i64: 1, 512>}, {pipeline_mode = #tpu.pipeline_mode<synchronous>, transform_indices = @transform_22, window_bounds = array<i64: 512, 32>}, {pipeline_mode = #tpu.pipeline_mode<synchronous>, transform_indices = @transform_23, window_bounds = array<i64: 1, 32>}, {pipeline_mode = #tpu.pipeline_mode<synchronous>, transform_indices = @transform_24, window_bounds = array<i64: 1, 32>}, {pipeline_mode = #tpu.pipeline_mode<synchronous>, transform_indices = @transform_25, window_bounds = array<i64: 1, 32>}, {pipeline_mode = #tpu.pipeline_mode<synchronous>, transform_indices = @transform_26, window_bounds = array<i64: 1, 8, 32>}]} {
    %c0 = arith.constant 0 : index
    %c0_0 = arith.constant 0 : index
    %c0_1 = arith.constant 0 : index
    %0 = vector.load %arg1[%c0, %c0_0, %c0_1] : memref<1x8x32xf32, #tpu.memory_space<vmem>>, vector<1x8x32xf32>
    %1 = vector.shape_cast %0 : vector<1x8x32xf32> to vector<8x32xf32>
    %c0_2 = arith.constant 0 : index
    %c0_3 = arith.constant 0 : index
    %2 = vector.load %arg2[%c0_2, %c0_3] : memref<1x8xi32, #tpu.memory_space<vmem>>, vector<1x8xi32>
    %c0_4 = arith.constant 0 : index
    %c0_5 = arith.constant 0 : index
    %3 = vector.load %arg3[%c0_4, %c0_5] : memref<32x96xf32, #tpu.memory_space<vmem>>, vector<32x96xf32>
    %cst = arith.constant dense<0.000000e+00> : vector<8x96xf32>
    %4 = tpu.matmul %1, %3, %cst {dimension_numbers = #tpu.dot_dimension_numbers<[1], [0], [0], [1], [0, 0, 1, 1], [], []>} : vector<8x32xf32>, vector<32x96xf32>, vector<8x96xf32> -> vector<8x96xf32>
    %c0_6 = arith.constant 0 : index
    %c0_7 = arith.constant 0 : index
    %5 = vector.load %arg4[%c0_6, %c0_7] : memref<1x96xf32, #tpu.memory_space<vmem>>, vector<1x96xf32>
    %6 = vector.broadcast %5 : vector<1x96xf32> to vector<8x96xf32>
    %7 = arith.addf %4, %6 : vector<8x96xf32>
    %8 = vector.extract_strided_slice %7 {offsets = [0, 0], sizes = [8, 32], strides = [1, 1]} : vector<8x96xf32> to vector<8x32xf32>
    %9 = vector.extract_strided_slice %7 {offsets = [0, 32], sizes = [8, 32], strides = [1, 1]} : vector<8x96xf32> to vector<8x32xf32>
    %10 = vector.extract_strided_slice %7 {offsets = [0, 64], sizes = [8, 32], strides = [1, 1]} : vector<8x96xf32> to vector<8x32xf32>
    %c0_8 = arith.constant 0 : index
    %c0_9 = arith.constant 0 : index
    %11 = vector.load %arg5[%c0_8, %c0_9] : memref<32x32xf32, #tpu.memory_space<vmem>>, vector<32x32xf32>
    %12 = vector.extract_strided_slice %8 {offsets = [0, 0], sizes = [8, 16], strides = [1, 1]} : vector<8x32xf32> to vector<8x16xf32>
    %13 = vector.extract_strided_slice %9 {offsets = [0, 0], sizes = [8, 16], strides = [1, 1]} : vector<8x32xf32> to vector<8x16xf32>
    %14 = vector.extract_strided_slice %10 {offsets = [0, 0], sizes = [8, 16], strides = [1, 1]} : vector<8x32xf32> to vector<8x16xf32>
    %cst_10 = arith.constant dense<0.000000e+00> : vector<8x8xf32>
    %15 = tpu.matmul %12, %13, %cst_10 {dimension_numbers = #tpu.dot_dimension_numbers<[1], [1], [0], [0], [0, 0, 1, 0], [], []>} : vector<8x16xf32>, vector<8x16xf32>, vector<8x8xf32> -> vector<8x8xf32>
    %cst_11 = arith.constant 2.500000e-01 : f32
    %16 = vector.broadcast %cst_11 : f32 to vector<8x8xf32>
    %17 = arith.mulf %15, %16 : vector<8x8xf32>
    %c0_i32 = arith.constant 0 : i32
    %18 = vector.broadcast %c0_i32 : i32 to vector<1x8xi32>
    %19 = arith.cmpi eq, %2, %18 : vector<1x8xi32>
    %cst_12 = arith.constant -1.000000e+09 : f32
    %20 = vector.shape_cast %19 : vector<1x8xi1> to vector<1x8xi1>
    %21 = vector.broadcast %20 : vector<1x8xi1> to vector<8x8xi1>
    %22 = vector.broadcast %cst_12 : f32 to vector<8x8xf32>
    %23 = arith.select %21, %22, %17 : vector<8x8xi1>, vector<8x8xf32>
    %cst_13 = arith.constant dense<0xFF800000> : vector<8xf32>
    %24 = vector.multi_reduction <maximumf>, %23, %cst_13 [1] : vector<8x8xf32> to vector<8xf32>
    %25 = vector.shape_cast %24 : vector<8xf32> to vector<8x1xf32>
    %26 = vector.broadcast %25 : vector<8x1xf32> to vector<8x8xf32>
    %27 = arith.subf %23, %26 : vector<8x8xf32>
    %28 = math.exp %27 : vector<8x8xf32>
    %cst_14 = arith.constant dense<0.000000e+00> : vector<8xf32>
    %29 = vector.multi_reduction <add>, %28, %cst_14 [1] : vector<8x8xf32> to vector<8xf32>
    %30 = vector.shape_cast %29 : vector<8xf32> to vector<8x1xf32>
    %31 = tpu.reciprocal %30 {approx = true} : vector<8x1xf32> -> vector<8x1xf32>
    %32 = vector.broadcast %31 : vector<8x1xf32> to vector<8x8xf32>
    %33 = arith.mulf %28, %32 : vector<8x8xf32>
    %cst_15 = arith.constant dense<0.000000e+00> : vector<8x16xf32>
    %34 = tpu.matmul %33, %14, %cst_15 {dimension_numbers = #tpu.dot_dimension_numbers<[1], [0], [0], [1], [0, 0, 1, 1], [], []>} : vector<8x8xf32>, vector<8x16xf32>, vector<8x16xf32> -> vector<8x16xf32>
    %35 = vector.extract_strided_slice %11 {offsets = [0, 0], sizes = [16, 32], strides = [1, 1]} : vector<32x32xf32> to vector<16x32xf32>
    %cst_16 = arith.constant dense<0.000000e+00> : vector<8x32xf32>
    %36 = tpu.matmul %34, %35, %cst_16 {dimension_numbers = #tpu.dot_dimension_numbers<[1], [0], [0], [1], [0, 0, 1, 1], [], []>} : vector<8x16xf32>, vector<16x32xf32>, vector<8x32xf32> -> vector<8x32xf32>
    %37 = vector.extract_strided_slice %8 {offsets = [0, 16], sizes = [8, 16], strides = [1, 1]} : vector<8x32xf32> to vector<8x16xf32>
    %38 = vector.extract_strided_slice %9 {offsets = [0, 16], sizes = [8, 16], strides = [1, 1]} : vector<8x32xf32> to vector<8x16xf32>
    %39 = vector.extract_strided_slice %10 {offsets = [0, 16], sizes = [8, 16], strides = [1, 1]} : vector<8x32xf32> to vector<8x16xf32>
    %cst_17 = arith.constant dense<0.000000e+00> : vector<8x8xf32>
    %40 = tpu.matmul %37, %38, %cst_17 {dimension_numbers = #tpu.dot_dimension_numbers<[1], [1], [0], [0], [0, 0, 1, 0], [], []>} : vector<8x16xf32>, vector<8x16xf32>, vector<8x8xf32> -> vector<8x8xf32>
    %cst_18 = arith.constant 2.500000e-01 : f32
    %41 = vector.broadcast %cst_18 : f32 to vector<8x8xf32>
    %42 = arith.mulf %40, %41 : vector<8x8xf32>
    %c0_i32_19 = arith.constant 0 : i32
    %43 = vector.broadcast %c0_i32_19 : i32 to vector<1x8xi32>
    %44 = arith.cmpi eq, %2, %43 : vector<1x8xi32>
    %cst_20 = arith.constant -1.000000e+09 : f32
    %45 = vector.shape_cast %44 : vector<1x8xi1> to vector<1x8xi1>
    %46 = vector.broadcast %45 : vector<1x8xi1> to vector<8x8xi1>
    %47 = vector.broadcast %cst_20 : f32 to vector<8x8xf32>
    %48 = arith.select %46, %47, %42 : vector<8x8xi1>, vector<8x8xf32>
    %cst_21 = arith.constant dense<0xFF800000> : vector<8xf32>
    %49 = vector.multi_reduction <maximumf>, %48, %cst_21 [1] : vector<8x8xf32> to vector<8xf32>
    %50 = vector.shape_cast %49 : vector<8xf32> to vector<8x1xf32>
    %51 = vector.broadcast %50 : vector<8x1xf32> to vector<8x8xf32>
    %52 = arith.subf %48, %51 : vector<8x8xf32>
    %53 = math.exp %52 : vector<8x8xf32>
    %cst_22 = arith.constant dense<0.000000e+00> : vector<8xf32>
    %54 = vector.multi_reduction <add>, %53, %cst_22 [1] : vector<8x8xf32> to vector<8xf32>
    %55 = vector.shape_cast %54 : vector<8xf32> to vector<8x1xf32>
    %56 = tpu.reciprocal %55 {approx = true} : vector<8x1xf32> -> vector<8x1xf32>
    %57 = vector.broadcast %56 : vector<8x1xf32> to vector<8x8xf32>
    %58 = arith.mulf %53, %57 : vector<8x8xf32>
    %cst_23 = arith.constant dense<0.000000e+00> : vector<8x16xf32>
    %59 = tpu.matmul %58, %39, %cst_23 {dimension_numbers = #tpu.dot_dimension_numbers<[1], [0], [0], [1], [0, 0, 1, 1], [], []>} : vector<8x8xf32>, vector<8x16xf32>, vector<8x16xf32> -> vector<8x16xf32>
    %60 = vector.extract_strided_slice %11 {offsets = [16, 0], sizes = [16, 32], strides = [1, 1]} : vector<32x32xf32> to vector<16x32xf32>
    %cst_24 = arith.constant dense<0.000000e+00> : vector<8x32xf32>
    %61 = tpu.matmul %59, %60, %cst_24 {dimension_numbers = #tpu.dot_dimension_numbers<[1], [0], [0], [1], [0, 0, 1, 1], [], []>} : vector<8x16xf32>, vector<16x32xf32>, vector<8x32xf32> -> vector<8x32xf32>
    %62 = arith.addf %36, %61 : vector<8x32xf32>
    %c0_25 = arith.constant 0 : index
    %c0_26 = arith.constant 0 : index
    %63 = vector.load %arg6[%c0_25, %c0_26] : memref<1x32xf32, #tpu.memory_space<vmem>>, vector<1x32xf32>
    %64 = vector.broadcast %63 : vector<1x32xf32> to vector<8x32xf32>
    %65 = arith.addf %62, %64 : vector<8x32xf32>
    %66 = arith.addf %1, %65 : vector<8x32xf32>
    %c0_27 = arith.constant 0 : index
    %c0_28 = arith.constant 0 : index
    %67 = vector.load %arg7[%c0_27, %c0_28] : memref<1x32xf32, #tpu.memory_space<vmem>>, vector<1x32xf32>
    %c0_29 = arith.constant 0 : index
    %c0_30 = arith.constant 0 : index
    %68 = vector.load %arg8[%c0_29, %c0_30] : memref<1x32xf32, #tpu.memory_space<vmem>>, vector<1x32xf32>
    %cst_31 = arith.constant dense<0.000000e+00> : vector<8xf32>
    %69 = vector.multi_reduction <add>, %66, %cst_31 [1] : vector<8x32xf32> to vector<8xf32>
    %70 = vector.shape_cast %69 : vector<8xf32> to vector<8x1xf32>
    %cst_32 = arith.constant 3.200000e+01 : f32
    %71 = vector.broadcast %cst_32 : f32 to vector<8x1xf32>
    %72 = arith.divf %70, %71 : vector<8x1xf32>
    %73 = vector.broadcast %72 : vector<8x1xf32> to vector<8x32xf32>
    %74 = arith.subf %66, %73 : vector<8x32xf32>
    %75 = vector.broadcast %72 : vector<8x1xf32> to vector<8x32xf32>
    %76 = arith.subf %66, %75 : vector<8x32xf32>
    %77 = arith.mulf %74, %76 : vector<8x32xf32>
    %cst_33 = arith.constant dense<0.000000e+00> : vector<8xf32>
    %78 = vector.multi_reduction <add>, %77, %cst_33 [1] : vector<8x32xf32> to vector<8xf32>
    %79 = vector.shape_cast %78 : vector<8xf32> to vector<8x1xf32>
    %cst_34 = arith.constant 3.200000e+01 : f32
    %80 = vector.broadcast %cst_34 : f32 to vector<8x1xf32>
    %81 = arith.divf %79, %80 : vector<8x1xf32>
    %82 = vector.broadcast %72 : vector<8x1xf32> to vector<8x32xf32>
    %83 = arith.subf %66, %82 : vector<8x32xf32>
    %cst_35 = arith.constant 9.99999974E-6 : f32
    %84 = vector.broadcast %cst_35 : f32 to vector<8x1xf32>
    %85 = arith.addf %81, %84 : vector<8x1xf32>
    %86 = math.rsqrt %85 : vector<8x1xf32>
    %87 = vector.broadcast %86 : vector<8x1xf32> to vector<8x32xf32>
    %88 = arith.mulf %83, %87 : vector<8x32xf32>
    %89 = vector.broadcast %67 : vector<1x32xf32> to vector<8x32xf32>
    %90 = arith.mulf %88, %89 : vector<8x32xf32>
    %91 = vector.broadcast %68 : vector<1x32xf32> to vector<8x32xf32>
    %92 = arith.addf %90, %91 : vector<8x32xf32>
    %c0_36 = arith.constant 0 : index
    %c0_37 = arith.constant 0 : index
    %93 = vector.load %arg9[%c0_36, %c0_37] : memref<32x512xf32, #tpu.memory_space<vmem>>, vector<32x512xf32>
    %cst_38 = arith.constant dense<0.000000e+00> : vector<8x512xf32>
    %94 = tpu.matmul %92, %93, %cst_38 {dimension_numbers = #tpu.dot_dimension_numbers<[1], [0], [0], [1], [0, 0, 1, 1], [], []>} : vector<8x32xf32>, vector<32x512xf32>, vector<8x512xf32> -> vector<8x512xf32>
    %c0_39 = arith.constant 0 : index
    %c0_40 = arith.constant 0 : index
    %95 = vector.load %arg10[%c0_39, %c0_40] : memref<1x512xf32, #tpu.memory_space<vmem>>, vector<1x512xf32>
    %96 = vector.broadcast %95 : vector<1x512xf32> to vector<8x512xf32>
    %97 = arith.addf %94, %96 : vector<8x512xf32>
    %cst_41 = arith.constant 5.000000e-01 : f32
    %98 = vector.broadcast %cst_41 : f32 to vector<8x512xf32>
    %99 = arith.mulf %98, %97 : vector<8x512xf32>
    %cst_42 = arith.constant 0.707106769 : f32
    %100 = vector.broadcast %cst_42 : f32 to vector<8x512xf32>
    %101 = arith.mulf %97, %100 : vector<8x512xf32>
    %102 = math.erf %101 : vector<8x512xf32>
    %cst_43 = arith.constant 1.000000e+00 : f32
    %103 = vector.broadcast %cst_43 : f32 to vector<8x512xf32>
    %104 = arith.addf %103, %102 : vector<8x512xf32>
    %105 = arith.mulf %99, %104 : vector<8x512xf32>
    %c0_44 = arith.constant 0 : index
    %c0_45 = arith.constant 0 : index
    %106 = vector.load %arg11[%c0_44, %c0_45] : memref<512x32xf32, #tpu.memory_space<vmem>>, vector<512x32xf32>
    %cst_46 = arith.constant dense<0.000000e+00> : vector<8x32xf32>
    %107 = tpu.matmul %105, %106, %cst_46 {dimension_numbers = #tpu.dot_dimension_numbers<[1], [0], [0], [1], [0, 0, 1, 1], [], []>} : vector<8x512xf32>, vector<512x32xf32>, vector<8x32xf32> -> vector<8x32xf32>
    %c0_47 = arith.constant 0 : index
    %c0_48 = arith.constant 0 : index
    %108 = vector.load %arg12[%c0_47, %c0_48] : memref<1x32xf32, #tpu.memory_space<vmem>>, vector<1x32xf32>
    %109 = vector.broadcast %108 : vector<1x32xf32> to vector<8x32xf32>
    %110 = arith.addf %107, %109 : vector<8x32xf32>
    %111 = arith.addf %92, %110 : vector<8x32xf32>
    %c0_49 = arith.constant 0 : index
    %c0_50 = arith.constant 0 : index
    %112 = vector.load %arg13[%c0_49, %c0_50] : memref<1x32xf32, #tpu.memory_space<vmem>>, vector<1x32xf32>
    %c0_51 = arith.constant 0 : index
    %c0_52 = arith.constant 0 : index
    %113 = vector.load %arg14[%c0_51, %c0_52] : memref<1x32xf32, #tpu.memory_space<vmem>>, vector<1x32xf32>
    %cst_53 = arith.constant dense<0.000000e+00> : vector<8xf32>
    %114 = vector.multi_reduction <add>, %111, %cst_53 [1] : vector<8x32xf32> to vector<8xf32>
    %115 = vector.shape_cast %114 : vector<8xf32> to vector<8x1xf32>
    %cst_54 = arith.constant 3.200000e+01 : f32
    %116 = vector.broadcast %cst_54 : f32 to vector<8x1xf32>
    %117 = arith.divf %115, %116 : vector<8x1xf32>
    %118 = vector.broadcast %117 : vector<8x1xf32> to vector<8x32xf32>
    %119 = arith.subf %111, %118 : vector<8x32xf32>
    %120 = vector.broadcast %117 : vector<8x1xf32> to vector<8x32xf32>
    %121 = arith.subf %111, %120 : vector<8x32xf32>
    %122 = arith.mulf %119, %121 : vector<8x32xf32>
    %cst_55 = arith.constant dense<0.000000e+00> : vector<8xf32>
    %123 = vector.multi_reduction <add>, %122, %cst_55 [1] : vector<8x32xf32> to vector<8xf32>
    %124 = vector.shape_cast %123 : vector<8xf32> to vector<8x1xf32>
    %cst_56 = arith.constant 3.200000e+01 : f32
    %125 = vector.broadcast %cst_56 : f32 to vector<8x1xf32>
    %126 = arith.divf %124, %125 : vector<8x1xf32>
    %127 = vector.broadcast %117 : vector<8x1xf32> to vector<8x32xf32>
    %128 = arith.subf %111, %127 : vector<8x32xf32>
    %cst_57 = arith.constant 9.99999974E-6 : f32
    %129 = vector.broadcast %cst_57 : f32 to vector<8x1xf32>
    %130 = arith.addf %126, %129 : vector<8x1xf32>
    %131 = math.rsqrt %130 : vector<8x1xf32>
    %132 = vector.broadcast %131 : vector<8x1xf32> to vector<8x32xf32>
    %133 = arith.mulf %128, %132 : vector<8x32xf32>
    %134 = vector.broadcast %112 : vector<1x32xf32> to vector<8x32xf32>
    %135 = arith.mulf %133, %134 : vector<8x32xf32>
    %136 = vector.broadcast %113 : vector<1x32xf32> to vector<8x32xf32>
    %137 = arith.addf %135, %136 : vector<8x32xf32>
    %c0_58 = arith.constant 0 : index
    %c0_59 = arith.constant 0 : index
    %138 = vector.load %arg15[%c0_58, %c0_59] : memref<32x96xf32, #tpu.memory_space<vmem>>, vector<32x96xf32>
    %cst_60 = arith.constant dense<0.000000e+00> : vector<8x96xf32>
    %139 = tpu.matmul %137, %138, %cst_60 {dimension_numbers = #tpu.dot_dimension_numbers<[1], [0], [0], [1], [0, 0, 1, 1], [], []>} : vector<8x32xf32>, vector<32x96xf32>, vector<8x96xf32> -> vector<8x96xf32>
    %c0_61 = arith.constant 0 : index
    %c0_62 = arith.constant 0 : index
    %140 = vector.load %arg16[%c0_61, %c0_62] : memref<1x96xf32, #tpu.memory_space<vmem>>, vector<1x96xf32>
    %141 = vector.broadcast %140 : vector<1x96xf32> to vector<8x96xf32>
    %142 = arith.addf %139, %141 : vector<8x96xf32>
    %143 = vector.extract_strided_slice %142 {offsets = [0, 0], sizes = [8, 32], strides = [1, 1]} : vector<8x96xf32> to vector<8x32xf32>
    %144 = vector.extract_strided_slice %142 {offsets = [0, 32], sizes = [8, 32], strides = [1, 1]} : vector<8x96xf32> to vector<8x32xf32>
    %145 = vector.extract_strided_slice %142 {offsets = [0, 64], sizes = [8, 32], strides = [1, 1]} : vector<8x96xf32> to vector<8x32xf32>
    %c0_63 = arith.constant 0 : index
    %c0_64 = arith.constant 0 : index
    %146 = vector.load %arg17[%c0_63, %c0_64] : memref<32x32xf32, #tpu.memory_space<vmem>>, vector<32x32xf32>
    %147 = vector.extract_strided_slice %143 {offsets = [0, 0], sizes = [8, 16], strides = [1, 1]} : vector<8x32xf32> to vector<8x16xf32>
    %148 = vector.extract_strided_slice %144 {offsets = [0, 0], sizes = [8, 16], strides = [1, 1]} : vector<8x32xf32> to vector<8x16xf32>
    %149 = vector.extract_strided_slice %145 {offsets = [0, 0], sizes = [8, 16], strides = [1, 1]} : vector<8x32xf32> to vector<8x16xf32>
    %cst_65 = arith.constant dense<0.000000e+00> : vector<8x8xf32>
    %150 = tpu.matmul %147, %148, %cst_65 {dimension_numbers = #tpu.dot_dimension_numbers<[1], [1], [0], [0], [0, 0, 1, 0], [], []>} : vector<8x16xf32>, vector<8x16xf32>, vector<8x8xf32> -> vector<8x8xf32>
    %cst_66 = arith.constant 2.500000e-01 : f32
    %151 = vector.broadcast %cst_66 : f32 to vector<8x8xf32>
    %152 = arith.mulf %150, %151 : vector<8x8xf32>
    %c0_i32_67 = arith.constant 0 : i32
    %153 = vector.broadcast %c0_i32_67 : i32 to vector<1x8xi32>
    %154 = arith.cmpi eq, %2, %153 : vector<1x8xi32>
    %cst_68 = arith.constant -1.000000e+09 : f32
    %155 = vector.shape_cast %154 : vector<1x8xi1> to vector<1x8xi1>
    %156 = vector.broadcast %155 : vector<1x8xi1> to vector<8x8xi1>
    %157 = vector.broadcast %cst_68 : f32 to vector<8x8xf32>
    %158 = arith.select %156, %157, %152 : vector<8x8xi1>, vector<8x8xf32>
    %cst_69 = arith.constant dense<0xFF800000> : vector<8xf32>
    %159 = vector.multi_reduction <maximumf>, %158, %cst_69 [1] : vector<8x8xf32> to vector<8xf32>
    %160 = vector.shape_cast %159 : vector<8xf32> to vector<8x1xf32>
    %161 = vector.broadcast %160 : vector<8x1xf32> to vector<8x8xf32>
    %162 = arith.subf %158, %161 : vector<8x8xf32>
    %163 = math.exp %162 : vector<8x8xf32>
    %cst_70 = arith.constant dense<0.000000e+00> : vector<8xf32>
    %164 = vector.multi_reduction <add>, %163, %cst_70 [1] : vector<8x8xf32> to vector<8xf32>
    %165 = vector.shape_cast %164 : vector<8xf32> to vector<8x1xf32>
    %166 = tpu.reciprocal %165 {approx = true} : vector<8x1xf32> -> vector<8x1xf32>
    %167 = vector.broadcast %166 : vector<8x1xf32> to vector<8x8xf32>
    %168 = arith.mulf %163, %167 : vector<8x8xf32>
    %cst_71 = arith.constant dense<0.000000e+00> : vector<8x16xf32>
    %169 = tpu.matmul %168, %149, %cst_71 {dimension_numbers = #tpu.dot_dimension_numbers<[1], [0], [0], [1], [0, 0, 1, 1], [], []>} : vector<8x8xf32>, vector<8x16xf32>, vector<8x16xf32> -> vector<8x16xf32>
    %170 = vector.extract_strided_slice %146 {offsets = [0, 0], sizes = [16, 32], strides = [1, 1]} : vector<32x32xf32> to vector<16x32xf32>
    %cst_72 = arith.constant dense<0.000000e+00> : vector<8x32xf32>
    %171 = tpu.matmul %169, %170, %cst_72 {dimension_numbers = #tpu.dot_dimension_numbers<[1], [0], [0], [1], [0, 0, 1, 1], [], []>} : vector<8x16xf32>, vector<16x32xf32>, vector<8x32xf32> -> vector<8x32xf32>
    %172 = vector.extract_strided_slice %143 {offsets = [0, 16], sizes = [8, 16], strides = [1, 1]} : vector<8x32xf32> to vector<8x16xf32>
    %173 = vector.extract_strided_slice %144 {offsets = [0, 16], sizes = [8, 16], strides = [1, 1]} : vector<8x32xf32> to vector<8x16xf32>
    %174 = vector.extract_strided_slice %145 {offsets = [0, 16], sizes = [8, 16], strides = [1, 1]} : vector<8x32xf32> to vector<8x16xf32>
    %cst_73 = arith.constant dense<0.000000e+00> : vector<8x8xf32>
    %175 = tpu.matmul %172, %173, %cst_73 {dimension_numbers = #tpu.dot_dimension_numbers<[1], [1], [0], [0], [0, 0, 1, 0], [], []>} : vector<8x16xf32>, vector<8x16xf32>, vector<8x8xf32> -> vector<8x8xf32>
    %cst_74 = arith.constant 2.500000e-01 : f32
    %176 = vector.broadcast %cst_74 : f32 to vector<8x8xf32>
    %177 = arith.mulf %175, %176 : vector<8x8xf32>
    %c0_i32_75 = arith.constant 0 : i32
    %178 = vector.broadcast %c0_i32_75 : i32 to vector<1x8xi32>
    %179 = arith.cmpi eq, %2, %178 : vector<1x8xi32>
    %cst_76 = arith.constant -1.000000e+09 : f32
    %180 = vector.shape_cast %179 : vector<1x8xi1> to vector<1x8xi1>
    %181 = vector.broadcast %180 : vector<1x8xi1> to vector<8x8xi1>
    %182 = vector.broadcast %cst_76 : f32 to vector<8x8xf32>
    %183 = arith.select %181, %182, %177 : vector<8x8xi1>, vector<8x8xf32>
    %cst_77 = arith.constant dense<0xFF800000> : vector<8xf32>
    %184 = vector.multi_reduction <maximumf>, %183, %cst_77 [1] : vector<8x8xf32> to vector<8xf32>
    %185 = vector.shape_cast %184 : vector<8xf32> to vector<8x1xf32>
    %186 = vector.broadcast %185 : vector<8x1xf32> to vector<8x8xf32>
    %187 = arith.subf %183, %186 : vector<8x8xf32>
    %188 = math.exp %187 : vector<8x8xf32>
    %cst_78 = arith.constant dense<0.000000e+00> : vector<8xf32>
    %189 = vector.multi_reduction <add>, %188, %cst_78 [1] : vector<8x8xf32> to vector<8xf32>
    %190 = vector.shape_cast %189 : vector<8xf32> to vector<8x1xf32>
    %191 = tpu.reciprocal %190 {approx = true} : vector<8x1xf32> -> vector<8x1xf32>
    %192 = vector.broadcast %191 : vector<8x1xf32> to vector<8x8xf32>
    %193 = arith.mulf %188, %192 : vector<8x8xf32>
    %cst_79 = arith.constant dense<0.000000e+00> : vector<8x16xf32>
    %194 = tpu.matmul %193, %174, %cst_79 {dimension_numbers = #tpu.dot_dimension_numbers<[1], [0], [0], [1], [0, 0, 1, 1], [], []>} : vector<8x8xf32>, vector<8x16xf32>, vector<8x16xf32> -> vector<8x16xf32>
    %195 = vector.extract_strided_slice %146 {offsets = [16, 0], sizes = [16, 32], strides = [1, 1]} : vector<32x32xf32> to vector<16x32xf32>
    %cst_80 = arith.constant dense<0.000000e+00> : vector<8x32xf32>
    %196 = tpu.matmul %194, %195, %cst_80 {dimension_numbers = #tpu.dot_dimension_numbers<[1], [0], [0], [1], [0, 0, 1, 1], [], []>} : vector<8x16xf32>, vector<16x32xf32>, vector<8x32xf32> -> vector<8x32xf32>
    %197 = arith.addf %171, %196 : vector<8x32xf32>
    %c0_81 = arith.constant 0 : index
    %c0_82 = arith.constant 0 : index
    %198 = vector.load %arg18[%c0_81, %c0_82] : memref<1x32xf32, #tpu.memory_space<vmem>>, vector<1x32xf32>
    %199 = vector.broadcast %198 : vector<1x32xf32> to vector<8x32xf32>
    %200 = arith.addf %197, %199 : vector<8x32xf32>
    %201 = arith.addf %137, %200 : vector<8x32xf32>
    %c0_83 = arith.constant 0 : index
    %c0_84 = arith.constant 0 : index
    %202 = vector.load %arg19[%c0_83, %c0_84] : memref<1x32xf32, #tpu.memory_space<vmem>>, vector<1x32xf32>
    %c0_85 = arith.constant 0 : index
    %c0_86 = arith.constant 0 : index
    %203 = vector.load %arg20[%c0_85, %c0_86] : memref<1x32xf32, #tpu.memory_space<vmem>>, vector<1x32xf32>
    %cst_87 = arith.constant dense<0.000000e+00> : vector<8xf32>
    %204 = vector.multi_reduction <add>, %201, %cst_87 [1] : vector<8x32xf32> to vector<8xf32>
    %205 = vector.shape_cast %204 : vector<8xf32> to vector<8x1xf32>
    %cst_88 = arith.constant 3.200000e+01 : f32
    %206 = vector.broadcast %cst_88 : f32 to vector<8x1xf32>
    %207 = arith.divf %205, %206 : vector<8x1xf32>
    %208 = vector.broadcast %207 : vector<8x1xf32> to vector<8x32xf32>
    %209 = arith.subf %201, %208 : vector<8x32xf32>
    %210 = vector.broadcast %207 : vector<8x1xf32> to vector<8x32xf32>
    %211 = arith.subf %201, %210 : vector<8x32xf32>
    %212 = arith.mulf %209, %211 : vector<8x32xf32>
    %cst_89 = arith.constant dense<0.000000e+00> : vector<8xf32>
    %213 = vector.multi_reduction <add>, %212, %cst_89 [1] : vector<8x32xf32> to vector<8xf32>
    %214 = vector.shape_cast %213 : vector<8xf32> to vector<8x1xf32>
    %cst_90 = arith.constant 3.200000e+01 : f32
    %215 = vector.broadcast %cst_90 : f32 to vector<8x1xf32>
    %216 = arith.divf %214, %215 : vector<8x1xf32>
    %217 = vector.broadcast %207 : vector<8x1xf32> to vector<8x32xf32>
    %218 = arith.subf %201, %217 : vector<8x32xf32>
    %cst_91 = arith.constant 9.99999974E-6 : f32
    %219 = vector.broadcast %cst_91 : f32 to vector<8x1xf32>
    %220 = arith.addf %216, %219 : vector<8x1xf32>
    %221 = math.rsqrt %220 : vector<8x1xf32>
    %222 = vector.broadcast %221 : vector<8x1xf32> to vector<8x32xf32>
    %223 = arith.mulf %218, %222 : vector<8x32xf32>
    %224 = vector.broadcast %202 : vector<1x32xf32> to vector<8x32xf32>
    %225 = arith.mulf %223, %224 : vector<8x32xf32>
    %226 = vector.broadcast %203 : vector<1x32xf32> to vector<8x32xf32>
    %227 = arith.addf %225, %226 : vector<8x32xf32>
    %c0_92 = arith.constant 0 : index
    %c0_93 = arith.constant 0 : index
    %228 = vector.load %arg21[%c0_92, %c0_93] : memref<32x512xf32, #tpu.memory_space<vmem>>, vector<32x512xf32>
    %cst_94 = arith.constant dense<0.000000e+00> : vector<8x512xf32>
    %229 = tpu.matmul %227, %228, %cst_94 {dimension_numbers = #tpu.dot_dimension_numbers<[1], [0], [0], [1], [0, 0, 1, 1], [], []>} : vector<8x32xf32>, vector<32x512xf32>, vector<8x512xf32> -> vector<8x512xf32>
    %c0_95 = arith.constant 0 : index
    %c0_96 = arith.constant 0 : index
    %230 = vector.load %arg22[%c0_95, %c0_96] : memref<1x512xf32, #tpu.memory_space<vmem>>, vector<1x512xf32>
    %231 = vector.broadcast %230 : vector<1x512xf32> to vector<8x512xf32>
    %232 = arith.addf %229, %231 : vector<8x512xf32>
    %cst_97 = arith.constant 5.000000e-01 : f32
    %233 = vector.broadcast %cst_97 : f32 to vector<8x512xf32>
    %234 = arith.mulf %233, %232 : vector<8x512xf32>
    %cst_98 = arith.constant 0.707106769 : f32
    %235 = vector.broadcast %cst_98 : f32 to vector<8x512xf32>
    %236 = arith.mulf %232, %235 : vector<8x512xf32>
    %237 = math.erf %236 : vector<8x512xf32>
    %cst_99 = arith.constant 1.000000e+00 : f32
    %238 = vector.broadcast %cst_99 : f32 to vector<8x512xf32>
    %239 = arith.addf %238, %237 : vector<8x512xf32>
    %240 = arith.mulf %234, %239 : vector<8x512xf32>
    %c0_100 = arith.constant 0 : index
    %c0_101 = arith.constant 0 : index
    %241 = vector.load %arg23[%c0_100, %c0_101] : memref<512x32xf32, #tpu.memory_space<vmem>>, vector<512x32xf32>
    %cst_102 = arith.constant dense<0.000000e+00> : vector<8x32xf32>
    %242 = tpu.matmul %240, %241, %cst_102 {dimension_numbers = #tpu.dot_dimension_numbers<[1], [0], [0], [1], [0, 0, 1, 1], [], []>} : vector<8x512xf32>, vector<512x32xf32>, vector<8x32xf32> -> vector<8x32xf32>
    %c0_103 = arith.constant 0 : index
    %c0_104 = arith.constant 0 : index
    %243 = vector.load %arg24[%c0_103, %c0_104] : memref<1x32xf32, #tpu.memory_space<vmem>>, vector<1x32xf32>
    %244 = vector.broadcast %243 : vector<1x32xf32> to vector<8x32xf32>
    %245 = arith.addf %242, %244 : vector<8x32xf32>
    %246 = arith.addf %227, %245 : vector<8x32xf32>
    %c0_105 = arith.constant 0 : index
    %c0_106 = arith.constant 0 : index
    %247 = vector.load %arg25[%c0_105, %c0_106] : memref<1x32xf32, #tpu.memory_space<vmem>>, vector<1x32xf32>
    %c0_107 = arith.constant 0 : index
    %c0_108 = arith.constant 0 : index
    %248 = vector.load %arg26[%c0_107, %c0_108] : memref<1x32xf32, #tpu.memory_space<vmem>>, vector<1x32xf32>
    %cst_109 = arith.constant dense<0.000000e+00> : vector<8xf32>
    %249 = vector.multi_reduction <add>, %246, %cst_109 [1] : vector<8x32xf32> to vector<8xf32>
    %250 = vector.shape_cast %249 : vector<8xf32> to vector<8x1xf32>
    %cst_110 = arith.constant 3.200000e+01 : f32
    %251 = vector.broadcast %cst_110 : f32 to vector<8x1xf32>
    %252 = arith.divf %250, %251 : vector<8x1xf32>
    %253 = vector.broadcast %252 : vector<8x1xf32> to vector<8x32xf32>
    %254 = arith.subf %246, %253 : vector<8x32xf32>
    %255 = vector.broadcast %252 : vector<8x1xf32> to vector<8x32xf32>
    %256 = arith.subf %246, %255 : vector<8x32xf32>
    %257 = arith.mulf %254, %256 : vector<8x32xf32>
    %cst_111 = arith.constant dense<0.000000e+00> : vector<8xf32>
    %258 = vector.multi_reduction <add>, %257, %cst_111 [1] : vector<8x32xf32> to vector<8xf32>
    %259 = vector.shape_cast %258 : vector<8xf32> to vector<8x1xf32>
    %cst_112 = arith.constant 3.200000e+01 : f32
    %260 = vector.broadcast %cst_112 : f32 to vector<8x1xf32>
    %261 = arith.divf %259, %260 : vector<8x1xf32>
    %262 = vector.broadcast %252 : vector<8x1xf32> to vector<8x32xf32>
    %263 = arith.subf %246, %262 : vector<8x32xf32>
    %cst_113 = arith.constant 9.99999974E-6 : f32
    %264 = vector.broadcast %cst_113 : f32 to vector<8x1xf32>
    %265 = arith.addf %261, %264 : vector<8x1xf32>
    %266 = math.rsqrt %265 : vector<8x1xf32>
    %267 = vector.broadcast %266 : vector<8x1xf32> to vector<8x32xf32>
    %268 = arith.mulf %263, %267 : vector<8x32xf32>
    %269 = vector.broadcast %247 : vector<1x32xf32> to vector<8x32xf32>
    %270 = arith.mulf %268, %269 : vector<8x32xf32>
    %271 = vector.broadcast %248 : vector<1x32xf32> to vector<8x32xf32>
    %272 = arith.addf %270, %271 : vector<8x32xf32>
    %c0_114 = arith.constant 0 : index
    %c0_115 = arith.constant 0 : index
    %c0_116 = arith.constant 0 : index
    %273 = vector.load %arg27[%c0_114, %c0_115, %c0_116] : memref<1x8x32xf32, #tpu.memory_space<vmem>>, vector<1x8x32xf32>
    %274 = vector.shape_cast %273 : vector<1x8x32xf32> to vector<8x32xf32>
    %275 = vector.shape_cast %272 : vector<8x32xf32> to vector<1x8x32xf32>
    tpu.vector_store %arg27[%c0_114, %c0_115, %c0_116], %275 {strides = array<i32>} : memref<1x8x32xf32, #tpu.memory_space<vmem>>, vector<1x8x32xf32>,
    return
  }
  func.func @transform_0(%arg0: i32) -> (i32, i32, i32) {
    %c0_i32 = arith.constant 0 : i32
    %c0_i32_0 = arith.constant 0 : i32
    %c0_i32_1 = arith.constant 0 : i32
    %c0_i32_2 = arith.constant 0 : i32
    return %c0_i32, %c0_i32_0, %c0_i32_1 : i32, i32, i32
  }
  func.func @transform_1(%arg0: i32) -> (i32, i32) {
    %c0_i32 = arith.constant 0 : i32
    %c0_i32_0 = arith.constant 0 : i32
    %c0_i32_1 = arith.constant 0 : i32
    return %c0_i32, %c0_i32_0 : i32, i32
  }
  func.func @transform_2(%arg0: i32) -> (i32, i32) {
    %c0_i32 = arith.constant 0 : i32
    %c0_i32_0 = arith.constant 0 : i32
    %c0_i32_1 = arith.constant 0 : i32
    return %c0_i32, %c0_i32_0 : i32, i32
  }
  func.func @transform_3(%arg0: i32) -> (i32, i32) {
    %c0_i32 = arith.constant 0 : i32
    %c0_i32_0 = arith.constant 0 : i32
    %c0_i32_1 = arith.constant 0 : i32
    return %c0_i32, %c0_i32_0 : i32, i32
  }
  func.func @transform_4(%arg0: i32) -> (i32, i32) {
    %c0_i32 = arith.constant 0 : i32
    %c0_i32_0 = arith.constant 0 : i32
    %c0_i32_1 = arith.constant 0 : i32
    return %c0_i32, %c0_i32_0 : i32, i32
  }
  func.func @transform_5(%arg0: i32) -> (i32, i32) {
    %c0_i32 = arith.constant 0 : i32
    %c0_i32_0 = arith.constant 0 : i32
    %c0_i32_1 = arith.constant 0 : i32
    return %c0_i32, %c0_i32_0 : i32, i32
  }
  func.func @transform_6(%arg0: i32) -> (i32, i32) {
    %c0_i32 = arith.constant 0 : i32
    %c0_i32_0 = arith.constant 0 : i32
    %c0_i32_1 = arith.constant 0 : i32
    return %c0_i32, %c0_i32_0 : i32, i32
  }
  func.func @transform_7(%arg0: i32) -> (i32, i32) {
    %c0_i32 = arith.constant 0 : i32
    %c0_i32_0 = arith.constant 0 : i32
    %c0_i32_1 = arith.constant 0 : i32
    return %c0_i32, %c0_i32_0 : i32, i32
  }
  func.func @transform_8(%arg0: i32) -> (i32, i32) {
    %c0_i32 = arith.constant 0 : i32
    %c0_i32_0 = arith.constant 0 : i32
    %c0_i32_1 = arith.constant 0 : i32
    return %c0_i32, %c0_i32_0 : i32, i32
  }
  func.func @transform_9(%arg0: i32) -> (i32, i32) {
    %c0_i32 = arith.constant 0 : i32
    %c0_i32_0 = arith.constant 0 : i32
    %c0_i32_1 = arith.constant 0 : i32
    return %c0_i32, %c0_i32_0 : i32, i32
  }
  func.func @transform_10(%arg0: i32) -> (i32, i32) {
    %c0_i32 = arith.constant 0 : i32
    %c0_i32_0 = arith.constant 0 : i32
    %c0_i32_1 = arith.constant 0 : i32
    return %c0_i32, %c0_i32_0 : i32, i32
  }
  func.func @transform_11(%arg0: i32) -> (i32, i32) {
    %c0_i32 = arith.constant 0 : i32
    %c0_i32_0 = arith.constant 0 : i32
    %c0_i32_1 = arith.constant 0 : i32
    return %c0_i32, %c0_i32_0 : i32, i32
  }
  func.func @transform_12(%arg0: i32) -> (i32, i32) {
    %c0_i32 = arith.constant 0 : i32
    %c0_i32_0 = arith.constant 0 : i32
    %c0_i32_1 = arith.constant 0 : i32
    return %c0_i32, %c0_i32_0 : i32, i32
  }
  func.func @transform_13(%arg0: i32) -> (i32, i32) {
    %c0_i32 = arith.constant 0 : i32
    %c0_i32_0 = arith.constant 0 : i32
    %c0_i32_1 = arith.constant 0 : i32
    return %c0_i32, %c0_i32_0 : i32, i32
  }
  func.func @transform_14(%arg0: i32) -> (i32, i32) {
    %c0_i32 = arith.constant 0 : i32
    %c0_i32_0 = arith.constant 0 : i32
    %c0_i32_1 = arith.constant 0 : i32
    return %c0_i32, %c0_i32_0 : i32, i32
  }
  func.func @transform_15(%arg0: i32) -> (i32, i32) {
    %c0_i32 = arith.constant 0 : i32
    %c0_i32_0 = arith.constant 0 : i32
    %c0_i32_1 = arith.constant 0 : i32
    return %c0_i32, %c0_i32_0 : i32, i32
  }
  func.func @transform_16(%arg0: i32) -> (i32, i32) {
    %c0_i32 = arith.constant 0 : i32
    %c0_i32_0 = arith.constant 0 : i32
    %c0_i32_1 = arith.constant 0 : i32
    return %c0_i32, %c0_i32_0 : i32, i32
  }
  func.func @transform_17(%arg0: i32) -> (i32, i32) {
    %c0_i32 = arith.constant 0 : i32
    %c0_i32_0 = arith.constant 0 : i32
    %c0_i32_1 = arith.constant 0 : i32
    return %c0_i32, %c0_i32_0 : i32, i32
  }
  func.func @transform_18(%arg0: i32) -> (i32, i32) {
    %c0_i32 = arith.constant 0 : i32
    %c0_i32_0 = arith.constant 0 : i32
    %c0_i32_1 = arith.constant 0 : i32
    return %c0_i32, %c0_i32_0 : i32, i32
  }
  func.func @transform_19(%arg0: i32) -> (i32, i32) {
    %c0_i32 = arith.constant 0 : i32
    %c0_i32_0 = arith.constant 0 : i32
    %c0_i32_1 = arith.constant 0 : i32
    return %c0_i32, %c0_i32_0 : i32, i32
  }
  func.func @transform_20(%arg0: i32) -> (i32, i32) {
    %c0_i32 = arith.constant 0 : i32
    %c0_i32_0 = arith.constant 0 : i32
    %c0_i32_1 = arith.constant 0 : i32
    return %c0_i32, %c0_i32_0 : i32, i32
  }
  func.func @transform_21(%arg0: i32) -> (i32, i32) {
    %c0_i32 = arith.constant 0 : i32
    %c0_i32_0 = arith.constant 0 : i32
    %c0_i32_1 = arith.constant 0 : i32
    return %c0_i32, %c0_i32_0 : i32, i32
  }
  func.func @transform_22(%arg0: i32) -> (i32, i32) {
    %c0_i32 = arith.constant 0 : i32
    %c0_i32_0 = arith.constant 0 : i32
    %c0_i32_1 = arith.constant 0 : i32
    return %c0_i32, %c0_i32_0 : i32, i32
  }
  func.func @transform_23(%arg0: i32) -> (i32, i32) {
    %c0_i32 = arith.constant 0 : i32
    %c0_i32_0 = arith.constant 0 : i32
    %c0_i32_1 = arith.constant 0 : i32
    return %c0_i32, %c0_i32_0 : i32, i32
  }
  func.func @transform_24(%arg0: i32) -> (i32, i32) {
    %c0_i32 = arith.constant 0 : i32
    %c0_i32_0 = arith.constant 0 : i32
    %c0_i32_1 = arith.constant 0 : i32
    return %c0_i32, %c0_i32_0 : i32, i32
  }
  func.func @transform_25(%arg0: i32) -> (i32, i32) {
    %c0_i32 = arith.constant 0 : i32
    %c0_i32_0 = arith.constant 0 : i32
    %c0_i32_1 = arith.constant 0 : i32
    return %c0_i32, %c0_i32_0 : i32, i32
  }
  func.func @transform_26(%arg0: i32) -> (i32, i32, i32) {
    %c0_i32 = arith.constant 0 : i32
    %c0_i32_0 = arith.constant 0 : i32
    %c0_i32_1 = arith.constant 0 : i32
    %c0_i32_2 = arith.constant 0 : i32
    return %c0_i32, %c0_i32_0, %c0_i32_1 : i32, i32, i32
  }
}

module attributes {stable_mosaic.version = 11 : i64} {
  func.func @_decoder_stack_kernel(%arg0: i32, %arg1: memref<32x32xf32, #tpu.memory_space<vmem>>, %arg2: memref<1x8x32xf32, #tpu.memory_space<vmem>>, %arg3: memref<8x8xi32, #tpu.memory_space<vmem>>, %arg4: memref<1x8xi32, #tpu.memory_space<vmem>>, %arg5: memref<32x96xf32, #tpu.memory_space<vmem>>, %arg6: memref<1x96xf32, #tpu.memory_space<vmem>>, %arg7: memref<32x32xf32, #tpu.memory_space<vmem>>, %arg8: memref<1x32xf32, #tpu.memory_space<vmem>>, %arg9: memref<1x32xf32, #tpu.memory_space<vmem>>, %arg10: memref<1x32xf32, #tpu.memory_space<vmem>>, %arg11: memref<32x32xf32, #tpu.memory_space<vmem>>, %arg12: memref<1x32xf32, #tpu.memory_space<vmem>>, %arg13: memref<32x64xf32, #tpu.memory_space<vmem>>, %arg14: memref<1x64xf32, #tpu.memory_space<vmem>>, %arg15: memref<32x32xf32, #tpu.memory_space<vmem>>, %arg16: memref<1x32xf32, #tpu.memory_space<vmem>>, %arg17: memref<1x32xf32, #tpu.memory_space<vmem>>, %arg18: memref<1x32xf32, #tpu.memory_space<vmem>>, %arg19: memref<32x512xf32, #tpu.memory_space<vmem>>, %arg20: memref<1x512xf32, #tpu.memory_space<vmem>>, %arg21: memref<512x32xf32, #tpu.memory_space<vmem>>, %arg22: memref<1x32xf32, #tpu.memory_space<vmem>>, %arg23: memref<1x32xf32, #tpu.memory_space<vmem>>, %arg24: memref<1x32xf32, #tpu.memory_space<vmem>>, %arg25: memref<32x96xf32, #tpu.memory_space<vmem>>, %arg26: memref<1x96xf32, #tpu.memory_space<vmem>>, %arg27: memref<32x32xf32, #tpu.memory_space<vmem>>, %arg28: memref<1x32xf32, #tpu.memory_space<vmem>>, %arg29: memref<1x32xf32, #tpu.memory_space<vmem>>, %arg30: memref<1x32xf32, #tpu.memory_space<vmem>>, %arg31: memref<32x32xf32, #tpu.memory_space<vmem>>, %arg32: memref<1x32xf32, #tpu.memory_space<vmem>>, %arg33: memref<32x64xf32, #tpu.memory_space<vmem>>, %arg34: memref<1x64xf32, #tpu.memory_space<vmem>>, %arg35: memref<32x32xf32, #tpu.memory_space<vmem>>, %arg36: memref<1x32xf32, #tpu.memory_space<vmem>>, %arg37: memref<1x32xf32, #tpu.memory_space<vmem>>, %arg38: memref<1x32xf32, #tpu.memory_space<vmem>>, %arg39: memref<32x512xf32, #tpu.memory_space<vmem>>, %arg40: memref<1x512xf32, #tpu.memory_space<vmem>>, %arg41: memref<512x32xf32, #tpu.memory_space<vmem>>, %arg42: memref<1x32xf32, #tpu.memory_space<vmem>>, %arg43: memref<1x32xf32, #tpu.memory_space<vmem>>, %arg44: memref<1x32xf32, #tpu.memory_space<vmem>>, %arg45: memref<32x16xf32, #tpu.memory_space<vmem>>, %arg46: memref<1x16xf32, #tpu.memory_space<vmem>>, %arg47: memref<32x16xf32, #tpu.memory_space<vmem>>) attributes {dimension_semantics = [#tpu.dimension_semantics<parallel>], iteration_bounds = array<i64: 2>, scalar_prefetch = 0 : i64, scratch_operands = 0 : i64, tpu.core_type = #tpu.core_type<tc>, window_params = [{transform_indices = @transform_0, window_bounds = array<i64: 32, 32>}, {pipeline_mode = #tpu.pipeline_mode<synchronous>, transform_indices = @transform_1, window_bounds = array<i64: 1, 8, 32>}, {pipeline_mode = #tpu.pipeline_mode<synchronous>, transform_indices = @transform_2, window_bounds = array<i64: 8, 8>}, {pipeline_mode = #tpu.pipeline_mode<synchronous>, transform_indices = @transform_3, window_bounds = array<i64: 1, 8>}, {pipeline_mode = #tpu.pipeline_mode<synchronous>, transform_indices = @transform_4, window_bounds = array<i64: 32, 96>}, {pipeline_mode = #tpu.pipeline_mode<synchronous>, transform_indices = @transform_5, window_bounds = array<i64: 1, 96>}, {pipeline_mode = #tpu.pipeline_mode<synchronous>, transform_indices = @transform_6, window_bounds = array<i64: 32, 32>}, {pipeline_mode = #tpu.pipeline_mode<synchronous>, transform_indices = @transform_7, window_bounds = array<i64: 1, 32>}, {pipeline_mode = #tpu.pipeline_mode<synchronous>, transform_indices = @transform_8, window_bounds = array<i64: 1, 32>}, {pipeline_mode = #tpu.pipeline_mode<synchronous>, transform_indices = @transform_9, window_bounds = array<i64: 1, 32>}, {pipeline_mode = #tpu.pipeline_mode<synchronous>, transform_indices = @transform_10, window_bounds = array<i64: 32, 32>}, {pipeline_mode = #tpu.pipeline_mode<synchronous>, transform_indices = @transform_11, window_bounds = array<i64: 1, 32>}, {pipeline_mode = #tpu.pipeline_mode<synchronous>, transform_indices = @transform_12, window_bounds = array<i64: 32, 64>}, {pipeline_mode = #tpu.pipeline_mode<synchronous>, transform_indices = @transform_13, window_bounds = array<i64: 1, 64>}, {pipeline_mode = #tpu.pipeline_mode<synchronous>, transform_indices = @transform_14, window_bounds = array<i64: 32, 32>}, {pipeline_mode = #tpu.pipeline_mode<synchronous>, transform_indices = @transform_15, window_bounds = array<i64: 1, 32>}, {pipeline_mode = #tpu.pipeline_mode<synchronous>, transform_indices = @transform_16, window_bounds = array<i64: 1, 32>}, {pipeline_mode = #tpu.pipeline_mode<synchronous>, transform_indices = @transform_17, window_bounds = array<i64: 1, 32>}, {pipeline_mode = #tpu.pipeline_mode<synchronous>, transform_indices = @transform_18, window_bounds = array<i64: 32, 512>}, {pipeline_mode = #tpu.pipeline_mode<synchronous>, transform_indices = @transform_19, window_bounds = array<i64: 1, 512>}, {pipeline_mode = #tpu.pipeline_mode<synchronous>, transform_indices = @transform_20, window_bounds = array<i64: 512, 32>}, {pipeline_mode = #tpu.pipeline_mode<synchronous>, transform_indices = @transform_21, window_bounds = array<i64: 1, 32>}, {pipeline_mode = #tpu.pipeline_mode<synchronous>, transform_indices = @transform_22, window_bounds = array<i64: 1, 32>}, {pipeline_mode = #tpu.pipeline_mode<synchronous>, transform_indices = @transform_23, window_bounds = array<i64: 1, 32>}, {pipeline_mode = #tpu.pipeline_mode<synchronous>, transform_indices = @transform_24, window_bounds = array<i64: 32, 96>}, {pipeline_mode = #tpu.pipeline_mode<synchronous>, transform_indices = @transform_25, window_bounds = array<i64: 1, 96>}, {pipeline_mode = #tpu.pipeline_mode<synchronous>, transform_indices = @transform_26, window_bounds = array<i64: 32, 32>}, {pipeline_mode = #tpu.pipeline_mode<synchronous>, transform_indices = @transform_27, window_bounds = array<i64: 1, 32>}, {pipeline_mode = #tpu.pipeline_mode<synchronous>, transform_indices = @transform_28, window_bounds = array<i64: 1, 32>}, {pipeline_mode = #tpu.pipeline_mode<synchronous>, transform_indices = @transform_29, window_bounds = array<i64: 1, 32>}, {pipeline_mode = #tpu.pipeline_mode<synchronous>, transform_indices = @transform_30, window_bounds = array<i64: 32, 32>}, {pipeline_mode = #tpu.pipeline_mode<synchronous>, transform_indices = @transform_31, window_bounds = array<i64: 1, 32>}, {pipeline_mode = #tpu.pipeline_mode<synchronous>, transform_indices = @transform_32, window_bounds = array<i64: 32, 64>}, {pipeline_mode = #tpu.pipeline_mode<synchronous>, transform_indices = @transform_33, window_bounds = array<i64: 1, 64>}, {pipeline_mode = #tpu.pipeline_mode<synchronous>, transform_indices = @transform_34, window_bounds = array<i64: 32, 32>}, {pipeline_mode = #tpu.pipeline_mode<synchronous>, transform_indices = @transform_35, window_bounds = array<i64: 1, 32>}, {pipeline_mode = #tpu.pipeline_mode<synchronous>, transform_indices = @transform_36, window_bounds = array<i64: 1, 32>}, {pipeline_mode = #tpu.pipeline_mode<synchronous>, transform_indices = @transform_37, window_bounds = array<i64: 1, 32>}, {pipeline_mode = #tpu.pipeline_mode<synchronous>, transform_indices = @transform_38, window_bounds = array<i64: 32, 512>}, {pipeline_mode = #tpu.pipeline_mode<synchronous>, transform_indices = @transform_39, window_bounds = array<i64: 1, 512>}, {pipeline_mode = #tpu.pipeline_mode<synchronous>, transform_indices = @transform_40, window_bounds = array<i64: 512, 32>}, {pipeline_mode = #tpu.pipeline_mode<synchronous>, transform_indices = @transform_41, window_bounds = array<i64: 1, 32>}, {pipeline_mode = #tpu.pipeline_mode<synchronous>, transform_indices = @transform_42, window_bounds = array<i64: 1, 32>}, {pipeline_mode = #tpu.pipeline_mode<synchronous>, transform_indices = @transform_43, window_bounds = array<i64: 1, 32>}, {pipeline_mode = #tpu.pipeline_mode<synchronous>, transform_indices = @transform_44, window_bounds = array<i64: 32, 16>}, {pipeline_mode = #tpu.pipeline_mode<synchronous>, transform_indices = @transform_45, window_bounds = array<i64: 1, 16>}, {transform_indices = @transform_46, window_bounds = array<i64: 32, 16>}]} {
    %c0 = arith.constant 0 : index
    %c0_0 = arith.constant 0 : index
    %0 = vector.load %arg1[%c0, %c0_0] : memref<32x32xf32, #tpu.memory_space<vmem>>, vector<32x32xf32>
    %c0_1 = arith.constant 0 : index
    %c0_2 = arith.constant 0 : index
    %c0_3 = arith.constant 0 : index
    %1 = vector.load %arg2[%c0_1, %c0_2, %c0_3] : memref<1x8x32xf32, #tpu.memory_space<vmem>>, vector<1x8x32xf32>
    %2 = vector.shape_cast %1 : vector<1x8x32xf32> to vector<8x32xf32>
    %c0_4 = arith.constant 0 : index
    %c0_5 = arith.constant 0 : index
    %3 = vector.load %arg3[%c0_4, %c0_5] : memref<8x8xi32, #tpu.memory_space<vmem>>, vector<8x8xi32>
    %c0_6 = arith.constant 0 : index
    %c0_7 = arith.constant 0 : index
    %4 = vector.load %arg4[%c0_6, %c0_7] : memref<1x8xi32, #tpu.memory_space<vmem>>, vector<1x8xi32>
    %c0_8 = arith.constant 0 : index
    %c0_9 = arith.constant 0 : index
    %5 = vector.load %arg5[%c0_8, %c0_9] : memref<32x96xf32, #tpu.memory_space<vmem>>, vector<32x96xf32>
    %cst = arith.constant dense<0.000000e+00> : vector<32x96xf32>
    %6 = tpu.matmul %0, %5, %cst {dimension_numbers = #tpu.dot_dimension_numbers<[1], [0], [0], [1], [0, 0, 1, 1], [], []>} : vector<32x32xf32>, vector<32x96xf32>, vector<32x96xf32> -> vector<32x96xf32>
    %c0_10 = arith.constant 0 : index
    %c0_11 = arith.constant 0 : index
    %7 = vector.load %arg6[%c0_10, %c0_11] : memref<1x96xf32, #tpu.memory_space<vmem>>, vector<1x96xf32>
    %8 = vector.broadcast %7 : vector<1x96xf32> to vector<32x96xf32>
    %9 = arith.addf %6, %8 : vector<32x96xf32>
    %c0_12 = arith.constant 0 : index
    %c0_13 = arith.constant 0 : index
    %10 = vector.load %arg7[%c0_12, %c0_13] : memref<32x32xf32, #tpu.memory_space<vmem>>, vector<32x32xf32>
    %11 = vector.extract_strided_slice %9 {offsets = [0, 0], sizes = [32, 16], strides = [1, 1]} : vector<32x96xf32> to vector<32x16xf32>
    %12 = vector.shape_cast %11 : vector<32x16xf32> to vector<4x8x16xf32>
    %13 = vector.extract_strided_slice %9 {offsets = [0, 32], sizes = [32, 16], strides = [1, 1]} : vector<32x96xf32> to vector<32x16xf32>
    %14 = vector.shape_cast %13 : vector<32x16xf32> to vector<4x8x16xf32>
    %15 = vector.extract_strided_slice %9 {offsets = [0, 64], sizes = [32, 16], strides = [1, 1]} : vector<32x96xf32> to vector<32x16xf32>
    %16 = vector.shape_cast %15 : vector<32x16xf32> to vector<4x8x16xf32>
    %cst_14 = arith.constant dense<0.000000e+00> : vector<4x8x8xf32>
    %17 = tpu.matmul %12, %14, %cst_14 {dimension_numbers = #tpu.dot_dimension_numbers<[2], [2], [1], [1], [0, 0, 0, 1, 1, 1], [0], [0]>} : vector<4x8x16xf32>, vector<4x8x16xf32>, vector<4x8x8xf32> -> vector<4x8x8xf32>
    %cst_15 = arith.constant 2.500000e-01 : f32
    %18 = vector.broadcast %cst_15 : f32 to vector<4x8x8xf32>
    %19 = arith.mulf %17, %18 : vector<4x8x8xf32>
    %20 = vector.shape_cast %3 : vector<8x8xi32> to vector<1x8x8xi32>
    %c0_i32 = arith.constant 0 : i32
    %21 = vector.broadcast %c0_i32 : i32 to vector<1x8x8xi32>
    %22 = arith.cmpi eq, %20, %21 : vector<1x8x8xi32>
    %cst_16 = arith.constant -1.000000e+09 : f32
    %23 = vector.shape_cast %22 : vector<1x8x8xi1> to vector<1x8x8xi1>
    %24 = vector.broadcast %23 : vector<1x8x8xi1> to vector<4x8x8xi1>
    %25 = vector.broadcast %cst_16 : f32 to vector<4x8x8xf32>
    %26 = arith.select %24, %25, %19 : vector<4x8x8xi1>, vector<4x8x8xf32>
    %cst_17 = arith.constant dense<0xFF800000> : vector<4x8xf32>
    %27 = vector.multi_reduction <maximumf>, %26, %cst_17 [2] : vector<4x8x8xf32> to vector<4x8xf32>
    %28 = vector.shape_cast %27 : vector<4x8xf32> to vector<4x8x1xf32>
    %29 = vector.broadcast %28 : vector<4x8x1xf32> to vector<4x8x8xf32>
    %30 = arith.subf %26, %29 : vector<4x8x8xf32>
    %31 = math.exp %30 : vector<4x8x8xf32>
    %cst_18 = arith.constant dense<0.000000e+00> : vector<4x8xf32>
    %32 = vector.multi_reduction <add>, %31, %cst_18 [2] : vector<4x8x8xf32> to vector<4x8xf32>
    %33 = vector.shape_cast %32 : vector<4x8xf32> to vector<4x8x1xf32>
    %34 = tpu.reciprocal %33 {approx = true} : vector<4x8x1xf32> -> vector<4x8x1xf32>
    %35 = vector.broadcast %34 : vector<4x8x1xf32> to vector<4x8x8xf32>
    %36 = arith.mulf %31, %35 : vector<4x8x8xf32>
    %cst_19 = arith.constant dense<0.000000e+00> : vector<4x8x16xf32>
    %37 = tpu.matmul %36, %16, %cst_19 {dimension_numbers = #tpu.dot_dimension_numbers<[2], [1], [1], [2], [0, 0, 0, 1, 1, 2], [0], [0]>} : vector<4x8x8xf32>, vector<4x8x16xf32>, vector<4x8x16xf32> -> vector<4x8x16xf32>
    %38 = vector.shape_cast %37 : vector<4x8x16xf32> to vector<32x16xf32>
    %39 = vector.extract_strided_slice %10 {offsets = [0, 0], sizes = [16, 32], strides = [1, 1]} : vector<32x32xf32> to vector<16x32xf32>
    %cst_20 = arith.constant dense<0.000000e+00> : vector<32x32xf32>
    %40 = tpu.matmul %38, %39, %cst_20 {dimension_numbers = #tpu.dot_dimension_numbers<[1], [0], [0], [1], [0, 0, 1, 1], [], []>} : vector<32x16xf32>, vector<16x32xf32>, vector<32x32xf32> -> vector<32x32xf32>
    %41 = vector.extract_strided_slice %9 {offsets = [0, 16], sizes = [32, 16], strides = [1, 1]} : vector<32x96xf32> to vector<32x16xf32>
    %42 = vector.shape_cast %41 : vector<32x16xf32> to vector<4x8x16xf32>
    %43 = vector.extract_strided_slice %9 {offsets = [0, 48], sizes = [32, 16], strides = [1, 1]} : vector<32x96xf32> to vector<32x16xf32>
    %44 = vector.shape_cast %43 : vector<32x16xf32> to vector<4x8x16xf32>
    %45 = vector.extract_strided_slice %9 {offsets = [0, 80], sizes = [32, 16], strides = [1, 1]} : vector<32x96xf32> to vector<32x16xf32>
    %46 = vector.shape_cast %45 : vector<32x16xf32> to vector<4x8x16xf32>
    %cst_21 = arith.constant dense<0.000000e+00> : vector<4x8x8xf32>
    %47 = tpu.matmul %42, %44, %cst_21 {dimension_numbers = #tpu.dot_dimension_numbers<[2], [2], [1], [1], [0, 0, 0, 1, 1, 1], [0], [0]>} : vector<4x8x16xf32>, vector<4x8x16xf32>, vector<4x8x8xf32> -> vector<4x8x8xf32>
    %cst_22 = arith.constant 2.500000e-01 : f32
    %48 = vector.broadcast %cst_22 : f32 to vector<4x8x8xf32>
    %49 = arith.mulf %47, %48 : vector<4x8x8xf32>
    %50 = vector.shape_cast %3 : vector<8x8xi32> to vector<1x8x8xi32>
    %c0_i32_23 = arith.constant 0 : i32
    %51 = vector.broadcast %c0_i32_23 : i32 to vector<1x8x8xi32>
    %52 = arith.cmpi eq, %50, %51 : vector<1x8x8xi32>
    %cst_24 = arith.constant -1.000000e+09 : f32
    %53 = vector.shape_cast %52 : vector<1x8x8xi1> to vector<1x8x8xi1>
    %54 = vector.broadcast %53 : vector<1x8x8xi1> to vector<4x8x8xi1>
    %55 = vector.broadcast %cst_24 : f32 to vector<4x8x8xf32>
    %56 = arith.select %54, %55, %49 : vector<4x8x8xi1>, vector<4x8x8xf32>
    %cst_25 = arith.constant dense<0xFF800000> : vector<4x8xf32>
    %57 = vector.multi_reduction <maximumf>, %56, %cst_25 [2] : vector<4x8x8xf32> to vector<4x8xf32>
    %58 = vector.shape_cast %57 : vector<4x8xf32> to vector<4x8x1xf32>
    %59 = vector.broadcast %58 : vector<4x8x1xf32> to vector<4x8x8xf32>
    %60 = arith.subf %56, %59 : vector<4x8x8xf32>
    %61 = math.exp %60 : vector<4x8x8xf32>
    %cst_26 = arith.constant dense<0.000000e+00> : vector<4x8xf32>
    %62 = vector.multi_reduction <add>, %61, %cst_26 [2] : vector<4x8x8xf32> to vector<4x8xf32>
    %63 = vector.shape_cast %62 : vector<4x8xf32> to vector<4x8x1xf32>
    %64 = tpu.reciprocal %63 {approx = true} : vector<4x8x1xf32> -> vector<4x8x1xf32>
    %65 = vector.broadcast %64 : vector<4x8x1xf32> to vector<4x8x8xf32>
    %66 = arith.mulf %61, %65 : vector<4x8x8xf32>
    %cst_27 = arith.constant dense<0.000000e+00> : vector<4x8x16xf32>
    %67 = tpu.matmul %66, %46, %cst_27 {dimension_numbers = #tpu.dot_dimension_numbers<[2], [1], [1], [2], [0, 0, 0, 1, 1, 2], [0], [0]>} : vector<4x8x8xf32>, vector<4x8x16xf32>, vector<4x8x16xf32> -> vector<4x8x16xf32>
    %68 = vector.shape_cast %67 : vector<4x8x16xf32> to vector<32x16xf32>
    %69 = vector.extract_strided_slice %10 {offsets = [16, 0], sizes = [16, 32], strides = [1, 1]} : vector<32x32xf32> to vector<16x32xf32>
    %cst_28 = arith.constant dense<0.000000e+00> : vector<32x32xf32>
    %70 = tpu.matmul %68, %69, %cst_28 {dimension_numbers = #tpu.dot_dimension_numbers<[1], [0], [0], [1], [0, 0, 1, 1], [], []>} : vector<32x16xf32>, vector<16x32xf32>, vector<32x32xf32> -> vector<32x32xf32>
    %71 = arith.addf %40, %70 : vector<32x32xf32>
    %c0_29 = arith.constant 0 : index
    %c0_30 = arith.constant 0 : index
    %72 = vector.load %arg8[%c0_29, %c0_30] : memref<1x32xf32, #tpu.memory_space<vmem>>, vector<1x32xf32>
    %73 = vector.broadcast %72 : vector<1x32xf32> to vector<32x32xf32>
    %74 = arith.addf %71, %73 : vector<32x32xf32>
    %75 = arith.addf %0, %74 : vector<32x32xf32>
    %c0_31 = arith.constant 0 : index
    %c0_32 = arith.constant 0 : index
    %76 = vector.load %arg9[%c0_31, %c0_32] : memref<1x32xf32, #tpu.memory_space<vmem>>, vector<1x32xf32>
    %c0_33 = arith.constant 0 : index
    %c0_34 = arith.constant 0 : index
    %77 = vector.load %arg10[%c0_33, %c0_34] : memref<1x32xf32, #tpu.memory_space<vmem>>, vector<1x32xf32>
    %cst_35 = arith.constant dense<0.000000e+00> : vector<32xf32>
    %78 = vector.multi_reduction <add>, %75, %cst_35 [1] : vector<32x32xf32> to vector<32xf32>
    %79 = vector.shape_cast %78 : vector<32xf32> to vector<32x1xf32>
    %cst_36 = arith.constant 3.200000e+01 : f32
    %80 = vector.broadcast %cst_36 : f32 to vector<32x1xf32>
    %81 = arith.divf %79, %80 : vector<32x1xf32>
    %82 = vector.broadcast %81 : vector<32x1xf32> to vector<32x32xf32>
    %83 = arith.subf %75, %82 : vector<32x32xf32>
    %84 = vector.broadcast %81 : vector<32x1xf32> to vector<32x32xf32>
    %85 = arith.subf %75, %84 : vector<32x32xf32>
    %86 = arith.mulf %83, %85 : vector<32x32xf32>
    %cst_37 = arith.constant dense<0.000000e+00> : vector<32xf32>
    %87 = vector.multi_reduction <add>, %86, %cst_37 [1] : vector<32x32xf32> to vector<32xf32>
    %88 = vector.shape_cast %87 : vector<32xf32> to vector<32x1xf32>
    %cst_38 = arith.constant 3.200000e+01 : f32
    %89 = vector.broadcast %cst_38 : f32 to vector<32x1xf32>
    %90 = arith.divf %88, %89 : vector<32x1xf32>
    %91 = vector.broadcast %81 : vector<32x1xf32> to vector<32x32xf32>
    %92 = arith.subf %75, %91 : vector<32x32xf32>
    %cst_39 = arith.constant 9.99999974E-6 : f32
    %93 = vector.broadcast %cst_39 : f32 to vector<32x1xf32>
    %94 = arith.addf %90, %93 : vector<32x1xf32>
    %95 = math.rsqrt %94 : vector<32x1xf32>
    %96 = vector.broadcast %95 : vector<32x1xf32> to vector<32x32xf32>
    %97 = arith.mulf %92, %96 : vector<32x32xf32>
    %98 = vector.broadcast %76 : vector<1x32xf32> to vector<32x32xf32>
    %99 = arith.mulf %97, %98 : vector<32x32xf32>
    %100 = vector.broadcast %77 : vector<1x32xf32> to vector<32x32xf32>
    %101 = arith.addf %99, %100 : vector<32x32xf32>
    %c0_40 = arith.constant 0 : index
    %c0_41 = arith.constant 0 : index
    %102 = vector.load %arg11[%c0_40, %c0_41] : memref<32x32xf32, #tpu.memory_space<vmem>>, vector<32x32xf32>
    %cst_42 = arith.constant dense<0.000000e+00> : vector<32x32xf32>
    %103 = tpu.matmul %101, %102, %cst_42 {dimension_numbers = #tpu.dot_dimension_numbers<[1], [0], [0], [1], [0, 0, 1, 1], [], []>} : vector<32x32xf32>, vector<32x32xf32>, vector<32x32xf32> -> vector<32x32xf32>
    %c0_43 = arith.constant 0 : index
    %c0_44 = arith.constant 0 : index
    %104 = vector.load %arg12[%c0_43, %c0_44] : memref<1x32xf32, #tpu.memory_space<vmem>>, vector<1x32xf32>
    %105 = vector.broadcast %104 : vector<1x32xf32> to vector<32x32xf32>
    %106 = arith.addf %103, %105 : vector<32x32xf32>
    %c0_45 = arith.constant 0 : index
    %c0_46 = arith.constant 0 : index
    %107 = vector.load %arg13[%c0_45, %c0_46] : memref<32x64xf32, #tpu.memory_space<vmem>>, vector<32x64xf32>
    %cst_47 = arith.constant dense<0.000000e+00> : vector<8x64xf32>
    %108 = tpu.matmul %2, %107, %cst_47 {dimension_numbers = #tpu.dot_dimension_numbers<[1], [0], [0], [1], [0, 0, 1, 1], [], []>} : vector<8x32xf32>, vector<32x64xf32>, vector<8x64xf32> -> vector<8x64xf32>
    %c0_48 = arith.constant 0 : index
    %c0_49 = arith.constant 0 : index
    %109 = vector.load %arg14[%c0_48, %c0_49] : memref<1x64xf32, #tpu.memory_space<vmem>>, vector<1x64xf32>
    %110 = vector.broadcast %109 : vector<1x64xf32> to vector<8x64xf32>
    %111 = arith.addf %108, %110 : vector<8x64xf32>
    %112 = vector.extract_strided_slice %111 {offsets = [0, 0], sizes = [8, 32], strides = [1, 1]} : vector<8x64xf32> to vector<8x32xf32>
    %113 = vector.extract_strided_slice %111 {offsets = [0, 32], sizes = [8, 32], strides = [1, 1]} : vector<8x64xf32> to vector<8x32xf32>
    %c0_50 = arith.constant 0 : index
    %c0_51 = arith.constant 0 : index
    %114 = vector.load %arg15[%c0_50, %c0_51] : memref<32x32xf32, #tpu.memory_space<vmem>>, vector<32x32xf32>
    %115 = vector.extract_strided_slice %106 {offsets = [0, 0], sizes = [32, 16], strides = [1, 1]} : vector<32x32xf32> to vector<32x16xf32>
    %116 = vector.extract_strided_slice %112 {offsets = [0, 0], sizes = [8, 16], strides = [1, 1]} : vector<8x32xf32> to vector<8x16xf32>
    %117 = vector.extract_strided_slice %113 {offsets = [0, 0], sizes = [8, 16], strides = [1, 1]} : vector<8x32xf32> to vector<8x16xf32>
    %cst_52 = arith.constant dense<0.000000e+00> : vector<32x8xf32>
    %118 = tpu.matmul %115, %116, %cst_52 {dimension_numbers = #tpu.dot_dimension_numbers<[1], [1], [0], [0], [0, 0, 1, 0], [], []>} : vector<32x16xf32>, vector<8x16xf32>, vector<32x8xf32> -> vector<32x8xf32>
    %cst_53 = arith.constant 2.500000e-01 : f32
    %119 = vector.broadcast %cst_53 : f32 to vector<32x8xf32>
    %120 = arith.mulf %118, %119 : vector<32x8xf32>
    %c0_i32_54 = arith.constant 0 : i32
    %121 = vector.broadcast %c0_i32_54 : i32 to vector<1x8xi32>
    %122 = arith.cmpi eq, %4, %121 : vector<1x8xi32>
    %cst_55 = arith.constant -1.000000e+09 : f32
    %123 = vector.shape_cast %122 : vector<1x8xi1> to vector<1x8xi1>
    %124 = vector.broadcast %123 : vector<1x8xi1> to vector<32x8xi1>
    %125 = vector.broadcast %cst_55 : f32 to vector<32x8xf32>
    %126 = arith.select %124, %125, %120 : vector<32x8xi1>, vector<32x8xf32>
    %cst_56 = arith.constant dense<0xFF800000> : vector<32xf32>
    %127 = vector.multi_reduction <maximumf>, %126, %cst_56 [1] : vector<32x8xf32> to vector<32xf32>
    %128 = vector.shape_cast %127 : vector<32xf32> to vector<32x1xf32>
    %129 = vector.broadcast %128 : vector<32x1xf32> to vector<32x8xf32>
    %130 = arith.subf %126, %129 : vector<32x8xf32>
    %131 = math.exp %130 : vector<32x8xf32>
    %cst_57 = arith.constant dense<0.000000e+00> : vector<32xf32>
    %132 = vector.multi_reduction <add>, %131, %cst_57 [1] : vector<32x8xf32> to vector<32xf32>
    %133 = vector.shape_cast %132 : vector<32xf32> to vector<32x1xf32>
    %134 = tpu.reciprocal %133 {approx = true} : vector<32x1xf32> -> vector<32x1xf32>
    %135 = vector.broadcast %134 : vector<32x1xf32> to vector<32x8xf32>
    %136 = arith.mulf %131, %135 : vector<32x8xf32>
    %cst_58 = arith.constant dense<0.000000e+00> : vector<32x16xf32>
    %137 = tpu.matmul %136, %117, %cst_58 {dimension_numbers = #tpu.dot_dimension_numbers<[1], [0], [0], [1], [0, 0, 1, 1], [], []>} : vector<32x8xf32>, vector<8x16xf32>, vector<32x16xf32> -> vector<32x16xf32>
    %138 = vector.extract_strided_slice %114 {offsets = [0, 0], sizes = [16, 32], strides = [1, 1]} : vector<32x32xf32> to vector<16x32xf32>
    %cst_59 = arith.constant dense<0.000000e+00> : vector<32x32xf32>
    %139 = tpu.matmul %137, %138, %cst_59 {dimension_numbers = #tpu.dot_dimension_numbers<[1], [0], [0], [1], [0, 0, 1, 1], [], []>} : vector<32x16xf32>, vector<16x32xf32>, vector<32x32xf32> -> vector<32x32xf32>
    %140 = vector.extract_strided_slice %106 {offsets = [0, 16], sizes = [32, 16], strides = [1, 1]} : vector<32x32xf32> to vector<32x16xf32>
    %141 = vector.extract_strided_slice %112 {offsets = [0, 16], sizes = [8, 16], strides = [1, 1]} : vector<8x32xf32> to vector<8x16xf32>
    %142 = vector.extract_strided_slice %113 {offsets = [0, 16], sizes = [8, 16], strides = [1, 1]} : vector<8x32xf32> to vector<8x16xf32>
    %cst_60 = arith.constant dense<0.000000e+00> : vector<32x8xf32>
    %143 = tpu.matmul %140, %141, %cst_60 {dimension_numbers = #tpu.dot_dimension_numbers<[1], [1], [0], [0], [0, 0, 1, 0], [], []>} : vector<32x16xf32>, vector<8x16xf32>, vector<32x8xf32> -> vector<32x8xf32>
    %cst_61 = arith.constant 2.500000e-01 : f32
    %144 = vector.broadcast %cst_61 : f32 to vector<32x8xf32>
    %145 = arith.mulf %143, %144 : vector<32x8xf32>
    %c0_i32_62 = arith.constant 0 : i32
    %146 = vector.broadcast %c0_i32_62 : i32 to vector<1x8xi32>
    %147 = arith.cmpi eq, %4, %146 : vector<1x8xi32>
    %cst_63 = arith.constant -1.000000e+09 : f32
    %148 = vector.shape_cast %147 : vector<1x8xi1> to vector<1x8xi1>
    %149 = vector.broadcast %148 : vector<1x8xi1> to vector<32x8xi1>
    %150 = vector.broadcast %cst_63 : f32 to vector<32x8xf32>
    %151 = arith.select %149, %150, %145 : vector<32x8xi1>, vector<32x8xf32>
    %cst_64 = arith.constant dense<0xFF800000> : vector<32xf32>
    %152 = vector.multi_reduction <maximumf>, %151, %cst_64 [1] : vector<32x8xf32> to vector<32xf32>
    %153 = vector.shape_cast %152 : vector<32xf32> to vector<32x1xf32>
    %154 = vector.broadcast %153 : vector<32x1xf32> to vector<32x8xf32>
    %155 = arith.subf %151, %154 : vector<32x8xf32>
    %156 = math.exp %155 : vector<32x8xf32>
    %cst_65 = arith.constant dense<0.000000e+00> : vector<32xf32>
    %157 = vector.multi_reduction <add>, %156, %cst_65 [1] : vector<32x8xf32> to vector<32xf32>
    %158 = vector.shape_cast %157 : vector<32xf32> to vector<32x1xf32>
    %159 = tpu.reciprocal %158 {approx = true} : vector<32x1xf32> -> vector<32x1xf32>
    %160 = vector.broadcast %159 : vector<32x1xf32> to vector<32x8xf32>
    %161 = arith.mulf %156, %160 : vector<32x8xf32>
    %cst_66 = arith.constant dense<0.000000e+00> : vector<32x16xf32>
    %162 = tpu.matmul %161, %142, %cst_66 {dimension_numbers = #tpu.dot_dimension_numbers<[1], [0], [0], [1], [0, 0, 1, 1], [], []>} : vector<32x8xf32>, vector<8x16xf32>, vector<32x16xf32> -> vector<32x16xf32>
    %163 = vector.extract_strided_slice %114 {offsets = [16, 0], sizes = [16, 32], strides = [1, 1]} : vector<32x32xf32> to vector<16x32xf32>
    %cst_67 = arith.constant dense<0.000000e+00> : vector<32x32xf32>
    %164 = tpu.matmul %162, %163, %cst_67 {dimension_numbers = #tpu.dot_dimension_numbers<[1], [0], [0], [1], [0, 0, 1, 1], [], []>} : vector<32x16xf32>, vector<16x32xf32>, vector<32x32xf32> -> vector<32x32xf32>
    %165 = arith.addf %139, %164 : vector<32x32xf32>
    %c0_68 = arith.constant 0 : index
    %c0_69 = arith.constant 0 : index
    %166 = vector.load %arg16[%c0_68, %c0_69] : memref<1x32xf32, #tpu.memory_space<vmem>>, vector<1x32xf32>
    %167 = vector.broadcast %166 : vector<1x32xf32> to vector<32x32xf32>
    %168 = arith.addf %165, %167 : vector<32x32xf32>
    %169 = arith.addf %101, %168 : vector<32x32xf32>
    %c0_70 = arith.constant 0 : index
    %c0_71 = arith.constant 0 : index
    %170 = vector.load %arg17[%c0_70, %c0_71] : memref<1x32xf32, #tpu.memory_space<vmem>>, vector<1x32xf32>
    %c0_72 = arith.constant 0 : index
    %c0_73 = arith.constant 0 : index
    %171 = vector.load %arg18[%c0_72, %c0_73] : memref<1x32xf32, #tpu.memory_space<vmem>>, vector<1x32xf32>
    %cst_74 = arith.constant dense<0.000000e+00> : vector<32xf32>
    %172 = vector.multi_reduction <add>, %169, %cst_74 [1] : vector<32x32xf32> to vector<32xf32>
    %173 = vector.shape_cast %172 : vector<32xf32> to vector<32x1xf32>
    %cst_75 = arith.constant 3.200000e+01 : f32
    %174 = vector.broadcast %cst_75 : f32 to vector<32x1xf32>
    %175 = arith.divf %173, %174 : vector<32x1xf32>
    %176 = vector.broadcast %175 : vector<32x1xf32> to vector<32x32xf32>
    %177 = arith.subf %169, %176 : vector<32x32xf32>
    %178 = vector.broadcast %175 : vector<32x1xf32> to vector<32x32xf32>
    %179 = arith.subf %169, %178 : vector<32x32xf32>
    %180 = arith.mulf %177, %179 : vector<32x32xf32>
    %cst_76 = arith.constant dense<0.000000e+00> : vector<32xf32>
    %181 = vector.multi_reduction <add>, %180, %cst_76 [1] : vector<32x32xf32> to vector<32xf32>
    %182 = vector.shape_cast %181 : vector<32xf32> to vector<32x1xf32>
    %cst_77 = arith.constant 3.200000e+01 : f32
    %183 = vector.broadcast %cst_77 : f32 to vector<32x1xf32>
    %184 = arith.divf %182, %183 : vector<32x1xf32>
    %185 = vector.broadcast %175 : vector<32x1xf32> to vector<32x32xf32>
    %186 = arith.subf %169, %185 : vector<32x32xf32>
    %cst_78 = arith.constant 9.99999974E-6 : f32
    %187 = vector.broadcast %cst_78 : f32 to vector<32x1xf32>
    %188 = arith.addf %184, %187 : vector<32x1xf32>
    %189 = math.rsqrt %188 : vector<32x1xf32>
    %190 = vector.broadcast %189 : vector<32x1xf32> to vector<32x32xf32>
    %191 = arith.mulf %186, %190 : vector<32x32xf32>
    %192 = vector.broadcast %170 : vector<1x32xf32> to vector<32x32xf32>
    %193 = arith.mulf %191, %192 : vector<32x32xf32>
    %194 = vector.broadcast %171 : vector<1x32xf32> to vector<32x32xf32>
    %195 = arith.addf %193, %194 : vector<32x32xf32>
    %c0_79 = arith.constant 0 : index
    %c0_80 = arith.constant 0 : index
    %196 = vector.load %arg19[%c0_79, %c0_80] : memref<32x512xf32, #tpu.memory_space<vmem>>, vector<32x512xf32>
    %cst_81 = arith.constant dense<0.000000e+00> : vector<32x512xf32>
    %197 = tpu.matmul %195, %196, %cst_81 {dimension_numbers = #tpu.dot_dimension_numbers<[1], [0], [0], [1], [0, 0, 1, 1], [], []>} : vector<32x32xf32>, vector<32x512xf32>, vector<32x512xf32> -> vector<32x512xf32>
    %c0_82 = arith.constant 0 : index
    %c0_83 = arith.constant 0 : index
    %198 = vector.load %arg20[%c0_82, %c0_83] : memref<1x512xf32, #tpu.memory_space<vmem>>, vector<1x512xf32>
    %199 = vector.broadcast %198 : vector<1x512xf32> to vector<32x512xf32>
    %200 = arith.addf %197, %199 : vector<32x512xf32>
    %cst_84 = arith.constant 5.000000e-01 : f32
    %201 = vector.broadcast %cst_84 : f32 to vector<32x512xf32>
    %202 = arith.mulf %201, %200 : vector<32x512xf32>
    %cst_85 = arith.constant 0.707106769 : f32
    %203 = vector.broadcast %cst_85 : f32 to vector<32x512xf32>
    %204 = arith.mulf %200, %203 : vector<32x512xf32>
    %205 = math.erf %204 : vector<32x512xf32>
    %cst_86 = arith.constant 1.000000e+00 : f32
    %206 = vector.broadcast %cst_86 : f32 to vector<32x512xf32>
    %207 = arith.addf %206, %205 : vector<32x512xf32>
    %208 = arith.mulf %202, %207 : vector<32x512xf32>
    %c0_87 = arith.constant 0 : index
    %c0_88 = arith.constant 0 : index
    %209 = vector.load %arg21[%c0_87, %c0_88] : memref<512x32xf32, #tpu.memory_space<vmem>>, vector<512x32xf32>
    %cst_89 = arith.constant dense<0.000000e+00> : vector<32x32xf32>
    %210 = tpu.matmul %208, %209, %cst_89 {dimension_numbers = #tpu.dot_dimension_numbers<[1], [0], [0], [1], [0, 0, 1, 1], [], []>} : vector<32x512xf32>, vector<512x32xf32>, vector<32x32xf32> -> vector<32x32xf32>
    %c0_90 = arith.constant 0 : index
    %c0_91 = arith.constant 0 : index
    %211 = vector.load %arg22[%c0_90, %c0_91] : memref<1x32xf32, #tpu.memory_space<vmem>>, vector<1x32xf32>
    %212 = vector.broadcast %211 : vector<1x32xf32> to vector<32x32xf32>
    %213 = arith.addf %210, %212 : vector<32x32xf32>
    %214 = arith.addf %195, %213 : vector<32x32xf32>
    %c0_92 = arith.constant 0 : index
    %c0_93 = arith.constant 0 : index
    %215 = vector.load %arg23[%c0_92, %c0_93] : memref<1x32xf32, #tpu.memory_space<vmem>>, vector<1x32xf32>
    %c0_94 = arith.constant 0 : index
    %c0_95 = arith.constant 0 : index
    %216 = vector.load %arg24[%c0_94, %c0_95] : memref<1x32xf32, #tpu.memory_space<vmem>>, vector<1x32xf32>
    %cst_96 = arith.constant dense<0.000000e+00> : vector<32xf32>
    %217 = vector.multi_reduction <add>, %214, %cst_96 [1] : vector<32x32xf32> to vector<32xf32>
    %218 = vector.shape_cast %217 : vector<32xf32> to vector<32x1xf32>
    %cst_97 = arith.constant 3.200000e+01 : f32
    %219 = vector.broadcast %cst_97 : f32 to vector<32x1xf32>
    %220 = arith.divf %218, %219 : vector<32x1xf32>
    %221 = vector.broadcast %220 : vector<32x1xf32> to vector<32x32xf32>
    %222 = arith.subf %214, %221 : vector<32x32xf32>
    %223 = vector.broadcast %220 : vector<32x1xf32> to vector<32x32xf32>
    %224 = arith.subf %214, %223 : vector<32x32xf32>
    %225 = arith.mulf %222, %224 : vector<32x32xf32>
    %cst_98 = arith.constant dense<0.000000e+00> : vector<32xf32>
    %226 = vector.multi_reduction <add>, %225, %cst_98 [1] : vector<32x32xf32> to vector<32xf32>
    %227 = vector.shape_cast %226 : vector<32xf32> to vector<32x1xf32>
    %cst_99 = arith.constant 3.200000e+01 : f32
    %228 = vector.broadcast %cst_99 : f32 to vector<32x1xf32>
    %229 = arith.divf %227, %228 : vector<32x1xf32>
    %230 = vector.broadcast %220 : vector<32x1xf32> to vector<32x32xf32>
    %231 = arith.subf %214, %230 : vector<32x32xf32>
    %cst_100 = arith.constant 9.99999974E-6 : f32
    %232 = vector.broadcast %cst_100 : f32 to vector<32x1xf32>
    %233 = arith.addf %229, %232 : vector<32x1xf32>
    %234 = math.rsqrt %233 : vector<32x1xf32>
    %235 = vector.broadcast %234 : vector<32x1xf32> to vector<32x32xf32>
    %236 = arith.mulf %231, %235 : vector<32x32xf32>
    %237 = vector.broadcast %215 : vector<1x32xf32> to vector<32x32xf32>
    %238 = arith.mulf %236, %237 : vector<32x32xf32>
    %239 = vector.broadcast %216 : vector<1x32xf32> to vector<32x32xf32>
    %240 = arith.addf %238, %239 : vector<32x32xf32>
    %c0_101 = arith.constant 0 : index
    %c0_102 = arith.constant 0 : index
    %241 = vector.load %arg25[%c0_101, %c0_102] : memref<32x96xf32, #tpu.memory_space<vmem>>, vector<32x96xf32>
    %cst_103 = arith.constant dense<0.000000e+00> : vector<32x96xf32>
    %242 = tpu.matmul %240, %241, %cst_103 {dimension_numbers = #tpu.dot_dimension_numbers<[1], [0], [0], [1], [0, 0, 1, 1], [], []>} : vector<32x32xf32>, vector<32x96xf32>, vector<32x96xf32> -> vector<32x96xf32>
    %c0_104 = arith.constant 0 : index
    %c0_105 = arith.constant 0 : index
    %243 = vector.load %arg26[%c0_104, %c0_105] : memref<1x96xf32, #tpu.memory_space<vmem>>, vector<1x96xf32>
    %244 = vector.broadcast %243 : vector<1x96xf32> to vector<32x96xf32>
    %245 = arith.addf %242, %244 : vector<32x96xf32>
    %c0_106 = arith.constant 0 : index
    %c0_107 = arith.constant 0 : index
    %246 = vector.load %arg27[%c0_106, %c0_107] : memref<32x32xf32, #tpu.memory_space<vmem>>, vector<32x32xf32>
    %247 = vector.extract_strided_slice %245 {offsets = [0, 0], sizes = [32, 16], strides = [1, 1]} : vector<32x96xf32> to vector<32x16xf32>
    %248 = vector.shape_cast %247 : vector<32x16xf32> to vector<4x8x16xf32>
    %249 = vector.extract_strided_slice %245 {offsets = [0, 32], sizes = [32, 16], strides = [1, 1]} : vector<32x96xf32> to vector<32x16xf32>
    %250 = vector.shape_cast %249 : vector<32x16xf32> to vector<4x8x16xf32>
    %251 = vector.extract_strided_slice %245 {offsets = [0, 64], sizes = [32, 16], strides = [1, 1]} : vector<32x96xf32> to vector<32x16xf32>
    %252 = vector.shape_cast %251 : vector<32x16xf32> to vector<4x8x16xf32>
    %cst_108 = arith.constant dense<0.000000e+00> : vector<4x8x8xf32>
    %253 = tpu.matmul %248, %250, %cst_108 {dimension_numbers = #tpu.dot_dimension_numbers<[2], [2], [1], [1], [0, 0, 0, 1, 1, 1], [0], [0]>} : vector<4x8x16xf32>, vector<4x8x16xf32>, vector<4x8x8xf32> -> vector<4x8x8xf32>
    %cst_109 = arith.constant 2.500000e-01 : f32
    %254 = vector.broadcast %cst_109 : f32 to vector<4x8x8xf32>
    %255 = arith.mulf %253, %254 : vector<4x8x8xf32>
    %256 = vector.shape_cast %3 : vector<8x8xi32> to vector<1x8x8xi32>
    %c0_i32_110 = arith.constant 0 : i32
    %257 = vector.broadcast %c0_i32_110 : i32 to vector<1x8x8xi32>
    %258 = arith.cmpi eq, %256, %257 : vector<1x8x8xi32>
    %cst_111 = arith.constant -1.000000e+09 : f32
    %259 = vector.shape_cast %258 : vector<1x8x8xi1> to vector<1x8x8xi1>
    %260 = vector.broadcast %259 : vector<1x8x8xi1> to vector<4x8x8xi1>
    %261 = vector.broadcast %cst_111 : f32 to vector<4x8x8xf32>
    %262 = arith.select %260, %261, %255 : vector<4x8x8xi1>, vector<4x8x8xf32>
    %cst_112 = arith.constant dense<0xFF800000> : vector<4x8xf32>
    %263 = vector.multi_reduction <maximumf>, %262, %cst_112 [2] : vector<4x8x8xf32> to vector<4x8xf32>
    %264 = vector.shape_cast %263 : vector<4x8xf32> to vector<4x8x1xf32>
    %265 = vector.broadcast %264 : vector<4x8x1xf32> to vector<4x8x8xf32>
    %266 = arith.subf %262, %265 : vector<4x8x8xf32>
    %267 = math.exp %266 : vector<4x8x8xf32>
    %cst_113 = arith.constant dense<0.000000e+00> : vector<4x8xf32>
    %268 = vector.multi_reduction <add>, %267, %cst_113 [2] : vector<4x8x8xf32> to vector<4x8xf32>
    %269 = vector.shape_cast %268 : vector<4x8xf32> to vector<4x8x1xf32>
    %270 = tpu.reciprocal %269 {approx = true} : vector<4x8x1xf32> -> vector<4x8x1xf32>
    %271 = vector.broadcast %270 : vector<4x8x1xf32> to vector<4x8x8xf32>
    %272 = arith.mulf %267, %271 : vector<4x8x8xf32>
    %cst_114 = arith.constant dense<0.000000e+00> : vector<4x8x16xf32>
    %273 = tpu.matmul %272, %252, %cst_114 {dimension_numbers = #tpu.dot_dimension_numbers<[2], [1], [1], [2], [0, 0, 0, 1, 1, 2], [0], [0]>} : vector<4x8x8xf32>, vector<4x8x16xf32>, vector<4x8x16xf32> -> vector<4x8x16xf32>
    %274 = vector.shape_cast %273 : vector<4x8x16xf32> to vector<32x16xf32>
    %275 = vector.extract_strided_slice %246 {offsets = [0, 0], sizes = [16, 32], strides = [1, 1]} : vector<32x32xf32> to vector<16x32xf32>
    %cst_115 = arith.constant dense<0.000000e+00> : vector<32x32xf32>
    %276 = tpu.matmul %274, %275, %cst_115 {dimension_numbers = #tpu.dot_dimension_numbers<[1], [0], [0], [1], [0, 0, 1, 1], [], []>} : vector<32x16xf32>, vector<16x32xf32>, vector<32x32xf32> -> vector<32x32xf32>
    %277 = vector.extract_strided_slice %245 {offsets = [0, 16], sizes = [32, 16], strides = [1, 1]} : vector<32x96xf32> to vector<32x16xf32>
    %278 = vector.shape_cast %277 : vector<32x16xf32> to vector<4x8x16xf32>
    %279 = vector.extract_strided_slice %245 {offsets = [0, 48], sizes = [32, 16], strides = [1, 1]} : vector<32x96xf32> to vector<32x16xf32>
    %280 = vector.shape_cast %279 : vector<32x16xf32> to vector<4x8x16xf32>
    %281 = vector.extract_strided_slice %245 {offsets = [0, 80], sizes = [32, 16], strides = [1, 1]} : vector<32x96xf32> to vector<32x16xf32>
    %282 = vector.shape_cast %281 : vector<32x16xf32> to vector<4x8x16xf32>
    %cst_116 = arith.constant dense<0.000000e+00> : vector<4x8x8xf32>
    %283 = tpu.matmul %278, %280, %cst_116 {dimension_numbers = #tpu.dot_dimension_numbers<[2], [2], [1], [1], [0, 0, 0, 1, 1, 1], [0], [0]>} : vector<4x8x16xf32>, vector<4x8x16xf32>, vector<4x8x8xf32> -> vector<4x8x8xf32>
    %cst_117 = arith.constant 2.500000e-01 : f32
    %284 = vector.broadcast %cst_117 : f32 to vector<4x8x8xf32>
    %285 = arith.mulf %283, %284 : vector<4x8x8xf32>
    %286 = vector.shape_cast %3 : vector<8x8xi32> to vector<1x8x8xi32>
    %c0_i32_118 = arith.constant 0 : i32
    %287 = vector.broadcast %c0_i32_118 : i32 to vector<1x8x8xi32>
    %288 = arith.cmpi eq, %286, %287 : vector<1x8x8xi32>
    %cst_119 = arith.constant -1.000000e+09 : f32
    %289 = vector.shape_cast %288 : vector<1x8x8xi1> to vector<1x8x8xi1>
    %290 = vector.broadcast %289 : vector<1x8x8xi1> to vector<4x8x8xi1>
    %291 = vector.broadcast %cst_119 : f32 to vector<4x8x8xf32>
    %292 = arith.select %290, %291, %285 : vector<4x8x8xi1>, vector<4x8x8xf32>
    %cst_120 = arith.constant dense<0xFF800000> : vector<4x8xf32>
    %293 = vector.multi_reduction <maximumf>, %292, %cst_120 [2] : vector<4x8x8xf32> to vector<4x8xf32>
    %294 = vector.shape_cast %293 : vector<4x8xf32> to vector<4x8x1xf32>
    %295 = vector.broadcast %294 : vector<4x8x1xf32> to vector<4x8x8xf32>
    %296 = arith.subf %292, %295 : vector<4x8x8xf32>
    %297 = math.exp %296 : vector<4x8x8xf32>
    %cst_121 = arith.constant dense<0.000000e+00> : vector<4x8xf32>
    %298 = vector.multi_reduction <add>, %297, %cst_121 [2] : vector<4x8x8xf32> to vector<4x8xf32>
    %299 = vector.shape_cast %298 : vector<4x8xf32> to vector<4x8x1xf32>
    %300 = tpu.reciprocal %299 {approx = true} : vector<4x8x1xf32> -> vector<4x8x1xf32>
    %301 = vector.broadcast %300 : vector<4x8x1xf32> to vector<4x8x8xf32>
    %302 = arith.mulf %297, %301 : vector<4x8x8xf32>
    %cst_122 = arith.constant dense<0.000000e+00> : vector<4x8x16xf32>
    %303 = tpu.matmul %302, %282, %cst_122 {dimension_numbers = #tpu.dot_dimension_numbers<[2], [1], [1], [2], [0, 0, 0, 1, 1, 2], [0], [0]>} : vector<4x8x8xf32>, vector<4x8x16xf32>, vector<4x8x16xf32> -> vector<4x8x16xf32>
    %304 = vector.shape_cast %303 : vector<4x8x16xf32> to vector<32x16xf32>
    %305 = vector.extract_strided_slice %246 {offsets = [16, 0], sizes = [16, 32], strides = [1, 1]} : vector<32x32xf32> to vector<16x32xf32>
    %cst_123 = arith.constant dense<0.000000e+00> : vector<32x32xf32>
    %306 = tpu.matmul %304, %305, %cst_123 {dimension_numbers = #tpu.dot_dimension_numbers<[1], [0], [0], [1], [0, 0, 1, 1], [], []>} : vector<32x16xf32>, vector<16x32xf32>, vector<32x32xf32> -> vector<32x32xf32>
    %307 = arith.addf %276, %306 : vector<32x32xf32>
    %c0_124 = arith.constant 0 : index
    %c0_125 = arith.constant 0 : index
    %308 = vector.load %arg28[%c0_124, %c0_125] : memref<1x32xf32, #tpu.memory_space<vmem>>, vector<1x32xf32>
    %309 = vector.broadcast %308 : vector<1x32xf32> to vector<32x32xf32>
    %310 = arith.addf %307, %309 : vector<32x32xf32>
    %311 = arith.addf %240, %310 : vector<32x32xf32>
    %c0_126 = arith.constant 0 : index
    %c0_127 = arith.constant 0 : index
    %312 = vector.load %arg29[%c0_126, %c0_127] : memref<1x32xf32, #tpu.memory_space<vmem>>, vector<1x32xf32>
    %c0_128 = arith.constant 0 : index
    %c0_129 = arith.constant 0 : index
    %313 = vector.load %arg30[%c0_128, %c0_129] : memref<1x32xf32, #tpu.memory_space<vmem>>, vector<1x32xf32>
    %cst_130 = arith.constant dense<0.000000e+00> : vector<32xf32>
    %314 = vector.multi_reduction <add>, %311, %cst_130 [1] : vector<32x32xf32> to vector<32xf32>
    %315 = vector.shape_cast %314 : vector<32xf32> to vector<32x1xf32>
    %cst_131 = arith.constant 3.200000e+01 : f32
    %316 = vector.broadcast %cst_131 : f32 to vector<32x1xf32>
    %317 = arith.divf %315, %316 : vector<32x1xf32>
    %318 = vector.broadcast %317 : vector<32x1xf32> to vector<32x32xf32>
    %319 = arith.subf %311, %318 : vector<32x32xf32>
    %320 = vector.broadcast %317 : vector<32x1xf32> to vector<32x32xf32>
    %321 = arith.subf %311, %320 : vector<32x32xf32>
    %322 = arith.mulf %319, %321 : vector<32x32xf32>
    %cst_132 = arith.constant dense<0.000000e+00> : vector<32xf32>
    %323 = vector.multi_reduction <add>, %322, %cst_132 [1] : vector<32x32xf32> to vector<32xf32>
    %324 = vector.shape_cast %323 : vector<32xf32> to vector<32x1xf32>
    %cst_133 = arith.constant 3.200000e+01 : f32
    %325 = vector.broadcast %cst_133 : f32 to vector<32x1xf32>
    %326 = arith.divf %324, %325 : vector<32x1xf32>
    %327 = vector.broadcast %317 : vector<32x1xf32> to vector<32x32xf32>
    %328 = arith.subf %311, %327 : vector<32x32xf32>
    %cst_134 = arith.constant 9.99999974E-6 : f32
    %329 = vector.broadcast %cst_134 : f32 to vector<32x1xf32>
    %330 = arith.addf %326, %329 : vector<32x1xf32>
    %331 = math.rsqrt %330 : vector<32x1xf32>
    %332 = vector.broadcast %331 : vector<32x1xf32> to vector<32x32xf32>
    %333 = arith.mulf %328, %332 : vector<32x32xf32>
    %334 = vector.broadcast %312 : vector<1x32xf32> to vector<32x32xf32>
    %335 = arith.mulf %333, %334 : vector<32x32xf32>
    %336 = vector.broadcast %313 : vector<1x32xf32> to vector<32x32xf32>
    %337 = arith.addf %335, %336 : vector<32x32xf32>
    %c0_135 = arith.constant 0 : index
    %c0_136 = arith.constant 0 : index
    %338 = vector.load %arg31[%c0_135, %c0_136] : memref<32x32xf32, #tpu.memory_space<vmem>>, vector<32x32xf32>
    %cst_137 = arith.constant dense<0.000000e+00> : vector<32x32xf32>
    %339 = tpu.matmul %337, %338, %cst_137 {dimension_numbers = #tpu.dot_dimension_numbers<[1], [0], [0], [1], [0, 0, 1, 1], [], []>} : vector<32x32xf32>, vector<32x32xf32>, vector<32x32xf32> -> vector<32x32xf32>
    %c0_138 = arith.constant 0 : index
    %c0_139 = arith.constant 0 : index
    %340 = vector.load %arg32[%c0_138, %c0_139] : memref<1x32xf32, #tpu.memory_space<vmem>>, vector<1x32xf32>
    %341 = vector.broadcast %340 : vector<1x32xf32> to vector<32x32xf32>
    %342 = arith.addf %339, %341 : vector<32x32xf32>
    %c0_140 = arith.constant 0 : index
    %c0_141 = arith.constant 0 : index
    %343 = vector.load %arg33[%c0_140, %c0_141] : memref<32x64xf32, #tpu.memory_space<vmem>>, vector<32x64xf32>
    %cst_142 = arith.constant dense<0.000000e+00> : vector<8x64xf32>
    %344 = tpu.matmul %2, %343, %cst_142 {dimension_numbers = #tpu.dot_dimension_numbers<[1], [0], [0], [1], [0, 0, 1, 1], [], []>} : vector<8x32xf32>, vector<32x64xf32>, vector<8x64xf32> -> vector<8x64xf32>
    %c0_143 = arith.constant 0 : index
    %c0_144 = arith.constant 0 : index
    %345 = vector.load %arg34[%c0_143, %c0_144] : memref<1x64xf32, #tpu.memory_space<vmem>>, vector<1x64xf32>
    %346 = vector.broadcast %345 : vector<1x64xf32> to vector<8x64xf32>
    %347 = arith.addf %344, %346 : vector<8x64xf32>
    %348 = vector.extract_strided_slice %347 {offsets = [0, 0], sizes = [8, 32], strides = [1, 1]} : vector<8x64xf32> to vector<8x32xf32>
    %349 = vector.extract_strided_slice %347 {offsets = [0, 32], sizes = [8, 32], strides = [1, 1]} : vector<8x64xf32> to vector<8x32xf32>
    %c0_145 = arith.constant 0 : index
    %c0_146 = arith.constant 0 : index
    %350 = vector.load %arg35[%c0_145, %c0_146] : memref<32x32xf32, #tpu.memory_space<vmem>>, vector<32x32xf32>
    %351 = vector.extract_strided_slice %342 {offsets = [0, 0], sizes = [32, 16], strides = [1, 1]} : vector<32x32xf32> to vector<32x16xf32>
    %352 = vector.extract_strided_slice %348 {offsets = [0, 0], sizes = [8, 16], strides = [1, 1]} : vector<8x32xf32> to vector<8x16xf32>
    %353 = vector.extract_strided_slice %349 {offsets = [0, 0], sizes = [8, 16], strides = [1, 1]} : vector<8x32xf32> to vector<8x16xf32>
    %cst_147 = arith.constant dense<0.000000e+00> : vector<32x8xf32>
    %354 = tpu.matmul %351, %352, %cst_147 {dimension_numbers = #tpu.dot_dimension_numbers<[1], [1], [0], [0], [0, 0, 1, 0], [], []>} : vector<32x16xf32>, vector<8x16xf32>, vector<32x8xf32> -> vector<32x8xf32>
    %cst_148 = arith.constant 2.500000e-01 : f32
    %355 = vector.broadcast %cst_148 : f32 to vector<32x8xf32>
    %356 = arith.mulf %354, %355 : vector<32x8xf32>
    %c0_i32_149 = arith.constant 0 : i32
    %357 = vector.broadcast %c0_i32_149 : i32 to vector<1x8xi32>
    %358 = arith.cmpi eq, %4, %357 : vector<1x8xi32>
    %cst_150 = arith.constant -1.000000e+09 : f32
    %359 = vector.shape_cast %358 : vector<1x8xi1> to vector<1x8xi1>
    %360 = vector.broadcast %359 : vector<1x8xi1> to vector<32x8xi1>
    %361 = vector.broadcast %cst_150 : f32 to vector<32x8xf32>
    %362 = arith.select %360, %361, %356 : vector<32x8xi1>, vector<32x8xf32>
    %cst_151 = arith.constant dense<0xFF800000> : vector<32xf32>
    %363 = vector.multi_reduction <maximumf>, %362, %cst_151 [1] : vector<32x8xf32> to vector<32xf32>
    %364 = vector.shape_cast %363 : vector<32xf32> to vector<32x1xf32>
    %365 = vector.broadcast %364 : vector<32x1xf32> to vector<32x8xf32>
    %366 = arith.subf %362, %365 : vector<32x8xf32>
    %367 = math.exp %366 : vector<32x8xf32>
    %cst_152 = arith.constant dense<0.000000e+00> : vector<32xf32>
    %368 = vector.multi_reduction <add>, %367, %cst_152 [1] : vector<32x8xf32> to vector<32xf32>
    %369 = vector.shape_cast %368 : vector<32xf32> to vector<32x1xf32>
    %370 = tpu.reciprocal %369 {approx = true} : vector<32x1xf32> -> vector<32x1xf32>
    %371 = vector.broadcast %370 : vector<32x1xf32> to vector<32x8xf32>
    %372 = arith.mulf %367, %371 : vector<32x8xf32>
    %cst_153 = arith.constant dense<0.000000e+00> : vector<32x16xf32>
    %373 = tpu.matmul %372, %353, %cst_153 {dimension_numbers = #tpu.dot_dimension_numbers<[1], [0], [0], [1], [0, 0, 1, 1], [], []>} : vector<32x8xf32>, vector<8x16xf32>, vector<32x16xf32> -> vector<32x16xf32>
    %374 = vector.extract_strided_slice %350 {offsets = [0, 0], sizes = [16, 32], strides = [1, 1]} : vector<32x32xf32> to vector<16x32xf32>
    %cst_154 = arith.constant dense<0.000000e+00> : vector<32x32xf32>
    %375 = tpu.matmul %373, %374, %cst_154 {dimension_numbers = #tpu.dot_dimension_numbers<[1], [0], [0], [1], [0, 0, 1, 1], [], []>} : vector<32x16xf32>, vector<16x32xf32>, vector<32x32xf32> -> vector<32x32xf32>
    %376 = vector.extract_strided_slice %342 {offsets = [0, 16], sizes = [32, 16], strides = [1, 1]} : vector<32x32xf32> to vector<32x16xf32>
    %377 = vector.extract_strided_slice %348 {offsets = [0, 16], sizes = [8, 16], strides = [1, 1]} : vector<8x32xf32> to vector<8x16xf32>
    %378 = vector.extract_strided_slice %349 {offsets = [0, 16], sizes = [8, 16], strides = [1, 1]} : vector<8x32xf32> to vector<8x16xf32>
    %cst_155 = arith.constant dense<0.000000e+00> : vector<32x8xf32>
    %379 = tpu.matmul %376, %377, %cst_155 {dimension_numbers = #tpu.dot_dimension_numbers<[1], [1], [0], [0], [0, 0, 1, 0], [], []>} : vector<32x16xf32>, vector<8x16xf32>, vector<32x8xf32> -> vector<32x8xf32>
    %cst_156 = arith.constant 2.500000e-01 : f32
    %380 = vector.broadcast %cst_156 : f32 to vector<32x8xf32>
    %381 = arith.mulf %379, %380 : vector<32x8xf32>
    %c0_i32_157 = arith.constant 0 : i32
    %382 = vector.broadcast %c0_i32_157 : i32 to vector<1x8xi32>
    %383 = arith.cmpi eq, %4, %382 : vector<1x8xi32>
    %cst_158 = arith.constant -1.000000e+09 : f32
    %384 = vector.shape_cast %383 : vector<1x8xi1> to vector<1x8xi1>
    %385 = vector.broadcast %384 : vector<1x8xi1> to vector<32x8xi1>
    %386 = vector.broadcast %cst_158 : f32 to vector<32x8xf32>
    %387 = arith.select %385, %386, %381 : vector<32x8xi1>, vector<32x8xf32>
    %cst_159 = arith.constant dense<0xFF800000> : vector<32xf32>
    %388 = vector.multi_reduction <maximumf>, %387, %cst_159 [1] : vector<32x8xf32> to vector<32xf32>
    %389 = vector.shape_cast %388 : vector<32xf32> to vector<32x1xf32>
    %390 = vector.broadcast %389 : vector<32x1xf32> to vector<32x8xf32>
    %391 = arith.subf %387, %390 : vector<32x8xf32>
    %392 = math.exp %391 : vector<32x8xf32>
    %cst_160 = arith.constant dense<0.000000e+00> : vector<32xf32>
    %393 = vector.multi_reduction <add>, %392, %cst_160 [1] : vector<32x8xf32> to vector<32xf32>
    %394 = vector.shape_cast %393 : vector<32xf32> to vector<32x1xf32>
    %395 = tpu.reciprocal %394 {approx = true} : vector<32x1xf32> -> vector<32x1xf32>
    %396 = vector.broadcast %395 : vector<32x1xf32> to vector<32x8xf32>
    %397 = arith.mulf %392, %396 : vector<32x8xf32>
    %cst_161 = arith.constant dense<0.000000e+00> : vector<32x16xf32>
    %398 = tpu.matmul %397, %378, %cst_161 {dimension_numbers = #tpu.dot_dimension_numbers<[1], [0], [0], [1], [0, 0, 1, 1], [], []>} : vector<32x8xf32>, vector<8x16xf32>, vector<32x16xf32> -> vector<32x16xf32>
    %399 = vector.extract_strided_slice %350 {offsets = [16, 0], sizes = [16, 32], strides = [1, 1]} : vector<32x32xf32> to vector<16x32xf32>
    %cst_162 = arith.constant dense<0.000000e+00> : vector<32x32xf32>
    %400 = tpu.matmul %398, %399, %cst_162 {dimension_numbers = #tpu.dot_dimension_numbers<[1], [0], [0], [1], [0, 0, 1, 1], [], []>} : vector<32x16xf32>, vector<16x32xf32>, vector<32x32xf32> -> vector<32x32xf32>
    %401 = arith.addf %375, %400 : vector<32x32xf32>
    %c0_163 = arith.constant 0 : index
    %c0_164 = arith.constant 0 : index
    %402 = vector.load %arg36[%c0_163, %c0_164] : memref<1x32xf32, #tpu.memory_space<vmem>>, vector<1x32xf32>
    %403 = vector.broadcast %402 : vector<1x32xf32> to vector<32x32xf32>
    %404 = arith.addf %401, %403 : vector<32x32xf32>
    %405 = arith.addf %337, %404 : vector<32x32xf32>
    %c0_165 = arith.constant 0 : index
    %c0_166 = arith.constant 0 : index
    %406 = vector.load %arg37[%c0_165, %c0_166] : memref<1x32xf32, #tpu.memory_space<vmem>>, vector<1x32xf32>
    %c0_167 = arith.constant 0 : index
    %c0_168 = arith.constant 0 : index
    %407 = vector.load %arg38[%c0_167, %c0_168] : memref<1x32xf32, #tpu.memory_space<vmem>>, vector<1x32xf32>
    %cst_169 = arith.constant dense<0.000000e+00> : vector<32xf32>
    %408 = vector.multi_reduction <add>, %405, %cst_169 [1] : vector<32x32xf32> to vector<32xf32>
    %409 = vector.shape_cast %408 : vector<32xf32> to vector<32x1xf32>
    %cst_170 = arith.constant 3.200000e+01 : f32
    %410 = vector.broadcast %cst_170 : f32 to vector<32x1xf32>
    %411 = arith.divf %409, %410 : vector<32x1xf32>
    %412 = vector.broadcast %411 : vector<32x1xf32> to vector<32x32xf32>
    %413 = arith.subf %405, %412 : vector<32x32xf32>
    %414 = vector.broadcast %411 : vector<32x1xf32> to vector<32x32xf32>
    %415 = arith.subf %405, %414 : vector<32x32xf32>
    %416 = arith.mulf %413, %415 : vector<32x32xf32>
    %cst_171 = arith.constant dense<0.000000e+00> : vector<32xf32>
    %417 = vector.multi_reduction <add>, %416, %cst_171 [1] : vector<32x32xf32> to vector<32xf32>
    %418 = vector.shape_cast %417 : vector<32xf32> to vector<32x1xf32>
    %cst_172 = arith.constant 3.200000e+01 : f32
    %419 = vector.broadcast %cst_172 : f32 to vector<32x1xf32>
    %420 = arith.divf %418, %419 : vector<32x1xf32>
    %421 = vector.broadcast %411 : vector<32x1xf32> to vector<32x32xf32>
    %422 = arith.subf %405, %421 : vector<32x32xf32>
    %cst_173 = arith.constant 9.99999974E-6 : f32
    %423 = vector.broadcast %cst_173 : f32 to vector<32x1xf32>
    %424 = arith.addf %420, %423 : vector<32x1xf32>
    %425 = math.rsqrt %424 : vector<32x1xf32>
    %426 = vector.broadcast %425 : vector<32x1xf32> to vector<32x32xf32>
    %427 = arith.mulf %422, %426 : vector<32x32xf32>
    %428 = vector.broadcast %406 : vector<1x32xf32> to vector<32x32xf32>
    %429 = arith.mulf %427, %428 : vector<32x32xf32>
    %430 = vector.broadcast %407 : vector<1x32xf32> to vector<32x32xf32>
    %431 = arith.addf %429, %430 : vector<32x32xf32>
    %c0_174 = arith.constant 0 : index
    %c0_175 = arith.constant 0 : index
    %432 = vector.load %arg39[%c0_174, %c0_175] : memref<32x512xf32, #tpu.memory_space<vmem>>, vector<32x512xf32>
    %cst_176 = arith.constant dense<0.000000e+00> : vector<32x512xf32>
    %433 = tpu.matmul %431, %432, %cst_176 {dimension_numbers = #tpu.dot_dimension_numbers<[1], [0], [0], [1], [0, 0, 1, 1], [], []>} : vector<32x32xf32>, vector<32x512xf32>, vector<32x512xf32> -> vector<32x512xf32>
    %c0_177 = arith.constant 0 : index
    %c0_178 = arith.constant 0 : index
    %434 = vector.load %arg40[%c0_177, %c0_178] : memref<1x512xf32, #tpu.memory_space<vmem>>, vector<1x512xf32>
    %435 = vector.broadcast %434 : vector<1x512xf32> to vector<32x512xf32>
    %436 = arith.addf %433, %435 : vector<32x512xf32>
    %cst_179 = arith.constant 5.000000e-01 : f32
    %437 = vector.broadcast %cst_179 : f32 to vector<32x512xf32>
    %438 = arith.mulf %437, %436 : vector<32x512xf32>
    %cst_180 = arith.constant 0.707106769 : f32
    %439 = vector.broadcast %cst_180 : f32 to vector<32x512xf32>
    %440 = arith.mulf %436, %439 : vector<32x512xf32>
    %441 = math.erf %440 : vector<32x512xf32>
    %cst_181 = arith.constant 1.000000e+00 : f32
    %442 = vector.broadcast %cst_181 : f32 to vector<32x512xf32>
    %443 = arith.addf %442, %441 : vector<32x512xf32>
    %444 = arith.mulf %438, %443 : vector<32x512xf32>
    %c0_182 = arith.constant 0 : index
    %c0_183 = arith.constant 0 : index
    %445 = vector.load %arg41[%c0_182, %c0_183] : memref<512x32xf32, #tpu.memory_space<vmem>>, vector<512x32xf32>
    %cst_184 = arith.constant dense<0.000000e+00> : vector<32x32xf32>
    %446 = tpu.matmul %444, %445, %cst_184 {dimension_numbers = #tpu.dot_dimension_numbers<[1], [0], [0], [1], [0, 0, 1, 1], [], []>} : vector<32x512xf32>, vector<512x32xf32>, vector<32x32xf32> -> vector<32x32xf32>
    %c0_185 = arith.constant 0 : index
    %c0_186 = arith.constant 0 : index
    %447 = vector.load %arg42[%c0_185, %c0_186] : memref<1x32xf32, #tpu.memory_space<vmem>>, vector<1x32xf32>
    %448 = vector.broadcast %447 : vector<1x32xf32> to vector<32x32xf32>
    %449 = arith.addf %446, %448 : vector<32x32xf32>
    %450 = arith.addf %431, %449 : vector<32x32xf32>
    %c0_187 = arith.constant 0 : index
    %c0_188 = arith.constant 0 : index
    %451 = vector.load %arg43[%c0_187, %c0_188] : memref<1x32xf32, #tpu.memory_space<vmem>>, vector<1x32xf32>
    %c0_189 = arith.constant 0 : index
    %c0_190 = arith.constant 0 : index
    %452 = vector.load %arg44[%c0_189, %c0_190] : memref<1x32xf32, #tpu.memory_space<vmem>>, vector<1x32xf32>
    %cst_191 = arith.constant dense<0.000000e+00> : vector<32xf32>
    %453 = vector.multi_reduction <add>, %450, %cst_191 [1] : vector<32x32xf32> to vector<32xf32>
    %454 = vector.shape_cast %453 : vector<32xf32> to vector<32x1xf32>
    %cst_192 = arith.constant 3.200000e+01 : f32
    %455 = vector.broadcast %cst_192 : f32 to vector<32x1xf32>
    %456 = arith.divf %454, %455 : vector<32x1xf32>
    %457 = vector.broadcast %456 : vector<32x1xf32> to vector<32x32xf32>
    %458 = arith.subf %450, %457 : vector<32x32xf32>
    %459 = vector.broadcast %456 : vector<32x1xf32> to vector<32x32xf32>
    %460 = arith.subf %450, %459 : vector<32x32xf32>
    %461 = arith.mulf %458, %460 : vector<32x32xf32>
    %cst_193 = arith.constant dense<0.000000e+00> : vector<32xf32>
    %462 = vector.multi_reduction <add>, %461, %cst_193 [1] : vector<32x32xf32> to vector<32xf32>
    %463 = vector.shape_cast %462 : vector<32xf32> to vector<32x1xf32>
    %cst_194 = arith.constant 3.200000e+01 : f32
    %464 = vector.broadcast %cst_194 : f32 to vector<32x1xf32>
    %465 = arith.divf %463, %464 : vector<32x1xf32>
    %466 = vector.broadcast %456 : vector<32x1xf32> to vector<32x32xf32>
    %467 = arith.subf %450, %466 : vector<32x32xf32>
    %cst_195 = arith.constant 9.99999974E-6 : f32
    %468 = vector.broadcast %cst_195 : f32 to vector<32x1xf32>
    %469 = arith.addf %465, %468 : vector<32x1xf32>
    %470 = math.rsqrt %469 : vector<32x1xf32>
    %471 = vector.broadcast %470 : vector<32x1xf32> to vector<32x32xf32>
    %472 = arith.mulf %467, %471 : vector<32x32xf32>
    %473 = vector.broadcast %451 : vector<1x32xf32> to vector<32x32xf32>
    %474 = arith.mulf %472, %473 : vector<32x32xf32>
    %475 = vector.broadcast %452 : vector<1x32xf32> to vector<32x32xf32>
    %476 = arith.addf %474, %475 : vector<32x32xf32>
    %c0_196 = arith.constant 0 : index
    %c0_197 = arith.constant 0 : index
    %477 = vector.load %arg45[%c0_196, %c0_197] : memref<32x16xf32, #tpu.memory_space<vmem>>, vector<32x16xf32>
    %cst_198 = arith.constant dense<0.000000e+00> : vector<32x16xf32>
    %478 = tpu.matmul %476, %477, %cst_198 {dimension_numbers = #tpu.dot_dimension_numbers<[1], [0], [0], [1], [0, 0, 1, 1], [], []>} : vector<32x32xf32>, vector<32x16xf32>, vector<32x16xf32> -> vector<32x16xf32>
    %c0_199 = arith.constant 0 : index
    %c0_200 = arith.constant 0 : index
    %479 = vector.load %arg46[%c0_199, %c0_200] : memref<1x16xf32, #tpu.memory_space<vmem>>, vector<1x16xf32>
    %480 = vector.broadcast %479 : vector<1x16xf32> to vector<32x16xf32>
    %481 = arith.addf %478, %480 : vector<32x16xf32>
    %c0_201 = arith.constant 0 : index
    %c0_202 = arith.constant 0 : index
    %482 = vector.load %arg47[%c0_201, %c0_202] : memref<32x16xf32, #tpu.memory_space<vmem>>, vector<32x16xf32>
    tpu.vector_store %arg47[%c0_201, %c0_202], %481 {strides = array<i32>} : memref<32x16xf32, #tpu.memory_space<vmem>>, vector<32x16xf32>,
    return
  }
  func.func @transform_0(%arg0: i32) -> (i32, i32) {
    %c0_i32 = arith.constant 0 : i32
    %c0_i32_0 = arith.constant 0 : i32
    return %arg0, %c0_i32 : i32, i32
  }
  func.func @transform_1(%arg0: i32) -> (i32, i32, i32) {
    %c0_i32 = arith.constant 0 : i32
    %c0_i32_0 = arith.constant 0 : i32
    %c0_i32_1 = arith.constant 0 : i32
    %c0_i32_2 = arith.constant 0 : i32
    return %c0_i32, %c0_i32_0, %c0_i32_1 : i32, i32, i32
  }
  func.func @transform_2(%arg0: i32) -> (i32, i32) {
    %c0_i32 = arith.constant 0 : i32
    %c0_i32_0 = arith.constant 0 : i32
    %c0_i32_1 = arith.constant 0 : i32
    return %c0_i32, %c0_i32_0 : i32, i32
  }
  func.func @transform_3(%arg0: i32) -> (i32, i32) {
    %c0_i32 = arith.constant 0 : i32
    %c0_i32_0 = arith.constant 0 : i32
    %c0_i32_1 = arith.constant 0 : i32
    return %c0_i32, %c0_i32_0 : i32, i32
  }
  func.func @transform_4(%arg0: i32) -> (i32, i32) {
    %c0_i32 = arith.constant 0 : i32
    %c0_i32_0 = arith.constant 0 : i32
    %c0_i32_1 = arith.constant 0 : i32
    return %c0_i32, %c0_i32_0 : i32, i32
  }
  func.func @transform_5(%arg0: i32) -> (i32, i32) {
    %c0_i32 = arith.constant 0 : i32
    %c0_i32_0 = arith.constant 0 : i32
    %c0_i32_1 = arith.constant 0 : i32
    return %c0_i32, %c0_i32_0 : i32, i32
  }
  func.func @transform_6(%arg0: i32) -> (i32, i32) {
    %c0_i32 = arith.constant 0 : i32
    %c0_i32_0 = arith.constant 0 : i32
    %c0_i32_1 = arith.constant 0 : i32
    return %c0_i32, %c0_i32_0 : i32, i32
  }
  func.func @transform_7(%arg0: i32) -> (i32, i32) {
    %c0_i32 = arith.constant 0 : i32
    %c0_i32_0 = arith.constant 0 : i32
    %c0_i32_1 = arith.constant 0 : i32
    return %c0_i32, %c0_i32_0 : i32, i32
  }
  func.func @transform_8(%arg0: i32) -> (i32, i32) {
    %c0_i32 = arith.constant 0 : i32
    %c0_i32_0 = arith.constant 0 : i32
    %c0_i32_1 = arith.constant 0 : i32
    return %c0_i32, %c0_i32_0 : i32, i32
  }
  func.func @transform_9(%arg0: i32) -> (i32, i32) {
    %c0_i32 = arith.constant 0 : i32
    %c0_i32_0 = arith.constant 0 : i32
    %c0_i32_1 = arith.constant 0 : i32
    return %c0_i32, %c0_i32_0 : i32, i32
  }
  func.func @transform_10(%arg0: i32) -> (i32, i32) {
    %c0_i32 = arith.constant 0 : i32
    %c0_i32_0 = arith.constant 0 : i32
    %c0_i32_1 = arith.constant 0 : i32
    return %c0_i32, %c0_i32_0 : i32, i32
  }
  func.func @transform_11(%arg0: i32) -> (i32, i32) {
    %c0_i32 = arith.constant 0 : i32
    %c0_i32_0 = arith.constant 0 : i32
    %c0_i32_1 = arith.constant 0 : i32
    return %c0_i32, %c0_i32_0 : i32, i32
  }
  func.func @transform_12(%arg0: i32) -> (i32, i32) {
    %c0_i32 = arith.constant 0 : i32
    %c0_i32_0 = arith.constant 0 : i32
    %c0_i32_1 = arith.constant 0 : i32
    return %c0_i32, %c0_i32_0 : i32, i32
  }
  func.func @transform_13(%arg0: i32) -> (i32, i32) {
    %c0_i32 = arith.constant 0 : i32
    %c0_i32_0 = arith.constant 0 : i32
    %c0_i32_1 = arith.constant 0 : i32
    return %c0_i32, %c0_i32_0 : i32, i32
  }
  func.func @transform_14(%arg0: i32) -> (i32, i32) {
    %c0_i32 = arith.constant 0 : i32
    %c0_i32_0 = arith.constant 0 : i32
    %c0_i32_1 = arith.constant 0 : i32
    return %c0_i32, %c0_i32_0 : i32, i32
  }
  func.func @transform_15(%arg0: i32) -> (i32, i32) {
    %c0_i32 = arith.constant 0 : i32
    %c0_i32_0 = arith.constant 0 : i32
    %c0_i32_1 = arith.constant 0 : i32
    return %c0_i32, %c0_i32_0 : i32, i32
  }
  func.func @transform_16(%arg0: i32) -> (i32, i32) {
    %c0_i32 = arith.constant 0 : i32
    %c0_i32_0 = arith.constant 0 : i32
    %c0_i32_1 = arith.constant 0 : i32
    return %c0_i32, %c0_i32_0 : i32, i32
  }
  func.func @transform_17(%arg0: i32) -> (i32, i32) {
    %c0_i32 = arith.constant 0 : i32
    %c0_i32_0 = arith.constant 0 : i32
    %c0_i32_1 = arith.constant 0 : i32
    return %c0_i32, %c0_i32_0 : i32, i32
  }
  func.func @transform_18(%arg0: i32) -> (i32, i32) {
    %c0_i32 = arith.constant 0 : i32
    %c0_i32_0 = arith.constant 0 : i32
    %c0_i32_1 = arith.constant 0 : i32
    return %c0_i32, %c0_i32_0 : i32, i32
  }
  func.func @transform_19(%arg0: i32) -> (i32, i32) {
    %c0_i32 = arith.constant 0 : i32
    %c0_i32_0 = arith.constant 0 : i32
    %c0_i32_1 = arith.constant 0 : i32
    return %c0_i32, %c0_i32_0 : i32, i32
  }
  func.func @transform_20(%arg0: i32) -> (i32, i32) {
    %c0_i32 = arith.constant 0 : i32
    %c0_i32_0 = arith.constant 0 : i32
    %c0_i32_1 = arith.constant 0 : i32
    return %c0_i32, %c0_i32_0 : i32, i32
  }
  func.func @transform_21(%arg0: i32) -> (i32, i32) {
    %c0_i32 = arith.constant 0 : i32
    %c0_i32_0 = arith.constant 0 : i32
    %c0_i32_1 = arith.constant 0 : i32
    return %c0_i32, %c0_i32_0 : i32, i32
  }
  func.func @transform_22(%arg0: i32) -> (i32, i32) {
    %c0_i32 = arith.constant 0 : i32
    %c0_i32_0 = arith.constant 0 : i32
    %c0_i32_1 = arith.constant 0 : i32
    return %c0_i32, %c0_i32_0 : i32, i32
  }
  func.func @transform_23(%arg0: i32) -> (i32, i32) {
    %c0_i32 = arith.constant 0 : i32
    %c0_i32_0 = arith.constant 0 : i32
    %c0_i32_1 = arith.constant 0 : i32
    return %c0_i32, %c0_i32_0 : i32, i32
  }
  func.func @transform_24(%arg0: i32) -> (i32, i32) {
    %c0_i32 = arith.constant 0 : i32
    %c0_i32_0 = arith.constant 0 : i32
    %c0_i32_1 = arith.constant 0 : i32
    return %c0_i32, %c0_i32_0 : i32, i32
  }
  func.func @transform_25(%arg0: i32) -> (i32, i32) {
    %c0_i32 = arith.constant 0 : i32
    %c0_i32_0 = arith.constant 0 : i32
    %c0_i32_1 = arith.constant 0 : i32
    return %c0_i32, %c0_i32_0 : i32, i32
  }
  func.func @transform_26(%arg0: i32) -> (i32, i32) {
    %c0_i32 = arith.constant 0 : i32
    %c0_i32_0 = arith.constant 0 : i32
    %c0_i32_1 = arith.constant 0 : i32
    return %c0_i32, %c0_i32_0 : i32, i32
  }
  func.func @transform_27(%arg0: i32) -> (i32, i32) {
    %c0_i32 = arith.constant 0 : i32
    %c0_i32_0 = arith.constant 0 : i32
    %c0_i32_1 = arith.constant 0 : i32
    return %c0_i32, %c0_i32_0 : i32, i32
  }
  func.func @transform_28(%arg0: i32) -> (i32, i32) {
    %c0_i32 = arith.constant 0 : i32
    %c0_i32_0 = arith.constant 0 : i32
    %c0_i32_1 = arith.constant 0 : i32
    return %c0_i32, %c0_i32_0 : i32, i32
  }
  func.func @transform_29(%arg0: i32) -> (i32, i32) {
    %c0_i32 = arith.constant 0 : i32
    %c0_i32_0 = arith.constant 0 : i32
    %c0_i32_1 = arith.constant 0 : i32
    return %c0_i32, %c0_i32_0 : i32, i32
  }
  func.func @transform_30(%arg0: i32) -> (i32, i32) {
    %c0_i32 = arith.constant 0 : i32
    %c0_i32_0 = arith.constant 0 : i32
    %c0_i32_1 = arith.constant 0 : i32
    return %c0_i32, %c0_i32_0 : i32, i32
  }
  func.func @transform_31(%arg0: i32) -> (i32, i32) {
    %c0_i32 = arith.constant 0 : i32
    %c0_i32_0 = arith.constant 0 : i32
    %c0_i32_1 = arith.constant 0 : i32
    return %c0_i32, %c0_i32_0 : i32, i32
  }
  func.func @transform_32(%arg0: i32) -> (i32, i32) {
    %c0_i32 = arith.constant 0 : i32
    %c0_i32_0 = arith.constant 0 : i32
    %c0_i32_1 = arith.constant 0 : i32
    return %c0_i32, %c0_i32_0 : i32, i32
  }
  func.func @transform_33(%arg0: i32) -> (i32, i32) {
    %c0_i32 = arith.constant 0 : i32
    %c0_i32_0 = arith.constant 0 : i32
    %c0_i32_1 = arith.constant 0 : i32
    return %c0_i32, %c0_i32_0 : i32, i32
  }
  func.func @transform_34(%arg0: i32) -> (i32, i32) {
    %c0_i32 = arith.constant 0 : i32
    %c0_i32_0 = arith.constant 0 : i32
    %c0_i32_1 = arith.constant 0 : i32
    return %c0_i32, %c0_i32_0 : i32, i32
  }
  func.func @transform_35(%arg0: i32) -> (i32, i32) {
    %c0_i32 = arith.constant 0 : i32
    %c0_i32_0 = arith.constant 0 : i32
    %c0_i32_1 = arith.constant 0 : i32
    return %c0_i32, %c0_i32_0 : i32, i32
  }
  func.func @transform_36(%arg0: i32) -> (i32, i32) {
    %c0_i32 = arith.constant 0 : i32
    %c0_i32_0 = arith.constant 0 : i32
    %c0_i32_1 = arith.constant 0 : i32
    return %c0_i32, %c0_i32_0 : i32, i32
  }
  func.func @transform_37(%arg0: i32) -> (i32, i32) {
    %c0_i32 = arith.constant 0 : i32
    %c0_i32_0 = arith.constant 0 : i32
    %c0_i32_1 = arith.constant 0 : i32
    return %c0_i32, %c0_i32_0 : i32, i32
  }
  func.func @transform_38(%arg0: i32) -> (i32, i32) {
    %c0_i32 = arith.constant 0 : i32
    %c0_i32_0 = arith.constant 0 : i32
    %c0_i32_1 = arith.constant 0 : i32
    return %c0_i32, %c0_i32_0 : i32, i32
  }
  func.func @transform_39(%arg0: i32) -> (i32, i32) {
    %c0_i32 = arith.constant 0 : i32
    %c0_i32_0 = arith.constant 0 : i32
    %c0_i32_1 = arith.constant 0 : i32
    return %c0_i32, %c0_i32_0 : i32, i32
  }
  func.func @transform_40(%arg0: i32) -> (i32, i32) {
    %c0_i32 = arith.constant 0 : i32
    %c0_i32_0 = arith.constant 0 : i32
    %c0_i32_1 = arith.constant 0 : i32
    return %c0_i32, %c0_i32_0 : i32, i32
  }
  func.func @transform_41(%arg0: i32) -> (i32, i32) {
    %c0_i32 = arith.constant 0 : i32
    %c0_i32_0 = arith.constant 0 : i32
    %c0_i32_1 = arith.constant 0 : i32
    return %c0_i32, %c0_i32_0 : i32, i32
  }
  func.func @transform_42(%arg0: i32) -> (i32, i32) {
    %c0_i32 = arith.constant 0 : i32
    %c0_i32_0 = arith.constant 0 : i32
    %c0_i32_1 = arith.constant 0 : i32
    return %c0_i32, %c0_i32_0 : i32, i32
  }
  func.func @transform_43(%arg0: i32) -> (i32, i32) {
    %c0_i32 = arith.constant 0 : i32
    %c0_i32_0 = arith.constant 0 : i32
    %c0_i32_1 = arith.constant 0 : i32
    return %c0_i32, %c0_i32_0 : i32, i32
  }
  func.func @transform_44(%arg0: i32) -> (i32, i32) {
    %c0_i32 = arith.constant 0 : i32
    %c0_i32_0 = arith.constant 0 : i32
    %c0_i32_1 = arith.constant 0 : i32
    return %c0_i32, %c0_i32_0 : i32, i32
  }
  func.func @transform_45(%arg0: i32) -> (i32, i32) {
    %c0_i32 = arith.constant 0 : i32
    %c0_i32_0 = arith.constant 0 : i32
    %c0_i32_1 = arith.constant 0 : i32
    return %c0_i32, %c0_i32_0 : i32, i32
  }
  func.func @transform_46(%arg0: i32) -> (i32, i32) {
    %c0_i32 = arith.constant 0 : i32
    %c0_i32_0 = arith.constant 0 : i32
    return %arg0, %c0_i32 : i32, i32
  }
}

</mosaic_0001>

<bundles_post_ra>
// kernel: transformer_forward.2
= control target key start
LH: loop header
LB: loop body
LE: loop exit
PB: predicated region body
PF: predicated region fallthrough
CT: control target
= control target key end

     0   :  { %v2736_v0 = vmov 0.0|0.0   ;;  %vm2737_vm0 = vmmov 0   ;;  %v2738_v4 = vmov 0.0   ;;  %vm96_vm1 = vcmask 261120   ;;  %s3648_s27 = smov 112   ;;  %s3646_s29 = smov 48   ;;  %s3615_s2 = inlined_call_operand.vmem [shape: f32[32,96], index: 2, kind: input, shape index: {}]   ;;  %s3616_s0 = inlined_call_operand.vmem [shape: f32[1,8,32], index: 0, kind: input, shape index: {}]   ;;  %s3617_s3 = inlined_call_operand.vmem [shape: f32[1,96], index: 3, kind: input, shape index: {}]   ;;  %s3618_s1 = inlined_call_operand.vmem [shape: s32[1,8], index: 1, kind: input, shape index: {}]   ;;  %s3619_s4 = inlined_call_operand.vmem [shape: f32[32,32], index: 4, kind: input, shape index: {}]   ;;  %s3620_s5 = inlined_call_operand.vmem [shape: f32[1,32], index: 5, kind: input, shape index: {}]   ;;  %s3621_s8 = inlined_call_operand.vmem [shape: f32[32,512], index: 8, kind: input, shape index: {}]   ;;  %s3622_s10 = inlined_call_operand.vmem [shape: f32[512,32], index: 10, kind: input, shape index: {}]   ;;  %s3623_s6 = inlined_call_operand.vmem [shape: f32[1,32], index: 6, kind: input, shape index: {}]   ;;  %s3624_s7 = inlined_call_operand.vmem [shape: f32[1,32], index: 7, kind: input, shape index: {}]   ;;  %s3625_s9 = inlined_call_operand.vmem [shape: f32[1,512], index: 9, kind: input, shape index: {}]   ;;  %s3626_s11 = inlined_call_operand.vmem [shape: f32[1,32], index: 11, kind: input, shape index: {}]   ;;  %s3627_s14 = inlined_call_operand.vmem [shape: f32[32,96], index: 14, kind: input, shape index: {}]   ;;  %s3628_s12 = inlined_call_operand.vmem [shape: f32[1,32], index: 12, kind: input, shape index: {}]   ;;  %s3629_s13 = inlined_call_operand.vmem [shape: f32[1,32], index: 13, kind: input, shape index: {}]   ;;  %s3630_s15 = inlined_call_operand.vmem [shape: f32[1,96], index: 15, kind: input, shape index: {}]   ;;  %s3631_s16 = inlined_call_operand.vmem [shape: f32[32,32], index: 16, kind: input, shape index: {}]   ;;  %s3632_s17 = inlined_call_operand.vmem [shape: f32[1,32], index: 17, kind: input, shape index: {}]   ;;  %s3633_s20 = inlined_call_operand.vmem [shape: f32[32,512], index: 20, kind: input, shape index: {}]   ;;  %s3634_s22 = inlined_call_operand.vmem [shape: f32[512,32], index: 22, kind: input, shape index: {}]   ;;  %s3635_s18 = inlined_call_operand.vmem [shape: f32[1,32], index: 18, kind: input, shape index: {}]   ;;  %s3636_s19 = inlined_call_operand.vmem [shape: f32[1,32], index: 19, kind: input, shape index: {}]   ;;  %s3637_s21 = inlined_call_operand.vmem [shape: f32[1,512], index: 21, kind: input, shape index: {}]   ;;  %s3638_s23 = inlined_call_operand.vmem [shape: f32[1,32], index: 23, kind: input, shape index: {}]   ;;  %s3639_s24 = inlined_call_operand.vmem [shape: f32[1,32], index: 24, kind: input, shape index: {}]   ;;  %s3640_s25 = inlined_call_operand.vmem [shape: f32[1,32], index: 25, kind: input, shape index: {}]   ;;  %s3641_s26 = inlined_call_operand.vmem [shape: f32[1,8,32], index: 26, kind: output, shape index: {}]  }
   0x1   :  { %3649 = sst [smem:[#allocation2_spill]] %s3615_s2  ;;  %2503 = vmatprep.subr.bf16.mxu0 %v2736_v0  ;;  %2421 = vmatprep.mubr.msk.f32.mxu0 %vm2737_vm0, %v2738_v4  ;;  %vm177_vm2 = vcmask 130048   ;;  %v255_v16 = vlaneseq  ;;  %v2742_v20 = vmov 0   ;;  %vm261_vm5 = vcmask 64512   ;;  %s3647_s2 = smov 64  }
   0x2   :  { %3650 = sst [smem:[#allocation3_spill]] %s3616_s0  ;;  %2424 = vmatprep.subr.mxu1 %v2738_v4  ;;  %2426 = vmatprep.mubr.msk.f32.mxu1 %vm2737_vm0, %v2738_v4 }
   0x3   :  { %3651 = sst [smem:[#allocation4_spill]] %s3617_s3  ;;  %v2928_v18 = vshrl.u32 %v255_v16, 7 }
   0x4   :  { %3652 = sst [smem:[#allocation5_spill]] %s3618_s1  ;;  %s3662_s0 = sld [smem:[#allocation4_spill]] }
   0x5   :  { %3653 = sst [smem:[#allocation6_spill]] %s3619_s4  ;;  %s2740_s1 = smov 96   ;;  %v2931_v19 = vsub.s32 0, %v2928_v18 }
   0x6   :  { %3654 = sst [smem:[#allocation7_spill]] %s3620_s5  ;;  %s3661_s5 = sld [smem:[#allocation3_spill]] }
   0x7   :  { %3655 = sst [smem:[#allocation8_spill]] %s3621_s8  ;;  %s3663_s4 = sld [smem:[#allocation5_spill]] }
   0x8   :  { %3656 = sst [smem:[#allocation9_spill]] %s3622_s10  ;;  %s3660_s10 = sld [smem:[#allocation2_spill]] }
   0x9   :  { %3657 = sst [smem:[#allocation10_spill]] %s3623_s6  ;;  %s3666_s3 = sld [smem:[#allocation6_spill]] }
   0xa   :  { %3658 = sst [smem:[#allocation11_spill]] %s3624_s7  ;;  %v2199_v9 = vld [vmem:[%s3662_s0] ss:$0 sm:$0xff]  ;;  %s3667_s30 = sld [smem:[#allocation7_spill]] }
   0xb   :  { %3659 = sst [smem:[#allocation12_spill]] %s3625_s9  ;;  %s3668_s9 = sld [smem:[#allocation8_spill]] }
   0xc   :  { %v2902_v8 = vld [vmem:[%s3661_s5] sm:$0xff]  ;;  %s3669_s5 = sld [smem:[#allocation9_spill]]  ;;  %s3670_s7 = sld [smem:[#allocation10_spill]] }
   0xd   :  { %v84_v17 = vld [vmem:[%s3663_s4] sm:$0x1]  ;;  %s3671_s8 = sld [smem:[#allocation11_spill]] }
   0xe   :  { %v85_v1 = vld [vmem:[%s3660_s10] sm:$0xff]  ;;  %v86_v2 = vld [vmem:[%s3660_s10 + $0x8] sm:$0xff]  ;;  %v87_v3 = vld [vmem:[%s3660_s10 + $0x10] sm:$0xff]  ;;  %vm253_vm3 = vcmp.eq.s32.totalorder %v84_v17, 0 }
   0xf   :  { %v2504_v5 = vpack.c.bf16 %v86_v2, %v85_v1  ;;  %v88_v6 = vld [vmem:[%s3660_s10 + $0x18] sm:$0xff]  ;;  %s2741_s10 = smov 80   ;;  %v254_v21 = vsel %vm253_vm3, 1, %v2742_v20  ;;  %v170_v49 = vld [vmem:[%s3666_s3] sm:$0xff]  ;;  %v171_v50 = vld [vmem:[%s3666_s3 + $0x8] sm:$0xff] }
  0x10   :  { %v2507_v7 = vpack.c.bf16 %v88_v6, %v87_v3  ;;  %v258_v22 = vrot.slane %v254_v21, %v2931_v19  ;;  %v2513_v53 = vpack.c.bf16 %v171_v50, %v170_v49  ;;  %v172_v55 = vld [vmem:[%s3666_s3 + $0x10] sm:$0xff]  ;;  %v173_v56 = vld [vmem:[%s3666_s3 + $0x18] sm:$0xff]  ;;  %v2209_v2 = vld [vmem:[%s3667_s30] ss:$0 sm:$0xff] }
  0x11   :  { %2505 = vmatpush3.bf16.msra.mxu0 %v2504_v5  ;;  %v2510_v57 = vpack.c.bf16 %v173_v56, %v172_v55  ;;  %v706_v16 = vld [vmem:[%s3668_s9 + $0x28] sm:$0xff]  ;;  %v708_v20 = vld [vmem:[%s3668_s9 + $0x38] sm:$0xff]  ;;  %v701_v21 = vld [vmem:[%s3668_s9] sm:$0xff] }
  0x12   :  { %2506 = vmatprep.subr.bf16.mxu0 %v2736_v0  ;;  %vm2934_vm4 = vcmp.eq.s32.totalorder %v258_v22, 1  ;;  %v705_v22 = vld [vmem:[%s3668_s9 + $0x20] sm:$0xff] }
  0x13   :  { %v2210_v50 = vld [vmem:[%s3670_s7] ss:$0 sm:$0xff] }
  0x14   :  { %v936_v56 = vld [vmem:[%s3669_s5 + $0x100] sm:$0xff] }
  0x15   :  { %2508 = vmatpush3.bf16.msra.mxu0 %v2507_v7 }
  0x16   :  { %2434 = vmatprep.subr.mxu0 %v2738_v4 }
  0x18   :  { %2422 = vmatmul.mubr.msk.f32.vlgmr.msra.gmra.mrb[0].mxu0 %vm96_vm1, %v2902_v8 }
  0x19   :  { %2436 = vmatprep.mubr.msk.f32.mxu0 %vm2737_vm0, %v2738_v4 }
  0xeb   :  { %v166_v10 = vpop.f32.mrb[0].mxu0 }
  0xec   :  { %v167_v11 = vadd.f32 %v2199_v9, %v166_v10  ;;  %v2423_v12 = vpop.f32.mrb[1].mxu0 }
  0xee   :  { %349 = vrot.lane.b32.xlu1 %v167_v11, %s3648_s27  ;;  %175 = vrot.lane.b32.xlu0 %v167_v11, %s2740_s1 }
  0xf2   :  { %351 = vrot.lane.b32.xlu0 %v167_v11, %s2741_s10 }
 0x160   :  { %v176_v13 = vpop.permute.xlu0 %175  ;;  %v350_v15 = vpop.permute.xlu1 %349 }
 0x161   :  { %2425 = vmatpush3.xpose.msk.msra.mxu1 %vm177_vm2, %v176_v13 }
 0x162   :  { %2429 = vmatprep.subr.mxu1 %v2738_v4 }
 0x164   :  { %2427 = vmatmul.mubr.msk.f32.vlgmr.msra.gmra.mrb[0].mxu1 %vm177_vm2, %v167_v11  ;;  %v352_v14 = vpop.permute.xlu0 %351 }
 0x165   :  { %2435 = vmatpush3.xpose.msk.msra.mxu0 %vm177_vm2, %v352_v14  ;;  %2431 = vmatprep.mubr.msk.f32.mxu1 %vm2737_vm0, %v2738_v4 }
 0x166   :  { %2509 = vmatprep.subr.bf16.mxu0 %v2736_v0 }
 0x168   :  { %2437 = vmatmul.mubr.msk.f32.vlgmr.msra.gmra.mrb[2].mxu0 %vm177_vm2, %v350_v15  ;;  %v702_v15 = vld [vmem:[%s3668_s9 + $0x8] sm:$0xff] }
 0x169   :  { %2448 = vmatprep.mubr.msk.f32.mxu0 %vm2737_vm0, %v2738_v4  ;;  %2511 = vmatpush3.bf16.msra.mxu0 %v2510_v57  ;;  %v2515_v17 = vpack.c.bf16 %v706_v16, %v702_v15  ;;  %v937_v57 = vld [vmem:[%s3669_s5 + $0x108] sm:$0xff] }
 0x16b   :  { %2516 = vmatprep.subr.bf16.mxu0 %v2515_v17 }
 0x237   :  { %v248_v23 = vpop.f32.mrb[0].mxu1 }
 0x238   :  { %v252_v25 = vmul.f32 0.25, %v248_v23  ;;  %v2428_v26 = vpop.f32.mrb[1].mxu1 }
 0x239   :  { %v703_v26 = vld [vmem:[%s3668_s9 + $0x10] sm:$0xff] }
 0x23a   :  { %v260_v27 = vsel %vm2934_vm4, -1e+09, %v252_v25  ;;  %v2517_v25 = vpack.c.bf16 %v705_v22, %v701_v21  ;;  %v909_v21 = vld [vmem:[%s3669_s5 + $0x28] sm:$0xff]  ;;  %v940_v22 = vld [vmem:[%s3669_s5 + $0x120] sm:$0xff] }
 0x23b   :  { %v423_v28 = vpop.f32.mrb[2].mxu0  ;;  %v262_v29 = vsel %vm261_vm5, %v260_v27, -inf }
 0x23c   :  { %v427_v30 = vmul.f32 0.25, %v423_v28  ;;  %263 = vmax.xlane.f32.xlu1 %v262_v29  ;;  %v2438_v31 = vpop.f32.mrb[3].mxu0  ;;  %v710_v29 = vld [vmem:[%s3668_s9 + $0x48] sm:$0xff] }
 0x23d   :  { %v712_v31 = vld [vmem:[%s3668_s9 + $0x58] sm:$0xff] }
 0x23e   :  { %v428_v32 = vsel %vm2934_vm4, -1e+09, %v427_v30  ;;  %v714_v30 = vld [vmem:[%s3668_s9 + $0x68] sm:$0xff] }
 0x23f   :  { %v429_v33 = vsel %vm261_vm5, %v428_v32, -inf }
 0x240   :  { %430 = vmax.xlane.f32.xlu0 %v429_v33  ;;  %v716_v33 = vld [vmem:[%s3668_s9 + $0x78] sm:$0xff] }
 0x2c9   :  { %v264_v34 = vpop.xlane.xlu1 %263 }
 0x2ca   :  { %v265_v35 = vsub.f32 %v260_v27, %v264_v34  ;;  %v707_v27 = vld [vmem:[%s3668_s9 + $0x30] sm:$0xff]  ;;  %v709_v34 = vld [vmem:[%s3668_s9 + $0x40] sm:$0xff] }
 0x2cb   :  { %v2525_v28 = vpack.c.bf16 %v707_v27, %v703_v26  ;;  %v926_v27 = vld [vmem:[%s3669_s5 + $0xb0] sm:$0xff] }
 0x2cc   :  { %v266_v36 = vmul.f32 1.442695, %v265_v35  ;;  %v713_v35 = vld [vmem:[%s3668_s9 + $0x60] sm:$0xff] }
 0x2cd   :  { %v431_v37 = vpop.xlane.xlu0 %430 }
 0x2ce   :  { %2696 = vpow2.f32 %v266_v36  ;;  %v432_v38 = vsub.f32 %v428_v32, %v431_v37  ;;  %v2519_v32 = vpack.c.bf16 %v714_v30, %v710_v29  ;;  %v2527_v36 = vpack.c.bf16 %v716_v33, %v712_v31  ;;  %v958_v29 = vld [vmem:[%s3669_s5 + $0x1b0] sm:$0xff]  ;;  %v959_v31 = vld [vmem:[%s3669_s5 + $0x1b8] sm:$0xff] }
 0x2cf   :  { %v2521_v37 = vpack.c.bf16 %v713_v35, %v709_v34  ;;  %v911_v33 = vld [vmem:[%s3669_s5 + $0x38] sm:$0xff]  ;;  %v2575_v34 = vpack.c.bf16 %v959_v31, %v958_v29  ;;  %v729_v29 = vsub.s32 2, %v2928_v18  ;;  %v725_v31 = vsub.s32 1, %v2928_v18 }
 0x2d0   :  { %v433_v39 = vmul.f32 1.442695, %v432_v38  ;;  %v711_v38 = vld [vmem:[%s3668_s9 + $0x50] sm:$0xff] }
 0x2d2   :  { %2698 = vpow2.f32 %v433_v39  ;;  %v715_v39 = vld [vmem:[%s3668_s9 + $0x70] sm:$0xff] }
 0x2d8   :  { %v2697_v40 = vpop.eup %2696 }
 0x2d9   :  { %v268_v41 = vsel %vm261_vm5, %v2697_v40, 0.0 }
 0x2da   :  { %269 = vadd.xlane.f32.xlu0 %v268_v41  ;;  %v920_v41 = vld [vmem:[%s3669_s5 + $0x80] sm:$0xff] }
 0x2dc   :  { %v2699_v42 = vpop.eup %2698 }
 0x2dd   :  { %v435_v43 = vsel %vm261_vm5, %v2699_v42, 0.0 }
 0x2de   :  { %436 = vadd.xlane.f32.xlu1 %v435_v43  ;;  %v952_v43 = vld [vmem:[%s3669_s5 + $0x180] sm:$0xff] }
 0x2ef   :  { %440 = vrot.lane.b32.xlu1 %v167_v11, %s3646_s29  ;;  %s3672_s29 = sld [smem:[#allocation12_spill]] }
 0x2f0   :  { %273 = vrot.lane.b32.xlu0 %v167_v11, %s3647_s2 }
 0x367   :  { %v270_v44 = vpop.xlane.xlu0 %269 }
 0x368   :  { %2700 = vrcp.f32 %v270_v44 }
 0x36b   :  { %v437_v45 = vpop.xlane.xlu1 %436  ;;  %v274_v46 = vpop.permute.xlu0 %273 }
 0x36c   :  { %2702 = vrcp.f32 %v437_v45  ;;  %2430 = vmatpush3.msra.mxu1 %v274_v46  ;;  %v953_v45 = vld [vmem:[%s3669_s5 + $0x188] sm:$0xff] }
 0x36d   :  { %2439 = vmatprep.subr.mxu1 %v2738_v4  ;;  %v2563_v46 = vpack.c.bf16 %v953_v45, %v952_v43  ;;  %v961_v43 = vld [vmem:[%s3669_s5 + $0x1c8] sm:$0xff] }
 0x36e   :  { %v913_v45 = vld [vmem:[%s3669_s5 + $0x48] sm:$0xff] }
 0x36f   :  { %v441_v51 = vpop.permute.xlu1 %440 }
 0x372   :  { %v2701_v47 = vpop.eup %2700 }
 0x373   :  { %v272_v48 = vmul.f32 %v2701_v47, %v2697_v40  ;;  %v2529_v40 = vpack.c.bf16 %v715_v39, %v711_v38  ;;  %v928_v39 = vld [vmem:[%s3669_s5 + $0xc0] sm:$0xff] }
 0x375   :  { %2432 = vmatmul.mubr.msk.f32.vlgmr.msra.gmra.mrb[2].mxu1 %vm261_vm5, %v272_v48 }
 0x376   :  { %v2703_v52 = vpop.eup %2702  ;;  %2440 = vmatpush3.msra.mxu1 %v441_v51  ;;  %2441 = vmatprep.mubr.msk.f32.mxu1 %vm2737_vm0, %v2738_v4 }
 0x377   :  { %v439_v54 = vmul.f32 %v2703_v52, %v2699_v42  ;;  %2512 = vmatprep.subr.bf16.mxu1 %v2736_v0  ;;  %v921_v42 = vld [vmem:[%s3669_s5 + $0x88] sm:$0xff]  ;;  %v2211_v52 = vld [vmem:[%s3671_s8] ss:$0 sm:$0xff] }
 0x378   :  { %v2531_v44 = vpack.c.bf16 %v921_v42, %v920_v41  ;;  %v960_v41 = vld [vmem:[%s3669_s5 + $0x1c0] sm:$0xff] }
 0x379   :  { %2442 = vmatmul.mubr.msk.f32.vlgmr.msra.gmra.mrb[4].mxu1 %vm261_vm5, %v439_v54  ;;  %v905_v54 = vld [vmem:[%s3669_s5 + $0x8] sm:$0xff] }
 0x37a   :  { %2514 = vmatpush3.bf16.msra.mxu1 %v2513_v53  ;;  %2455 = vmatprep.mubr.msk.f32.mxu1 %vm2737_vm0, %v2738_v4  ;;  %v904_v53 = vld [vmem:[%s3669_s5] sm:$0xff] }
 0x448   :  { %v345_v58 = vpop.f32.mrb[2].mxu1 }
 0x449   :  { %v2433_v59 = vpop.f32.mrb[3].mxu1  ;;  %2456 = vmatmul.mubr.msk.f32.vlgmr.msra.gmra.mrb[6].mxu1 %vm177_vm2, %v345_v58  ;;  %v922_v58 = vld [vmem:[%s3669_s5 + $0x90] sm:$0xff] }
 0x44a   :  { %877 = vmatprep.mubr.f32.mxu1 %v2738_v4  ;;  %v923_v59 = vld [vmem:[%s3669_s5 + $0x98] sm:$0xff] }
 0x44c   :  { %v512_v60 = vpop.f32.mrb[4].mxu1 }
 0x44d   :  { %v2443_v61 = vpop.f32.mrb[5].mxu1  ;;  %2449 = vmatmul.mubr.msk.f32.vlgmr.msra.gmra.mrb[4].mxu0 %vm177_vm2, %v512_v60  ;;  %v954_v60 = vld [vmem:[%s3669_s5 + $0x190] sm:$0xff] }
 0x44e   :  { %806 = vmatprep.mubr.f32.mxu0 %v2738_v4  ;;  %2518 = vmatpush1.bf16.msra.mxu0 %v2517_v25  ;;  %v955_v61 = vld [vmem:[%s3669_s5 + $0x198] sm:$0xff] }
 0x44f   :  { %2520 = vmatprep.subr.bf16.mxu0 %v2519_v32  ;;  %v910_v32 = vld [vmem:[%s3669_s5 + $0x30] sm:$0xff] }
 0x450   :  { %v2545_v35 = vpack.c.bf16 %v911_v33, %v910_v32  ;;  %v733_v32 = vsub.s32 3, %v2928_v18 }
 0x452   :  { %2522 = vmatpush1.bf16.msra.mxu0 %v2521_v37  ;;  %v943_v37 = vld [vmem:[%s3669_s5 + $0x138] sm:$0xff] }
 0x453   :  { %2532 = vmatprep.subr.bf16.mxu0 %v2531_v44  ;;  %v912_v44 = vld [vmem:[%s3669_s5 + $0x40] sm:$0xff] }
 0x51c   :  { %v658_v62 = vpop.f32.mrb[6].mxu1 }
 0x51d   :  { %v2457_v63 = vpop.f32.mrb[7].mxu1 }
 0x51e   :  { %v2533_v63 = vpack.c.bf16 %v905_v54, %v904_v53  ;;  %v962_v53 = vld [vmem:[%s3669_s5 + $0x1d0] sm:$0xff] }
 0x520   :  { %v585_v1 = vpop.f32.mrb[4].mxu0 }
 0x521   :  { %v659_v3 = vadd.f32 %v658_v62, %v585_v1  ;;  %v2450_v5 = vpop.f32.mrb[5].mxu0  ;;  %v2565_v1 = vpack.c.bf16 %v937_v57, %v936_v56  ;;  %v914_v56 = vld [vmem:[%s3669_s5 + $0x50] sm:$0xff]  ;;  %v915_v57 = vld [vmem:[%s3669_s5 + $0x58] sm:$0xff] }
 0x523   :  { %v669_v6 = vadd.f32 %v2209_v2, %v659_v3  ;;  %v906_v2 = vld [vmem:[%s3669_s5 + $0x10] sm:$0xff]  ;;  %v907_v3 = vld [vmem:[%s3669_s5 + $0x18] sm:$0xff] }
 0x524   :  { %v2537_v15 = vpack.c.bf16 %v907_v3, %v906_v2  ;;  %v964_v2 = vld [vmem:[%s3669_s5 + $0x1e0] sm:$0xff] }
 0x525   :  { %v670_v7 = vadd.f32 %v669_v6, %v2902_v8  ;;  %v704_v8 = vld [vmem:[%s3668_s9 + $0x18] sm:$0xff]  ;;  %v2535_v6 = vpack.c.bf16 %v923_v59, %v922_v58  ;;  %v2553_v59 = vpack.c.bf16 %v915_v57, %v914_v56 }
 0x526   :  { %v2523_v23 = vpack.c.bf16 %v708_v20, %v704_v8  ;;  %v908_v8 = vld [vmem:[%s3669_s5 + $0x20] sm:$0xff] }
 0x527   :  { %v673_v9 = vsel %vm96_vm1, %v670_v7, 0.0  ;;  %v2541_v25 = vpack.c.bf16 %v909_v21, %v908_v8  ;;  %v966_v8 = vld [vmem:[%s3669_s5 + $0x1f0] sm:$0xff] }
 0x528   :  { %674 = vadd.xlane.f32.xlu1 %v673_v9  ;;  %2524 = vmatprep.subr.bf16.mxu1 %v2523_v23  ;;  %v938_v9 = vld [vmem:[%s3669_s5 + $0x110] sm:$0xff]  ;;  %v941_v23 = vld [vmem:[%s3669_s5 + $0x128] sm:$0xff] }
 0x529   :  { %2526 = vmatpush1.bf16.msra.mxu1 %v2525_v28  ;;  %v2573_v26 = vpack.c.bf16 %v941_v23, %v940_v22  ;;  %v927_v28 = vld [vmem:[%s3669_s5 + $0xb8] sm:$0xff]  ;;  %v918_v21 = vld [vmem:[%s3669_s5 + $0x70] sm:$0xff] }
 0x52a   :  { %2528 = vmatprep.subr.bf16.mxu1 %v2527_v36  ;;  %v2543_v30 = vpack.c.bf16 %v927_v28, %v926_v27  ;;  %v942_v36 = vld [vmem:[%s3669_s5 + $0x130] sm:$0xff]  ;;  %v919_v22 = vld [vmem:[%s3669_s5 + $0x78] sm:$0xff] }
 0x52b   :  { %v2577_v38 = vpack.c.bf16 %v943_v37, %v942_v36  ;;  %v951_v27 = vld [vmem:[%s3669_s5 + $0x178] sm:$0xff] }
 0x52d   :  { %2530 = vmatpush1.bf16.msra.mxu1 %v2529_v40  ;;  %v929_v40 = vld [vmem:[%s3669_s5 + $0xc8] sm:$0xff] }
 0x52e   :  { %2564 = vmatprep.subr.bf16.mxu1 %v2563_v46  ;;  %v2547_v42 = vpack.c.bf16 %v929_v40, %v928_v39  ;;  %v2579_v46 = vpack.c.bf16 %v961_v43, %v960_v41 }
 0x5b5   :  { %v675_v10 = vpop.xlane.xlu1 %674 }
 0x5b6   :  { %v677_v11 = vmul.f32 0.03125, %v675_v10  ;;  %v939_v10 = vld [vmem:[%s3669_s5 + $0x118] sm:$0xff] }
 0x5b7   :  { %v2569_v16 = vpack.c.bf16 %v939_v10, %v938_v9  ;;  %v917_v9 = vld [vmem:[%s3669_s5 + $0x68] sm:$0xff] }
 0x5b8   :  { %v678_v12 = vsub.f32 %v670_v7, %v677_v11  ;;  %v2567_v7 = vpack.c.bf16 %v955_v61, %v954_v60  ;;  %v924_v11 = vld [vmem:[%s3669_s5 + $0xa0] sm:$0xff]  ;;  %v946_v60 = vld [vmem:[%s3669_s5 + $0x150] sm:$0xff]  ;;  %v947_v61 = vld [vmem:[%s3669_s5 + $0x158] sm:$0xff] }
 0x5ba   :  { %v679_v13 = vmul.f32 %v678_v12, %v678_v12 }
 0x5bc   :  { %v680_v14 = vsel %vm96_vm1, %v679_v13, 0.0  ;;  %v956_v13 = vld [vmem:[%s3669_s5 + $0x1a0] sm:$0xff] }
 0x5bd   :  { %681 = vadd.xlane.f32.xlu0 %v680_v14  ;;  %v957_v14 = vld [vmem:[%s3669_s5 + $0x1a8] sm:$0xff] }
 0x5be   :  { %v2571_v20 = vpack.c.bf16 %v957_v14, %v956_v13  ;;  %v949_v13 = vld [vmem:[%s3669_s5 + $0x168] sm:$0xff] }
 0x64a   :  { %v682_v47 = vpop.xlane.xlu0 %681 }
 0x64b   :  { %v683_v48 = vmul.f32 0.03125, %v682_v47  ;;  %v2549_v47 = vpack.c.bf16 %v913_v45, %v912_v44 }
 0x64d   :  { %v684_v49 = vadd.f32 1e-05, %v683_v48  ;;  %v944_v48 = vld [vmem:[%s3669_s5 + $0x140] sm:$0xff] }
 0x64f   :  { %2704 = vrsqrt.f32 %v684_v49  ;;  %v945_v49 = vld [vmem:[%s3669_s5 + $0x148] sm:$0xff] }
 0x659   :  { %v2705_v51 = vpop.eup %2704 }
 0x65a   :  { %v686_v55 = vmul.f32 %v2705_v51, %v678_v12  ;;  %v925_v12 = vld [vmem:[%s3669_s5 + $0xa8] sm:$0xff]  ;;  %v930_v51 = vld [vmem:[%s3669_s5 + $0xd0] sm:$0xff] }
 0x65b   :  { %v2539_v17 = vpack.c.bf16 %v925_v12, %v924_v11  ;;  %v948_v12 = vld [vmem:[%s3669_s5 + $0x160] sm:$0xff] }
 0x65c   :  { %v693_v62 = vmul.f32 %v2210_v50, %v686_v55  ;;  %v2581_v50 = vpack.c.bf16 %v945_v49, %v944_v48  ;;  %v963_v55 = vld [vmem:[%s3669_s5 + $0x1d8] sm:$0xff]  ;;  %v2589_v14 = vpack.c.bf16 %v949_v13, %v948_v12 }
 0x65d   :  { %v2583_v58 = vpack.c.bf16 %v963_v55, %v962_v53 }
 0x65e   :  { %v3074_v5 = vadd.f32 %v2211_v52, %v693_v62  ;;  %v931_v52 = vld [vmem:[%s3669_s5 + $0xd8] sm:$0xff]  ;;  %v2585_v62 = vpack.c.bf16 %v947_v61, %v946_v60 }
 0x65f   :  { %v2551_v54 = vpack.c.bf16 %v931_v52, %v930_v51 }
 0x660   :  { %2212 = vmatmul.mubr.msk.f32.vlgmr.msra.gmra.mrb[6].mxu0 %vm96_vm1, %v3074_v5  ;;  %2213 = vmatmul.mubr.msk.f32.vlgmr.msra.gmra.mrb[8].mxu1 %vm96_vm1, %v3074_v5 }
 0x661   :  { %2534 = vmatpush3.bf16.msra.mxu0 %v2533_v63  ;;  %2566 = vmatpush3.bf16.msra.mxu1 %v2565_v1  ;;  %v932_v63 = vld [vmem:[%s3669_s5 + $0xe0] sm:$0xff]  ;;  %v933_v1 = vld [vmem:[%s3669_s5 + $0xe8] sm:$0xff] }
 0x662   :  { %2536 = vmatprep.subr.bf16.mxu0 %v2535_v6  ;;  %2568 = vmatprep.subr.bf16.mxu1 %v2567_v7  ;;  %v2555_v3 = vpack.c.bf16 %v933_v1, %v932_v63  ;;  %v965_v6 = vld [vmem:[%s3669_s5 + $0x1e8] sm:$0xff]  ;;  %v916_v7 = vld [vmem:[%s3669_s5 + $0x60] sm:$0xff] }
 0x663   :  { %v2587_v10 = vpack.c.bf16 %v965_v6, %v964_v2  ;;  %v2557_v11 = vpack.c.bf16 %v917_v9, %v916_v7  ;;  %v2214_v6 = vld [vmem:[%s3626_s11] ss:$0 sm:$0xff] }
 0x665   :  { %2538 = vmatpush3.bf16.msra.mxu0 %v2537_v15  ;;  %2570 = vmatpush3.bf16.msra.mxu1 %v2569_v16  ;;  %v934_v15 = vld [vmem:[%s3669_s5 + $0xf0] sm:$0xff]  ;;  %v935_v16 = vld [vmem:[%s3669_s5 + $0xf8] sm:$0xff] }
 0x666   :  { %2540 = vmatprep.subr.bf16.mxu0 %v2539_v17  ;;  %2572 = vmatprep.subr.bf16.mxu1 %v2571_v20  ;;  %v2559_v17 = vpack.c.bf16 %v935_v16, %v934_v15  ;;  %v967_v20 = vld [vmem:[%s3669_s5 + $0x1f8] sm:$0xff] }
 0x667   :  { %v2591_v23 = vpack.c.bf16 %v967_v20, %v966_v8 }
 0x669   :  { %2542 = vmatpush3.bf16.msra.mxu0 %v2541_v25  ;;  %2574 = vmatpush3.bf16.msra.mxu1 %v2573_v26  ;;  %v2561_v25 = vpack.c.bf16 %v919_v22, %v918_v21  ;;  %v950_v26 = vld [vmem:[%s3669_s5 + $0x170] sm:$0xff]  ;;  %v1145_v22 = vld [vmem:[%s3627_s14] sm:$0xff] }
 0x66a   :  { %2544 = vmatprep.subr.bf16.mxu0 %v2543_v30  ;;  %2576 = vmatprep.subr.bf16.mxu1 %v2575_v34  ;;  %v2593_v28 = vpack.c.bf16 %v951_v27, %v950_v26  ;;  %v717_v30 = vld [vmem:[%s3672_s29] sm:$0xf]  ;;  %v1148_v26 = vld [vmem:[%s3627_s14 + $0x18] sm:$0xff] }
 0x66b   :  { %v722_v33 = vrot.slane %v717_v30, %v2931_v19  ;;  %v730_v34 = vrot.slane %v717_v30, %v729_v29  ;;  %v734_v36 = vrot.slane %v717_v30, %v733_v32 }
 0x66d   :  { %2546 = vmatpush3.bf16.msra.mxu0 %v2545_v35  ;;  %2578 = vmatpush3.bf16.msra.mxu1 %v2577_v38  ;;  %v726_v35 = vrot.slane %v717_v30, %v725_v31 }
 0x66e   :  { %2548 = vmatprep.subr.bf16.mxu0 %v2547_v42  ;;  %2580 = vmatprep.subr.bf16.mxu1 %v2579_v46 }
 0x671   :  { %2550 = vmatpush3.bf16.msra.mxu0 %v2549_v47  ;;  %2582 = vmatpush3.bf16.msra.mxu1 %v2581_v50 }
 0x672   :  { %2552 = vmatprep.subr.bf16.mxu0 %v2551_v54  ;;  %2584 = vmatprep.subr.bf16.mxu1 %v2583_v58 }
 0x675   :  { %2554 = vmatpush3.bf16.msra.mxu0 %v2553_v59  ;;  %2586 = vmatpush3.bf16.msra.mxu1 %v2585_v62 }
 0x676   :  { %2556 = vmatprep.subr.bf16.mxu0 %v2555_v3  ;;  %2588 = vmatprep.subr.bf16.mxu1 %v2587_v10 }
 0x679   :  { %2558 = vmatpush3.bf16.msra.mxu0 %v2557_v11  ;;  %2590 = vmatpush3.bf16.msra.mxu1 %v2589_v14 }
 0x67a   :  { %2560 = vmatprep.subr.bf16.mxu0 %v2559_v17  ;;  %2592 = vmatprep.subr.bf16.mxu1 %v2591_v23  ;;  %v1146_v23 = vld [vmem:[%s3627_s14 + $0x8] sm:$0xff] }
 0x67d   :  { %2562 = vmatpush3.bf16.msra.mxu0 %v2561_v25  ;;  %2594 = vmatpush3.bf16.msra.mxu1 %v2593_v28  ;;  %v2596_v25 = vpack.c.bf16 %v1146_v23, %v1145_v22 }
 0x67e   :  { %2595 = vmatprep.subr.bf16.mxu0 %v2736_v0  ;;  %2469 = vmatprep.subr.mxu1 %v2738_v4 }
 0x733   :  { %v808_v37 = vpop.f32.mrb[6].mxu0  ;;  %v879_v38 = vpop.f32.mrb[8].mxu1 }
 0x734   :  { %v809_v39 = vadd.f32 %v808_v37, %v722_v33  ;;  %v880_v40 = vadd.f32 %v879_v38, %v730_v34  ;;  %v810_v41 = vpop.f32.mrb[7].mxu0  ;;  %v881_v42 = vpop.f32.mrb[9].mxu1  ;;  %v2216_v37 = vld [vmem:[%s3629_s13] ss:$0 sm:$0xff]  ;;  %s3674_s13 = smov 64  }
 0x735   :  { %v811_v43 = vadd.f32 %v810_v41, %v726_v35  ;;  %v882_v44 = vadd.f32 %v881_v42, %v734_v36  ;;  %v2215_v35 = vld [vmem:[%s3628_s12] ss:$0 sm:$0xff]  ;;  %s3673_s12 = smov 112  }
 0x736   :  { %v888_v45 = vmul.f32 0.70710677, %v809_v39  ;;  %v890_v46 = vmul.f32 0.70710677, %v880_v40  ;;  %v884_v57 = vmul.f32 0.5, %v809_v39  ;;  %v886_v60 = vmul.f32 0.5, %v880_v40 }
 0x737   :  { %v889_v47 = vmul.f32 0.70710677, %v811_v43  ;;  %v891_v48 = vmul.f32 0.70710677, %v882_v44  ;;  %v885_v55 = vmul.f32 0.5, %v811_v43  ;;  %v887_v58 = vmul.f32 0.5, %v882_v44 }
 0x738   :  { %2706 = verf.f32 %v888_v45  ;;  %v2217_v40 = vld [vmem:[%s3630_s15] ss:$0 sm:$0xff]  ;;  %s3675_s15 = smov 48  }
 0x739   :  { %2708 = verf.f32 %v890_v46 }
 0x73a   :  { %2710 = verf.f32 %v889_v47 }
 0x73b   :  { %2712 = verf.f32 %v891_v48 }
 0x742   :  { %v2707_v49 = vpop.eup %2706 }
 0x743   :  { %v2709_v50 = vpop.eup %2708  ;;  %v896_v52 = vadd.f32 1.0, %v2707_v49 }
 0x744   :  { %v2711_v51 = vpop.eup %2710  ;;  %v898_v54 = vadd.f32 1.0, %v2709_v50 }
 0x745   :  { %v2713_v53 = vpop.eup %2712  ;;  %v897_v56 = vadd.f32 1.0, %v2711_v51  ;;  %v900_v62 = vmul.f32 %v896_v52, %v884_v57 }
 0x746   :  { %v899_v59 = vadd.f32 1.0, %v2713_v53  ;;  %v902_v1 = vmul.f32 %v898_v54, %v886_v60 }
 0x747   :  { %v901_v61 = vmul.f32 %v897_v56, %v885_v55 }
 0x748   :  { %v903_v63 = vmul.f32 %v899_v59, %v887_v58 }
 0x749   :  { %1039 = vmatprep.mubr.f32.mxu0 %v901_v61 }
 0x74a   :  { %1109 = vmatprep.mubr.f32.mxu1 %v903_v63  ;;  %1040 = vmatmul.mubr.f32.vlgmr.msra.gmra.mrb[8].mxu0 %v900_v62 }
 0x74b   :  { %1110 = vmatmul.mubr.f32.vlgmr.msra.gmra.mrb[10].mxu1 %v902_v1  ;;  %2466 = vmatprep.mubr.msk.f32.mxu0 %vm2737_vm0, %v2738_v4 }
 0x74c   :  { %2471 = vmatprep.mubr.msk.f32.mxu1 %vm2737_vm0, %v2738_v4  ;;  %2597 = vmatpush3.bf16.msra.mxu0 %v2596_v25 }
 0x74d   :  { %2598 = vmatprep.subr.bf16.mxu0 %v2736_v0 }
 0x81d   :  { %v2286_v2 = vpop.f32.mrb[8].mxu0 }
 0x81e   :  { %v2321_v3 = vpop.f32.mrb[10].mxu1  ;;  %v2287_v7 = vpop.f32.mrb[9].mxu0 }
 0x81f   :  { %v2288_v9 = vadd.f32 %v2287_v7, %v2286_v2  ;;  %v2322_v10 = vpop.f32.mrb[11].mxu1 }
 0x820   :  { %v2323_v11 = vadd.f32 %v2322_v10, %v2321_v3 }
 0x821   :  { %v1042_v12 = vadd.f32 %v2288_v9, %v2214_v6 }
 0x823   :  { %v1112_v13 = vadd.f32 %v2323_v11, %v1042_v12  ;;  %v1229_v11 = vld [vmem:[%s3631_s16] sm:$0xff]  ;;  %v1230_v12 = vld [vmem:[%s3631_s16 + $0x8] sm:$0xff] }
 0x825   :  { %v1115_v14 = vadd.f32 %v1112_v13, %v3074_v5  ;;  %v1147_v5 = vld [vmem:[%s3627_s14 + $0x10] sm:$0xff] }
 0x826   :  { %v2599_v27 = vpack.c.bf16 %v1148_v26, %v1147_v5 }
 0x827   :  { %v1118_v15 = vsel %vm96_vm1, %v1115_v14, 0.0 }
 0x828   :  { %1119 = vadd.xlane.f32.xlu0 %v1118_v15  ;;  %2600 = vmatpush3.bf16.msra.mxu0 %v2599_v27  ;;  %v2605_v15 = vpack.c.bf16 %v1230_v12, %v1229_v11  ;;  %v2227_v27 = vld [vmem:[%s3632_s17] ss:$0 sm:$0xff] }
 0x829   :  { %2479 = vmatprep.subr.mxu0 %v2738_v4  ;;  %v2228_v12 = vld [vmem:[%s3635_s18] ss:$0 sm:$0xff] }
 0x8b5   :  { %v1120_v16 = vpop.xlane.xlu0 %1119 }
 0x8b6   :  { %v1121_v8 = vmul.f32 0.03125, %v1120_v16 }
 0x8b8   :  { %v1122_v17 = vsub.f32 %v1115_v14, %v1121_v8  ;;  %v1231_v8 = vld [vmem:[%s3631_s16 + $0x10] sm:$0xff] }
 0x8ba   :  { %v1123_v20 = vmul.f32 %v1122_v17, %v1122_v17 }
 0x8bc   :  { %v1124_v21 = vsel %vm96_vm1, %v1123_v20, 0.0 }
 0x8bd   :  { %1125 = vadd.xlane.f32.xlu1 %v1124_v21 }
 0x94a   :  { %v1126_v28 = vpop.xlane.xlu1 %1125 }
 0x94b   :  { %v1127_v30 = vmul.f32 0.03125, %v1126_v28 }
 0x94d   :  { %v1128_v33 = vadd.f32 1e-05, %v1127_v30 }
 0x94f   :  { %2714 = vrsqrt.f32 %v1128_v33 }
 0x959   :  { %v2715_v34 = vpop.eup %2714 }
 0x95a   :  { %v1130_v36 = vmul.f32 %v2715_v34, %v1122_v17  ;;  %v1232_v17 = vld [vmem:[%s3631_s16 + $0x18] sm:$0xff] }
 0x95b   :  { %v2602_v20 = vpack.c.bf16 %v1232_v17, %v1231_v8  ;;  %v1985_v17 = vld [vmem:[%s3634_s22 + $0x100] sm:$0xff] }
 0x95c   :  { %v1137_v38 = vmul.f32 %v2215_v35, %v1130_v36 }
 0x95e   :  { %v3275_v39 = vadd.f32 %v2216_v37, %v1137_v38 }
 0x960   :  { %2467 = vmatmul.mubr.msk.f32.vlgmr.msra.gmra.mrb[10].mxu0 %vm96_vm1, %v3275_v39 }
 0x961   :  { %2481 = vmatprep.mubr.msk.f32.mxu0 %vm2737_vm0, %v2738_v4 }
 0xa33   :  { %v1225_v41 = vpop.f32.mrb[10].mxu0 }
 0xa34   :  { %v1226_v42 = vadd.f32 %v2217_v40, %v1225_v41  ;;  %v2468_v43 = vpop.f32.mrb[11].mxu0  ;;  %v1751_v41 = vld [vmem:[%s3633_s20 + $0x8] sm:$0xff] }
 0xa36   :  { %1401 = vrot.lane.b32.xlu1 %v1226_v42, %s2741_s10  ;;  %1234 = vrot.lane.b32.xlu0 %v1226_v42, %s2740_s1 }
 0xa3a   :  { %1399 = vrot.lane.b32.xlu1 %v1226_v42, %s3673_s12 }
 0xaa8   :  { %v1402_v44 = vpop.permute.xlu1 %1401  ;;  %v1235_v45 = vpop.permute.xlu0 %1234 }
 0xaa9   :  { %2470 = vmatpush3.xpose.msk.msra.mxu1 %vm177_vm2, %v1235_v45  ;;  %2480 = vmatpush3.xpose.msk.msra.mxu0 %vm177_vm2, %v1402_v44  ;;  %v1757_v44 = vld [vmem:[%s3633_s20 + $0x38] sm:$0xff]  ;;  %v1750_v45 = vld [vmem:[%s3633_s20] sm:$0xff] }
 0xaaa   :  { %2474 = vmatprep.subr.mxu1 %v2738_v4  ;;  %2601 = vmatprep.subr.bf16.mxu0 %v2736_v0 }
 0xaac   :  { %v1400_v46 = vpop.permute.xlu1 %1399  ;;  %2472 = vmatmul.mubr.msk.f32.vlgmr.msra.gmra.mrb[12].mxu1 %vm177_vm2, %v1226_v42 }
 0xaad   :  { %2482 = vmatmul.mubr.msk.f32.vlgmr.msra.gmra.mrb[12].mxu0 %vm177_vm2, %v1400_v46  ;;  %2476 = vmatprep.mubr.msk.f32.mxu1 %vm2737_vm0, %v2738_v4  ;;  %v1754_v46 = vld [vmem:[%s3633_s20 + $0x20] sm:$0xff] }
 0xaae   :  { %2493 = vmatprep.mubr.msk.f32.mxu0 %vm2737_vm0, %v2738_v4  ;;  %2603 = vmatpush3.bf16.msra.mxu0 %v2602_v20  ;;  %v1986_v20 = vld [vmem:[%s3634_s22 + $0x108] sm:$0xff] }
 0xb7f   :  { %v1306_v47 = vpop.f32.mrb[12].mxu1 }
 0xb80   :  { %v1310_v48 = vmul.f32 0.25, %v1306_v47  ;;  %v2473_v49 = vpop.f32.mrb[13].mxu1  ;;  %v1473_v50 = vpop.f32.mrb[12].mxu0 }
 0xb81   :  { %v1477_v51 = vmul.f32 0.25, %v1473_v50  ;;  %v2483_v52 = vpop.f32.mrb[13].mxu0  ;;  %v1752_v49 = vld [vmem:[%s3633_s20 + $0x10] sm:$0xff] }
 0xb82   :  { %v1311_v53 = vsel %vm2934_vm4, -1e+09, %v1310_v48  ;;  %v2609_v48 = vpack.c.bf16 %v1754_v46, %v1750_v45  ;;  %v1756_v50 = vld [vmem:[%s3633_s20 + $0x30] sm:$0xff]  ;;  %v1759_v52 = vld [vmem:[%s3633_s20 + $0x48] sm:$0xff]  ;;  %v1989_v46 = vld [vmem:[%s3634_s22 + $0x120] sm:$0xff] }
 0xb83   :  { %v1312_v54 = vsel %vm261_vm5, %v1311_v53, -inf  ;;  %v1478_v55 = vsel %vm2934_vm4, -1e+09, %v1477_v51  ;;  %v2617_v51 = vpack.c.bf16 %v1756_v50, %v1752_v49  ;;  %v1958_v45 = vld [vmem:[%s3634_s22 + $0x28] sm:$0xff]  ;;  %v1975_v50 = vld [vmem:[%s3634_s22 + $0xb0] sm:$0xff] }
 0xb84   :  { %1313 = vmax.xlane.f32.xlu0 %v1312_v54  ;;  %v1479_v56 = vsel %vm261_vm5, %v1478_v55, -inf  ;;  %v1761_v54 = vld [vmem:[%s3633_s20 + $0x58] sm:$0xff] }
 0xb85   :  { %1480 = vmax.xlane.f32.xlu1 %v1479_v56  ;;  %v1765_v56 = vld [vmem:[%s3633_s20 + $0x78] sm:$0xff] }
 0xb96   :  { %1323 = vrot.lane.b32.xlu1 %v1226_v42, %s3674_s13 }
 0xc11   :  { %v1314_v57 = vpop.xlane.xlu0 %1313 }
 0xc12   :  { %v1315_v58 = vsub.f32 %v1311_v53, %v1314_v57  ;;  %v1481_v59 = vpop.xlane.xlu1 %1480  ;;  %v1763_v53 = vld [vmem:[%s3633_s20 + $0x68] sm:$0xff]  ;;  %v1758_v57 = vld [vmem:[%s3633_s20 + $0x40] sm:$0xff] }
 0xc13   :  { %v1482_v60 = vsub.f32 %v1478_v55, %v1481_v59  ;;  %v2611_v55 = vpack.c.bf16 %v1763_v53, %v1759_v52  ;;  %v2619_v59 = vpack.c.bf16 %v1765_v56, %v1761_v54  ;;  %v2007_v52 = vld [vmem:[%s3634_s22 + $0x1b0] sm:$0xff]  ;;  %v2008_v54 = vld [vmem:[%s3634_s22 + $0x1b8] sm:$0xff] }
 0xc14   :  { %v1316_v61 = vmul.f32 1.442695, %v1315_v58  ;;  %v1762_v58 = vld [vmem:[%s3633_s20 + $0x60] sm:$0xff]  ;;  %v1960_v56 = vld [vmem:[%s3634_s22 + $0x38] sm:$0xff] }
 0xc15   :  { %v1483_v62 = vmul.f32 1.442695, %v1482_v60  ;;  %v2613_v60 = vpack.c.bf16 %v1762_v58, %v1758_v57  ;;  %v2667_v57 = vpack.c.bf16 %v2008_v54, %v2007_v52  ;;  %v1766_v52 = vld [vmem:[%s3637_s21] sm:$0xf] }
 0xc16   :  { %2716 = vpow2.f32 %v1316_v61  ;;  %v1324_v63 = vpop.permute.xlu1 %1323  ;;  %v1760_v61 = vld [vmem:[%s3633_s20 + $0x50] sm:$0xff]  ;;  %v1779_v54 = vrot.slane %v1766_v52, %v729_v29 }
 0xc17   :  { %2475 = vmatpush3.msra.mxu1 %v1324_v63  ;;  %2718 = vpow2.f32 %v1483_v62  ;;  %v1764_v62 = vld [vmem:[%s3633_s20 + $0x70] sm:$0xff] }
 0xc18   :  { %2484 = vmatprep.subr.mxu1 %v2738_v4  ;;  %v2621_v63 = vpack.c.bf16 %v1764_v62, %v1760_v61  ;;  %v1977_v62 = vld [vmem:[%s3634_s22 + $0xc0] sm:$0xff] }
 0xc20   :  { %v2717_v24 = vpop.eup %2716 }
 0xc21   :  { %v1318_v1 = vsel %vm261_vm5, %v2717_v24, 0.0  ;;  %v2719_v2 = vpop.eup %2718 }
 0xc22   :  { %1319 = vadd.xlane.f32.xlu0 %v1318_v1  ;;  %v1485_v3 = vsel %vm261_vm5, %v2719_v2, 0.0  ;;  %v1970_v1 = vld [vmem:[%s3634_s22 + $0x88] sm:$0xff] }
 0xc26   :  { %1486 = vadd.xlane.f32.xlu0 %v1485_v3 }
 0xc3c   :  { %1490 = vrot.lane.b32.xlu0 %v1226_v42, %s3675_s15  ;;  %v1755_v42 = vld [vmem:[%s3633_s20 + $0x28] sm:$0xff] }
 0xc3d   :  { %v2607_v43 = vpack.c.bf16 %v1755_v42, %v1751_v41 }
 0xc3f   :  { %2608 = vmatprep.subr.bf16.mxu0 %v2607_v43 }
 0xcaf   :  { %v1320_v6 = vpop.xlane.xlu0 %1319 }
 0xcb0   :  { %2720 = vrcp.f32 %v1320_v6  ;;  %v2002_v6 = vld [vmem:[%s3634_s22 + $0x188] sm:$0xff] }
 0xcb3   :  { %v1487_v7 = vpop.xlane.xlu0 %1486 }
 0xcb4   :  { %2722 = vrcp.f32 %v1487_v7 }
 0xcb7   :  { %v1491_v13 = vpop.permute.xlu0 %1490 }
 0xcba   :  { %v2721_v9 = vpop.eup %2720 }
 0xcbb   :  { %v1322_v10 = vmul.f32 %v2721_v9, %v2717_v24  ;;  %v1969_v24 = vld [vmem:[%s3634_s22 + $0x80] sm:$0xff] }
 0xcbc   :  { %v2623_v3 = vpack.c.bf16 %v1970_v1, %v1969_v24  ;;  %v2009_v24 = vld [vmem:[%s3634_s22 + $0x1c0] sm:$0xff] }
 0xcbd   :  { %2477 = vmatmul.mubr.msk.f32.vlgmr.msra.gmra.mrb[14].mxu1 %vm261_vm5, %v1322_v10 }
 0xcbe   :  { %v2723_v14 = vpop.eup %2722  ;;  %2485 = vmatpush3.msra.mxu1 %v1491_v13  ;;  %2486 = vmatprep.mubr.msk.f32.mxu1 %vm2737_vm0, %v2738_v4 }
 0xcbf   :  { %v1489_v16 = vmul.f32 %v2723_v14, %v2719_v2  ;;  %2604 = vmatprep.subr.bf16.mxu1 %v2736_v0  ;;  %v2001_v2 = vld [vmem:[%s3634_s22 + $0x180] sm:$0xff] }
 0xcc0   :  { %v2655_v7 = vpack.c.bf16 %v2002_v6, %v2001_v2  ;;  %v2229_v14 = vld [vmem:[%s3636_s19] ss:$0 sm:$0xff]  ;;  %v2010_v2 = vld [vmem:[%s3634_s22 + $0x1c8] sm:$0xff] }
 0xcc1   :  { %2487 = vmatmul.mubr.msk.f32.vlgmr.msra.gmra.mrb[16].mxu1 %vm261_vm5, %v1489_v16  ;;  %v1954_v16 = vld [vmem:[%s3634_s22 + $0x8] sm:$0xff] }
 0xcc2   :  { %2606 = vmatpush3.bf16.msra.mxu1 %v2605_v15  ;;  %2500 = vmatprep.mubr.msk.f32.mxu1 %vm2737_vm0, %v2738_v4  ;;  %v1953_v15 = vld [vmem:[%s3634_s22] sm:$0xff]  ;;  %v1962_v6 = vld [vmem:[%s3634_s22 + $0x48] sm:$0xff] }
 0xd90   :  { %v1395_v21 = vpop.f32.mrb[14].mxu1 }
 0xd91   :  { %v2478_v22 = vpop.f32.mrb[15].mxu1  ;;  %2501 = vmatmul.mubr.msk.f32.vlgmr.msra.gmra.mrb[18].mxu1 %vm177_vm2, %v1395_v21  ;;  %v1971_v21 = vld [vmem:[%s3634_s22 + $0x90] sm:$0xff] }
 0xd92   :  { %1926 = vmatprep.mubr.f32.mxu1 %v2738_v4  ;;  %v1972_v22 = vld [vmem:[%s3634_s22 + $0x98] sm:$0xff] }
 0xd94   :  { %v1562_v0 = vpop.f32.mrb[16].mxu1 }
 0xd95   :  { %v2488_v23 = vpop.f32.mrb[17].mxu1  ;;  %2494 = vmatmul.mubr.msk.f32.vlgmr.msra.gmra.mrb[14].mxu0 %vm177_vm2, %v1562_v0  ;;  %v2003_v0 = vld [vmem:[%s3634_s22 + $0x190] sm:$0xff] }
 0xd96   :  { %1855 = vmatprep.mubr.f32.mxu0 %v2738_v4  ;;  %2610 = vmatpush1.bf16.msra.mxu0 %v2609_v48  ;;  %v2004_v23 = vld [vmem:[%s3634_s22 + $0x198] sm:$0xff] }
 0xd97   :  { %2612 = vmatprep.subr.bf16.mxu0 %v2611_v55  ;;  %v1959_v55 = vld [vmem:[%s3634_s22 + $0x30] sm:$0xff] }
 0xd98   :  { %v2637_v58 = vpack.c.bf16 %v1960_v56, %v1959_v55  ;;  %v1775_v55 = vrot.slane %v1766_v52, %v725_v31  ;;  %v1783_v56 = vrot.slane %v1766_v52, %v733_v32 }
 0xd9a   :  { %2614 = vmatpush1.bf16.msra.mxu0 %v2613_v60  ;;  %v1992_v60 = vld [vmem:[%s3634_s22 + $0x138] sm:$0xff] }
 0xd9b   :  { %2624 = vmatprep.subr.bf16.mxu0 %v2623_v3  ;;  %v1961_v3 = vld [vmem:[%s3634_s22 + $0x40] sm:$0xff] }
 0xe64   :  { %v1708_v25 = vpop.f32.mrb[18].mxu1 }
 0xe65   :  { %v2502_v5 = vpop.f32.mrb[19].mxu1 }
 0xe66   :  { %v2625_v5 = vpack.c.bf16 %v1954_v16, %v1953_v15  ;;  %v2011_v15 = vld [vmem:[%s3634_s22 + $0x1d0] sm:$0xff] }
 0xe68   :  { %v1635_v26 = vpop.f32.mrb[14].mxu0 }
 0xe69   :  { %v1709_v28 = vadd.f32 %v1708_v25, %v1635_v26  ;;  %v2495_v30 = vpop.f32.mrb[15].mxu0  ;;  %v2657_v26 = vpack.c.bf16 %v1986_v20, %v1985_v17  ;;  %v1963_v17 = vld [vmem:[%s3634_s22 + $0x50] sm:$0xff]  ;;  %v1964_v20 = vld [vmem:[%s3634_s22 + $0x58] sm:$0xff] }
 0xe6b   :  { %v1719_v33 = vadd.f32 %v2227_v27, %v1709_v28  ;;  %v1955_v27 = vld [vmem:[%s3634_s22 + $0x10] sm:$0xff]  ;;  %v1956_v28 = vld [vmem:[%s3634_s22 + $0x18] sm:$0xff] }
 0xe6c   :  { %v2629_v41 = vpack.c.bf16 %v1956_v28, %v1955_v27  ;;  %v2013_v27 = vld [vmem:[%s3634_s22 + $0x1e0] sm:$0xff] }
 0xe6d   :  { %v1720_v34 = vadd.f32 %v1719_v33, %v3275_v39  ;;  %v1753_v39 = vld [vmem:[%s3633_s20 + $0x18] sm:$0xff]  ;;  %v2627_v33 = vpack.c.bf16 %v1972_v22, %v1971_v21  ;;  %v2645_v22 = vpack.c.bf16 %v1964_v20, %v1963_v17 }
 0xe6e   :  { %v2615_v47 = vpack.c.bf16 %v1757_v44, %v1753_v39  ;;  %v1957_v39 = vld [vmem:[%s3634_s22 + $0x20] sm:$0xff] }
 0xe6f   :  { %v1723_v35 = vsel %vm96_vm1, %v1720_v34, 0.0  ;;  %v2633_v48 = vpack.c.bf16 %v1958_v45, %v1957_v39  ;;  %v2015_v39 = vld [vmem:[%s3634_s22 + $0x1f0] sm:$0xff] }
 0xe70   :  { %1724 = vadd.xlane.f32.xlu1 %v1723_v35  ;;  %2616 = vmatprep.subr.bf16.mxu1 %v2615_v47  ;;  %v1987_v35 = vld [vmem:[%s3634_s22 + $0x110] sm:$0xff]  ;;  %v1990_v47 = vld [vmem:[%s3634_s22 + $0x128] sm:$0xff] }
 0xe71   :  { %2618 = vmatpush1.bf16.msra.mxu1 %v2617_v51  ;;  %v2665_v49 = vpack.c.bf16 %v1990_v47, %v1989_v46  ;;  %v1976_v51 = vld [vmem:[%s3634_s22 + $0xb8] sm:$0xff]  ;;  %v1967_v45 = vld [vmem:[%s3634_s22 + $0x70] sm:$0xff] }
 0xe72   :  { %2620 = vmatprep.subr.bf16.mxu1 %v2619_v59  ;;  %v2635_v53 = vpack.c.bf16 %v1976_v51, %v1975_v50  ;;  %v1991_v59 = vld [vmem:[%s3634_s22 + $0x130] sm:$0xff]  ;;  %v1968_v46 = vld [vmem:[%s3634_s22 + $0x78] sm:$0xff] }
 0xe73   :  { %v2669_v61 = vpack.c.bf16 %v1992_v60, %v1991_v59  ;;  %v2000_v50 = vld [vmem:[%s3634_s22 + $0x178] sm:$0xff] }
 0xe75   :  { %2622 = vmatpush1.bf16.msra.mxu1 %v2621_v63  ;;  %v1978_v63 = vld [vmem:[%s3634_s22 + $0xc8] sm:$0xff] }
 0xe76   :  { %2656 = vmatprep.subr.bf16.mxu1 %v2655_v7  ;;  %v2639_v1 = vpack.c.bf16 %v1978_v63, %v1977_v62  ;;  %v2671_v7 = vpack.c.bf16 %v2010_v2, %v2009_v24 }
 0xefd   :  { %v1725_v36 = vpop.xlane.xlu1 %1724 }
 0xefe   :  { %v1726_v37 = vmul.f32 0.03125, %v1725_v36  ;;  %v1988_v36 = vld [vmem:[%s3634_s22 + $0x118] sm:$0xff] }
 0xeff   :  { %v2661_v42 = vpack.c.bf16 %v1988_v36, %v1987_v35  ;;  %v1966_v35 = vld [vmem:[%s3634_s22 + $0x68] sm:$0xff] }
 0xf00   :  { %v1727_v38 = vsub.f32 %v1720_v34, %v1726_v37  ;;  %v2659_v34 = vpack.c.bf16 %v2004_v23, %v2003_v0  ;;  %v1973_v37 = vld [vmem:[%s3634_s22 + $0xa0] sm:$0xff]  ;;  %v1995_v0 = vld [vmem:[%s3634_s22 + $0x150] sm:$0xff]  ;;  %v1996_v23 = vld [vmem:[%s3634_s22 + $0x158] sm:$0xff] }
 0xf02   :  { %v1728_v40 = vmul.f32 %v1727_v38, %v1727_v38 }
 0xf04   :  { %v1729_v4 = vsel %vm96_vm1, %v1728_v40, 0.0  ;;  %v2005_v40 = vld [vmem:[%s3634_s22 + $0x1a0] sm:$0xff] }
 0xf05   :  { %1730 = vadd.xlane.f32.xlu0 %v1729_v4  ;;  %v2006_v4 = vld [vmem:[%s3634_s22 + $0x1a8] sm:$0xff] }
 0xf06   :  { %v2663_v44 = vpack.c.bf16 %v2006_v4, %v2005_v40  ;;  %v1998_v40 = vld [vmem:[%s3634_s22 + $0x168] sm:$0xff] }
 0xf92   :  { %v1731_v9 = vpop.xlane.xlu0 %1730 }
 0xf93   :  { %v1732_v10 = vmul.f32 0.03125, %v1731_v9  ;;  %v2641_v9 = vpack.c.bf16 %v1962_v6, %v1961_v3 }
 0xf95   :  { %v1733_v11 = vadd.f32 1e-05, %v1732_v10  ;;  %v1993_v10 = vld [vmem:[%s3634_s22 + $0x140] sm:$0xff] }
 0xf97   :  { %2724 = vrsqrt.f32 %v1733_v11  ;;  %v1994_v11 = vld [vmem:[%s3634_s22 + $0x148] sm:$0xff] }
 0xfa1   :  { %v2725_v13 = vpop.eup %2724 }
 0xfa2   :  { %v1735_v8 = vmul.f32 %v2725_v13, %v1727_v38  ;;  %v1974_v38 = vld [vmem:[%s3634_s22 + $0xa8] sm:$0xff]  ;;  %v1979_v13 = vld [vmem:[%s3634_s22 + $0xd0] sm:$0xff] }
 0xfa3   :  { %v2631_v43 = vpack.c.bf16 %v1974_v38, %v1973_v37  ;;  %v1997_v38 = vld [vmem:[%s3634_s22 + $0x160] sm:$0xff] }
 0xfa4   :  { %v1742_v25 = vmul.f32 %v2228_v12, %v1735_v8  ;;  %v2673_v12 = vpack.c.bf16 %v1994_v11, %v1993_v10  ;;  %v2012_v8 = vld [vmem:[%s3634_s22 + $0x1d8] sm:$0xff]  ;;  %v2681_v4 = vpack.c.bf16 %v1998_v40, %v1997_v38 }
 0xfa5   :  { %v2675_v21 = vpack.c.bf16 %v2012_v8, %v2011_v15 }
 0xfa6   :  { %v3433_v30 = vadd.f32 %v2229_v14, %v1742_v25  ;;  %v1980_v14 = vld [vmem:[%s3634_s22 + $0xd8] sm:$0xff]  ;;  %v2677_v25 = vpack.c.bf16 %v1996_v23, %v1995_v0 }
 0xfa7   :  { %v2643_v16 = vpack.c.bf16 %v1980_v14, %v1979_v13 }
 0xfa8   :  { %2230 = vmatmul.mubr.msk.f32.vlgmr.msra.gmra.mrb[16].mxu0 %vm96_vm1, %v3433_v30  ;;  %2231 = vmatmul.mubr.msk.f32.vlgmr.msra.gmra.mrb[20].mxu1 %vm96_vm1, %v3433_v30 }
 0xfa9   :  { %2626 = vmatpush3.bf16.msra.mxu0 %v2625_v5  ;;  %2658 = vmatpush3.bf16.msra.mxu1 %v2657_v26  ;;  %v1981_v5 = vld [vmem:[%s3634_s22 + $0xe0] sm:$0xff]  ;;  %v1982_v26 = vld [vmem:[%s3634_s22 + $0xe8] sm:$0xff] }
 0xfaa   :  { %2628 = vmatprep.subr.bf16.mxu0 %v2627_v33  ;;  %2660 = vmatprep.subr.bf16.mxu1 %v2659_v34  ;;  %v2647_v28 = vpack.c.bf16 %v1982_v26, %v1981_v5  ;;  %v2014_v33 = vld [vmem:[%s3634_s22 + $0x1e8] sm:$0xff]  ;;  %v1965_v34 = vld [vmem:[%s3634_s22 + $0x60] sm:$0xff] }
 0xfab   :  { %v2679_v36 = vpack.c.bf16 %v2014_v33, %v2013_v27  ;;  %v2649_v37 = vpack.c.bf16 %v1966_v35, %v1965_v34 }
 0xfad   :  { %2630 = vmatpush3.bf16.msra.mxu0 %v2629_v41  ;;  %2662 = vmatpush3.bf16.msra.mxu1 %v2661_v42  ;;  %v1983_v41 = vld [vmem:[%s3634_s22 + $0xf0] sm:$0xff]  ;;  %v1984_v42 = vld [vmem:[%s3634_s22 + $0xf8] sm:$0xff] }
 0xfae   :  { %2632 = vmatprep.subr.bf16.mxu0 %v2631_v43  ;;  %2664 = vmatprep.subr.bf16.mxu1 %v2663_v44  ;;  %v2651_v43 = vpack.c.bf16 %v1984_v42, %v1983_v41  ;;  %v2016_v44 = vld [vmem:[%s3634_s22 + $0x1f8] sm:$0xff] }
 0xfaf   :  { %v2683_v47 = vpack.c.bf16 %v2016_v44, %v2015_v39  ;;  %v2233_v39 = vld [vmem:[%s3639_s24] ss:$0 sm:$0xff] }
 0xfb1   :  { %2634 = vmatpush3.bf16.msra.mxu0 %v2633_v48  ;;  %2666 = vmatpush3.bf16.msra.mxu1 %v2665_v49  ;;  %v2653_v48 = vpack.c.bf16 %v1968_v46, %v1967_v45  ;;  %v1999_v49 = vld [vmem:[%s3634_s22 + $0x170] sm:$0xff] }
 0xfb2   :  { %2636 = vmatprep.subr.bf16.mxu0 %v2635_v53  ;;  %2668 = vmatprep.subr.bf16.mxu1 %v2667_v57  ;;  %v2685_v51 = vpack.c.bf16 %v2000_v50, %v1999_v49  ;;  %v1771_v53 = vrot.slane %v1766_v52, %v2931_v19 }
 0xfb5   :  { %2638 = vmatpush3.bf16.msra.mxu0 %v2637_v58  ;;  %2670 = vmatpush3.bf16.msra.mxu1 %v2669_v61 }
 0xfb6   :  { %2640 = vmatprep.subr.bf16.mxu0 %v2639_v1  ;;  %2672 = vmatprep.subr.bf16.mxu1 %v2671_v7 }
 0xfb9   :  { %2642 = vmatpush3.bf16.msra.mxu0 %v2641_v9  ;;  %2674 = vmatpush3.bf16.msra.mxu1 %v2673_v12 }
 0xfba   :  { %2644 = vmatprep.subr.bf16.mxu0 %v2643_v16  ;;  %2676 = vmatprep.subr.bf16.mxu1 %v2675_v21 }
 0xfbd   :  { %2646 = vmatpush3.bf16.msra.mxu0 %v2645_v22  ;;  %2678 = vmatpush3.bf16.msra.mxu1 %v2677_v25  ;;  %v2232_v22 = vld [vmem:[%s3638_s23] ss:$0 sm:$0xff] }
 0xfbe   :  { %2648 = vmatprep.subr.bf16.mxu0 %v2647_v28  ;;  %2680 = vmatprep.subr.bf16.mxu1 %v2679_v36 }
 0xfc1   :  { %2650 = vmatpush3.bf16.msra.mxu0 %v2649_v37  ;;  %2682 = vmatpush3.bf16.msra.mxu1 %v2681_v4 }
 0xfc2   :  { %2652 = vmatprep.subr.bf16.mxu0 %v2651_v43  ;;  %2684 = vmatprep.subr.bf16.mxu1 %v2683_v47  ;;  %v2234_v43 = vld [vmem:[%s3640_s25] ss:$0 sm:$0xff] }
 0xfc5   :  { %2654 = vmatpush3.bf16.msra.mxu0 %v2653_v48  ;;  %2686 = vmatpush3.bf16.msra.mxu1 %v2685_v51 }
0x107b   :  { %v1857_v57 = vpop.f32.mrb[16].mxu0  ;;  %v1928_v58 = vpop.f32.mrb[20].mxu1 }
0x107c   :  { %v1858_v59 = vadd.f32 %v1857_v57, %v1771_v53  ;;  %v1929_v60 = vadd.f32 %v1928_v58, %v1779_v54  ;;  %v1859_v61 = vpop.f32.mrb[17].mxu0  ;;  %v1930_v62 = vpop.f32.mrb[21].mxu1 }
0x107d   :  { %v1860_v63 = vadd.f32 %v1859_v61, %v1775_v55  ;;  %v1931_v24 = vadd.f32 %v1930_v62, %v1783_v56 }
0x107e   :  { %v1937_v1 = vmul.f32 0.70710677, %v1858_v59  ;;  %v1939_v2 = vmul.f32 0.70710677, %v1929_v60  ;;  %v1933_v11 = vmul.f32 0.5, %v1858_v59  ;;  %v1935_v14 = vmul.f32 0.5, %v1929_v60 }
0x107f   :  { %v1938_v19 = vmul.f32 0.70710677, %v1860_v63  ;;  %v1940_v3 = vmul.f32 0.70710677, %v1931_v24  ;;  %v1934_v9 = vmul.f32 0.5, %v1860_v63  ;;  %v1936_v12 = vmul.f32 0.5, %v1931_v24 }
0x1080   :  { %2726 = verf.f32 %v1937_v1 }
0x1081   :  { %2728 = verf.f32 %v1939_v2 }
0x1082   :  { %2730 = verf.f32 %v1938_v19 }
0x1083   :  { %2732 = verf.f32 %v1940_v3 }
0x108a   :  { %v2727_v29 = vpop.eup %2726 }
0x108b   :  { %v2729_v31 = vpop.eup %2728  ;;  %v1945_v32 = vadd.f32 1.0, %v2727_v29 }
0x108c   :  { %v2731_v18 = vpop.eup %2730  ;;  %v1947_v7 = vadd.f32 1.0, %v2729_v31 }
0x108d   :  { %v2733_v6 = vpop.eup %2732  ;;  %v1946_v10 = vadd.f32 1.0, %v2731_v18  ;;  %v1949_v16 = vmul.f32 %v1945_v32, %v1933_v11 }
0x108e   :  { %v1948_v13 = vadd.f32 1.0, %v2733_v6  ;;  %v1951_v17 = vmul.f32 %v1947_v7, %v1935_v14 }
0x108f   :  { %v1950_v15 = vmul.f32 %v1946_v10, %v1934_v9 }
0x1090   :  { %v1952_v8 = vmul.f32 %v1948_v13, %v1936_v12 }
0x1091   :  { %2088 = vmatprep.mubr.f32.mxu0 %v1950_v15 }
0x1092   :  { %2158 = vmatprep.mubr.f32.mxu1 %v1952_v8  ;;  %2089 = vmatmul.mubr.f32.vlgmr.msra.gmra.mrb[18].mxu0 %v1949_v16 }
0x1093   :  { %2159 = vmatmul.mubr.f32.vlgmr.msra.gmra.mrb[22].mxu1 %v1951_v17 }
0x1165   :  { %v2375_v20 = vpop.f32.mrb[18].mxu0 }
0x1166   :  { %v2410_v21 = vpop.f32.mrb[22].mxu1  ;;  %v2376_v0 = vpop.f32.mrb[19].mxu0 }
0x1167   :  { %v2377_v23 = vadd.f32 %v2376_v0, %v2375_v20  ;;  %v2411_v25 = vpop.f32.mrb[23].mxu1 }
0x1168   :  { %v2412_v5 = vadd.f32 %v2411_v25, %v2410_v21 }
0x1169   :  { %v2091_v26 = vadd.f32 %v2377_v23, %v2232_v22 }
0x116b   :  { %v2161_v27 = vadd.f32 %v2412_v5, %v2091_v26 }
0x116d   :  { %v2164_v28 = vadd.f32 %v2161_v27, %v3433_v30 }
0x116f   :  { %v2167_v33 = vsel %vm96_vm1, %v2164_v28, 0.0 }
0x1170   :  { %2168 = vadd.xlane.f32.xlu1 %v2167_v33 }
0x11fd   :  { %v2169_v34 = vpop.xlane.xlu1 %2168 }
0x11fe   :  { %v2170_v35 = vmul.f32 0.03125, %v2169_v34 }
0x1200   :  { %v2171_v36 = vsub.f32 %v2164_v28, %v2170_v35 }
0x1202   :  { %v2172_v37 = vmul.f32 %v2171_v36, %v2171_v36 }
0x1204   :  { %v2173_v38 = vsel %vm96_vm1, %v2172_v37, 0.0 }
0x1205   :  { %2174 = vadd.xlane.f32.xlu0 %v2173_v38 }
0x1292   :  { %v2175_v40 = vpop.xlane.xlu0 %2174 }
0x1293   :  { %v2176_v4 = vmul.f32 0.03125, %v2175_v40 }
0x1295   :  { %v2177_v41 = vadd.f32 1e-05, %v2176_v4 }
0x1297   :  { %2734 = vrsqrt.f32 %v2177_v41 }
0x12a1   :  { %v2735_v42 = vpop.eup %2734 }
0x12a2   :  { %v2179_v30 = vmul.f32 %v2735_v42, %v2171_v36 }
0x12a4   :  { %v2186_v44 = vmul.f32 %v2233_v39, %v2179_v30 }
0x12a6   :  { %v2193_v45 = vadd.f32 %v2234_v43, %v2186_v44 }
0x12a8   :  { %2194 = vst.msk [vmem:[%s3641_s26] sm:$0xff] %vm96_vm1, %v2193_v45 }

// kernel: transformer_forward.3
= control target key start
LH: loop header
LB: loop body
LE: loop exit
PB: predicated region body
PF: predicated region fallthrough
CT: control target
= control target key end

     0   :  { %s9943_s6 = smov 1   ;;  %s9944_s10 = smov 2   ;;  %s11494_s0 = inlined_call_operand.smem [shape: u32[47], index: -1, kind: input, shape index: {}] }
   0x1   :  { %s10009_s5 = sld [smem:[%s11494_s0]]   ;;  %s9945_s14 = smov 3  }
   0x2   :  { %s10014_s9 = sld [smem:[%s11494_s0 + %s9943_s6]]   ;;  %s9946_s18 = smov 4  }
   0x3   :  { %s10019_s13 = sld [smem:[%s11494_s0 + %s9944_s10]]   ;;  %s9947_s22 = smov 5  }
   0x4   :  { %s10024_s17 = sld [smem:[%s11494_s0 + %s9945_s14]]   ;;  %s9948_s26 = smov 6  }
   0x5   :  { %s10029_s21 = sld [smem:[%s11494_s0 + %s9946_s18]]   ;;  %s9949_s30 = smov 7  }
   0x6   :  { %s10034_s25 = sld [smem:[%s11494_s0 + %s9947_s22]]   ;;  %s9950_s4 = smov 8  }
   0x7   :  { %11524 = sst [smem:[#allocation5_spill]] %s10009_s5  ;;  %s9951_s10 = smov 9  }
   0x8   :  { %11525 = sst [smem:[#allocation6_spill]] %s10014_s9  ;;  %s9952_s15 = smov 10  }
   0x9   :  { %11526 = sst [smem:[#allocation7_spill]] %s10019_s13  ;;  %s9953_s20 = smov 11  }
   0xa   :  { %s10039_s29 = sld [smem:[%s11494_s0 + %s9948_s26]]   ;;  %s9954_s26 = smov 12  }
   0xb   :  { %s10044_s3 = sld [smem:[%s11494_s0 + %s9949_s30]]   ;;  %s9955_s1 = smov 13  }
   0xc   :  { %s10049_s8 = sld [smem:[%s11494_s0 + %s9950_s4]]   ;;  %s9956_s7 = smov 14  }
   0xd   :  { %s10054_s14 = sld [smem:[%s11494_s0 + %s9951_s10]]   ;;  %s9958_s22 = smov 16  }
   0xe   :  { %s10059_s19 = sld [smem:[%s11494_s0 + %s9952_s15]]   ;;  %s9957_s15 = smov 15  }
   0xf   :  { %s10064_s24 = sld [smem:[%s11494_s0 + %s9953_s20]]   ;;  %s9959_s28 = smov 17  }
  0x10   :  { %s10069_s30 = sld [smem:[%s11494_s0 + %s9954_s26]]  }
  0x11   :  { %11527 = sst [smem:[#allocation8_spill]] %s10044_s3 }
  0x12   :  { %11528 = sst [smem:[#allocation9_spill]] %s10049_s8 }
  0x13   :  { %s10074_s6 = sld [smem:[%s11494_s0 + %s9955_s1]]  }
  0x14   :  { %s10079_s12 = sld [smem:[%s11494_s0 + %s9956_s7]]   ;;  %s9960_s7 = smov 18  }
  0x15   :  { %s10084_s20 = sld [smem:[%s11494_s0 + %s9957_s15]]   ;;  %s9961_s15 = smov 19  }
  0x16   :  { %s10089_s27 = sld [smem:[%s11494_s0 + %s9958_s22]]   ;;  %s9962_s22 = smov 20  }
  0x17   :  { %s10094_s4 = sld [smem:[%s11494_s0 + %s9959_s28]]   ;;  %s9963_s28 = smov 21  }
  0x19   :  { %11529 = sst [smem:[#allocation10_spill]] %s10074_s6 }
  0x1a   :  { %11530 = sst [smem:[#allocation11_spill]] %s10079_s12 }
  0x1b   :  { %11531 = sst [smem:[#allocation12_spill]] %s10084_s20 }
  0x1c   :  { %11532 = sst [smem:[#allocation13_spill]] %s10089_s27 }
  0x1d   :  { %11533 = sst [smem:[#allocation14_spill]] %s10094_s4 }
  0x1e   :  { %s10099_s12 = sld [smem:[%s11494_s0 + %s9960_s7]]   ;;  %s9964_s7 = smov 22  }
  0x1f   :  { %s10104_s20 = sld [smem:[%s11494_s0 + %s9961_s15]]   ;;  %s9965_s15 = smov 23  }
  0x20   :  { %s10109_s27 = sld [smem:[%s11494_s0 + %s9962_s22]]   ;;  %s9966_s22 = smov 24  }
  0x21   :  { %s10114_s4 = sld [smem:[%s11494_s0 + %s9963_s28]]   ;;  %s9967_s28 = smov 25  }
  0x24   :  { %11534 = sst [smem:[#allocation15_spill]] %s10099_s12 }
  0x25   :  { %11535 = sst [smem:[#allocation16_spill]] %s10104_s20 }
  0x26   :  { %11536 = sst [smem:[#allocation17_spill]] %s10109_s27 }
  0x27   :  { %11537 = sst [smem:[#allocation18_spill]] %s10114_s4 }
  0x28   :  { %s10119_s12 = sld [smem:[%s11494_s0 + %s9964_s7]]   ;;  %s9968_s7 = smov 26  }
  0x29   :  { %s10124_s20 = sld [smem:[%s11494_s0 + %s9965_s15]]   ;;  %s9969_s15 = smov 27  }
  0x2a   :  { %s10129_s27 = sld [smem:[%s11494_s0 + %s9966_s22]]   ;;  %s9970_s22 = smov 28  }
  0x2b   :  { %s10134_s4 = sld [smem:[%s11494_s0 + %s9967_s28]]   ;;  %s9971_s28 = smov 29  }
  0x2e   :  { %11538 = sst [smem:[#allocation19_spill]] %s10119_s12 }
  0x2f   :  { %11539 = sst [smem:[#allocation20_spill]] %s10124_s20 }
  0x30   :  { %11540 = sst [smem:[#allocation21_spill]] %s10129_s27 }
  0x31   :  { %11541 = sst [smem:[#allocation22_spill]] %s10134_s4 }
  0x32   :  { %s10139_s12 = sld [smem:[%s11494_s0 + %s9968_s7]]   ;;  %s9972_s7 = smov 30  }
  0x33   :  { %s10144_s20 = sld [smem:[%s11494_s0 + %s9969_s15]]   ;;  %s9973_s15 = smov 31  }
  0x34   :  { %s10149_s27 = sld [smem:[%s11494_s0 + %s9970_s22]]   ;;  %s9974_s22 = smov 32  }
  0x35   :  { %s10154_s4 = sld [smem:[%s11494_s0 + %s9971_s28]]   ;;  %s9975_s28 = smov 33  }
  0x38   :  { %11542 = sst [smem:[#allocation23_spill]] %s10139_s12 }
  0x39   :  { %11543 = sst [smem:[#allocation24_spill]] %s10144_s20 }
  0x3a   :  { %11544 = sst [smem:[#allocation25_spill]] %s10149_s27 }
  0x3b   :  { %11545 = sst [smem:[#allocation26_spill]] %s10154_s4 }
  0x3c   :  { %s10159_s12 = sld [smem:[%s11494_s0 + %s9972_s7]]   ;;  %s9976_s7 = smov 34  }
  0x3d   :  { %s10164_s20 = sld [smem:[%s11494_s0 + %s9973_s15]]   ;;  %s9977_s15 = smov 35  }
  0x3e   :  { %s10169_s27 = sld [smem:[%s11494_s0 + %s9974_s22]]   ;;  %s9978_s22 = smov 36  }
  0x3f   :  { %s10174_s4 = sld [smem:[%s11494_s0 + %s9975_s28]]   ;;  %s9979_s28 = smov 37  }
  0x42   :  { %11546 = sst [smem:[#allocation27_spill]] %s10159_s12 }
  0x43   :  { %11547 = sst [smem:[#allocation28_spill]] %s10164_s20 }
  0x44   :  { %11548 = sst [smem:[#allocation29_spill]] %s10169_s27 }
  0x45   :  { %11549 = sst [smem:[#allocation30_spill]] %s10174_s4 }
  0x46   :  { %s10179_s12 = sld [smem:[%s11494_s0 + %s9976_s7]]   ;;  %s9980_s7 = smov 38  }
  0x47   :  { %s10184_s20 = sld [smem:[%s11494_s0 + %s9977_s15]]   ;;  %s9981_s15 = smov 39  }
  0x48   :  { %s10189_s27 = sld [smem:[%s11494_s0 + %s9978_s22]]   ;;  %s9982_s22 = smov 40  }
  0x49   :  { %s10194_s4 = sld [smem:[%s11494_s0 + %s9979_s28]]   ;;  %s9983_s28 = smov 41  }
  0x4c   :  { %11550 = sst [smem:[#allocation31_spill]] %s10179_s12 }
  0x4d   :  { %11551 = sst [smem:[#allocation32_spill]] %s10184_s20 }
  0x4e   :  { %11552 = sst [smem:[#allocation33_spill]] %s10189_s27 }
  0x4f   :  { %11553 = sst [smem:[#allocation34_spill]] %s10194_s4 }
  0x50   :  { %s10199_s12 = sld [smem:[%s11494_s0 + %s9980_s7]]   ;;  %s9984_s7 = smov 42  }
  0x51   :  { %s10204_s20 = sld [smem:[%s11494_s0 + %s9981_s15]]   ;;  %s9985_s15 = smov 43  }
  0x52   :  { %s10209_s27 = sld [smem:[%s11494_s0 + %s9982_s22]]   ;;  %s9986_s22 = smov 44  }
  0x53   :  { %s10214_s4 = sld [smem:[%s11494_s0 + %s9983_s28]]   ;;  %s9987_s28 = smov 45  }
  0x56   :  { %11554 = sst [smem:[#allocation35_spill]] %s10199_s12 }
  0x57   :  { %11555 = sst [smem:[#allocation36_spill]] %s10204_s20 }
  0x58   :  { %11556 = sst [smem:[#allocation37_spill]] %s10209_s27 }
  0x59   :  { %11557 = sst [smem:[#allocation38_spill]] %s10214_s4 }
  0x5a   :  { %s10219_s12 = sld [smem:[%s11494_s0 + %s9984_s7]]   ;;  %s9988_s7 = smov 46  }
  0x5b   :  { %s10224_s20 = sld [smem:[%s11494_s0 + %s9985_s15]]  }
  0x5c   :  { %s10229_s27 = sld [smem:[%s11494_s0 + %s9986_s22]]  }
  0x5d   :  { %s10234_s4 = sld [smem:[%s11494_s0 + %s9987_s28]]  }
  0x60   :  { %11558 = sst [smem:[#allocation39_spill]] %s10219_s12 }
  0x61   :  { %s10239_s12 = sld [smem:[%s11494_s0 + %s9988_s7]]  }
  0x63   :  { %11559 = sst [smem:[#allocation40_spill]] %s10234_s4 }
  0x64   :  { %98 = vsyncpa [#allocation3], 0 }
  0x65   :  { %100 = vsyncpa [#allocation3 + $0x1], 0  ;;  %s10241_s15 = smov 0   ;;  %s10243_s16 = smov 0  }
  0x66   :  { %s10245_s18 = smov 0   ;;  %s10247_s22 = smov 0  }
  0x67 LB: > { %s11560_s9 = sld [smem:[#allocation6_spill]]  ;;  %s10262_s0 = sadd.s32 4294967295, %s9941_s22   ;;  %s9929_s15 = sphi %s10241_s15, %s11605_s15   ;;  %s9941_s22 = sphi %s10247_s22, %s11608_s22   ;;  %s9937_s18 = sphi %s10245_s18, %s11607_s18   ;;  %s9933_s16 = sphi %s10243_s16, %s11606_s16  }
  0x68   : > { %s8316_s23 = sadd.s32 4294967294, %s9941_s22   ;;  %s10266_s26 = sadd.s32 1, %s9941_s22  }
  0x69   : > { %s1084_s28 = sadd.s32 1, %s9937_s18  ;;  %s1081_s1 = ssub.s32 %s9941_s22, %s10266_s26 }
  0x6a   : > { %p1094_p0 = scmp.ne.s32.totalorder %s9937_s18, %s9933_s16  ;;  %p1082_p1 = scmp.eq.s32.totalorder %s1081_s1, 0 }
  0x6b   : > { %p1095_p2 = scmp.eq.s32.totalorder %s10262_s0, 1  ;;  %p1100_p3 = scmp.ne.s32.totalorder %s9933_s16, %s9929_s15 }
  0x6c   : > { %p1101_p4 = scmp.eq.s32.totalorder %s8316_s23, 1  ;;  %p8319_p7 = scmp.ge.s32.totalorder %s9941_s22, 1 }
  0x6d   : > { %s10277_s2 = scalar_select %p1082_p1, %s9937_s18, %s1084_s28  }
  0x6e   : > { %p10279_p5 = por %p1095_p2, %p1094_p0  ;;  %p10283_p6 = por %p1101_p4, %p1100_p3 }
  0x6f   : > { %p1263_p8 = scmp.lt.s32.totalorder %s9941_s22, 3 }
  0x71   : > { %p1264_p9 = pnand %p8319_p7, %p1263_p8 }
  0x72   : > { %s11563_s5 = sld [smem:[#allocation5_spill]] (!%p1264_p9)  ;;  %v1387_v0 = vld [vmem:[%s10029_s21] sm:$0xff] (!%p1264_p9)  ;;  %v1388_v1 = vld [vmem:[%s10029_s21 + $0x8] sm:$0xff] (!%p1264_p9)  ;;  %v1389_v2 = vld [vmem:[%s10029_s21 + $0x10] sm:$0xff] (!%p1264_p9)  ;;  %s8321_s11 = sshll.u32 (!%p1264_p9), %s10262_s0, 2  ;;  %vm1398_vm0 = vcmask (!%p1264_p9), 261120  }
  0x73   : > { %1267 = sbr.rel (%p1264_p9) target bundleno = 9590 (0x2576), region = 204  ;;  %v9282_v3 = vpack.c.bf16 (!%p1264_p9), %v1388_v1, %v1387_v0  ;;  %v1390_v4 = vld [vmem:[%s10029_s21 + $0x18] sm:$0xff] (!%p1264_p9)  ;;  %p1374_p10 = scmp.lt.s32.totalorder (!%p1264_p9), %s8321_s11, 7  ;;  %v9989_v10 = vmov (!%p1264_p9), 0.0   ;;  %vm9990_vm1 = vmmov (!%p1264_p9), 0   ;;  %vm1503_vm2 = vcmask (!%p1264_p9), 130048  }
  0x74   : > { %v9286_v5 = vpack.c.bf16 (!%p1264_p9), %v1390_v4, %v1389_v2  ;;  %8900 = vmatprep.subr.mxu1 (!%p1264_p9), %v9989_v10  ;;  %8902 = vmatprep.mubr.msk.f32.mxu1 (!%p1264_p9), %vm9990_vm1, %v9989_v10  ;;  %v8323_v11 = vld [vmem:[%s10034_s25] ss:$0 sm:$0xff] (!%p1264_p9)  ;;  %s11513_s1 = smov (!%p1264_p9), 96   ;;  %s11564_s13 = sld [smem:[#allocation7_spill]] (!%p1264_p9)  ;;  %vm1820_vm4 = vcmask (!%p1264_p9), 64512  }
  0x75   : > { %9283 = vmatprep.subr.bf16.mxu0 (!%p1264_p9), %v9282_v3  ;;  %s11565_s3 = sld [smem:[#allocation8_spill]] (!%p1264_p9)  ;;  %s11566_s8 = sld [smem:[#allocation9_spill]] (!%p1264_p9) }
  0x76   : > { %9285 = vmatpush3.bf16.msra.mxu0 (!%p1264_p9), %v9282_v3  ;;  %s11567_s6 = sld [smem:[#allocation10_spill]] (!%p1264_p9)  ;;  %s11604_s4 = sld [smem:[#allocation40_spill]] (!%p1264_p9) }
  0x77   : > { %9287 = vmatprep.subr.bf16.mxu0 (!%p1264_p9), %v9286_v5 }
  0x7a   : > { %s11610_s11 = smov (!%p1374_p10, %s8321_s11), 7  ;;  %9289 = vmatpush3.bf16.msra.mxu0 %v9286_v5  ;;  %v10359_v24 = vld [vmem:[%s11564_s13] sm:$0xff]  ;;  %s11592_s13 = sld [smem:[#allocation29_spill]] }
  0x7b   : > { %s8322_s23 = sshll.u32 %s11610_s11, 3  ;;  %8915 = vmatprep.subr.mxu0 %v9989_v10  ;;  %vm1813_vm3 = vcmp.eq.s32.totalorder %v10359_v24, 0  ;;  %s11505_s11 = smov 64  }
  0x7c   : > { %s1377_s28 = scalar_lea.vmem %s11563_s5, %s8322_s23  ;;  %s11511_s23 = smov 80  }
  0x7d   : > { %v10295_v6 = vld [vmem:[%s1377_s28] sm:$0xff]  ;;  %v10299_v7 = vld [vmem:[%s1377_s28 + $0x8] sm:$0xff]  ;;  %v10301_v8 = vld [vmem:[%s1377_s28 + $0x10] sm:$0xff]  ;;  %s11580_s5 = sld [smem:[#allocation20_spill]] }
  0x7e   : > { %8894 = vmatprep.mubr.msk.f32.mxu0 %vm1398_vm0, %v10295_v6  ;;  %v10307_v9 = vld [vmem:[%s1377_s28 + $0x18] sm:$0xff]  ;;  %s11509_s28 = smov 112  }
  0x7f   : > { %8895 = vmatmul.mubr.msk.f32.vlgmr.msra.gmra.mrb[0].mxu0 %vm1398_vm0, %v10299_v7 }
  0x80   : > { %8897 = vmatprep.mubr.msk.f32.mxu0 %vm1398_vm0, %v10301_v8 }
  0x83   : > { %8898 = vmatmul.mubr.msk.f32.gmra.mrb[2].mxu0 %vm1398_vm0, %v10307_v9 }
  0x84   : > { %8917 = vmatprep.mubr.msk.f32.mxu0 %vm9990_vm1, %v9989_v10 }
 0x152   : > { %v8896_v12 = vpop.f32.mrb[0].mxu0 }
 0x153   : > { %v1477_v13 = vpop.f32.mrb[1].mxu0  ;;  %v10322_v17 = vadd.f32 %v8896_v12, %v8323_v11 }
 0x154   : > { %v10318_v14 = vadd.f32 %v8323_v11, %v1477_v13 }
 0x156   : > { %v8899_v15 = vpop.f32.mrb[2].mxu0  ;;  %1501 = vrot.lane.b32.xlu0 %v10318_v14, %s11513_s1 }
 0x157   : > { %v1487_v16 = vpop.f32.mrb[3].mxu0  ;;  %v10326_v19 = vadd.f32 %v8899_v15, %v8323_v11 }
 0x158   : > { %v10324_v18 = vadd.f32 %v8323_v11, %v1487_v16 }
 0x15a   : > { %1656 = vrot.lane.b32.xlu1 %v10324_v18, %s11513_s1  ;;  %1579 = vrot.lane.b32.xlu0 %v10322_v17, %s11513_s1 }
 0x15e   : > { %1733 = vrot.lane.b32.xlu1 %v10326_v19, %s11513_s1 }
 0x1c8   : > { %v1502_v20 = vpop.permute.xlu0 %1501 }
 0x1c9   : > { %8901 = vmatpush3.xpose.msk.msra.mxu1 %vm1503_vm2, %v1502_v20 }
 0x1ca   : > { %8905 = vmatprep.subr.mxu1 %v9989_v10 }
 0x1cc   : > { %v1657_v21 = vpop.permute.xlu1 %1656  ;;  %8903 = vmatmul.mubr.msk.f32.vlgmr.msra.gmra.mrb[0].mxu1 %vm1503_vm2, %v10318_v14  ;;  %v1580_v22 = vpop.permute.xlu0 %1579 }
 0x1cd   : > { %8906 = vmatpush3.xpose.msk.msra.mxu1 %vm1503_vm2, %v1580_v22  ;;  %8907 = vmatprep.mubr.msk.f32.mxu1 %vm9990_vm1, %v9989_v10 }
 0x1ce   : > { %8910 = vmatprep.subr.mxu1 %v9989_v10 }
 0x1d0   : > { %v1734_v23 = vpop.permute.xlu1 %1733  ;;  %8908 = vmatmul.mubr.msk.f32.vlgmr.msra.gmra.mrb[2].mxu1 %vm1503_vm2, %v10322_v17 }
 0x1d1   : > { %8911 = vmatpush3.xpose.msk.msra.mxu1 %vm1503_vm2, %v1657_v21  ;;  %8916 = vmatpush3.xpose.msk.msra.mxu0 %vm1503_vm2, %v1734_v23 }
 0x1d2   : > { %8912 = vmatprep.mubr.msk.f32.mxu1 %vm9990_vm1, %v9989_v10  ;;  %8920 = vmatprep.subr.mxu1 %v9989_v10 }
 0x1d3   : > { %8925 = vmatprep.subr.mxu0 %v9989_v10 }
 0x1d4   : > { %8913 = vmatmul.mubr.msk.f32.vlgmr.msra.gmra.mrb[4].mxu1 %vm1503_vm2, %v10324_v18  ;;  %8918 = vmatmul.mubr.msk.f32.vlgmr.msra.gmra.mrb[4].mxu0 %vm1503_vm2, %v10326_v19 }
 0x1d5   : > { %8922 = vmatprep.mubr.msk.f32.mxu1 %vm9990_vm1, %v9989_v10  ;;  %8927 = vmatprep.mubr.msk.f32.mxu0 %vm9990_vm1, %v9989_v10 }
 0x29f   : > { %v1574_v25 = vpop.f32.mrb[0].mxu1 }
 0x2a0   : > { %v1809_v26 = vmul.f32 0.25, %v1574_v25  ;;  %v8904_v27 = vpop.f32.mrb[1].mxu1 }
 0x2a2   : > { %v1816_v28 = vsel %vm1813_vm3, -1e+09, %v1809_v26 }
 0x2a3   : > { %v1651_v29 = vpop.f32.mrb[2].mxu1  ;;  %v1821_v30 = vsel %vm1820_vm4, %v1816_v28, -inf }
 0x2a4   : > { %v1810_v31 = vmul.f32 0.25, %v1651_v29  ;;  %1822 = vmax.xlane.f32.xlu0 %v1821_v30  ;;  %v8909_v32 = vpop.f32.mrb[3].mxu1 }
 0x2a6   : > { %v1817_v33 = vsel %vm1813_vm3, -1e+09, %v1810_v31 }
 0x2a7   : > { %v1728_v34 = vpop.f32.mrb[4].mxu1  ;;  %v1805_v35 = vpop.f32.mrb[4].mxu0  ;;  %v1824_v36 = vsel %vm1820_vm4, %v1817_v33, -inf }
 0x2a8   : > { %v1811_v37 = vmul.f32 0.25, %v1728_v34  ;;  %v1812_v38 = vmul.f32 0.25, %v1805_v35  ;;  %v8919_v39 = vpop.f32.mrb[5].mxu0  ;;  %1825 = vmax.xlane.f32.xlu1 %v1824_v36  ;;  %v8914_v40 = vpop.f32.mrb[5].mxu1 }
 0x2aa   : > { %v1818_v41 = vsel %vm1813_vm3, -1e+09, %v1811_v37  ;;  %v1819_v43 = vsel %vm1813_vm3, -1e+09, %v1812_v38 }
 0x2ab   : > { %v1827_v42 = vsel %vm1820_vm4, %v1818_v41, -inf  ;;  %v1830_v44 = vsel %vm1820_vm4, %v1819_v43, -inf }
 0x2ac   : > { %1828 = vmax.xlane.f32.xlu0 %v1827_v42 }
 0x2b0   : > { %1831 = vmax.xlane.f32.xlu0 %v1830_v44 }
 0x2b9   : > { %1865 = vrot.lane.b32.xlu1 %v10318_v14, %s11505_s11 }
 0x2bd   : > { %2017 = vrot.lane.b32.xlu1 %v10324_v18, %s11505_s11 }
 0x2c1   : > { %2093 = vrot.lane.b32.xlu1 %v10326_v19, %s11505_s11 }
 0x2c6   : > { %1941 = vrot.lane.b32.xlu0 %v10322_v17, %s11505_s11  ;;  %s11507_s11 = smov 48  }
 0x331   : > { %v1823_v45 = vpop.xlane.xlu0 %1822 }
 0x332   : > { %v1833_v46 = vsub.f32 %v1816_v28, %v1823_v45 }
 0x334   : > { %v1837_v47 = vmul.f32 1.442695, %v1833_v46 }
 0x335   : > { %v1826_v48 = vpop.xlane.xlu1 %1825 }
 0x336   : > { %9638 = vpow2.f32 %v1837_v47  ;;  %v1834_v51 = vsub.f32 %v1817_v33, %v1826_v48 }
 0x338   : > { %v1839_v55 = vmul.f32 1.442695, %v1834_v51 }
 0x339   : > { %v1866_v49 = vpop.permute.xlu1 %1865  ;;  %v1829_v50 = vpop.xlane.xlu0 %1828 }
 0x33a   : > { %8921 = vmatpush3.msra.mxu1 %v1866_v49  ;;  %v1835_v63 = vsub.f32 %v1818_v41, %v1829_v50 }
 0x33b   : > { %8930 = vmatprep.subr.mxu1 %v9989_v10 }
 0x33c   : > { %v1841_v0 = vmul.f32 1.442695, %v1835_v63 }
 0x33d   : > { %v1832_v52 = vpop.xlane.xlu0 %1831  ;;  %v2018_v3 = vpop.permute.xlu1 %2017 }
 0x33e   : > { %v1836_v53 = vsub.f32 %v1819_v43, %v1832_v52 }
 0x340   : > { %v9639_v54 = vpop.eup %9638  ;;  %v1843_v56 = vmul.f32 1.442695, %v1836_v53 }
 0x341   : > { %v1942_v57 = vpop.permute.xlu0 %1941  ;;  %v1845_v58 = vsel %vm1820_vm4, %v9639_v54, 0.0  ;;  %v2094_v4 = vpop.permute.xlu1 %2093 }
 0x342   : > { %9640 = vpow2.f32 %v1843_v56  ;;  %1846 = vadd.xlane.f32.xlu1 %v1845_v58  ;;  %8926 = vmatpush3.msra.mxu0 %v1942_v57 }
 0x343   : > { %8935 = vmatprep.subr.mxu0 %v9989_v10  ;;  %9642 = vpow2.f32 %v1839_v55 }
 0x344   : > { %9644 = vpow2.f32 %v1841_v0 }
 0x34c   : > { %v9641_v59 = vpop.eup %9640 }
 0x34d   : > { %v1854_v60 = vsel %vm1820_vm4, %v9641_v59, 0.0  ;;  %v9643_v61 = vpop.eup %9642 }
 0x34e   : > { %1855 = vadd.xlane.f32.xlu0 %v1854_v60  ;;  %v1848_v62 = vsel %vm1820_vm4, %v9643_v61, 0.0  ;;  %v9645_v1 = vpop.eup %9644 }
 0x34f   : > { %v1851_v2 = vsel %vm1820_vm4, %v9645_v1, 0.0 }
 0x352   : > { %1849 = vadd.xlane.f32.xlu0 %v1848_v62 }
 0x353   : > { %2249 = vrot.lane.b32.xlu1 %v10322_v17, %s11511_s23 }
 0x357   : > { %2247 = vrot.lane.b32.xlu1 %v10322_v17, %s11509_s28 }
 0x35b   : > { %2405 = vrot.lane.b32.xlu1 %v10326_v19, %s11511_s23 }
 0x368   : > { %2171 = vrot.lane.b32.xlu0 %v10318_v14, %s11511_s23 }
 0x36c   : > { %2169 = vrot.lane.b32.xlu0 %v10318_v14, %s11509_s28 }
 0x370   : > { %2327 = vrot.lane.b32.xlu0 %v10324_v18, %s11511_s23 }
 0x374   : > { %2325 = vrot.lane.b32.xlu0 %v10324_v18, %s11509_s28 }
 0x37f   : > { %1852 = vadd.xlane.f32.xlu1 %v1851_v2 }
 0x390   : > { %2403 = vrot.lane.b32.xlu1 %v10326_v19, %s11509_s28 }
 0x3cf   : > { %v1847_v5 = vpop.xlane.xlu1 %1846 }
 0x3d0   : > { %9646 = vrcp.f32 %v1847_v5 }
 0x3d3   : > { %v2250_v22 = vpop.permute.xlu1 %2249 }
 0x3d7   : > { %v2248_v25 = vpop.permute.xlu1 %2247 }
 0x3da   : > { %v9647_v11 = vpop.eup %9646 }
 0x3db   : > { %v1856_v12 = vpop.xlane.xlu0 %1855  ;;  %v1861_v13 = vmul.f32 %v9647_v11, %v9639_v54  ;;  %v2406_v26 = vpop.permute.xlu1 %2405 }
 0x3dd   : > { %8923 = vmatmul.mubr.msk.f32.vlgmr.msra.gmra.mrb[6].mxu1 %vm1820_vm4, %v1861_v13 }
 0x3de   : > { %8931 = vmatpush3.msra.mxu1 %v2018_v3  ;;  %8932 = vmatprep.mubr.msk.f32.mxu1 %vm9990_vm1, %v9989_v10 }
 0x3df   : > { %v1850_v15 = vpop.xlane.xlu0 %1849  ;;  %8940 = vmatprep.subr.mxu1 %v9989_v10 }
 0x3e0   : > { %9648 = vrcp.f32 %v1850_v15 }
 0x3e1   : > { %9650 = vrcp.f32 %v1856_v12 }
 0x3e3   : > { %v2172_v28 = vpop.permute.xlu0 %2171 }
 0x3e7   : > { %v2170_v30 = vpop.permute.xlu0 %2169 }
 0x3ea   : > { %v9649_v16 = vpop.eup %9648 }
 0x3eb   : > { %v1862_v20 = vmul.f32 %v9649_v16, %v9643_v61  ;;  %v9651_v21 = vpop.eup %9650  ;;  %v2328_v33 = vpop.permute.xlu0 %2327 }
 0x3ec   : > { %v1864_v23 = vmul.f32 %v9651_v21, %v9641_v59 }
 0x3ed   : > { %8928 = vmatmul.mubr.msk.f32.vlgmr.msra.gmra.mrb[6].mxu0 %vm1820_vm4, %v1862_v20 }
 0x3ee   : > { %8936 = vmatpush3.msra.mxu0 %v2094_v4  ;;  %8937 = vmatprep.mubr.msk.f32.mxu0 %vm9990_vm1, %v9989_v10 }
 0x3ef   : > { %8945 = vmatprep.subr.mxu0 %v9989_v10  ;;  %v2326_v34 = vpop.permute.xlu0 %2325 }
 0x3f1   : > { %8938 = vmatmul.mubr.msk.f32.vlgmr.msra.gmra.mrb[8].mxu0 %vm1820_vm4, %v1864_v23 }
 0x3f2   : > { %8947 = vmatprep.mubr.msk.f32.mxu0 %vm9990_vm1, %v9989_v10 }
 0x3f5   : > { %8946 = vmatpush3.xpose.msk.msra.mxu0 %vm1503_vm2, %v2250_v22 }
 0x3f6   : > { %8955 = vmatprep.subr.mxu0 %v9989_v10 }
 0x3f8   : > { %8948 = vmatmul.mubr.msk.f32.vlgmr.msra.gmra.mrb[10].mxu0 %vm1503_vm2, %v2248_v25 }
 0x3f9   : > { %8956 = vmatpush3.xpose.msk.msra.mxu0 %vm1503_vm2, %v2406_v26  ;;  %8957 = vmatprep.mubr.msk.f32.mxu0 %vm9990_vm1, %v9989_v10 }
 0x3fa   : > { %8965 = vmatprep.subr.mxu0 %v9989_v10 }
 0x40c   : > { %v1853_v27 = vpop.xlane.xlu1 %1852 }
 0x40d   : > { %9652 = vrcp.f32 %v1853_v27 }
 0x410   : > { %v2404_v29 = vpop.permute.xlu1 %2403 }
 0x411   : > { %8958 = vmatmul.mubr.msk.f32.vlgmr.msra.gmra.mrb[12].mxu0 %vm1503_vm2, %v2404_v29 }
 0x412   : > { %8967 = vmatprep.mubr.msk.f32.mxu0 %vm9990_vm1, %v9989_v10 }
 0x417   : > { %v9653_v31 = vpop.eup %9652 }
 0x418   : > { %v1863_v32 = vmul.f32 %v9653_v31, %v9645_v1 }
 0x41a   : > { %8933 = vmatmul.mubr.msk.f32.vlgmr.msra.gmra.mrb[8].mxu1 %vm1820_vm4, %v1863_v32 }
 0x41b   : > { %8941 = vmatpush3.xpose.msk.msra.mxu1 %vm1503_vm2, %v2172_v28  ;;  %8942 = vmatprep.mubr.msk.f32.mxu1 %vm9990_vm1, %v9989_v10 }
 0x41c   : > { %8950 = vmatprep.subr.mxu1 %v9989_v10 }
 0x41e   : > { %8943 = vmatmul.mubr.msk.f32.vlgmr.msra.gmra.mrb[10].mxu1 %vm1503_vm2, %v2170_v30 }
 0x41f   : > { %8951 = vmatpush3.xpose.msk.msra.mxu1 %vm1503_vm2, %v2328_v33  ;;  %8952 = vmatprep.mubr.msk.f32.mxu1 %vm9990_vm1, %v9989_v10 }
 0x420   : > { %8960 = vmatprep.subr.mxu1 %v9989_v10 }
 0x422   : > { %8953 = vmatmul.mubr.msk.f32.vlgmr.msra.gmra.mrb[12].mxu1 %vm1503_vm2, %v2326_v34 }
 0x423   : > { %8962 = vmatprep.mubr.msk.f32.mxu1 %vm9990_vm1, %v9989_v10 }
 0x4b0   : > { %v10438_v35 = vpop.f32.mrb[6].mxu1 }
 0x4b1   : > { %v8924_v36 = vpop.f32.mrb[7].mxu1 }
 0x4b2   : > { %v1498_v36 = vld [vmem:[%s10039_s29 + $0x10] sm:$0xff] }
 0x4c0   : > { %v10440_v37 = vpop.f32.mrb[6].mxu0 }
 0x4c1   : > { %v8929_v38 = vpop.f32.mrb[7].mxu0 }
 0x4c2   : > { %v1499_v38 = vld [vmem:[%s10039_s29 + $0x18] sm:$0xff] }
 0x4c4   : > { %v10442_v39 = vpop.f32.mrb[8].mxu0 }
 0x4c5   : > { %v8939_v40 = vpop.f32.mrb[9].mxu0 }
 0x4cb   : > { %v2321_v41 = vpop.f32.mrb[10].mxu0 }
 0x4cc   : > { %v2482_v42 = vmul.f32 0.25, %v2321_v41  ;;  %v8949_v43 = vpop.f32.mrb[11].mxu0 }
 0x4ce   : > { %v2486_v44 = vsel %vm1813_vm3, -1e+09, %v2482_v42 }
 0x4cf   : > { %v2492_v45 = vsel %vm1820_vm4, %v2486_v44, -inf }
 0x4d0   : > { %2493 = vmax.xlane.f32.xlu1 %v2492_v45 }
 0x4e1   : > { %2533 = vrot.lane.b32.xlu1 %v10318_v14, %s11507_s11 }
 0x4e4   : > { %v2477_v46 = vpop.f32.mrb[12].mxu0 }
 0x4e5   : > { %v8959_v47 = vpop.f32.mrb[13].mxu0  ;;  %v2484_v56 = vmul.f32 0.25, %v2477_v46 }
 0x4e6   : > { %v1496_v47 = vld [vmem:[%s10039_s29] sm:$0xff] }
 0x4e7   : > { %v2488_v60 = vsel %vm1813_vm3, -1e+09, %v2484_v56 }
 0x4e8   : > { %v2498_v61 = vsel %vm1820_vm4, %v2488_v60, -inf }
 0x4ed   : > { %v10449_v48 = vpop.f32.mrb[8].mxu1 }
 0x4ee   : > { %v8934_v49 = vpop.f32.mrb[9].mxu1 }
 0x4ef   : > { %v1497_v49 = vld [vmem:[%s10039_s29 + $0x8] sm:$0xff] }
 0x4f1   : > { %v2243_v50 = vpop.f32.mrb[10].mxu1 }
 0x4f2   : > { %v2481_v51 = vmul.f32 0.25, %v2243_v50  ;;  %v8944_v52 = vpop.f32.mrb[11].mxu1  ;;  %v9294_v50 = vpack.c.bf16 %v1497_v49, %v1496_v47 }
 0x4f4   : > { %v2485_v53 = vsel %vm1813_vm3, -1e+09, %v2481_v51 }
 0x4f5   : > { %v2399_v54 = vpop.f32.mrb[12].mxu1  ;;  %v2489_v55 = vsel %vm1820_vm4, %v2485_v53, -inf }
 0x4f6   : > { %v2483_v57 = vmul.f32 0.25, %v2399_v54  ;;  %2490 = vmax.xlane.f32.xlu0 %v2489_v55  ;;  %v8954_v58 = vpop.f32.mrb[13].mxu1 }
 0x4f8   : > { %v2487_v14 = vsel %vm1813_vm3, -1e+09, %v2483_v57 }
 0x4f9   : > { %v2495_v59 = vsel %vm1820_vm4, %v2487_v14, -inf }
 0x4fa   : > { %2496 = vmax.xlane.f32.xlu0 %v2495_v59 }
 0x4fe   : > { %2499 = vmax.xlane.f32.xlu0 %v2498_v61 }
 0x55d   : > { %v2494_v62 = vpop.xlane.xlu1 %2493 }
 0x55e   : > { %v2502_v63 = vsub.f32 %v2486_v44, %v2494_v62 }
 0x560   : > { %v2507_v0 = vmul.f32 1.442695, %v2502_v63 }
 0x561   : > { %v2534_v1 = vpop.permute.xlu1 %2533 }
 0x562   : > { %9654 = vpow2.f32 %v2507_v0  ;;  %8961 = vmatpush3.msra.mxu1 %v2534_v1 }
 0x563   : > { %8970 = vmatprep.subr.mxu1 %v9989_v10 }
 0x56c   : > { %v9655_v2 = vpop.eup %9654 }
 0x56d   : > { %v2516_v3 = vsel %vm1820_vm4, %v9655_v2, 0.0 }
 0x56e   : > { %2517 = vadd.xlane.f32.xlu0 %v2516_v3 }
 0x583   : > { %v2491_v4 = vpop.xlane.xlu0 %2490 }
 0x584   : > { %v2501_v5 = vsub.f32 %v2485_v53, %v2491_v4 }
 0x586   : > { %v2505_v11 = vmul.f32 1.442695, %v2501_v5 }
 0x587   : > { %v2497_v12 = vpop.xlane.xlu0 %2496 }
 0x588   : > { %9656 = vpow2.f32 %v2505_v11  ;;  %v2503_v13 = vsub.f32 %v2487_v14, %v2497_v12  ;;  %v8360_v14 = vld [vmem:[%s11565_s3] ss:$0 sm:$0xff]  ;;  %s11575_s3 = sld [smem:[#allocation14_spill]] }
 0x58a   : > { %v2509_v15 = vmul.f32 1.442695, %v2503_v13 }
 0x58b   : > { %v2500_v16 = vpop.xlane.xlu0 %2499 }
 0x58c   : > { %9658 = vpow2.f32 %v2509_v15  ;;  %v2504_v20 = vsub.f32 %v2488_v60, %v2500_v16 }
 0x58e   : > { %v2511_v21 = vmul.f32 1.442695, %v2504_v20 }
 0x590   : > { %9660 = vpow2.f32 %v2511_v21 }
 0x592   : > { %v9657_v22 = vpop.eup %9656 }
 0x593   : > { %v2513_v23 = vsel %vm1820_vm4, %v9657_v22, 0.0 }
 0x594   : > { %2514 = vadd.xlane.f32.xlu1 %v2513_v23 }
 0x596   : > { %v9659_v25 = vpop.eup %9658 }
 0x597   : > { %v2519_v26 = vsel %vm1820_vm4, %v9659_v25, 0.0 }
 0x598   : > { %2520 = vadd.xlane.f32.xlu1 %v2519_v26 }
 0x59a   : > { %v9661_v27 = vpop.eup %9660 }
 0x59b   : > { %v2522_v28 = vsel %vm1820_vm4, %v9661_v27, 0.0 }
 0x59c   : > { %2523 = vadd.xlane.f32.xlu0 %v2522_v28 }
 0x5a9   : > { %2685 = vrot.lane.b32.xlu1 %v10324_v18, %s11507_s11 }
 0x5ad   : > { %2761 = vrot.lane.b32.xlu1 %v10326_v19, %s11507_s11  ;;  %v9290_v19 = vpack.c.bf16 %v1499_v38, %v1498_v36  ;;  %v3123_v38 = vld [vmem:[%s10059_s19 + $0x10] sm:$0xff] }
 0x5b2   : > { %2609 = vrot.lane.b32.xlu0 %v10322_v17, %s11507_s11  ;;  %s11570_s11 = sld [smem:[#allocation11_spill]] }
 0x5fb   : > { %v2518_v29 = vpop.xlane.xlu0 %2517 }
 0x5fc   : > { %9662 = vrcp.f32 %v2518_v29 }
 0x606   : > { %v9663_v33 = vpop.eup %9662 }
 0x607   : > { %v2530_v42 = vmul.f32 %v9663_v33, %v9655_v2  ;;  %v3121_v33 = vld [vmem:[%s10059_s19] sm:$0xff] }
 0x621   : > { %v2515_v30 = vpop.xlane.xlu1 %2514 }
 0x622   : > { %9664 = vrcp.f32 %v2515_v30 }
 0x625   : > { %v2521_v31 = vpop.xlane.xlu1 %2520 }
 0x626   : > { %9666 = vrcp.f32 %v2521_v31 }
 0x629   : > { %v2524_v32 = vpop.xlane.xlu0 %2523  ;;  %v2686_v34 = vpop.permute.xlu1 %2685 }
 0x62a   : > { %9668 = vrcp.f32 %v2524_v32 }
 0x62c   : > { %v9665_v40 = vpop.eup %9664 }
 0x62d   : > { %v2610_v18 = vpop.permute.xlu0 %2609  ;;  %v2529_v41 = vmul.f32 %v9665_v40, %v9657_v22  ;;  %v2762_v43 = vpop.permute.xlu1 %2761  ;;  %v3124_v40 = vld [vmem:[%s10059_s19 + $0x18] sm:$0xff] }
 0x62e   : > { %8966 = vmatpush3.msra.mxu0 %v2610_v18  ;;  %v9302_v18 = vpack.c.bf16 %v3124_v40, %v3123_v38  ;;  %v9997_v40 = vmov 0  }
 0x62f   : > { %8963 = vmatmul.mubr.msk.f32.vlgmr.msra.gmra.mrb[14].mxu1 %vm1820_vm4, %v2529_v41  ;;  %8968 = vmatmul.mubr.msk.f32.vlgmr.msra.gmra.mrb[14].mxu0 %vm1820_vm4, %v2530_v42  ;;  %v9996_v41 = vmov 0.0|0.0  }
 0x630   : > { %v9667_v17 = vpop.eup %9666  ;;  %8971 = vmatpush3.msra.mxu1 %v2686_v34  ;;  %8975 = vmatprep.subr.mxu0 %v9989_v10  ;;  %v3122_v34 = vld [vmem:[%s10059_s19 + $0x8] sm:$0xff] }
 0x631   : > { %8976 = vmatpush3.msra.mxu0 %v2762_v43  ;;  %8972 = vmatprep.mubr.msk.f32.mxu1 %vm9990_vm1, %v9989_v10  ;;  %v2531_v44 = vmul.f32 %v9667_v17, %v9659_v25  ;;  %v9298_v36 = vpack.c.bf16 %v3122_v34, %v3121_v33  ;;  %v3423_v33 = vlaneseq  ;;  %v1386_v34 = vld [vmem:[%s10024_s17] sm:$0x1] }
 0x632   : > { %8977 = vmatprep.mubr.msk.f32.mxu0 %vm9990_vm1, %v9989_v10  ;;  %9291 = vmatprep.subr.bf16.mxu1 %v9290_v19  ;;  %vm3421_vm5 = vcmp.eq.s32.totalorder %v1386_v34, 0 }
 0x633   : > { %8973 = vmatmul.mubr.msk.f32.vlgmr.msra.gmra.mrb[16].mxu1 %vm1820_vm4, %v2531_v44  ;;  %9299 = vmatprep.subr.bf16.mxu0 %v9298_v36 }
 0x634   : > { %v9669_v45 = vpop.eup %9668  ;;  %9293 = vmatpush3.bf16.msra.mxu1 %v9290_v19 }
 0x635   : > { %v2532_v46 = vmul.f32 %v9669_v45, %v9661_v27  ;;  %9295 = vmatprep.subr.bf16.mxu1 %v9294_v50 }
 0x637   : > { %8978 = vmatmul.mubr.msk.f32.vlgmr.msra.gmra.mrb[16].mxu0 %vm1820_vm4, %v2532_v46 }
 0x638   : > { %9301 = vmatpush3.bf16.msra.mxu0 %v9298_v36  ;;  %v10566_v36 = vshrl.u32 %v3423_v33, 7 }
 0x639   : > { %9303 = vmatprep.subr.bf16.mxu0 %v9302_v18 }
 0x63a   : > { %v10569_v38 = vsub.s32 0, %v10566_v36 }
 0x63c   : > { %9305 = vmatpush3.bf16.msra.mxu0 %v9302_v18  ;;  %v3422_v18 = vsel %vm3421_vm5, 1, %v9997_v40 }
 0x63d   : > { %9306 = vmatprep.subr.bf16.mxu0 %v9996_v41 }
 0x702   : > { %v2605_v51 = vpop.f32.mrb[14].mxu1  ;;  %v2681_v52 = vpop.f32.mrb[14].mxu0 }
 0x703   : > { %v8964_v53 = vpop.f32.mrb[15].mxu1  ;;  %v8969_v54 = vpop.f32.mrb[15].mxu0  ;;  %8984 = vmatprep.mubr.msk.f32.mxu1 %vm1503_vm2, %v2605_v51 }
 0x704   : > { %8985 = vmatmul.mubr.msk.f32.vlgmr.msra.gmra.mrb[18].mxu1 %vm1503_vm2, %v2681_v52  ;;  %v8361_v54 = vld [vmem:[%s11566_s8] ss:$0 sm:$0xff]  ;;  %s11587_s8 = sld [smem:[#allocation23_spill]] }
 0x705   : > { %9297 = vmatpush3.bf16.msra.mxu1 %v9294_v50 }
 0x706   : > { %v2757_v55 = vpop.f32.mrb[16].mxu1 }
 0x707   : > { %v8974_v56 = vpop.f32.mrb[17].mxu1  ;;  %8987 = vmatprep.mubr.msk.f32.mxu1 %vm1503_vm2, %v2757_v55 }
 0x70a   : > { %v2833_v57 = vpop.f32.mrb[16].mxu0 }
 0x70b   : > { %v8979_v58 = vpop.f32.mrb[17].mxu0  ;;  %8988 = vmatmul.mubr.msk.f32.gmra.mrb[20].mxu1 %vm1503_vm2, %v2833_v57 }
 0x70c   : > { %8994 = vmatprep.mubr.msk.f32.mxu1 %vm1503_vm2, %v10438_v35  ;;  %v8362_v58 = vld [vmem:[%s10054_s14] ss:$0 sm:$0xff] }
 0x70f   : > { %8995 = vmatmul.mubr.msk.f32.vlgmr.msra.gmra.mrb[18].mxu1 %vm1503_vm2, %v10440_v37 }
 0x710   : > { %8997 = vmatprep.mubr.msk.f32.mxu1 %vm1503_vm2, %v10449_v48 }
 0x713   : > { %8998 = vmatmul.mubr.msk.f32.gmra.mrb[20].mxu1 %vm1503_vm2, %v10442_v39 }
 0x7e2   : > { %v8996_v59 = vpop.f32.mrb[18].mxu1 }
 0x7e3   : > { %v3039_v60 = vadd.f32 %v8996_v59, %v8360_v14  ;;  %v3012_v61 = vpop.f32.mrb[19].mxu1  ;;  %v3229_v59 = vld [vmem:[%s10069_s30] sm:$0xff] }
 0x7e4   : > { %v3038_v62 = vadd.f32 %v8360_v14, %v3012_v61 }
 0x7e5   : > { %v3043_v63 = vadd.f32 %v3039_v60, %v10299_v7  ;;  %v3230_v60 = vld [vmem:[%s10069_s30 + $0x8] sm:$0xff] }
 0x7e6   : > { %v8999_v0 = vpop.f32.mrb[20].mxu1  ;;  %v3042_v1 = vadd.f32 %v3038_v62, %v10295_v6 }
 0x7e7   : > { %v3022_v35 = vpop.f32.mrb[21].mxu1  ;;  %v3051_v2 = vsel %vm1398_vm0, %v3043_v63, 0.0  ;;  %v3041_v37 = vadd.f32 %v8999_v0, %v8360_v14 }
 0x7e8   : > { %v3040_v3 = vadd.f32 %v8360_v14, %v3022_v35  ;;  %3052 = vadd.xlane.f32.xlu1 %v3051_v2  ;;  %v3048_v48 = vsel %vm1398_vm0, %v3042_v1, 0.0  ;;  %v3231_v2 = vld [vmem:[%s10069_s30 + $0x10] sm:$0xff] }
 0x7e9   : > { %3049 = vadd.xlane.f32.xlu0 %v3048_v48  ;;  %v3045_v5 = vadd.f32 %v3041_v37, %v10307_v9  ;;  %v3232_v37 = vld [vmem:[%s10069_s30 + $0x18] sm:$0xff] }
 0x7ea   : > { %v3044_v39 = vadd.f32 %v3040_v3, %v10301_v8 }
 0x7eb   : > { %v3057_v7 = vsel %vm1398_vm0, %v3045_v5, 0.0 }
 0x7ec   : > { %v3054_v4 = vsel %vm1398_vm0, %v3044_v39, 0.0 }
 0x7ed   : > { %3055 = vadd.xlane.f32.xlu0 %v3054_v4 }
 0x7f1   : > { %3058 = vadd.xlane.f32.xlu0 %v3057_v7 }
 0x875   : > { %v3053_v6 = vpop.xlane.xlu1 %3052 }
 0x876   : > { %v3062_v11 = vmul.f32 0.03125, %v3053_v6  ;;  %v3050_v12 = vpop.xlane.xlu0 %3049 }
 0x877   : > { %v3061_v13 = vmul.f32 0.03125, %v3050_v12  ;;  %v8363_v12 = vld [vmem:[%s10064_s24] ss:$0 sm:$0xff] }
 0x878   : > { %v3066_v15 = vsub.f32 %v3043_v63, %v3062_v11  ;;  %v1384_v11 = vld [vmem:[%s11560_s9] sm:$0xff] }
 0x879   : > { %v3065_v16 = vsub.f32 %v3042_v1, %v3061_v13  ;;  %v9307_v1 = vpack.c.bf16 %v3230_v60, %v3229_v59 }
 0x87a   : > { %v3056_v20 = vpop.xlane.xlu0 %3055  ;;  %v3070_v21 = vmul.f32 %v3066_v15, %v3066_v15 }
 0x87b   : > { %v3063_v22 = vmul.f32 0.03125, %v3056_v20  ;;  %v3069_v23 = vmul.f32 %v3065_v16, %v3065_v16 }
 0x87c   : > { %v3076_v8 = vsel %vm1398_vm0, %v3070_v21, 0.0 }
 0x87d   : > { %v3067_v25 = vsub.f32 %v3044_v39, %v3063_v22  ;;  %3077 = vadd.xlane.f32.xlu0 %v3076_v8  ;;  %v3073_v9 = vsel %vm1398_vm0, %v3069_v23, 0.0  ;;  %v8368_v23 = vld [vmem:[%s11567_s6] ss:$0 sm:$0xff]  ;;  %s11585_s6 = smov 112  }
 0x87e   : > { %3074 = vadd.xlane.f32.xlu1 %v3073_v9  ;;  %v3059_v26 = vpop.xlane.xlu0 %3058 }
 0x87f   : > { %v3064_v27 = vmul.f32 0.03125, %v3059_v26  ;;  %v3071_v28 = vmul.f32 %v3067_v25, %v3067_v25 }
 0x881   : > { %v3068_v29 = vsub.f32 %v3045_v5, %v3064_v27  ;;  %v3079_v30 = vsel %vm1398_vm0, %v3071_v28, 0.0  ;;  %v9310_v5 = vpack.c.bf16 %v3232_v37, %v3231_v2 }
 0x882   : > { %3080 = vadd.xlane.f32.xlu1 %v3079_v30 }
 0x883   : > { %v3072_v31 = vmul.f32 %v3068_v29, %v3068_v29 }
 0x885   : > { %v3082_v32 = vsel %vm1398_vm0, %v3072_v31, 0.0 }
 0x886   : > { %3083 = vadd.xlane.f32.xlu0 %v3082_v32 }
 0x90a   : > { %v3078_v42 = vpop.xlane.xlu0 %3077 }
 0x90b   : > { %v3086_v19 = vmul.f32 0.03125, %v3078_v42  ;;  %v3075_v17 = vpop.xlane.xlu1 %3074  ;;  %v3426_v42 = vrot.slane %v3422_v18, %v10569_v38 }
 0x90c   : > { %v3085_v43 = vmul.f32 0.03125, %v3075_v17 }
 0x90d   : > { %v3090_v44 = vadd.f32 1e-05, %v3086_v19  ;;  %vm10572_vm6 = vcmp.eq.s32.totalorder %v3426_v42, 1 }
 0x90e   : > { %v3089_v45 = vadd.f32 1e-05, %v3085_v43 }
 0x90f   : > { %9670 = vrsqrt.f32 %v3090_v44  ;;  %v3081_v46 = vpop.xlane.xlu1 %3080 }
 0x910   : > { %9672 = vrsqrt.f32 %v3089_v45  ;;  %v3087_v47 = vmul.f32 0.03125, %v3081_v46 }
 0x912   : > { %v3091_v49 = vadd.f32 1e-05, %v3087_v47 }
 0x913   : > { %v3084_v50 = vpop.xlane.xlu0 %3083 }
 0x914   : > { %9674 = vrsqrt.f32 %v3091_v49  ;;  %v3088_v51 = vmul.f32 0.03125, %v3084_v50 }
 0x916   : > { %v3092_v52 = vadd.f32 1e-05, %v3088_v51 }
 0x918   : > { %9676 = vrsqrt.f32 %v3092_v52 }
 0x919   : > { %v9671_v53 = vpop.eup %9670 }
 0x91a   : > { %v9673_v55 = vpop.eup %9672  ;;  %v3098_v56 = vmul.f32 %v9671_v53, %v3066_v15 }
 0x91b   : > { %v3097_v57 = vmul.f32 %v9673_v55, %v3065_v16 }
 0x91c   : > { %v3108_v14 = vmul.f32 %v8361_v54, %v3098_v56 }
 0x91d   : > { %v3107_v61 = vmul.f32 %v8361_v54, %v3097_v57 }
 0x91e   : > { %v9675_v62 = vpop.eup %9674  ;;  %v10520_v35 = vadd.f32 %v8362_v58, %v3108_v14 }
 0x91f   : > { %v10518_v63 = vadd.f32 %v8362_v58, %v3107_v61  ;;  %v3099_v0 = vmul.f32 %v9675_v62, %v3067_v25 }
 0x921   : > { %9008 = vmatprep.mubr.msk.f32.mxu0 %vm1398_vm0, %v10518_v63  ;;  %v3109_v3 = vmul.f32 %v8361_v54, %v3099_v0 }
 0x922   : > { %v9677_v48 = vpop.eup %9676  ;;  %9009 = vmatmul.mubr.msk.f32.vlgmr.msra.gmra.mrb[18].mxu0 %vm1398_vm0, %v10520_v35 }
 0x923   : > { %v10528_v39 = vadd.f32 %v8362_v58, %v3109_v3  ;;  %9308 = vmatpush3.bf16.msra.mxu0 %v9307_v1  ;;  %v3100_v4 = vmul.f32 %v9677_v48, %v3068_v29 }
 0x924   : > { %9309 = vmatprep.subr.bf16.mxu0 %v9996_v41 }
 0x925   : > { %9011 = vmatprep.mubr.msk.f32.mxu0 %vm1398_vm0, %v10528_v39  ;;  %v3110_v7 = vmul.f32 %v8361_v54, %v3100_v4 }
 0x927   : > { %v10533_v6 = vadd.f32 %v8362_v58, %v3110_v7  ;;  %9311 = vmatpush3.bf16.msra.mxu0 %v9310_v5 }
 0x929   : > { %9012 = vmatmul.mubr.msk.f32.gmra.mrb[20].mxu0 %vm1398_vm0, %v10533_v6 }
 0x92a   : > { %9022 = vmatprep.mubr.msk.f32.mxu0 %vm9990_vm1, %v9989_v10 }
 0x92d   : > { %9023 = vmatmul.mubr.msk.f32.vlgmr.msra.gmra.mrb[22].mxu0 %vm1398_vm0, %v1384_v11 }
 0x9f5   : > { %v9010_v13 = vpop.f32.mrb[18].mxu0 }
 0x9f6   : > { %v3210_v15 = vpop.f32.mrb[19].mxu0  ;;  %v3216_v26 = vadd.f32 %v9010_v13, %v8363_v12 }
 0x9f7   : > { %v3211_v16 = vadd.f32 %v8363_v12, %v3210_v15 }
 0x9f9   : > { %3576 = vrot.lane.b32.xlu0 %v3211_v16, %s11509_s28  ;;  %9027 = vmatprep.mubr.msk.f32.mxu1 %vm1503_vm2, %v3211_v16 }
 0x9fc   : > { %v9013_v20 = vpop.f32.mrb[20].mxu0 }
 0x9fd   : > { %v3226_v21 = vadd.f32 %v9013_v20, %v8363_v12  ;;  %v3220_v22 = vpop.f32.mrb[21].mxu0 }
 0x9fe   : > { %v3221_v27 = vadd.f32 %v8363_v12, %v3220_v22 }
 0x9ff   : > { %3582 = vrot.lane.b32.xlu0 %v3226_v21, %s11509_s28 }
 0xa00   : > { %v3309_v8 = vpop.f32.mrb[22].mxu0 }
 0xa01   : > { %v10546_v25 = vadd.f32 %v8368_v23, %v3309_v8  ;;  %v9024_v9 = vpop.f32.mrb[23].mxu0 }
 0xa03   : > { %3584 = vrot.lane.b32.xlu1 %v10546_v25, %s11509_s28  ;;  %9025 = vmatprep.subr.msk.mxu1 %vm1503_vm2, %v10546_v25 }
 0xa04   : > { %9026 = vmatpush3.xpose.msk.msra.mxu1 %vm1503_vm2, %v10546_v25 }
 0xa07   : > { %3578 = vrot.lane.b32.xlu1 %v3216_v26, %s11509_s28  ;;  %9028 = vmatmul.mubr.msk.f32.vlgmr.msra.gmra.mrb[22].mxu1 %vm1503_vm2, %v3216_v26 }
 0xa08   : > { %9030 = vmatprep.mubr.msk.f32.mxu1 %vm1503_vm2, %v3221_v27 }
 0xa0b   : > { %3580 = vrot.lane.b32.xlu1 %v3221_v27, %s11509_s28  ;;  %9031 = vmatmul.mubr.msk.f32.gmra.mrb[24].mxu1 %vm1503_vm2, %v3226_v21  ;;  %s11571_s28 = sld [smem:[#allocation12_spill]] }
 0xa6b   : > { %v3577_v28 = vpop.permute.xlu0 %3576 }
 0xa6c   : > { %9043 = vmatprep.mubr.msk.f32.mxu1 %vm1503_vm2, %v3577_v28 }
 0xa71   : > { %v3583_v32 = vpop.permute.xlu0 %3582 }
 0xa75   : > { %v3585_v29 = vpop.permute.xlu1 %3584 }
 0xa76   : > { %9041 = vmatprep.subr.msk.mxu1 %vm1503_vm2, %v3585_v29 }
 0xa77   : > { %9042 = vmatpush3.xpose.msk.msra.mxu1 %vm1503_vm2, %v3585_v29 }
 0xa79   : > { %v3579_v30 = vpop.permute.xlu1 %3578 }
 0xa7a   : > { %9044 = vmatmul.mubr.msk.f32.vlgmr.msra.gmra.mrb[26].mxu1 %vm1503_vm2, %v3579_v30 }
 0xa7d   : > { %v3581_v31 = vpop.permute.xlu1 %3580 }
 0xa7e   : > { %9046 = vmatprep.mubr.msk.f32.mxu1 %vm1503_vm2, %v3581_v31 }
 0xa7f   : > { %9047 = vmatmul.mubr.msk.f32.gmra.mrb[28].mxu1 %vm1503_vm2, %v3583_v32 }
 0xada   : > { %v9029_v19 = vpop.f32.mrb[22].mxu1 }
 0xadb   : > { %v3418_v43 = vmul.f32 0.25, %v9029_v19  ;;  %v3398_v44 = vpop.f32.mrb[23].mxu1 }
 0xadc   : > { %v3417_v45 = vmul.f32 0.25, %v3398_v44 }
 0xadd   : > { %v3429_v46 = vsel %vm10572_vm6, -1e+09, %v3418_v43 }
 0xade   : > { %v9032_v47 = vpop.f32.mrb[24].mxu1  ;;  %v3435_v49 = vsel %vm1820_vm4, %v3429_v46, -inf  ;;  %v3428_v50 = vsel %vm10572_vm6, -1e+09, %v3417_v45 }
 0xadf   : > { %v3420_v51 = vmul.f32 0.25, %v9032_v47  ;;  %3436 = vmax.xlane.f32.xlu0 %v3435_v49  ;;  %v3408_v52 = vpop.f32.mrb[25].mxu1  ;;  %v3432_v53 = vsel %vm1820_vm4, %v3428_v50, -inf }
 0xae0   : > { %v3419_v54 = vmul.f32 0.25, %v3408_v52  ;;  %3433 = vmax.xlane.f32.xlu1 %v3432_v53 }
 0xae1   : > { %v3431_v55 = vsel %vm10572_vm6, -1e+09, %v3420_v51 }
 0xae2   : > { %v3441_v56 = vsel %vm1820_vm4, %v3431_v55, -inf  ;;  %v3430_v57 = vsel %vm10572_vm6, -1e+09, %v3419_v54 }
 0xae3   : > { %v3438_v58 = vsel %vm1820_vm4, %v3430_v57, -inf }
 0xae4   : > { %3442 = vmax.xlane.f32.xlu1 %v3441_v56  ;;  %3439 = vmax.xlane.f32.xlu0 %v3438_v58 }
 0xb4d   : > { %v9045_v14 = vpop.f32.mrb[26].mxu1 }
 0xb4e   : > { %v3682_v59 = vmul.f32 0.25, %v9045_v14  ;;  %v3662_v60 = vpop.f32.mrb[27].mxu1 }
 0xb4f   : > { %v3681_v61 = vmul.f32 0.25, %v3662_v60 }
 0xb50   : > { %v3686_v62 = vsel %vm10572_vm6, -1e+09, %v3682_v59 }
 0xb51   : > { %v3692_v0 = vsel %vm1820_vm4, %v3686_v62, -inf  ;;  %v3685_v1 = vsel %vm10572_vm6, -1e+09, %v3681_v61 }
 0xb52   : > { %3693 = vmax.xlane.f32.xlu1 %v3692_v0  ;;  %v9048_v2 = vpop.f32.mrb[28].mxu1  ;;  %v3689_v37 = vsel %vm1820_vm4, %v3685_v1, -inf }
 0xb53   : > { %v3684_v3 = vmul.f32 0.25, %v9048_v2  ;;  %v3672_v48 = vpop.f32.mrb[29].mxu1  ;;  %3690 = vmax.xlane.f32.xlu0 %v3689_v37 }
 0xb54   : > { %v3683_v4 = vmul.f32 0.25, %v3672_v48 }
 0xb55   : > { %v3688_v5 = vsel %vm10572_vm6, -1e+09, %v3684_v3 }
 0xb56   : > { %v3698_v7 = vsel %vm1820_vm4, %v3688_v5, -inf  ;;  %v3687_v11 = vsel %vm10572_vm6, -1e+09, %v3683_v4 }
 0xb57   : > { %3699 = vmax.xlane.f32.xlu1 %v3698_v7  ;;  %v3695_v12 = vsel %vm1820_vm4, %v3687_v11, -inf }
 0xb58   : > { %3696 = vmax.xlane.f32.xlu0 %v3695_v12 }
 0xb6c   : > { %v3437_v13 = vpop.xlane.xlu0 %3436 }
 0xb6d   : > { %v3445_v15 = vsub.f32 %v3429_v46, %v3437_v13  ;;  %v3434_v16 = vpop.xlane.xlu1 %3433 }
 0xb6e   : > { %v3444_v20 = vsub.f32 %v3428_v50, %v3434_v16 }
 0xb6f   : > { %v3450_v21 = vmul.f32 1.442695, %v3445_v15 }
 0xb70   : > { %v3448_v22 = vmul.f32 1.442695, %v3444_v20 }
 0xb71   : > { %9678 = vpow2.f32 %v3450_v21  ;;  %v3443_v23 = vpop.xlane.xlu1 %3442  ;;  %v3440_v8 = vpop.xlane.xlu0 %3439 }
 0xb72   : > { %9680 = vpow2.f32 %v3448_v22  ;;  %v3447_v9 = vsub.f32 %v3431_v55, %v3443_v23  ;;  %v3446_v26 = vsub.f32 %v3430_v57, %v3440_v8 }
 0xb74   : > { %v3454_v27 = vmul.f32 1.442695, %v3447_v9  ;;  %v3452_v28 = vmul.f32 1.442695, %v3446_v26 }
 0xb76   : > { %9682 = vpow2.f32 %v3454_v27 }
 0xb77   : > { %9684 = vpow2.f32 %v3452_v28 }
 0xb7b   : > { %v10600_v29 = vpop.eup %9678 }
 0xb7c   : > { %v9681_v30 = vpop.eup %9680  ;;  %v3459_v31 = vsel %vm1820_vm4, %v10600_v29, 0.0 }
 0xb7d   : > { %3460 = vadd.xlane.f32.xlu1 %v3459_v31  ;;  %v3456_v32 = vsel %vm1820_vm4, %v9681_v30, 0.0 }
 0xb7e   : > { %3457 = vadd.xlane.f32.xlu0 %v3456_v32  ;;  %v3313_v32 = vld [vmem:[%s11570_s11] sm:$0xff] }
 0xb80   : > { %v10605_v33 = vpop.eup %9682 }
 0xb81   : > { %v9685_v34 = vpop.eup %9684  ;;  %v3465_v40 = vsel %vm1820_vm4, %v10605_v33, 0.0 }
 0xb82   : > { %3466 = vadd.xlane.f32.xlu1 %v3465_v40  ;;  %v3462_v18 = vsel %vm1820_vm4, %v9685_v34, 0.0 }
 0xb83   : > { %3463 = vadd.xlane.f32.xlu0 %v3462_v18 }
 0xbdf   : > { %v3694_v42 = vpop.xlane.xlu1 %3693 }
 0xbe0   : > { %v3702_v19 = vsub.f32 %v3686_v62, %v3694_v42  ;;  %v3691_v43 = vpop.xlane.xlu0 %3690 }
 0xbe1   : > { %v3701_v44 = vsub.f32 %v3685_v1, %v3691_v43 }
 0xbe2   : > { %v3707_v45 = vmul.f32 1.442695, %v3702_v19 }
 0xbe3   : > { %v3705_v46 = vmul.f32 1.442695, %v3701_v44 }
 0xbe4   : > { %9686 = vpow2.f32 %v3707_v45  ;;  %v3700_v47 = vpop.xlane.xlu1 %3699 }
 0xbe5   : > { %9688 = vpow2.f32 %v3705_v46  ;;  %v3704_v49 = vsub.f32 %v3688_v5, %v3700_v47  ;;  %v3697_v50 = vpop.xlane.xlu0 %3696  ;;  %v8396_v47 = vld [vmem:[%s11571_s28] ss:$0 sm:$0xff]  ;;  %s11572_s28 = sld [smem:[#allocation15_spill]] }
 0xbe6   : > { %v3703_v51 = vsub.f32 %v3687_v11, %v3697_v50 }
 0xbe7   : > { %v3711_v52 = vmul.f32 1.442695, %v3704_v49 }
 0xbe8   : > { %v3709_v53 = vmul.f32 1.442695, %v3703_v51 }
 0xbe9   : > { %9690 = vpow2.f32 %v3711_v52 }
 0xbea   : > { %9692 = vpow2.f32 %v3709_v53 }
 0xbee   : > { %v9687_v54 = vpop.eup %9686 }
 0xbef   : > { %v9689_v55 = vpop.eup %9688  ;;  %v3716_v56 = vsel %vm1820_vm4, %v9687_v54, 0.0 }
 0xbf0   : > { %3717 = vadd.xlane.f32.xlu1 %v3716_v56  ;;  %v3713_v57 = vsel %vm1820_vm4, %v9689_v55, 0.0 }
 0xbf1   : > { %3714 = vadd.xlane.f32.xlu0 %v3713_v57 }
 0xbf3   : > { %v9691_v58 = vpop.eup %9690 }
 0xbf4   : > { %v9693_v14 = vpop.eup %9692  ;;  %v3722_v59 = vsel %vm1820_vm4, %v9691_v58, 0.0 }
 0xbf5   : > { %3723 = vadd.xlane.f32.xlu1 %v3722_v59  ;;  %v3719_v60 = vsel %vm1820_vm4, %v9693_v14, 0.0 }
 0xbf6   : > { %3720 = vadd.xlane.f32.xlu0 %v3719_v60 }
 0xc06   : > { %3733 = vrot.lane.b32.xlu1 %v10546_v25, %s11511_s23  ;;  %s11573_s23 = sld [smem:[#allocation17_spill]] }
 0xc0a   : > { %v3461_v1 = vpop.xlane.xlu1 %3460 }
 0xc0b   : > { %v3458_v61 = vpop.xlane.xlu0 %3457 }
 0xc0c   : > { %9694 = vrcp.f32 %v3458_v61  ;;  %3476 = vrot.lane.b32.xlu0 %v10546_v25, %s11513_s1  ;;  %s11574_s1 = sld [smem:[#allocation13_spill]] }
 0xc0d   : > { %9696 = vrcp.f32 %v3461_v1 }
 0xc0f   : > { %v3467_v2 = vpop.xlane.xlu1 %3466 }
 0xc10   : > { %v3464_v37 = vpop.xlane.xlu0 %3463 }
 0xc11   : > { %9698 = vrcp.f32 %v3464_v37 }
 0xc12   : > { %9700 = vrcp.f32 %v3467_v2 }
 0xc16   : > { %v9695_v62 = vpop.eup %9694 }
 0xc17   : > { %v3472_v0 = vmul.f32 %v9695_v62, %v9681_v30  ;;  %v9697_v7 = vpop.eup %9696  ;;  %v3316_v30 = vld [vmem:[%s11570_s11 + $0x18] sm:$0xff] }
 0xc18   : > { %v3473_v12 = vmul.f32 %v9697_v7, %v10600_v29  ;;  %v3315_v29 = vld [vmem:[%s11570_s11 + $0x10] sm:$0xff] }
 0xc19   : > { %9035 = vmatprep.mubr.msk.f32.mxu0 %vm1820_vm4, %v3472_v0  ;;  %v9312_v31 = vpack.c.bf16 %v3316_v30, %v3315_v29 }
 0xc1b   : > { %v9699_v11 = vpop.eup %9698  ;;  %9313 = vmatprep.subr.bf16.mxu1 %v9312_v31 }
 0xc1c   : > { %v9701_v13 = vpop.eup %9700  ;;  %v3474_v16 = vmul.f32 %v9699_v11, %v9685_v34  ;;  %9315 = vmatpush3.bf16.msra.mxu1 %v9312_v31  ;;  %v4118_v31 = vld [vmem:[%s11572_s28 + $0x10] sm:$0xff] }
 0xc1d   : > { %v3475_v21 = vmul.f32 %v9701_v13, %v10605_v33  ;;  %v3314_v33 = vld [vmem:[%s11570_s11 + $0x8] sm:$0xff]  ;;  %s11591_s11 = sld [smem:[#allocation26_spill]] }
 0xc1e   : > { %v9316_v34 = vpack.c.bf16 %v3314_v33, %v3313_v32  ;;  %v4122_v32 = vld [vmem:[%s11572_s28 + $0x30] sm:$0xff] }
 0xc1f   : > { %v9330_v33 = vpack.c.bf16 %v4122_v32, %v4118_v31  ;;  %v4459_v31 = vld [vmem:[%s11573_s23 + $0x118] sm:$0xff] }
 0xc20   : > { %9317 = vmatprep.subr.bf16.mxu1 %v9316_v34 }
 0xc7d   : > { %v3718_v3 = vpop.xlane.xlu1 %3717 }
 0xc7e   : > { %v3715_v48 = vpop.xlane.xlu0 %3714 }
 0xc7f   : > { %9702 = vrcp.f32 %v3715_v48 }
 0xc80   : > { %9704 = vrcp.f32 %v3718_v3 }
 0xc82   : > { %v3724_v4 = vpop.xlane.xlu1 %3723 }
 0xc83   : > { %v3721_v5 = vpop.xlane.xlu0 %3720 }
 0xc84   : > { %9706 = vrcp.f32 %v3721_v5 }
 0xc85   : > { %9708 = vrcp.f32 %v3724_v4 }
 0xc86   : > { %v3734_v15 = vpop.permute.xlu1 %3733 }
 0xc87   : > { %v3477_v25 = vpop.permute.xlu0 %3476 }
 0xc88   : > { %9033 = vmatprep.subr.mxu0 %v3477_v25 }
 0xc89   : > { %9034 = vmatpush3.msra.mxu0 %v3477_v25  ;;  %v9703_v20 = vpop.eup %9702 }
 0xc8a   : > { %9036 = vmatmul.mubr.msk.f32.vlgmr.msra.gmra.mrb[24].mxu0 %vm1820_vm4, %v3473_v12  ;;  %9049 = vmatprep.subr.mxu0 %v3734_v15  ;;  %v9705_v22 = vpop.eup %9704  ;;  %v3729_v23 = vmul.f32 %v9703_v20, %v9689_v55 }
 0xc8b   : > { %9038 = vmatprep.mubr.msk.f32.mxu0 %vm1820_vm4, %v3474_v16  ;;  %9050 = vmatpush3.msra.mxu0 %v3734_v15  ;;  %v3730_v9 = vmul.f32 %v9705_v22, %v9687_v54  ;;  %v4117_v22 = vld [vmem:[%s11572_s28 + $0x8] sm:$0xff] }
 0xc8e   : > { %v9707_v8 = vpop.eup %9706  ;;  %9039 = vmatmul.mubr.msk.f32.gmra.mrb[26].mxu0 %vm1820_vm4, %v3475_v21 }
 0xc8f   : > { %9051 = vmatprep.mubr.msk.f32.mxu0 %vm1820_vm4, %v3729_v23  ;;  %v9709_v26 = vpop.eup %9708  ;;  %v3731_v27 = vmul.f32 %v9707_v8, %v9693_v14  ;;  %v4121_v23 = vld [vmem:[%s11572_s28 + $0x28] sm:$0xff]  ;;  %v4119_v8 = vld [vmem:[%s11572_s28 + $0x18] sm:$0xff] }
 0xc90   : > { %v3732_v28 = vmul.f32 %v9709_v26, %v9691_v58  ;;  %v4123_v26 = vld [vmem:[%s11572_s28 + $0x38] sm:$0xff] }
 0xc91   : > { %v9328_v29 = vpack.c.bf16 %v4123_v26, %v4119_v8  ;;  %v4475_v8 = vld [vmem:[%s11573_s23 + $0x198] sm:$0xff] }
 0xc92   : > { %9052 = vmatmul.mubr.msk.f32.vlgmr.msra.gmra.mrb[28].mxu0 %vm1820_vm4, %v3730_v9  ;;  %v9320_v9 = vpack.c.bf16 %v4121_v23, %v4117_v22  ;;  %v4443_v22 = vld [vmem:[%s11573_s23 + $0x98] sm:$0xff]  ;;  %v4474_v23 = vld [vmem:[%s11573_s23 + $0x190] sm:$0xff] }
 0xc93   : > { %9054 = vmatprep.mubr.msk.f32.mxu0 %vm1820_vm4, %v3731_v27  ;;  %v4116_v27 = vld [vmem:[%s11572_s28] sm:$0xff] }
 0xc94   : > { %9321 = vmatprep.subr.bf16.mxu0 %v9320_v9  ;;  %v4426_v9 = vld [vmem:[%s11573_s23 + $0x10] sm:$0xff] }
 0xc96   : > { %9055 = vmatmul.mubr.msk.f32.gmra.mrb[30].mxu0 %vm1820_vm4, %v3732_v28  ;;  %v4120_v28 = vld [vmem:[%s11572_s28 + $0x20] sm:$0xff] }
 0xc97   : > { %4230 = vmatprep.mubr.f32.mxu0 %v9989_v10  ;;  %v9322_v30 = vpack.c.bf16 %v4120_v28, %v4116_v27 }
 0xc99   : > { %9323 = vmatpush1.bf16.msra.mxu0 %v9322_v30  ;;  %v4458_v30 = vld [vmem:[%s11573_s23 + $0x110] sm:$0xff] }
 0xd5d   : > { %v9037_v40 = vpop.f32.mrb[24].mxu0 }
 0xd5e   : > { %v3557_v18 = vpop.f32.mrb[25].mxu0 }
 0xd61   : > { %v9040_v42 = vpop.f32.mrb[26].mxu0 }
 0xd62   : > { %v3567_v19 = vpop.f32.mrb[27].mxu0 }
 0xd65   : > { %v9053_v43 = vpop.f32.mrb[28].mxu0 }
 0xd66   : > { %v3814_v44 = vpop.f32.mrb[29].mxu0 }
 0xd67   : > { %9061 = vmatprep.mubr.msk.f32.mxu1 %vm1503_vm2, %v3814_v44  ;;  %v4128_v44 = vld [vmem:[%s11572_s28 + $0x60] sm:$0xff] }
 0xd68   : > { %9062 = vmatmul.mubr.msk.f32.vlgmr.msra.gmra.mrb[30].mxu1 %vm1503_vm2, %v9053_v43  ;;  %v4124_v43 = vld [vmem:[%s11572_s28 + $0x40] sm:$0xff] }
 0xd69   : > { %v9056_v45 = vpop.f32.mrb[30].mxu0  ;;  %9319 = vmatpush3.bf16.msra.mxu1 %v9316_v34  ;;  %v4125_v34 = vld [vmem:[%s11572_s28 + $0x48] sm:$0xff] }
 0xd6a   : > { %v3824_v46 = vpop.f32.mrb[31].mxu0  ;;  %9329 = vmatprep.subr.bf16.mxu1 %v9328_v29  ;;  %v4427_v29 = vld [vmem:[%s11573_s23 + $0x18] sm:$0xff] }
 0xd6b   : > { %9064 = vmatprep.mubr.msk.f32.mxu1 %vm1503_vm2, %v3824_v46  ;;  %v9326_v46 = vpack.c.bf16 %v4128_v44, %v4124_v43  ;;  %v4477_v43 = vld [vmem:[%s11573_s23 + $0x1a8] sm:$0xff]  ;;  %v9374_v44 = vpack.c.bf16 %v4459_v31, %v4458_v30 }
 0xd6c   : > { %9065 = vmatmul.mubr.msk.f32.gmra.mrb[32].mxu1 %vm1503_vm2, %v9056_v45 }
 0xd6d   : > { %9071 = vmatprep.mubr.msk.f32.mxu1 %vm1503_vm2, %v3557_v18  ;;  %v4127_v18 = vld [vmem:[%s11572_s28 + $0x58] sm:$0xff] }
 0xd70   : > { %9072 = vmatmul.mubr.msk.f32.vlgmr.msra.gmra.mrb[30].mxu1 %vm1503_vm2, %v9037_v40  ;;  %v4129_v40 = vld [vmem:[%s11572_s28 + $0x68] sm:$0xff] }
 0xd71   : > { %9074 = vmatprep.mubr.msk.f32.mxu1 %vm1503_vm2, %v3567_v19  ;;  %9331 = vmatpush1.bf16.msra.mxu1 %v9330_v33  ;;  %v4131_v19 = vld [vmem:[%s11572_s28 + $0x78] sm:$0xff] }
 0xd72   : > { %v9332_v45 = vpack.c.bf16 %v4131_v19, %v4127_v18  ;;  %v4444_v18 = vld [vmem:[%s11573_s23 + $0xa0] sm:$0xff] }
 0xd73   : > { %v4476_v19 = vld [vmem:[%s11573_s23 + $0x1a0] sm:$0xff] }
 0xd74   : > { %9075 = vmatmul.mubr.msk.f32.gmra.mrb[32].mxu1 %vm1503_vm2, %v9040_v42  ;;  %v9324_v42 = vpack.c.bf16 %v4129_v40, %v4125_v34  ;;  %9333 = vmatprep.subr.bf16.mxu1 %v9332_v45  ;;  %v9372_v40 = vpack.c.bf16 %v4475_v8, %v4474_v23  ;;  %v4450_v8 = vld [vmem:[%s11573_s23 + $0xd0] sm:$0xff] }
 0xd75   : > { %4319 = vmatprep.mubr.f32.mxu1 %v9989_v10 }
 0xd76   : > { %9325 = vmatprep.subr.bf16.mxu0 %v9324_v42  ;;  %v4445_v42 = vld [vmem:[%s11573_s23 + $0xa8] sm:$0xff] }
 0xd77   : > { %9327 = vmatpush1.bf16.msra.mxu0 %v9326_v46 }
 0xe43   : > { %v9073_v49 = vpop.f32.mrb[30].mxu1 }
 0xe44   : > { %v4035_v50 = vadd.f32 %v9073_v49, %v8396_v47  ;;  %v4008_v51 = vpop.f32.mrb[31].mxu1  ;;  %v4130_v49 = vld [vmem:[%s11572_s28 + $0x70] sm:$0xff] }
 0xe45   : > { %v4034_v52 = vadd.f32 %v8396_v47, %v4008_v51  ;;  %v4440_v51 = vld [vmem:[%s11573_s23 + $0x80] sm:$0xff] }
 0xe46   : > { %v4039_v53 = vadd.f32 %v4035_v50, %v10520_v35 }
 0xe47   : > { %v9076_v54 = vpop.f32.mrb[32].mxu1  ;;  %v4038_v55 = vadd.f32 %v4034_v52, %v10518_v63  ;;  %v4441_v52 = vld [vmem:[%s11573_s23 + $0x88] sm:$0xff] }
 0xe48   : > { %v4037_v56 = vadd.f32 %v9076_v54, %v8396_v47  ;;  %v4018_v57 = vpop.f32.mrb[33].mxu1  ;;  %v4047_v58 = vsel %vm1398_vm0, %v4039_v53, 0.0  ;;  %v9336_v54 = vpack.c.bf16 %v4441_v52, %v4440_v51  ;;  %v9344_v51 = vpack.c.bf16 %v4445_v42, %v4444_v18  ;;  %v4453_v18 = vld [vmem:[%s11573_s23 + $0xe8] sm:$0xff]  ;;  %v4484_v42 = vld [vmem:[%s11573_s23 + $0x1e0] sm:$0xff] }
 0xe49   : > { %v4036_v14 = vadd.f32 %v8396_v47, %v4018_v57  ;;  %4048 = vadd.xlane.f32.xlu0 %v4047_v58  ;;  %v4044_v59 = vsel %vm1398_vm0, %v4038_v55, 0.0  ;;  %v4126_v47 = vld [vmem:[%s11572_s28 + $0x50] sm:$0xff]  ;;  %v9376_v52 = vpack.c.bf16 %v4477_v43, %v4476_v19  ;;  %v4485_v43 = vld [vmem:[%s11573_s23 + $0x1e8] sm:$0xff] }
 0xe4a   : > { %4045 = vadd.xlane.f32.xlu1 %v4044_v59  ;;  %v4041_v60 = vadd.f32 %v4037_v56, %v10533_v6  ;;  %v9334_v50 = vpack.c.bf16 %v4130_v49, %v4126_v47  ;;  %9337 = vmatprep.subr.bf16.mxu0 %v9336_v54  ;;  %v4428_v49 = vld [vmem:[%s11573_s23 + $0x20] sm:$0xff]  ;;  %v4461_v54 = vld [vmem:[%s11573_s23 + $0x128] sm:$0xff] }
 0xe4b   : > { %v4040_v61 = vadd.f32 %v4036_v14, %v10528_v39 }
 0xe4c   : > { %v4053_v62 = vsel %vm1398_vm0, %v4041_v60, 0.0  ;;  %9335 = vmatpush1.bf16.msra.mxu1 %v9334_v50  ;;  %v4429_v50 = vld [vmem:[%s11573_s23 + $0x28] sm:$0xff] }
 0xe4d   : > { %v4050_v35 = vsel %vm1398_vm0, %v4040_v61, 0.0 }
 0xe4e   : > { %4054 = vadd.xlane.f32.xlu1 %v4053_v62  ;;  %4051 = vadd.xlane.f32.xlu0 %v4050_v35 }
 0xed6   : > { %v4049_v63 = vpop.xlane.xlu0 %4048 }
 0xed7   : > { %v4057_v0 = vmul.f32 0.03125, %v4049_v63  ;;  %v4046_v1 = vpop.xlane.xlu1 %4045 }
 0xed8   : > { %v4056_v2 = vmul.f32 0.03125, %v4046_v1 }
 0xed9   : > { %v10651_v37 = vsub.f32 %v4039_v53, %v4057_v0  ;;  %v4472_v53 = vld [vmem:[%s11573_s23 + $0x180] sm:$0xff] }
 0xeda   : > { %v10653_v3 = vsub.f32 %v4038_v55, %v4056_v2  ;;  %v4473_v55 = vld [vmem:[%s11573_s23 + $0x188] sm:$0xff] }
 0xedb   : > { %v4055_v48 = vpop.xlane.xlu1 %4054  ;;  %v4052_v4 = vpop.xlane.xlu0 %4051  ;;  %v4065_v6 = vmul.f32 %v10651_v37, %v10651_v37  ;;  %v9368_v56 = vpack.c.bf16 %v4473_v55, %v4472_v53  ;;  %v4460_v53 = vld [vmem:[%s11573_s23 + $0x120] sm:$0xff] }
 0xedc   : > { %v4059_v39 = vmul.f32 0.03125, %v4055_v48  ;;  %v4058_v5 = vmul.f32 0.03125, %v4052_v4  ;;  %v4064_v7 = vmul.f32 %v10653_v3, %v10653_v3 }
 0xedd   : > { %v4071_v11 = vsel %vm1398_vm0, %v4065_v6, 0.0  ;;  %9369 = vmatprep.subr.bf16.mxu1 %v9368_v56  ;;  %v8397_v6 = vld [vmem:[%s11574_s1] ss:$0 sm:$0xff]  ;;  %s11577_s1 = sld [smem:[#allocation18_spill]] }
 0xede   : > { %v10660_v25 = vsub.f32 %v4041_v60, %v4059_v39  ;;  %v10662_v12 = vsub.f32 %v4040_v61, %v4058_v5  ;;  %4072 = vadd.xlane.f32.xlu1 %v4071_v11  ;;  %v4068_v13 = vsel %vm1398_vm0, %v4064_v7, 0.0  ;;  %v10693_v39 = vld [vmem:[%s11575_s3] ss:$0 sm:$0xff]  ;;  %s11576_s3 = sld [smem:[#allocation16_spill]] }
 0xedf   : > { %4069 = vadd.xlane.f32.xlu0 %v4068_v13  ;;  %v4424_v11 = vld [vmem:[%s11573_s23] sm:$0xff]  ;;  %v4425_v13 = vld [vmem:[%s11573_s23 + $0x8] sm:$0xff] }
 0xee0   : > { %v4067_v15 = vmul.f32 %v10660_v25, %v10660_v25  ;;  %v4066_v16 = vmul.f32 %v10662_v12, %v10662_v12  ;;  %v9338_v27 = vpack.c.bf16 %v4425_v13, %v4424_v11  ;;  %v4481_v11 = vld [vmem:[%s11573_s23 + $0x1c8] sm:$0xff]  ;;  %v4432_v13 = vld [vmem:[%s11573_s23 + $0x40] sm:$0xff] }
 0xee2   : > { %v4077_v20 = vsel %vm1398_vm0, %v4067_v15, 0.0  ;;  %v4074_v21 = vsel %vm1398_vm0, %v4066_v16, 0.0  ;;  %v4456_v15 = vld [vmem:[%s11573_s23 + $0x100] sm:$0xff]  ;;  %v4457_v16 = vld [vmem:[%s11573_s23 + $0x108] sm:$0xff] }
 0xee3   : > { %4078 = vadd.xlane.f32.xlu1 %v4077_v20  ;;  %4075 = vadd.xlane.f32.xlu0 %v4074_v21  ;;  %v4442_v20 = vld [vmem:[%s11573_s23 + $0x90] sm:$0xff]  ;;  %v9370_v28 = vpack.c.bf16 %v4457_v16, %v4456_v15  ;;  %v4433_v15 = vld [vmem:[%s11573_s23 + $0x48] sm:$0xff] }
 0xee4   : > { %v9340_v34 = vpack.c.bf16 %v4443_v22, %v4442_v20  ;;  %v9354_v20 = vpack.c.bf16 %v4433_v15, %v4432_v13  ;;  %v4465_v22 = vld [vmem:[%s11573_s23 + $0x148] sm:$0xff] }
 0xf6b   : > { %v4073_v57 = vpop.xlane.xlu1 %4072 }
 0xf6c   : > { %v4081_v58 = vmul.f32 0.03125, %v4073_v57  ;;  %v4070_v14 = vpop.xlane.xlu0 %4069  ;;  %v9378_v57 = vpack.c.bf16 %v4461_v54, %v4460_v53  ;;  %v4455_v53 = vld [vmem:[%s11573_s23 + $0xf8] sm:$0xff]  ;;  %v4486_v54 = vld [vmem:[%s11573_s23 + $0x1f0] sm:$0xff] }
 0xf6d   : > { %v4080_v59 = vmul.f32 0.03125, %v4070_v14  ;;  %v4446_v14 = vld [vmem:[%s11573_s23 + $0xb0] sm:$0xff] }
 0xf6e   : > { %v4085_v60 = vadd.f32 1e-05, %v4081_v58 }
 0xf6f   : > { %v4084_v61 = vadd.f32 1e-05, %v4080_v59  ;;  %v4447_v59 = vld [vmem:[%s11573_s23 + $0xb8] sm:$0xff] }
 0xf70   : > { %9710 = vrsqrt.f32 %v4085_v60  ;;  %v4079_v62 = vpop.xlane.xlu1 %4078  ;;  %v4076_v35 = vpop.xlane.xlu0 %4075  ;;  %v4478_v60 = vld [vmem:[%s11573_s23 + $0x1b0] sm:$0xff] }
 0xf71   : > { %9712 = vrsqrt.f32 %v4084_v61  ;;  %v4083_v63 = vmul.f32 0.03125, %v4079_v62  ;;  %v4082_v0 = vmul.f32 0.03125, %v4076_v35  ;;  %v9348_v61 = vpack.c.bf16 %v4447_v59, %v4446_v14  ;;  %v4479_v62 = vld [vmem:[%s11573_s23 + $0x1b8] sm:$0xff]  ;;  %v4430_v35 = vld [vmem:[%s11573_s23 + $0x30] sm:$0xff] }
 0xf72   : > { %v4439_v14 = vld [vmem:[%s11573_s23 + $0x78] sm:$0xff] }
 0xf73   : > { %v4087_v1 = vadd.f32 1e-05, %v4083_v63  ;;  %v4086_v2 = vadd.f32 1e-05, %v4082_v0  ;;  %v4431_v63 = vld [vmem:[%s11573_s23 + $0x38] sm:$0xff]  ;;  %v9380_v0 = vpack.c.bf16 %v4479_v62, %v4478_v60 }
 0xf74   : > { %v4471_v62 = vld [vmem:[%s11573_s23 + $0x178] sm:$0xff] }
 0xf75   : > { %9714 = vrsqrt.f32 %v4086_v2  ;;  %v4462_v2 = vld [vmem:[%s11573_s23 + $0x130] sm:$0xff] }
 0xf76   : > { %9716 = vrsqrt.f32 %v4087_v1  ;;  %v9350_v1 = vpack.c.bf16 %v4431_v63, %v4430_v35  ;;  %v4144_v63 = vsub.s32 2, %v10566_v36 }
 0xf7a   : > { %v9711_v48 = vpop.eup %9710 }
 0xf7b   : > { %v9713_v4 = vpop.eup %9712  ;;  %v4093_v7 = vmul.f32 %v9711_v48, %v10651_v37  ;;  %v4463_v48 = vld [vmem:[%s11573_s23 + $0x138] sm:$0xff] }
 0xf7c   : > { %v4092_v5 = vmul.f32 %v9713_v4, %v10653_v3  ;;  %v9382_v4 = vpack.c.bf16 %v4463_v48, %v4462_v2  ;;  %v4148_v2 = vsub.s32 3, %v10566_v36 }
 0xf7d   : > { %v4103_v37 = vmul.f32 %v8397_v6, %v4093_v7 }
 0xf7e   : > { %v4102_v21 = vmul.f32 %v8397_v6, %v4092_v5  ;;  %v4480_v5 = vld [vmem:[%s11573_s23 + $0x1c0] sm:$0xff] }
 0xf7f   : > { %v9715_v26 = vpop.eup %9714  ;;  %v10724_v45 = vadd.f32 %v10693_v39, %v4103_v37  ;;  %v9384_v16 = vpack.c.bf16 %v4481_v11, %v4480_v5 }
 0xf80   : > { %v10707_v3 = vadd.f32 %v10693_v39, %v4102_v21  ;;  %v9717_v32 = vpop.eup %9716  ;;  %v4094_v33 = vmul.f32 %v9715_v26, %v10662_v12  ;;  %v9342_v12 = vpack.c.bf16 %v4427_v29, %v4426_v9  ;;  %v4464_v21 = vld [vmem:[%s11573_s23 + $0x140] sm:$0xff]  ;;  %v4451_v9 = vld [vmem:[%s11573_s23 + $0xd8] sm:$0xff]  ;;  %v4482_v26 = vld [vmem:[%s11573_s23 + $0x1d0] sm:$0xff] }
 0xf81   : > { %v4095_v47 = vmul.f32 %v9717_v32, %v10660_v25  ;;  %v9346_v25 = vpack.c.bf16 %v4429_v50, %v4428_v49  ;;  %v9386_v23 = vpack.c.bf16 %v4465_v22, %v4464_v21  ;;  %v9356_v37 = vpack.c.bf16 %v4451_v9, %v4450_v8  ;;  %v4435_v29 = vld [vmem:[%s11573_s23 + $0x58] sm:$0xff]  ;;  %v4466_v32 = vld [vmem:[%s11573_s23 + $0x150] sm:$0xff]  ;;  %v4468_v49 = vld [vmem:[%s11573_s23 + $0x160] sm:$0xff] }
 0xf82   : > { %8399 = vmatmul.mubr.msk.f32.vlgmr.msra.gmra.mrb[32].mxu0 %vm1398_vm0, %v10707_v3  ;;  %8403 = vmatmul.mubr.msk.f32.vlgmr.msra.gmra.mrb[34].mxu1 %vm1398_vm0, %v10707_v3  ;;  %v4104_v46 = vmul.f32 %v8397_v6, %v4094_v33  ;;  %v4467_v33 = vld [vmem:[%s11573_s23 + $0x158] sm:$0xff]  ;;  %v4469_v50 = vld [vmem:[%s11573_s23 + $0x168] sm:$0xff] }
 0xf83   : > { %4236 = vmatprep.mubr.f32.mxu0 %v9989_v10  ;;  %4325 = vmatprep.mubr.f32.mxu1 %v9989_v10  ;;  %v4105_v56 = vmul.f32 %v8397_v6, %v4095_v47  ;;  %v4448_v6 = vld [vmem:[%s11573_s23 + $0xc0] sm:$0xff] }
 0xf84   : > { %9339 = vmatpush3.bf16.msra.mxu0 %v9338_v27  ;;  %9371 = vmatpush3.bf16.msra.mxu1 %v9370_v28  ;;  %v10738_v55 = vadd.f32 %v10693_v39, %v4104_v46  ;;  %v4483_v27 = vld [vmem:[%s11573_s23 + $0x1d8] sm:$0xff]  ;;  %v4434_v28 = vld [vmem:[%s11573_s23 + $0x50] sm:$0xff]  ;;  %v9392_v46 = vpack.c.bf16 %v4485_v43, %v4484_v42 }
 0xf85   : > { %9341 = vmatprep.subr.bf16.mxu0 %v9340_v34  ;;  %9373 = vmatprep.subr.bf16.mxu1 %v9372_v40  ;;  %v10747_v58 = vadd.f32 %v10693_v39, %v4105_v56  ;;  %v4449_v39 = vld [vmem:[%s11573_s23 + $0xc8] sm:$0xff]  ;;  %v9388_v30 = vpack.c.bf16 %v4483_v27, %v4482_v26  ;;  %v9358_v31 = vpack.c.bf16 %v4435_v29, %v4434_v28  ;;  %v4452_v40 = vld [vmem:[%s11573_s23 + $0xe0] sm:$0xff]  ;;  %v4487_v56 = vld [vmem:[%s11573_s23 + $0x1f8] sm:$0xff] }
 0xf86   : > { %8400 = vmatmul.mubr.msk.f32.gmra.mrb[34].mxu0 %vm1398_vm0, %v10724_v45  ;;  %8404 = vmatmul.mubr.msk.f32.gmra.mrb[36].mxu1 %vm1398_vm0, %v10724_v45  ;;  %v9352_v7 = vpack.c.bf16 %v4449_v39, %v4448_v6  ;;  %v9390_v34 = vpack.c.bf16 %v4467_v33, %v4466_v32  ;;  %v9360_v19 = vpack.c.bf16 %v4453_v18, %v4452_v40 }
 0xf87   : > { %4242 = vmatprep.mubr.f32.mxu0 %v9989_v10  ;;  %4331 = vmatprep.mubr.f32.mxu1 %v9989_v10  ;;  %v9396_v59 = vpack.c.bf16 %v4487_v56, %v4486_v54 }
 0xf88   : > { %9343 = vmatpush3.bf16.msra.mxu0 %v9342_v12  ;;  %9375 = vmatpush3.bf16.msra.mxu1 %v9374_v44  ;;  %v4436_v12 = vld [vmem:[%s11573_s23 + $0x60] sm:$0xff]  ;;  %v4437_v44 = vld [vmem:[%s11573_s23 + $0x68] sm:$0xff] }
 0xf89   : > { %9345 = vmatprep.subr.bf16.mxu0 %v9344_v51  ;;  %9377 = vmatprep.subr.bf16.mxu1 %v9376_v52  ;;  %v9362_v47 = vpack.c.bf16 %v4437_v44, %v4436_v12  ;;  %v9394_v51 = vpack.c.bf16 %v4469_v50, %v4468_v49  ;;  %v4454_v52 = vld [vmem:[%s11573_s23 + $0xf0] sm:$0xff] }
 0xf8a   : > { %8401 = vmatmul.mubr.msk.f32.gmra.mrb[36].mxu0 %vm1398_vm0, %v10738_v55  ;;  %8405 = vmatmul.mubr.msk.f32.gmra.mrb[38].mxu1 %vm1398_vm0, %v10738_v55 }
 0xf8b   : > { %4248 = vmatprep.mubr.f32.mxu0 %v9989_v10  ;;  %4337 = vmatprep.mubr.f32.mxu1 %v9989_v10 }
 0xf8c   : > { %9347 = vmatpush3.bf16.msra.mxu0 %v9346_v25  ;;  %9379 = vmatpush3.bf16.msra.mxu1 %v9378_v57  ;;  %v9364_v25 = vpack.c.bf16 %v4455_v53, %v4454_v52  ;;  %v4438_v57 = vld [vmem:[%s11573_s23 + $0x70] sm:$0xff] }
 0xf8d   : > { %9349 = vmatprep.subr.bf16.mxu0 %v9348_v61  ;;  %9381 = vmatprep.subr.bf16.mxu1 %v9380_v0  ;;  %v9366_v60 = vpack.c.bf16 %v4439_v14, %v4438_v57  ;;  %v4470_v61 = vld [vmem:[%s11573_s23 + $0x170] sm:$0xff]  ;;  %v4132_v0 = vld [vmem:[%s11576_s3] sm:$0xf]  ;;  %s11578_s3 = sld [smem:[#allocation21_spill]] }
 0xf8e   : > { %8402 = vmatmul.mubr.msk.f32.gmra.mrb[38].mxu0 %vm1398_vm0, %v10747_v58  ;;  %8406 = vmatmul.mubr.msk.f32.gmra.mrb[40].mxu1 %vm1398_vm0, %v10747_v58  ;;  %v9398_v35 = vpack.c.bf16 %v4471_v62, %v4470_v61  ;;  %v4137_v48 = vrot.slane %v4132_v0, %v10569_v38  ;;  %v4149_v39 = vrot.slane %v4132_v0, %v4148_v2 }
 0xf90   : > { %9351 = vmatpush3.bf16.msra.mxu0 %v9350_v1  ;;  %9383 = vmatpush3.bf16.msra.mxu1 %v9382_v4  ;;  %v4140_v1 = vsub.s32 1, %v10566_v36  ;;  %v4145_v4 = vrot.slane %v4132_v0, %v4144_v63 }
 0xf91   : > { %9353 = vmatprep.subr.bf16.mxu0 %v9352_v7  ;;  %9385 = vmatprep.subr.bf16.mxu1 %v9384_v16 }
 0xf92   : > { %v4141_v6 = vrot.slane %v4132_v0, %v4140_v1 }
 0xf94   : > { %9355 = vmatpush3.bf16.msra.mxu0 %v9354_v20  ;;  %9387 = vmatpush3.bf16.msra.mxu1 %v9386_v23 }
 0xf95   : > { %9357 = vmatprep.subr.bf16.mxu0 %v9356_v37  ;;  %9389 = vmatprep.subr.bf16.mxu1 %v9388_v30 }
 0xf98   : > { %9359 = vmatpush3.bf16.msra.mxu0 %v9358_v31  ;;  %9391 = vmatpush3.bf16.msra.mxu1 %v9390_v34 }
 0xf99   : > { %9361 = vmatprep.subr.bf16.mxu0 %v9360_v19  ;;  %9393 = vmatprep.subr.bf16.mxu1 %v9392_v46 }
 0xf9c   : > { %9363 = vmatpush3.bf16.msra.mxu0 %v9362_v47  ;;  %9395 = vmatpush3.bf16.msra.mxu1 %v9394_v51 }
 0xf9d   : > { %9365 = vmatprep.subr.bf16.mxu0 %v9364_v25  ;;  %9397 = vmatprep.subr.bf16.mxu1 %v9396_v59 }
 0xfa0   : > { %9367 = vmatpush3.bf16.msra.mxu0 %v9366_v60  ;;  %9399 = vmatpush3.bf16.msra.mxu1 %v9398_v35 }
 0xfa1   : > { %9101 = vmatprep.subr.mxu1 %v9989_v10 }
0x1055   : > { %v4232_v5 = vpop.f32.mrb[32].mxu0  ;;  %v4321_v7 = vpop.f32.mrb[34].mxu1 }
0x1056   : > { %v4233_v11 = vadd.f32 %v4232_v5, %v4137_v48  ;;  %v10805_v13 = vadd.f32 %v4321_v7, %v4145_v4  ;;  %v4234_v15 = vpop.f32.mrb[33].mxu0  ;;  %v4323_v16 = vpop.f32.mrb[35].mxu1 }
0x1057   : > { %v4235_v20 = vadd.f32 %v4234_v15, %v4141_v6  ;;  %v4324_v21 = vadd.f32 %v4323_v16, %v4149_v39 }
0x1058   : > { %v4360_v22 = vmul.f32 0.70710677, %v4233_v11  ;;  %v4362_v23 = vmul.f32 0.70710677, %v10805_v13  ;;  %v4344_v7 = vmul.f32 0.5, %v4233_v11 }
0x1059   : > { %v4361_v8 = vmul.f32 0.70710677, %v4235_v20  ;;  %v4363_v9 = vmul.f32 0.70710677, %v4324_v21  ;;  %v4238_v26 = vpop.f32.mrb[34].mxu0  ;;  %v4327_v37 = vpop.f32.mrb[36].mxu1 }
0x105a   : > { %9718 = verf.f32 %v4360_v22  ;;  %v10808_v27 = vadd.f32 %v4238_v26, %v4137_v48  ;;  %v10810_v28 = vadd.f32 %v4327_v37, %v4145_v4  ;;  %v4240_v29 = vpop.f32.mrb[35].mxu0  ;;  %v4329_v30 = vpop.f32.mrb[37].mxu1 }
0x105b   : > { %9720 = verf.f32 %v4362_v23  ;;  %v10812_v31 = vadd.f32 %v4240_v29, %v4141_v6  ;;  %v10814_v32 = vadd.f32 %v4329_v30, %v4149_v39  ;;  %v4345_v23 = vmul.f32 0.5, %v4235_v20 }
0x105c   : > { %9722 = verf.f32 %v4361_v8  ;;  %v4364_v33 = vmul.f32 0.70710677, %v10808_v27  ;;  %v4366_v18 = vmul.f32 0.70710677, %v10810_v28 }
0x105d   : > { %9724 = verf.f32 %v4363_v9  ;;  %v4244_v34 = vpop.f32.mrb[36].mxu0  ;;  %v4333_v40 = vpop.f32.mrb[38].mxu1  ;;  %v4365_v42 = vmul.f32 0.70710677, %v10812_v31  ;;  %v4367_v19 = vmul.f32 0.70710677, %v10814_v32 }
0x105e   : > { %9726 = verf.f32 %v4364_v33  ;;  %v10820_v43 = vadd.f32 %v4244_v34, %v4137_v48  ;;  %v10822_v12 = vadd.f32 %v4333_v40, %v4145_v4  ;;  %v4246_v44 = vpop.f32.mrb[37].mxu0  ;;  %v4335_v46 = vpop.f32.mrb[39].mxu1 }
0x105f   : > { %9728 = verf.f32 %v4366_v18  ;;  %v10824_v47 = vadd.f32 %v4246_v44, %v4141_v6  ;;  %v10826_v49 = vadd.f32 %v4335_v46, %v4149_v39  ;;  %v4348_v44 = vmul.f32 0.5, %v10808_v27 }
0x1060   : > { %9730 = verf.f32 %v4365_v42  ;;  %v4368_v50 = vmul.f32 0.70710677, %v10820_v43  ;;  %v4370_v53 = vmul.f32 0.70710677, %v10822_v12  ;;  %v4349_v42 = vmul.f32 0.5, %v10812_v31 }
0x1061   : > { %v4250_v51 = vpop.f32.mrb[38].mxu0  ;;  %v4339_v52 = vpop.f32.mrb[40].mxu1  ;;  %9732 = verf.f32 %v4367_v19  ;;  %v4369_v54 = vmul.f32 0.70710677, %v10824_v47  ;;  %v4371_v56 = vmul.f32 0.70710677, %v10826_v49 }
0x1062   : > { %v4252_v25 = vpop.f32.mrb[39].mxu0  ;;  %9734 = verf.f32 %v4368_v50  ;;  %v10832_v57 = vadd.f32 %v4250_v51, %v4137_v48  ;;  %v4341_v14 = vpop.f32.mrb[41].mxu1  ;;  %v10834_v60 = vadd.f32 %v4339_v52, %v4145_v4  ;;  %v4347_v4 = vmul.f32 0.5, %v4324_v21 }
0x1063   : > { %9736 = verf.f32 %v4370_v53  ;;  %v10836_v61 = vadd.f32 %v4252_v25, %v4141_v6  ;;  %v10839_v0 = vadd.f32 %v4341_v14, %v4149_v39  ;;  %v4346_v39 = vmul.f32 0.5, %v10805_v13 }
0x1064   : > { %v9719_v59 = vpop.eup %9718  ;;  %9738 = verf.f32 %v4369_v54  ;;  %v4372_v35 = vmul.f32 0.70710677, %v10832_v57  ;;  %v4374_v48 = vmul.f32 0.70710677, %v10834_v60  ;;  %v4351_v46 = vmul.f32 0.5, %v10814_v32 }
0x1065   : > { %v9721_v62 = vpop.eup %9720  ;;  %v4392_v15 = vadd.f32 1.0, %v9719_v59  ;;  %9740 = verf.f32 %v4371_v56  ;;  %v4373_v9 = vmul.f32 0.70710677, %v10836_v61  ;;  %v4375_v37 = vmul.f32 0.70710677, %v10839_v0 }
0x1066   : > { %v9723_v5 = vpop.eup %9722  ;;  %v4394_v22 = vadd.f32 1.0, %v9721_v62  ;;  %9742 = verf.f32 %v4372_v35  ;;  %v4350_v52 = vmul.f32 0.5, %v10810_v28  ;;  %v4353_v62 = vmul.f32 0.5, %v10824_v47 }
0x1067   : > { %v9725_v16 = vpop.eup %9724  ;;  %v4393_v8 = vadd.f32 1.0, %v9723_v5  ;;  %9744 = verf.f32 %v4374_v48  ;;  %v4408_v30 = vmul.f32 %v4392_v15, %v4344_v7  ;;  %v4352_v32 = vmul.f32 0.5, %v10820_v43 }
0x1068   : > { %v4395_v6 = vadd.f32 1.0, %v9725_v16  ;;  %v9727_v26 = vpop.eup %9726  ;;  %9746 = verf.f32 %v4373_v9  ;;  %v4410_v40 = vmul.f32 %v4394_v22, %v4346_v39  ;;  %v4355_v7 = vmul.f32 0.5, %v10826_v49 }
0x1069   : > { %v4409_v11 = vmul.f32 %v4393_v8, %v4345_v23  ;;  %v9729_v29 = vpop.eup %9728  ;;  %v4396_v20 = vadd.f32 1.0, %v9727_v26  ;;  %9748 = verf.f32 %v4375_v37  ;;  %v4354_v48 = vmul.f32 0.5, %v10822_v12 }
0x106a   : > { %v4411_v33 = vmul.f32 %v4395_v6, %v4347_v4  ;;  %v9731_v34 = vpop.eup %9730  ;;  %v4398_v18 = vadd.f32 1.0, %v9729_v29  ;;  %v4357_v43 = vmul.f32 0.5, %v10836_v61  ;;  %v4356_v49 = vmul.f32 0.5, %v10832_v57 }
0x106b   : > { %4559 = vmatprep.mubr.f32.mxu0 %v4409_v11  ;;  %v9733_v21 = vpop.eup %9732  ;;  %v4397_v19 = vadd.f32 1.0, %v9731_v34  ;;  %v4412_v14 = vmul.f32 %v4396_v20, %v4348_v44  ;;  %v4359_v12 = vmul.f32 0.5, %v10839_v0  ;;  %v4358_v37 = vmul.f32 0.5, %v10834_v60  ;;  %v8407_v34 = vld [vmem:[%s11577_s1] ss:$0 sm:$0xff]  ;;  %s11579_s1 = sld [smem:[#allocation19_spill]] }
0x106c   : > { %4644 = vmatprep.mubr.f32.mxu1 %v4411_v33  ;;  %4560 = vmatmul.mubr.f32.vlgmr.msra.gmra.mrb[40].mxu0 %v4408_v30  ;;  %v9735_v13 = vpop.eup %9734  ;;  %v4399_v50 = vadd.f32 1.0, %v9733_v21  ;;  %v4414_v5 = vmul.f32 %v4398_v18, %v4350_v52 }
0x106d   : > { %4645 = vmatmul.mubr.f32.vlgmr.msra.gmra.mrb[42].mxu1 %v4410_v40  ;;  %v9737_v51 = vpop.eup %9736  ;;  %v4413_v53 = vmul.f32 %v4397_v19, %v4349_v42  ;;  %v4400_v25 = vadd.f32 1.0, %v9735_v13 }
0x106e   : > { %v9739_v54 = vpop.eup %9738  ;;  %v4415_v56 = vmul.f32 %v4399_v50, %v4351_v46  ;;  %v4402_v31 = vadd.f32 1.0, %v9737_v51 }
0x106f   : > { %v9741_v59 = vpop.eup %9740  ;;  %v4401_v35 = vadd.f32 1.0, %v9739_v54  ;;  %4564 = vmatprep.mubr.f32.mxu0 %v4413_v53  ;;  %v4416_v23 = vmul.f32 %v4400_v25, %v4352_v32 }
0x1070   : > { %v9743_v27 = vpop.eup %9742  ;;  %v4403_v15 = vadd.f32 1.0, %v9741_v59  ;;  %4649 = vmatprep.mubr.f32.mxu1 %v4415_v56  ;;  %4565 = vmatmul.mubr.f32.gmra.mrb[42].mxu0 %v4412_v14  ;;  %v4418_v4 = vmul.f32 %v4402_v31, %v4354_v48 }
0x1071   : > { %v9745_v28 = vpop.eup %9744  ;;  %4650 = vmatmul.mubr.f32.gmra.mrb[44].mxu1 %v4414_v5  ;;  %v4417_v16 = vmul.f32 %v4401_v35, %v4353_v62  ;;  %v4404_v47 = vadd.f32 1.0, %v9743_v27 }
0x1072   : > { %v4419_v22 = vmul.f32 %v4403_v15, %v4355_v7  ;;  %v9747_v8 = vpop.eup %9746  ;;  %v4406_v9 = vadd.f32 1.0, %v9745_v28 }
0x1073   : > { %4569 = vmatprep.mubr.f32.mxu0 %v4417_v16  ;;  %v9749_v6 = vpop.eup %9748  ;;  %v4405_v26 = vadd.f32 1.0, %v9747_v8  ;;  %v4420_v30 = vmul.f32 %v4404_v47, %v4356_v49 }
0x1074   : > { %4654 = vmatprep.mubr.f32.mxu1 %v4419_v22  ;;  %4570 = vmatmul.mubr.f32.gmra.mrb[44].mxu0 %v4416_v23  ;;  %v4407_v39 = vadd.f32 1.0, %v9749_v6  ;;  %v4422_v33 = vmul.f32 %v4406_v9, %v4358_v37 }
0x1075   : > { %4655 = vmatmul.mubr.f32.gmra.mrb[46].mxu1 %v4418_v4  ;;  %v4421_v11 = vmul.f32 %v4405_v26, %v4357_v43 }
0x1076   : > { %v4423_v29 = vmul.f32 %v4407_v39, %v4359_v12 }
0x1077   : > { %4574 = vmatprep.mubr.f32.mxu0 %v4421_v11 }
0x1078   : > { %4659 = vmatprep.mubr.f32.mxu1 %v4423_v29  ;;  %4575 = vmatmul.mubr.f32.gmra.mrb[46].mxu0 %v4420_v30 }
0x1079   : > { %4660 = vmatmul.mubr.f32.gmra.mrb[48].mxu1 %v4422_v33 }
0x107a   : > { %9103 = vmatprep.mubr.msk.f32.mxu1 %vm9990_vm1, %v9989_v10 }
0x113f   : > { %v8637_v61 = vpop.f32.mrb[40].mxu0 }
0x1140   : > { %v8681_v57 = vpop.f32.mrb[42].mxu1  ;;  %v8638_v40 = vpop.f32.mrb[41].mxu0 }
0x1141   : > { %v8639_v0 = vadd.f32 %v8638_v40, %v8637_v61  ;;  %v8682_v20 = vpop.f32.mrb[43].mxu1 }
0x1142   : > { %v8683_v21 = vadd.f32 %v8682_v20, %v8681_v57 }
0x1143   : > { %v4562_v18 = vadd.f32 %v8639_v0, %v8407_v34  ;;  %v8640_v60 = vpop.f32.mrb[42].mxu0 }
0x1144   : > { %v8684_v19 = vpop.f32.mrb[44].mxu1  ;;  %v8641_v13 = vpop.f32.mrb[43].mxu0 }
0x1145   : > { %v4647_v42 = vadd.f32 %v8683_v21, %v4562_v18  ;;  %v8642_v44 = vadd.f32 %v8641_v13, %v8640_v60  ;;  %v8685_v46 = vpop.f32.mrb[45].mxu1  ;;  %v4743_v21 = vld [vmem:[%s11578_s3] sm:$0xff]  ;;  %v4744_v18 = vld [vmem:[%s11578_s3 + $0x8] sm:$0xff] }
0x1146   : > { %v8686_v50 = vadd.f32 %v8685_v46, %v8684_v19  ;;  %v9400_v60 = vpack.c.bf16 %v4744_v18, %v4743_v21  ;;  %v4746_v19 = vld [vmem:[%s11578_s3 + $0x18] sm:$0xff] }
0x1147   : > { %v4665_v51 = vadd.f32 %v4647_v42, %v10707_v3  ;;  %v4567_v52 = vadd.f32 %v8642_v44, %v8407_v34  ;;  %v8643_v53 = vpop.f32.mrb[44].mxu0  ;;  %v4745_v42 = vld [vmem:[%s11578_s3 + $0x10] sm:$0xff]  ;;  %s11581_s3 = sld [smem:[#allocation22_spill]] }
0x1148   : > { %v8687_v54 = vpop.f32.mrb[46].mxu1  ;;  %v8644_v25 = vpop.f32.mrb[45].mxu0  ;;  %9401 = vmatprep.subr.bf16.mxu0 %v9400_v60  ;;  %v9404_v13 = vpack.c.bf16 %v4746_v19, %v4745_v42 }
0x1149   : > { %v4671_v56 = vsel %vm1398_vm0, %v4665_v51, 0.0  ;;  %v4652_v14 = vadd.f32 %v8686_v50, %v4567_v52  ;;  %v8645_v59 = vadd.f32 %v8644_v25, %v8643_v53  ;;  %v8688_v31 = vpop.f32.mrb[47].mxu1  ;;  %9403 = vmatpush3.bf16.msra.mxu0 %v9400_v60 }
0x114a   : > { %4672 = vadd.xlane.f32.xlu0 %v4671_v56  ;;  %v8689_v62 = vadd.f32 %v8688_v31, %v8687_v54  ;;  %9405 = vmatprep.subr.bf16.mxu0 %v9404_v13 }
0x114b   : > { %v4572_v35 = vadd.f32 %v8645_v59, %v8407_v34  ;;  %v4666_v5 = vadd.f32 %v4652_v14, %v10724_v45  ;;  %v8646_v27 = vpop.f32.mrb[46].mxu0 }
0x114c   : > { %v8690_v7 = vpop.f32.mrb[48].mxu1  ;;  %v8647_v15 = vpop.f32.mrb[47].mxu0 }
0x114d   : > { %v4657_v32 = vadd.f32 %v8689_v62, %v4572_v35  ;;  %v4674_v3 = vsel %vm1398_vm0, %v4666_v5, 0.0  ;;  %v8648_v28 = vadd.f32 %v8647_v15, %v8646_v27  ;;  %v8691_v48 = vpop.f32.mrb[49].mxu1  ;;  %9407 = vmatpush3.bf16.msra.mxu0 %v9404_v13  ;;  %v8408_v62 = vld [vmem:[%s11579_s1] ss:$0 sm:$0xff]  ;;  %s11584_s1 = smov 80  }
0x114e   : > { %4675 = vadd.xlane.f32.xlu1 %v4674_v3  ;;  %v8692_v16 = vadd.f32 %v8691_v48, %v8690_v7  ;;  %9091 = vmatprep.subr.mxu0 %v9989_v10  ;;  %v8409_v27 = vld [vmem:[%s11580_s5] ss:$0 sm:$0xff]  ;;  %s11582_s5 = smov 96  }
0x114f   : > { %v4667_v22 = vadd.f32 %v4657_v32, %v10738_v55  ;;  %v4577_v23 = vadd.f32 %v8648_v28, %v8407_v34 }
0x1151   : > { %v4677_v8 = vsel %vm1398_vm0, %v4667_v22, 0.0  ;;  %v4662_v47 = vadd.f32 %v8692_v16, %v4577_v23 }
0x1152   : > { %4678 = vadd.xlane.f32.xlu0 %v4677_v8 }
0x1153   : > { %v4668_v4 = vadd.f32 %v4662_v47, %v10747_v58 }
0x1155   : > { %v4680_v45 = vsel %vm1398_vm0, %v4668_v4, 0.0 }
0x1156   : > { %4681 = vadd.xlane.f32.xlu1 %v4680_v45 }
0x11d7   : > { %v4673_v6 = vpop.xlane.xlu0 %4672 }
0x11d8   : > { %v4683_v9 = vmul.f32 0.03125, %v4673_v6 }
0x11da   : > { %v4687_v43 = vsub.f32 %v4665_v51, %v4683_v9  ;;  %v8410_v9 = vld [vmem:[%s11581_s3] ss:$0 sm:$0xff]  ;;  %s11583_s3 = smov 64  }
0x11db   : > { %v4676_v26 = vpop.xlane.xlu1 %4675 }
0x11dc   : > { %v4691_v49 = vmul.f32 %v4687_v43, %v4687_v43  ;;  %v4684_v12 = vmul.f32 0.03125, %v4676_v26 }
0x11de   : > { %v4695_v39 = vsel %vm1398_vm0, %v4691_v49, 0.0  ;;  %v4688_v37 = vsub.f32 %v4666_v5, %v4684_v12 }
0x11df   : > { %4696 = vadd.xlane.f32.xlu0 %v4695_v39  ;;  %v4679_v55 = vpop.xlane.xlu0 %4678 }
0x11e0   : > { %v4685_v11 = vmul.f32 0.03125, %v4679_v55  ;;  %v4692_v29 = vmul.f32 %v4688_v37, %v4688_v37 }
0x11e2   : > { %v4689_v30 = vsub.f32 %v4667_v22, %v4685_v11  ;;  %v4698_v58 = vsel %vm1398_vm0, %v4692_v29, 0.0 }
0x11e3   : > { %4699 = vadd.xlane.f32.xlu1 %v4698_v58  ;;  %v4682_v33 = vpop.xlane.xlu1 %4681 }
0x11e4   : > { %v4693_v61 = vmul.f32 %v4689_v30, %v4689_v30  ;;  %v4686_v57 = vmul.f32 0.03125, %v4682_v33 }
0x11e6   : > { %v4701_v34 = vsel %vm1398_vm0, %v4693_v61, 0.0  ;;  %v4690_v40 = vsub.f32 %v4668_v4, %v4686_v57 }
0x11e7   : > { %4702 = vadd.xlane.f32.xlu0 %v4701_v34 }
0x11e8   : > { %v4694_v0 = vmul.f32 %v4690_v40, %v4690_v40 }
0x11ea   : > { %v4704_v20 = vsel %vm1398_vm0, %v4694_v0, 0.0 }
0x11eb   : > { %4705 = vadd.xlane.f32.xlu1 %v4704_v20 }
0x126c   : > { %v4697_v44 = vpop.xlane.xlu0 %4696 }
0x126d   : > { %v4707_v46 = vmul.f32 0.03125, %v4697_v44 }
0x126f   : > { %v4711_v50 = vadd.f32 1e-05, %v4707_v46 }
0x1270   : > { %v4700_v51 = vpop.xlane.xlu1 %4699 }
0x1271   : > { %9750 = vrsqrt.f32 %v4711_v50  ;;  %v4708_v52 = vmul.f32 0.03125, %v4700_v51 }
0x1273   : > { %v4712_v53 = vadd.f32 1e-05, %v4708_v52 }
0x1274   : > { %v4703_v54 = vpop.xlane.xlu0 %4702 }
0x1275   : > { %9752 = vrsqrt.f32 %v4712_v53  ;;  %v4709_v25 = vmul.f32 0.03125, %v4703_v54 }
0x1277   : > { %v4713_v56 = vadd.f32 1e-05, %v4709_v25 }
0x1278   : > { %v4706_v14 = vpop.xlane.xlu1 %4705 }
0x1279   : > { %9754 = vrsqrt.f32 %v4713_v56  ;;  %v4710_v31 = vmul.f32 0.03125, %v4706_v14 }
0x127b   : > { %v9751_v59 = vpop.eup %9750  ;;  %v4714_v5 = vadd.f32 1e-05, %v4710_v31 }
0x127c   : > { %v4719_v35 = vmul.f32 %v9751_v59, %v4687_v43 }
0x127d   : > { %9756 = vrsqrt.f32 %v4714_v5 }
0x127e   : > { %v4729_v32 = vmul.f32 %v8408_v62, %v4719_v35 }
0x127f   : > { %v9753_v7 = vpop.eup %9752 }
0x1280   : > { %v10879_v15 = vadd.f32 %v8409_v27, %v4729_v32  ;;  %v4720_v3 = vmul.f32 %v9753_v7, %v4688_v37 }
0x1282   : > { %9085 = vmatprep.mubr.msk.f32.mxu0 %vm1398_vm0, %v10879_v15  ;;  %v4730_v28 = vmul.f32 %v8408_v62, %v4720_v3 }
0x1283   : > { %v9755_v48 = vpop.eup %9754 }
0x1284   : > { %v10883_v16 = vadd.f32 %v8409_v27, %v4730_v28  ;;  %v4721_v22 = vmul.f32 %v9755_v48, %v4689_v30 }
0x1286   : > { %9086 = vmatmul.mubr.msk.f32.vlgmr.msra.gmra.mrb[48].mxu0 %vm1398_vm0, %v10883_v16  ;;  %v4731_v23 = vmul.f32 %v8408_v62, %v4721_v22 }
0x1287   : > { %v9757_v8 = vpop.eup %9756 }
0x1288   : > { %v10887_v47 = vadd.f32 %v8409_v27, %v4731_v23  ;;  %v4722_v4 = vmul.f32 %v9757_v8, %v4690_v40 }
0x128a   : > { %9088 = vmatprep.mubr.msk.f32.mxu0 %vm1398_vm0, %v10887_v47  ;;  %v4732_v45 = vmul.f32 %v8408_v62, %v4722_v4 }
0x128c   : > { %v10891_v6 = vadd.f32 %v8409_v27, %v4732_v45 }
0x128e   : > { %9089 = vmatmul.mubr.msk.f32.gmra.mrb[50].mxu0 %vm1398_vm0, %v10891_v6 }
0x128f   : > { %9093 = vmatprep.mubr.msk.f32.mxu0 %vm9990_vm1, %v9989_v10 }
0x1359   : > { %v9087_v43 = vpop.f32.mrb[48].mxu0 }
0x135a   : > { %v10898_v26 = vadd.f32 %v9087_v43, %v8410_v9  ;;  %v4832_v49 = vpop.f32.mrb[49].mxu0 }
0x135b   : > { %v10900_v12 = vadd.f32 %v8410_v9, %v4832_v49 }
0x135c   : > { %4933 = vrot.lane.b32.xlu1 %v10898_v26, %s11582_s5 }
0x135d   : > { %4856 = vrot.lane.b32.xlu0 %v10900_v12, %s11582_s5 }
0x1361   : > { %v9090_v39 = vpop.f32.mrb[50].mxu0 }
0x1362   : > { %v10906_v37 = vadd.f32 %v9090_v39, %v8410_v9  ;;  %v4842_v55 = vpop.f32.mrb[51].mxu0 }
0x1363   : > { %v10908_v11 = vadd.f32 %v8410_v9, %v4842_v55 }
0x1364   : > { %5087 = vrot.lane.b32.xlu0 %v10906_v37, %s11582_s5 }
0x1365   : > { %5010 = vrot.lane.b32.xlu1 %v10908_v11, %s11582_s5 }
0x13ce   : > { %v4934_v30 = vpop.permute.xlu1 %4933 }
0x13cf   : > { %v4857_v29 = vpop.permute.xlu0 %4856 }
0x13d0   : > { %9092 = vmatpush3.xpose.msk.msra.mxu0 %vm1503_vm2, %v4857_v29 }
0x13d1   : > { %9096 = vmatprep.subr.mxu0 %v9989_v10 }
0x13d3   : > { %9094 = vmatmul.mubr.msk.f32.vlgmr.msra.gmra.mrb[52].mxu0 %vm1503_vm2, %v10900_v12 }
0x13d4   : > { %9097 = vmatpush3.xpose.msk.msra.mxu0 %vm1503_vm2, %v4934_v30  ;;  %9098 = vmatprep.mubr.msk.f32.mxu0 %vm9990_vm1, %v9989_v10 }
0x13d5   : > { %9106 = vmatprep.subr.mxu0 %v9989_v10 }
0x13d6   : > { %v5088_v58 = vpop.permute.xlu0 %5087 }
0x13d7   : > { %9099 = vmatmul.mubr.msk.f32.vlgmr.msra.gmra.mrb[54].mxu0 %vm1503_vm2, %v10898_v26  ;;  %v5011_v33 = vpop.permute.xlu1 %5010 }
0x13d8   : > { %9107 = vmatpush3.xpose.msk.msra.mxu0 %vm1503_vm2, %v5088_v58  ;;  %9108 = vmatprep.mubr.msk.f32.mxu0 %vm9990_vm1, %v9989_v10 }
0x13d9   : > { %9102 = vmatpush3.xpose.msk.msra.mxu1 %vm1503_vm2, %v5011_v33  ;;  %9116 = vmatprep.subr.mxu0 %v9989_v10 }
0x13da   : > { %9111 = vmatprep.subr.mxu1 %v9989_v10 }
0x13db   : > { %9109 = vmatmul.mubr.msk.f32.vlgmr.msra.gmra.mrb[56].mxu0 %vm1503_vm2, %v10906_v37 }
0x13dc   : > { %9104 = vmatmul.mubr.msk.f32.vlgmr.msra.gmra.mrb[50].mxu1 %vm1503_vm2, %v10908_v11  ;;  %9118 = vmatprep.mubr.msk.f32.mxu0 %vm9990_vm1, %v9989_v10 }
0x13dd   : > { %9113 = vmatprep.mubr.msk.f32.mxu1 %vm9990_vm1, %v9989_v10 }
0x14a6   : > { %v4928_v61 = vpop.f32.mrb[52].mxu0 }
0x14a7   : > { %v5163_v57 = vmul.f32 0.25, %v4928_v61  ;;  %v9095_v34 = vpop.f32.mrb[53].mxu0 }
0x14a9   : > { %v5167_v40 = vsel %vm1813_vm3, -1e+09, %v5163_v57 }
0x14aa   : > { %v5005_v0 = vpop.f32.mrb[54].mxu0  ;;  %v5171_v20 = vsel %vm1820_vm4, %v5167_v40, -inf }
0x14ab   : > { %v5164_v21 = vmul.f32 0.25, %v5005_v0  ;;  %5172 = vmax.xlane.f32.xlu1 %v5171_v20  ;;  %v9100_v18 = vpop.f32.mrb[55].mxu0 }
0x14ad   : > { %v5168_v60 = vsel %vm1813_vm3, -1e+09, %v5164_v21 }
0x14ae   : > { %v5159_v42 = vpop.f32.mrb[56].mxu0  ;;  %v5174_v19 = vsel %vm1820_vm4, %v5168_v60, -inf }
0x14af   : > { %v5082_v13 = vpop.f32.mrb[50].mxu1  ;;  %5175 = vmax.xlane.f32.xlu0 %v5174_v19  ;;  %v9110_v44 = vpop.f32.mrb[57].mxu0  ;;  %v5166_v53 = vmul.f32 0.25, %v5159_v42 }
0x14b0   : > { %v5165_v46 = vmul.f32 0.25, %v5082_v13  ;;  %v9105_v50 = vpop.f32.mrb[51].mxu1 }
0x14b1   : > { %v5170_v54 = vsel %vm1813_vm3, -1e+09, %v5166_v53 }
0x14b2   : > { %v5169_v51 = vsel %vm1813_vm3, -1e+09, %v5165_v46  ;;  %v5180_v25 = vsel %vm1820_vm4, %v5170_v54, -inf }
0x14b3   : > { %v5177_v52 = vsel %vm1820_vm4, %v5169_v51, -inf }
0x14b4   : > { %5178 = vmax.xlane.f32.xlu0 %v5177_v52 }
0x14bc   : > { %5291 = vrot.lane.b32.xlu1 %v10898_v26, %s11583_s3 }
0x14c0   : > { %5367 = vrot.lane.b32.xlu1 %v10908_v11, %s11583_s3 }
0x14c4   : > { %5521 = vrot.lane.b32.xlu1 %v10900_v12, %s11584_s1 }
0x14ca   : > { %5215 = vrot.lane.b32.xlu0 %v10900_v12, %s11583_s3 }
0x14ce   : > { %5443 = vrot.lane.b32.xlu0 %v10906_v37, %s11583_s3  ;;  %s11586_s3 = smov 48  }
0x14d2   : > { %5599 = vrot.lane.b32.xlu0 %v10898_v26, %s11584_s1 }
0x14e8   : > { %5181 = vmax.xlane.f32.xlu1 %v5180_v25 }
0x14f9   : > { %5519 = vrot.lane.b32.xlu1 %v10900_v12, %s11585_s6 }
0x1538   : > { %v5173_v56 = vpop.xlane.xlu1 %5172 }
0x1539   : > { %v5183_v14 = vsub.f32 %v5167_v40, %v5173_v56 }
0x153b   : > { %v5187_v59 = vmul.f32 1.442695, %v5183_v14 }
0x153c   : > { %v5292_v31 = vpop.permute.xlu1 %5291  ;;  %v5176_v62 = vpop.xlane.xlu0 %5175 }
0x153d   : > { %9758 = vpow2.f32 %v5187_v59  ;;  %v5184_v35 = vsub.f32 %v5168_v60, %v5176_v62  ;;  %9117 = vmatpush3.msra.mxu0 %v5292_v31 }
0x153e   : > { %9126 = vmatprep.subr.mxu0 %v9989_v10 }
0x153f   : > { %v5189_v5 = vmul.f32 1.442695, %v5184_v35 }
0x1540   : > { %v5368_v45 = vpop.permute.xlu1 %5367 }
0x1541   : > { %9760 = vpow2.f32 %v5189_v5  ;;  %v5179_v27 = vpop.xlane.xlu0 %5178 }
0x1542   : > { %v5185_v32 = vsub.f32 %v5169_v51, %v5179_v27 }
0x1544   : > { %v5191_v7 = vmul.f32 1.442695, %v5185_v32  ;;  %v5522_v9 = vpop.permute.xlu1 %5521 }
0x1545   : > { %v5216_v3 = vpop.permute.xlu0 %5215 }
0x1546   : > { %9762 = vpow2.f32 %v5191_v7  ;;  %9112 = vmatpush3.msra.mxu1 %v5216_v3 }
0x1547   : > { %v9759_v28 = vpop.eup %9758  ;;  %9121 = vmatprep.subr.mxu1 %v9989_v10 }
0x1548   : > { %v5195_v48 = vsel %vm1820_vm4, %v9759_v28, 0.0 }
0x1549   : > { %5196 = vadd.xlane.f32.xlu0 %v5195_v48  ;;  %v5444_v30 = vpop.permute.xlu0 %5443 }
0x154b   : > { %v9761_v22 = vpop.eup %9760 }
0x154c   : > { %v5198_v23 = vsel %vm1820_vm4, %v9761_v22, 0.0 }
0x154d   : > { %5199 = vadd.xlane.f32.xlu1 %v5198_v23  ;;  %v5600_v58 = vpop.permute.xlu0 %5599 }
0x1550   : > { %v9763_v8 = vpop.eup %9762 }
0x1551   : > { %v5201_v4 = vsel %vm1820_vm4, %v9763_v8, 0.0 }
0x1552   : > { %5202 = vadd.xlane.f32.xlu0 %v5201_v4 }
0x155e   : > { %5677 = vrot.lane.b32.xlu1 %v10908_v11, %s11584_s1 }
0x1568   : > { %5597 = vrot.lane.b32.xlu0 %v10898_v26, %s11585_s6 }
0x156c   : > { %5755 = vrot.lane.b32.xlu0 %v10906_v37, %s11584_s1 }
0x1570   : > { %5753 = vrot.lane.b32.xlu0 %v10906_v37, %s11585_s6 }
0x1575   : > { %v5182_v43 = vpop.xlane.xlu1 %5181 }
0x1576   : > { %v5186_v49 = vsub.f32 %v5170_v54, %v5182_v43 }
0x1578   : > { %v5193_v39 = vmul.f32 1.442695, %v5186_v49 }
0x1579   : > { %v5520_v33 = vpop.permute.xlu1 %5519 }
0x157a   : > { %9764 = vpow2.f32 %v5193_v39 }
0x1584   : > { %v9765_v55 = vpop.eup %9764 }
0x1585   : > { %v5204_v29 = vsel %vm1820_vm4, %v9765_v55, 0.0 }
0x1586   : > { %5205 = vadd.xlane.f32.xlu1 %v5204_v29 }
0x1597   : > { %5675 = vrot.lane.b32.xlu1 %v10908_v11, %s11585_s6 }
0x15d6   : > { %v5197_v61 = vpop.xlane.xlu0 %5196 }
0x15d7   : > { %9766 = vrcp.f32 %v5197_v61 }
0x15da   : > { %v5200_v57 = vpop.xlane.xlu1 %5199 }
0x15db   : > { %9768 = vrcp.f32 %v5200_v57 }
0x15de   : > { %v5678_v42 = vpop.permute.xlu1 %5677 }
0x15df   : > { %v5203_v34 = vpop.xlane.xlu0 %5202 }
0x15e0   : > { %9770 = vrcp.f32 %v5203_v34 }
0x15e1   : > { %v9767_v40 = vpop.eup %9766 }
0x15e2   : > { %v5211_v0 = vmul.f32 %v9767_v40, %v9759_v28 }
0x15e3   : > { %v5598_v44 = vpop.permute.xlu0 %5597 }
0x15e4   : > { %9114 = vmatmul.mubr.msk.f32.vlgmr.msra.gmra.mrb[52].mxu1 %vm1820_vm4, %v5211_v0 }
0x15e5   : > { %v9769_v20 = vpop.eup %9768  ;;  %9122 = vmatpush3.msra.mxu1 %v5368_v45  ;;  %9123 = vmatprep.mubr.msk.f32.mxu1 %vm9990_vm1, %v9989_v10 }
0x15e6   : > { %v5212_v21 = vmul.f32 %v9769_v20, %v9761_v22  ;;  %9131 = vmatprep.subr.mxu1 %v9989_v10 }
0x15e7   : > { %v5756_v51 = vpop.permute.xlu0 %5755 }
0x15e8   : > { %9119 = vmatmul.mubr.msk.f32.vlgmr.msra.gmra.mrb[58].mxu0 %vm1820_vm4, %v5212_v21 }
0x15e9   : > { %9127 = vmatpush3.msra.mxu0 %v5444_v30  ;;  %9128 = vmatprep.mubr.msk.f32.mxu0 %vm9990_vm1, %v9989_v10 }
0x15ea   : > { %v9771_v18 = vpop.eup %9770  ;;  %9136 = vmatprep.subr.mxu0 %v9989_v10 }
0x15eb   : > { %v5213_v60 = vmul.f32 %v9771_v18, %v9763_v8  ;;  %v5754_v52 = vpop.permute.xlu0 %5753 }
0x15ed   : > { %9124 = vmatmul.mubr.msk.f32.vlgmr.msra.gmra.mrb[54].mxu1 %vm1820_vm4, %v5213_v60 }
0x15ee   : > { %9132 = vmatpush3.xpose.msk.msra.mxu1 %vm1503_vm2, %v5522_v9  ;;  %9133 = vmatprep.mubr.msk.f32.mxu1 %vm9990_vm1, %v9989_v10 }
0x15ef   : > { %9141 = vmatprep.subr.mxu1 %v9989_v10 }
0x15f1   : > { %9134 = vmatmul.mubr.msk.f32.vlgmr.msra.gmra.mrb[56].mxu1 %vm1503_vm2, %v5520_v33 }
0x15f2   : > { %9142 = vmatpush3.xpose.msk.msra.mxu1 %vm1503_vm2, %v5678_v42  ;;  %9143 = vmatprep.mubr.msk.f32.mxu1 %vm9990_vm1, %v9989_v10 }
0x15f3   : > { %9151 = vmatprep.subr.mxu1 %v9989_v10 }
0x1613   : > { %v5206_v19 = vpop.xlane.xlu1 %5205 }
0x1614   : > { %9772 = vrcp.f32 %v5206_v19 }
0x1617   : > { %v5676_v13 = vpop.permute.xlu1 %5675 }
0x1618   : > { %9144 = vmatmul.mubr.msk.f32.vlgmr.msra.gmra.mrb[58].mxu1 %vm1503_vm2, %v5676_v13 }
0x1619   : > { %9153 = vmatprep.mubr.msk.f32.mxu1 %vm9990_vm1, %v9989_v10 }
0x161e   : > { %v9773_v46 = vpop.eup %9772 }
0x161f   : > { %v5214_v50 = vmul.f32 %v9773_v46, %v9765_v55 }
0x1621   : > { %9129 = vmatmul.mubr.msk.f32.vlgmr.msra.gmra.mrb[60].mxu0 %vm1820_vm4, %v5214_v50 }
0x1622   : > { %9137 = vmatpush3.xpose.msk.msra.mxu0 %vm1503_vm2, %v5600_v58  ;;  %9138 = vmatprep.mubr.msk.f32.mxu0 %vm9990_vm1, %v9989_v10 }
0x1623   : > { %9146 = vmatprep.subr.mxu0 %v9989_v10 }
0x1625   : > { %9139 = vmatmul.mubr.msk.f32.vlgmr.msra.gmra.mrb[62].mxu0 %vm1503_vm2, %v5598_v44 }
0x1626   : > { %9147 = vmatpush3.xpose.msk.msra.mxu0 %vm1503_vm2, %v5756_v51  ;;  %9148 = vmatprep.mubr.msk.f32.mxu0 %vm9990_vm1, %v9989_v10 }
0x1627   : > { %9156 = vmatprep.subr.mxu0 %v9989_v10 }
0x1629   : > { %9149 = vmatmul.mubr.msk.f32.vlgmr.msra.gmra.mrb[64].mxu0 %vm1503_vm2, %v5754_v52 }
0x162a   : > { %9158 = vmatprep.mubr.msk.f32.mxu0 %vm9990_vm1, %v9989_v10 }
0x16b7   : > { %v11014_v53 = vpop.f32.mrb[52].mxu1 }
0x16b8   : > { %v9115_v54 = vpop.f32.mrb[53].mxu1 }
0x16bb   : > { %v11016_v25 = vpop.f32.mrb[58].mxu0 }
0x16bc   : > { %v9120_v56 = vpop.f32.mrb[59].mxu0 }
0x16c0   : > { %v11018_v14 = vpop.f32.mrb[54].mxu1 }
0x16c1   : > { %v9125_v59 = vpop.f32.mrb[55].mxu1 }
0x16c4   : > { %v5593_v31 = vpop.f32.mrb[56].mxu1 }
0x16c5   : > { %v5831_v62 = vmul.f32 0.25, %v5593_v31  ;;  %v9135_v35 = vpop.f32.mrb[57].mxu1 }
0x16c7   : > { %v5835_v5 = vsel %vm1813_vm3, -1e+09, %v5831_v62 }
0x16c8   : > { %v5839_v27 = vsel %vm1820_vm4, %v5835_v5, -inf }
0x16c9   : > { %5840 = vmax.xlane.f32.xlu1 %v5839_v27 }
0x16eb   : > { %v5749_v32 = vpop.f32.mrb[58].mxu1 }
0x16ec   : > { %v9145_v7 = vpop.f32.mrb[59].mxu1  ;;  %v5833_v22 = vmul.f32 0.25, %v5749_v32 }
0x16ee   : > { %v5837_v43 = vsel %vm1813_vm3, -1e+09, %v5833_v22  ;;  %v4853_v22 = vld [vmem:[%s11587_s8 + $0x10] sm:$0xff] }
0x16ef   : > { %v5845_v29 = vsel %vm1820_vm4, %v5837_v43, -inf }
0x16f4   : > { %v11023_v3 = vpop.f32.mrb[60].mxu0 }
0x16f5   : > { %v9130_v28 = vpop.f32.mrb[61].mxu0 }
0x16f8   : > { %v5671_v48 = vpop.f32.mrb[62].mxu0 }
0x16f9   : > { %v5832_v23 = vmul.f32 0.25, %v5671_v48  ;;  %v9140_v8 = vpop.f32.mrb[63].mxu0 }
0x16fb   : > { %v5836_v4 = vsel %vm1813_vm3, -1e+09, %v5832_v23  ;;  %v4854_v23 = vld [vmem:[%s11587_s8 + $0x18] sm:$0xff] }
0x16fc   : > { %v5827_v45 = vpop.f32.mrb[64].mxu0  ;;  %v5842_v9 = vsel %vm1820_vm4, %v5836_v4, -inf  ;;  %v9408_v8 = vpack.c.bf16 %v4854_v23, %v4853_v22 }
0x16fd   : > { %v5834_v49 = vmul.f32 0.25, %v5827_v45  ;;  %5843 = vmax.xlane.f32.xlu0 %v5842_v9  ;;  %v9150_v39 = vpop.f32.mrb[65].mxu0  ;;  %v4852_v45 = vld [vmem:[%s11587_s8 + $0x8] sm:$0xff] }
0x16ff   : > { %v5838_v55 = vsel %vm1813_vm3, -1e+09, %v5834_v49 }
0x1700   : > { %v5848_v30 = vsel %vm1820_vm4, %v5838_v55, -inf }
0x1701   : > { %5846 = vmax.xlane.f32.xlu0 %v5845_v29  ;;  %5849 = vmax.xlane.f32.xlu1 %v5848_v30 }
0x1712   : > { %5959 = vrot.lane.b32.xlu1 %v10898_v26, %s11586_s3 }
0x1717   : > { %5883 = vrot.lane.b32.xlu0 %v10900_v12, %s11586_s3 }
0x1756   : > { %v5841_v58 = vpop.xlane.xlu1 %5840 }
0x1757   : > { %v5851_v33 = vsub.f32 %v5835_v5, %v5841_v58 }
0x1759   : > { %v5855_v61 = vmul.f32 1.442695, %v5851_v33 }
0x175b   : > { %9774 = vpow2.f32 %v5855_v61 }
0x1765   : > { %v9775_v57 = vpop.eup %9774 }
0x1766   : > { %v5863_v24 = vsel %vm1820_vm4, %v9775_v57, 0.0 }
0x1767   : > { %5864 = vadd.xlane.f32.xlu0 %v5863_v24 }
0x178a   : > { %v5844_v34 = vpop.xlane.xlu0 %5843 }
0x178b   : > { %v5852_v40 = vsub.f32 %v5836_v4, %v5844_v34  ;;  %v4851_v4 = vld [vmem:[%s11587_s8] sm:$0xff]  ;;  %s11590_s8 = sld [smem:[#allocation25_spill]] }
0x178c   : > { %v9412_v9 = vpack.c.bf16 %v4852_v45, %v4851_v4 }
0x178d   : > { %v5857_v0 = vmul.f32 1.442695, %v5852_v40 }
0x178e   : > { %v5850_v20 = vpop.xlane.xlu1 %5849  ;;  %v5847_v21 = vpop.xlane.xlu0 %5846 }
0x178f   : > { %9776 = vpow2.f32 %v5857_v0  ;;  %v5854_v18 = vsub.f32 %v5838_v55, %v5850_v20  ;;  %v5853_v60 = vsub.f32 %v5837_v43, %v5847_v21 }
0x1791   : > { %v5861_v26 = vmul.f32 1.442695, %v5854_v18  ;;  %v5859_v42 = vmul.f32 1.442695, %v5853_v60 }
0x1792   : > { %v5960_v19 = vpop.permute.xlu1 %5959  ;;  %v5884_v12 = vpop.permute.xlu0 %5883 }
0x1793   : > { %9778 = vpow2.f32 %v5861_v26  ;;  %9152 = vmatpush3.msra.mxu1 %v5884_v12  ;;  %9157 = vmatpush3.msra.mxu0 %v5960_v19 }
0x1794   : > { %9780 = vpow2.f32 %v5859_v42  ;;  %9161 = vmatprep.subr.mxu1 %v9989_v10  ;;  %9166 = vmatprep.subr.mxu0 %v9989_v10 }
0x1799   : > { %v9777_v13 = vpop.eup %9776 }
0x179a   : > { %v5866_v44 = vsel %vm1820_vm4, %v9777_v13, 0.0 }
0x179b   : > { %5867 = vadd.xlane.f32.xlu1 %v5866_v44 }
0x179d   : > { %v9779_v46 = vpop.eup %9778 }
0x179e   : > { %v9781_v50 = vpop.eup %9780  ;;  %v5872_v51 = vsel %vm1820_vm4, %v9779_v46, 0.0 }
0x179f   : > { %5873 = vadd.xlane.f32.xlu1 %v5872_v51  ;;  %v5869_v52 = vsel %vm1820_vm4, %v9781_v50, 0.0 }
0x17a0   : > { %5870 = vadd.xlane.f32.xlu0 %v5869_v52 }
0x17b0   : > { %6035 = vrot.lane.b32.xlu1 %v10908_v11, %s11586_s3 }
0x17b6   : > { %6111 = vrot.lane.b32.xlu0 %v10906_v37, %s11586_s3  ;;  %s11588_s3 = sld [smem:[#allocation24_spill]] }
0x17bc   : > { %v8447_v61 = vld [vmem:[%s11588_s3] ss:$0 sm:$0xff]  ;;  %s11589_s3 = sld [smem:[#allocation27_spill]] }
0x17f4   : > { %v5865_v54 = vpop.xlane.xlu0 %5864 }
0x17f5   : > { %9782 = vrcp.f32 %v5865_v54 }
0x17ff   : > { %v9783_v56 = vpop.eup %9782 }
0x1800   : > { %v5879_v59 = vmul.f32 %v9783_v56, %v9775_v57 }
0x1802   : > { %9154 = vmatmul.mubr.msk.f32.vlgmr.msra.gmra.mrb[60].mxu1 %vm1820_vm4, %v5879_v59 }
0x1803   : > { %9163 = vmatprep.mubr.msk.f32.mxu1 %vm9990_vm1, %v9989_v10 }
0x1828   : > { %v5868_v31 = vpop.xlane.xlu1 %5867 }
0x1829   : > { %9784 = vrcp.f32 %v5868_v31 }
0x182c   : > { %v5874_v62 = vpop.xlane.xlu1 %5873 }
0x182d   : > { %9786 = vrcp.f32 %v5874_v62  ;;  %v5871_v35 = vpop.xlane.xlu0 %5870 }
0x182e   : > { %9788 = vrcp.f32 %v5871_v35 }
0x1830   : > { %v6036_v11 = vpop.permute.xlu1 %6035 }
0x1831   : > { %9162 = vmatpush3.msra.mxu1 %v6036_v11  ;;  %v6112_v27 = vpop.permute.xlu0 %6111 }
0x1832   : > { %9409 = vmatprep.subr.bf16.mxu1 %v9408_v8 }
0x1833   : > { %v9785_v37 = vpop.eup %9784 }
0x1834   : > { %v5880_v5 = vmul.f32 %v9785_v37, %v9777_v13 }
0x1836   : > { %9159 = vmatmul.mubr.msk.f32.vlgmr.msra.gmra.mrb[66].mxu0 %vm1820_vm4, %v5880_v5 }
0x1837   : > { %v9787_v32 = vpop.eup %9786  ;;  %9167 = vmatpush3.msra.mxu0 %v6112_v27  ;;  %9168 = vmatprep.mubr.msk.f32.mxu0 %vm9990_vm1, %v9989_v10  ;;  %v6470_v27 = vld [vmem:[%s11589_s3] sm:$0xff] }
0x1838   : > { %v9789_v7 = vpop.eup %9788  ;;  %v5882_v28 = vmul.f32 %v9787_v32, %v9779_v46  ;;  %v6471_v32 = vld [vmem:[%s11589_s3 + $0x8] sm:$0xff] }
0x1839   : > { %v5881_v48 = vmul.f32 %v9789_v7, %v9781_v50  ;;  %v9416_v7 = vpack.c.bf16 %v6471_v32, %v6470_v27 }
0x183a   : > { %9169 = vmatmul.mubr.msk.f32.vlgmr.msra.gmra.mrb[68].mxu0 %vm1820_vm4, %v5882_v28  ;;  %v6472_v28 = vld [vmem:[%s11589_s3 + $0x10] sm:$0xff] }
0x183b   : > { %9164 = vmatmul.mubr.msk.f32.vlgmr.msra.gmra.mrb[62].mxu1 %vm1820_vm4, %v5881_v48  ;;  %v6473_v48 = vld [vmem:[%s11589_s3 + $0x18] sm:$0xff]  ;;  %9417 = vmatprep.subr.bf16.mxu0 %v9416_v7 }
0x183c   : > { %9411 = vmatpush3.bf16.msra.mxu1 %v9408_v8  ;;  %v9420_v22 = vpack.c.bf16 %v6473_v48, %v6472_v28  ;;  %9419 = vmatpush3.bf16.msra.mxu0 %v9416_v7 }
0x183d   : > { %9413 = vmatprep.subr.bf16.mxu1 %v9412_v9 }
0x183e   : > { %9421 = vmatprep.subr.bf16.mxu0 %v9420_v22 }
0x1840   : > { %9423 = vmatpush3.bf16.msra.mxu0 %v9420_v22 }
0x1841   : > { %9424 = vmatprep.subr.bf16.mxu0 %v9996_v41 }
0x18d5   : > { %v5955_v43 = vpop.f32.mrb[60].mxu1 }
0x18d6   : > { %v9155_v49 = vpop.f32.mrb[61].mxu1  ;;  %9175 = vmatprep.mubr.msk.f32.mxu1 %vm1503_vm2, %v5955_v43 }
0x1909   : > { %v6031_v39 = vpop.f32.mrb[66].mxu0 }
0x190a   : > { %v9160_v55 = vpop.f32.mrb[67].mxu0  ;;  %9176 = vmatmul.mubr.msk.f32.vlgmr.msra.gmra.mrb[64].mxu1 %vm1503_vm2, %v6031_v39 }
0x190b   : > { %9415 = vmatpush3.bf16.msra.mxu1 %v9412_v9 }
0x190d   : > { %v6183_v29 = vpop.f32.mrb[68].mxu0 }
0x190e   : > { %v6107_v30 = vpop.f32.mrb[62].mxu1  ;;  %v9170_v58 = vpop.f32.mrb[69].mxu0 }
0x190f   : > { %v9165_v33 = vpop.f32.mrb[63].mxu1  ;;  %9178 = vmatprep.mubr.msk.f32.mxu1 %vm1503_vm2, %v6107_v30 }
0x1910   : > { %9179 = vmatmul.mubr.msk.f32.gmra.mrb[66].mxu1 %vm1503_vm2, %v6183_v29 }
0x1911   : > { %9185 = vmatprep.mubr.msk.f32.mxu1 %vm1503_vm2, %v11014_v53 }
0x1914   : > { %9186 = vmatmul.mubr.msk.f32.vlgmr.msra.gmra.mrb[64].mxu1 %vm1503_vm2, %v11016_v25 }
0x1915   : > { %9188 = vmatprep.mubr.msk.f32.mxu1 %vm1503_vm2, %v11018_v14 }
0x1918   : > { %9189 = vmatmul.mubr.msk.f32.gmra.mrb[66].mxu1 %vm1503_vm2, %v11023_v3 }
0x19e7   : > { %v9187_v57 = vpop.f32.mrb[64].mxu1 }
0x19e8   : > { %v6389_v24 = vadd.f32 %v9187_v57, %v8447_v61  ;;  %v6362_v34 = vpop.f32.mrb[65].mxu1 }
0x19e9   : > { %v6388_v40 = vadd.f32 %v8447_v61, %v6362_v34 }
0x19ea   : > { %v6393_v0 = vadd.f32 %v6389_v24, %v10883_v16 }
0x19eb   : > { %v6392_v20 = vadd.f32 %v6388_v40, %v10879_v15  ;;  %v9190_v21 = vpop.f32.mrb[66].mxu1  ;;  %v8449_v40 = vld [vmem:[%s11591_s11] ss:$0 sm:$0xff]  ;;  %s11594_s11 = sld [smem:[#allocation30_spill]] }
0x19ec   : > { %v6391_v53 = vadd.f32 %v9190_v21, %v8447_v61  ;;  %v6372_v18 = vpop.f32.mrb[67].mxu1  ;;  %v6401_v25 = vsel %vm1398_vm0, %v6393_v0, 0.0  ;;  %v6579_v21 = vld [vmem:[%s11592_s13 + $0x8] sm:$0xff] }
0x19ed   : > { %v6390_v60 = vadd.f32 %v8447_v61, %v6372_v18  ;;  %6402 = vadd.xlane.f32.xlu0 %v6401_v25  ;;  %v6398_v14 = vsel %vm1398_vm0, %v6392_v20, 0.0  ;;  %v8448_v61 = vld [vmem:[%s11590_s8] ss:$0 sm:$0xff]  ;;  %s11593_s8 = sld [smem:[#allocation28_spill]] }
0x19ee   : > { %v6395_v3 = vadd.f32 %v6391_v53, %v10891_v6  ;;  %6399 = vadd.xlane.f32.xlu1 %v6398_v14 }
0x19ef   : > { %v6394_v26 = vadd.f32 %v6390_v60, %v10887_v47 }
0x19f0   : > { %v6407_v42 = vsel %vm1398_vm0, %v6395_v3, 0.0 }
0x19f1   : > { %v6404_v16 = vsel %vm1398_vm0, %v6394_v26, 0.0 }
0x19f2   : > { %6408 = vadd.xlane.f32.xlu1 %v6407_v42  ;;  %6405 = vadd.xlane.f32.xlu0 %v6404_v16 }
0x1a7a   : > { %v6403_v15 = vpop.xlane.xlu0 %6402 }
0x1a7b   : > { %v6411_v19 = vmul.f32 0.03125, %v6403_v15  ;;  %v6400_v12 = vpop.xlane.xlu1 %6399  ;;  %v6580_v15 = vld [vmem:[%s11592_s13 + $0x10] sm:$0xff] }
0x1a7c   : > { %v6410_v13 = vmul.f32 0.03125, %v6400_v12 }
0x1a7d   : > { %v6415_v44 = vsub.f32 %v6393_v0, %v6411_v19  ;;  %v6581_v19 = vld [vmem:[%s11592_s13 + $0x18] sm:$0xff] }
0x1a7e   : > { %v6414_v46 = vsub.f32 %v6392_v20, %v6410_v13  ;;  %v6578_v20 = vld [vmem:[%s11592_s13] sm:$0xff] }
0x1a7f   : > { %v6409_v50 = vpop.xlane.xlu1 %6408  ;;  %v6406_v51 = vpop.xlane.xlu0 %6405  ;;  %v6419_v52 = vmul.f32 %v6415_v44, %v6415_v44  ;;  %v9425_v14 = vpack.c.bf16 %v6579_v21, %v6578_v20 }
0x1a80   : > { %v6413_v6 = vmul.f32 0.03125, %v6409_v50  ;;  %v6412_v54 = vmul.f32 0.03125, %v6406_v51  ;;  %v6418_v47 = vmul.f32 %v6414_v46, %v6414_v46  ;;  %v9878_v50 = vld [vmem:[%s11560_s9] sm:$0xff] }
0x1a81   : > { %v6425_v56 = vsel %vm1398_vm0, %v6419_v52, 0.0  ;;  %v8450_v51 = vld [vmem:[%s11593_s8] ss:$0 sm:$0xff]  ;;  %s11598_s8 = sld [smem:[#allocation37_spill]] }
0x1a82   : > { %v6417_v59 = vsub.f32 %v6395_v3, %v6413_v6  ;;  %v6416_v31 = vsub.f32 %v6394_v26, %v6412_v54  ;;  %6426 = vadd.xlane.f32.xlu1 %v6425_v56  ;;  %v6422_v62 = vsel %vm1398_vm0, %v6418_v47, 0.0 }
0x1a83   : > { %6423 = vadd.xlane.f32.xlu0 %v6422_v62 }
0x1a84   : > { %v6421_v35 = vmul.f32 %v6417_v59, %v6417_v59  ;;  %v6420_v11 = vmul.f32 %v6416_v31, %v6416_v31 }
0x1a86   : > { %v6431_v37 = vsel %vm1398_vm0, %v6421_v35, 0.0  ;;  %v6428_v5 = vsel %vm1398_vm0, %v6420_v11, 0.0 }
0x1a87   : > { %6432 = vadd.xlane.f32.xlu1 %v6431_v37  ;;  %6429 = vadd.xlane.f32.xlu0 %v6428_v5 }
0x1b0f   : > { %v6427_v23 = vpop.xlane.xlu1 %6426 }
0x1b10   : > { %v6435_v8 = vmul.f32 0.03125, %v6427_v23  ;;  %v6424_v4 = vpop.xlane.xlu0 %6423 }
0x1b11   : > { %v6434_v45 = vmul.f32 0.03125, %v6424_v4 }
0x1b12   : > { %v6439_v9 = vadd.f32 1e-05, %v6435_v8 }
0x1b13   : > { %v6438_v43 = vadd.f32 1e-05, %v6434_v45 }
0x1b14   : > { %9790 = vrsqrt.f32 %v6439_v9  ;;  %v6433_v49 = vpop.xlane.xlu1 %6432  ;;  %v6430_v39 = vpop.xlane.xlu0 %6429 }
0x1b15   : > { %9792 = vrsqrt.f32 %v6438_v43  ;;  %v6437_v55 = vmul.f32 0.03125, %v6433_v49  ;;  %v6436_v29 = vmul.f32 0.03125, %v6430_v39 }
0x1b17   : > { %v6441_v30 = vadd.f32 1e-05, %v6437_v55  ;;  %v6440_v58 = vadd.f32 1e-05, %v6436_v29 }
0x1b19   : > { %9794 = vrsqrt.f32 %v6441_v30 }
0x1b1a   : > { %9796 = vrsqrt.f32 %v6440_v58 }
0x1b1e   : > { %v9791_v33 = vpop.eup %9790 }
0x1b1f   : > { %v9793_v57 = vpop.eup %9792  ;;  %v6447_v24 = vmul.f32 %v9791_v33, %v6415_v44 }
0x1b20   : > { %v6446_v34 = vmul.f32 %v9793_v57, %v6414_v46  ;;  %v9428_v46 = vpack.c.bf16 %v6581_v19, %v6580_v15 }
0x1b21   : > { %v6457_v0 = vmul.f32 %v8448_v61, %v6447_v24 }
0x1b22   : > { %v6456_v53 = vmul.f32 %v8448_v61, %v6446_v34 }
0x1b23   : > { %v9795_v18 = vpop.eup %9794  ;;  %v11096_v26 = vadd.f32 %v8449_v40, %v6457_v0 }
0x1b24   : > { %v9797_v25 = vpop.eup %9796  ;;  %v11094_v60 = vadd.f32 %v8449_v40, %v6456_v53  ;;  %v6449_v3 = vmul.f32 %v9795_v18, %v6417_v59  ;;  %v8455_v59 = vld [vmem:[%s11594_s11] ss:$0 sm:$0xff]  ;;  %s11599_s11 = sld [smem:[#allocation33_spill]] }
0x1b25   : > { %v6448_v42 = vmul.f32 %v9797_v25, %v6416_v31 }
0x1b26   : > { %9199 = vmatprep.mubr.msk.f32.mxu0 %vm1398_vm0, %v11094_v60  ;;  %v6459_v16 = vmul.f32 %v8448_v61, %v6449_v3 }
0x1b27   : > { %9200 = vmatmul.mubr.msk.f32.vlgmr.msra.gmra.mrb[70].mxu0 %vm1398_vm0, %v11096_v26  ;;  %v6458_v12 = vmul.f32 %v8448_v61, %v6448_v42 }
0x1b28   : > { %9426 = vmatpush3.bf16.msra.mxu0 %v9425_v14  ;;  %v11104_v13 = vadd.f32 %v8449_v40, %v6459_v16 }
0x1b29   : > { %v11106_v44 = vadd.f32 %v8449_v40, %v6458_v12  ;;  %9427 = vmatprep.subr.bf16.mxu0 %v9996_v41 }
0x1b2b   : > { %9202 = vmatprep.mubr.msk.f32.mxu0 %vm1398_vm0, %v11106_v44 }
0x1b2c   : > { %9203 = vmatmul.mubr.msk.f32.gmra.mrb[72].mxu0 %vm1398_vm0, %v11104_v13 }
0x1b2d   : > { %9429 = vmatpush3.bf16.msra.mxu0 %v9428_v46  ;;  %9213 = vmatprep.mubr.msk.f32.mxu0 %vm9990_vm1, %v9989_v10 }
0x1b30   : > { %9214 = vmatmul.mubr.msk.f32.vlgmr.msra.gmra.mrb[74].mxu0 %vm1398_vm0, %v9878_v50 }
0x1bfa   : > { %v9201_v52 = vpop.f32.mrb[70].mxu0 }
0x1bfb   : > { %v6559_v6 = vpop.f32.mrb[71].mxu0  ;;  %v6565_v47 = vadd.f32 %v9201_v52, %v8450_v51 }
0x1bfc   : > { %v6560_v54 = vadd.f32 %v8450_v51, %v6559_v6 }
0x1bfe   : > { %6915 = vrot.lane.b32.xlu1 %v6560_v54, %s11585_s6  ;;  %9218 = vmatprep.mubr.msk.f32.mxu1 %vm1503_vm2, %v6560_v54 }
0x1bff   : > { %v9204_v41 = vpop.f32.mrb[72].mxu0 }
0x1c00   : > { %v6569_v56 = vpop.f32.mrb[73].mxu0  ;;  %v6575_v11 = vadd.f32 %v9204_v41, %v8450_v51 }
0x1c01   : > { %v6570_v37 = vadd.f32 %v8450_v51, %v6569_v56 }
0x1c02   : > { %6917 = vrot.lane.b32.xlu1 %v6565_v47, %s11585_s6 }
0x1c03   : > { %v6655_v31 = vpop.f32.mrb[74].mxu0 }
0x1c04   : > { %v11122_v62 = vadd.f32 %v8455_v59, %v6655_v31  ;;  %v9215_v35 = vpop.f32.mrb[75].mxu0 }
0x1c06   : > { %6923 = vrot.lane.b32.xlu0 %v11122_v62, %s11585_s6  ;;  %9216 = vmatprep.subr.msk.mxu1 %vm1503_vm2, %v11122_v62 }
0x1c07   : > { %9217 = vmatpush3.xpose.msk.msra.mxu1 %vm1503_vm2, %v11122_v62  ;;  %6921 = vrot.lane.b32.xlu1 %v6575_v11, %s11585_s6 }
0x1c0a   : > { %6919 = vrot.lane.b32.xlu0 %v6570_v37, %s11585_s6  ;;  %9219 = vmatmul.mubr.msk.f32.vlgmr.msra.gmra.mrb[68].mxu1 %vm1503_vm2, %v6565_v47  ;;  %s11595_s6 = sld [smem:[#allocation31_spill]] }
0x1c0b   : > { %9221 = vmatprep.mubr.msk.f32.mxu1 %vm1503_vm2, %v6570_v37 }
0x1c0e   : > { %9222 = vmatmul.mubr.msk.f32.gmra.mrb[70].mxu1 %vm1503_vm2, %v6575_v11 }
0x1c70   : > { %v6916_v5 = vpop.permute.xlu1 %6915 }
0x1c71   : > { %9234 = vmatprep.mubr.msk.f32.mxu1 %vm1503_vm2, %v6916_v5 }
0x1c74   : > { %v6918_v32 = vpop.permute.xlu1 %6917 }
0x1c78   : > { %v6924_v27 = vpop.permute.xlu0 %6923 }
0x1c79   : > { %9232 = vmatprep.subr.msk.mxu1 %vm1503_vm2, %v6924_v27  ;;  %v6922_v28 = vpop.permute.xlu1 %6921 }
0x1c7a   : > { %9233 = vmatpush3.xpose.msk.msra.mxu1 %vm1503_vm2, %v6924_v27 }
0x1c7c   : > { %v6920_v7 = vpop.permute.xlu0 %6919 }
0x1c7d   : > { %9235 = vmatmul.mubr.msk.f32.vlgmr.msra.gmra.mrb[72].mxu1 %vm1503_vm2, %v6918_v32 }
0x1c7e   : > { %9237 = vmatprep.mubr.msk.f32.mxu1 %vm1503_vm2, %v6920_v7 }
0x1c81   : > { %9238 = vmatmul.mubr.msk.f32.gmra.mrb[74].mxu1 %vm1503_vm2, %v6922_v28 }
0x1cdd   : > { %v9220_v48 = vpop.f32.mrb[68].mxu1 }
0x1cde   : > { %v6764_v22 = vmul.f32 0.25, %v9220_v48  ;;  %v6744_v23 = vpop.f32.mrb[69].mxu1 }
0x1cdf   : > { %v6763_v8 = vmul.f32 0.25, %v6744_v23 }
0x1ce0   : > { %v6768_v4 = vsel %vm10572_vm6, -1e+09, %v6764_v22 }
0x1ce1   : > { %v6767_v45 = vsel %vm10572_vm6, -1e+09, %v6763_v8  ;;  %v9223_v9 = vpop.f32.mrb[70].mxu1  ;;  %v6774_v43 = vsel %vm1820_vm4, %v6768_v4, -inf }
0x1ce2   : > { %6775 = vmax.xlane.f32.xlu1 %v6774_v43  ;;  %v6754_v49 = vpop.f32.mrb[71].mxu1  ;;  %v6771_v39 = vsel %vm1820_vm4, %v6767_v45, -inf  ;;  %v6766_v55 = vmul.f32 0.25, %v9223_v9 }
0x1ce3   : > { %v6765_v29 = vmul.f32 0.25, %v6754_v49  ;;  %6772 = vmax.xlane.f32.xlu0 %v6771_v39 }
0x1ce4   : > { %v6770_v33 = vsel %vm10572_vm6, -1e+09, %v6766_v55 }
0x1ce5   : > { %v6769_v30 = vsel %vm10572_vm6, -1e+09, %v6765_v29  ;;  %v6780_v61 = vsel %vm1820_vm4, %v6770_v33, -inf }
0x1ce6   : > { %v6777_v58 = vsel %vm1820_vm4, %v6769_v30, -inf }
0x1ce7   : > { %6778 = vmax.xlane.f32.xlu0 %v6777_v58 }
0x1ceb   : > { %6781 = vmax.xlane.f32.xlu0 %v6780_v61 }
0x1d50   : > { %v9236_v57 = vpop.f32.mrb[72].mxu1 }
0x1d51   : > { %v7021_v24 = vmul.f32 0.25, %v9236_v57  ;;  %v7001_v34 = vpop.f32.mrb[73].mxu1 }
0x1d52   : > { %v7020_v40 = vmul.f32 0.25, %v7001_v34 }
0x1d53   : > { %v7025_v0 = vsel %vm10572_vm6, -1e+09, %v7021_v24 }
0x1d54   : > { %v7024_v20 = vsel %vm10572_vm6, -1e+09, %v7020_v40  ;;  %v9239_v21 = vpop.f32.mrb[74].mxu1  ;;  %v7031_v53 = vsel %vm1820_vm4, %v7025_v0, -inf }
0x1d55   : > { %v7023_v18 = vmul.f32 0.25, %v9239_v21  ;;  %v7011_v25 = vpop.f32.mrb[75].mxu1  ;;  %7032 = vmax.xlane.f32.xlu0 %v7031_v53  ;;  %v7028_v14 = vsel %vm1820_vm4, %v7024_v20, -inf }
0x1d56   : > { %v7022_v3 = vmul.f32 0.25, %v7011_v25  ;;  %7029 = vmax.xlane.f32.xlu1 %v7028_v14 }
0x1d57   : > { %v7027_v42 = vsel %vm10572_vm6, -1e+09, %v7023_v18 }
0x1d58   : > { %v7026_v16 = vsel %vm10572_vm6, -1e+09, %v7022_v3  ;;  %v7037_v15 = vsel %vm1820_vm4, %v7027_v42, -inf }
0x1d59   : > { %7038 = vmax.xlane.f32.xlu0 %v7037_v15  ;;  %v7034_v19 = vsel %vm1820_vm4, %v7026_v16, -inf }
0x1d5a   : > { %7035 = vmax.xlane.f32.xlu1 %v7034_v19 }
0x1d6f   : > { %v6776_v12 = vpop.xlane.xlu1 %6775 }
0x1d70   : > { %v6784_v46 = vsub.f32 %v6768_v4, %v6776_v12  ;;  %v6773_v50 = vpop.xlane.xlu0 %6772 }
0x1d71   : > { %v6783_v51 = vsub.f32 %v6767_v45, %v6773_v50 }
0x1d72   : > { %v6789_v52 = vmul.f32 1.442695, %v6784_v46 }
0x1d73   : > { %v6787_v6 = vmul.f32 1.442695, %v6783_v51 }
0x1d74   : > { %9798 = vpow2.f32 %v6789_v52  ;;  %v6779_v54 = vpop.xlane.xlu0 %6778 }
0x1d75   : > { %9800 = vpow2.f32 %v6787_v6  ;;  %v6785_v41 = vsub.f32 %v6769_v30, %v6779_v54 }
0x1d77   : > { %v6791_v47 = vmul.f32 1.442695, %v6785_v41 }
0x1d78   : > { %v6782_v56 = vpop.xlane.xlu0 %6781 }
0x1d79   : > { %9802 = vpow2.f32 %v6791_v47  ;;  %v6786_v17 = vsub.f32 %v6770_v33, %v6782_v56 }
0x1d7b   : > { %v6793_v59 = vmul.f32 1.442695, %v6786_v17 }
0x1d7d   : > { %9804 = vpow2.f32 %v6793_v59 }
0x1d7e   : > { %v11165_v31 = vpop.eup %9798 }
0x1d7f   : > { %v9801_v35 = vpop.eup %9800  ;;  %v6798_v11 = vsel %vm1820_vm4, %v11165_v31, 0.0 }
0x1d80   : > { %6799 = vadd.xlane.f32.xlu0 %v6798_v11  ;;  %v6795_v37 = vsel %vm1820_vm4, %v9801_v35, 0.0 }
0x1d81   : > { %6796 = vadd.xlane.f32.xlu1 %v6795_v37  ;;  %v6659_v37 = vld [vmem:[%s11595_s6] sm:$0xff] }
0x1d83   : > { %v11170_v5 = vpop.eup %9802 }
0x1d84   : > { %v6801_v27 = vsel %vm1820_vm4, %v11170_v5, 0.0 }
0x1d85   : > { %6802 = vadd.xlane.f32.xlu1 %v6801_v27 }
0x1d87   : > { %v11174_v32 = vpop.eup %9804 }
0x1d88   : > { %v6804_v7 = vsel %vm1820_vm4, %v11174_v32, 0.0 }
0x1d89   : > { %6805 = vadd.xlane.f32.xlu0 %v6804_v7 }
0x1de2   : > { %v7033_v28 = vpop.xlane.xlu0 %7032 }
0x1de3   : > { %v7041_v48 = vsub.f32 %v7025_v0, %v7033_v28  ;;  %v7030_v22 = vpop.xlane.xlu1 %7029 }
0x1de4   : > { %v7040_v23 = vsub.f32 %v7024_v20, %v7030_v22 }
0x1de5   : > { %v7046_v8 = vmul.f32 1.442695, %v7041_v48 }
0x1de6   : > { %v7044_v4 = vmul.f32 1.442695, %v7040_v23  ;;  %v7039_v45 = vpop.xlane.xlu0 %7038 }
0x1de7   : > { %9806 = vpow2.f32 %v7046_v8  ;;  %v7043_v9 = vsub.f32 %v7027_v42, %v7039_v45  ;;  %v7036_v43 = vpop.xlane.xlu1 %7035 }
0x1de8   : > { %9808 = vpow2.f32 %v7044_v4  ;;  %v7042_v49 = vsub.f32 %v7026_v16, %v7036_v43 }
0x1de9   : > { %v7050_v39 = vmul.f32 1.442695, %v7043_v9 }
0x1dea   : > { %v7048_v55 = vmul.f32 1.442695, %v7042_v49 }
0x1deb   : > { %9810 = vpow2.f32 %v7050_v39 }
0x1dec   : > { %9812 = vpow2.f32 %v7048_v55 }
0x1df1   : > { %v9807_v29 = vpop.eup %9806 }
0x1df2   : > { %v9809_v30 = vpop.eup %9808  ;;  %v7055_v58 = vsel %vm1820_vm4, %v9807_v29, 0.0 }
0x1df3   : > { %7056 = vadd.xlane.f32.xlu0 %v7055_v58  ;;  %v7052_v33 = vsel %vm1820_vm4, %v9809_v30, 0.0 }
0x1df4   : > { %7053 = vadd.xlane.f32.xlu1 %v7052_v33 }
0x1df5   : > { %v9811_v61 = vpop.eup %9810 }
0x1df6   : > { %v9813_v57 = vpop.eup %9812  ;;  %v7061_v24 = vsel %vm1820_vm4, %v9811_v61, 0.0 }
0x1df7   : > { %7062 = vadd.xlane.f32.xlu0 %v7061_v24  ;;  %v7058_v34 = vsel %vm1820_vm4, %v9813_v57, 0.0 }
0x1df8   : > { %7059 = vadd.xlane.f32.xlu1 %v7058_v34 }
0x1e09   : > { %6815 = vrot.lane.b32.xlu1 %v11122_v62, %s11582_s5  ;;  %s11596_s5 = sld [smem:[#allocation32_spill]] }
0x1e0d   : > { %7072 = vrot.lane.b32.xlu0 %v11122_v62, %s11584_s1  ;;  %v6800_v21 = vpop.xlane.xlu0 %6799  ;;  %s11597_s1 = sld [smem:[#allocation35_spill]] }
0x1e0e   : > { %v6797_v40 = vpop.xlane.xlu1 %6796 }
0x1e0f   : > { %9814 = vrcp.f32 %v6797_v40  ;;  %v8483_v45 = vld [vmem:[%s11596_s5] ss:$0 sm:$0xff]  ;;  %s11600_s5 = sld [smem:[#allocation34_spill]] }
0x1e10   : > { %9816 = vrcp.f32 %v6800_v21 }
0x1e12   : > { %v6803_v53 = vpop.xlane.xlu1 %6802 }
0x1e13   : > { %9818 = vrcp.f32 %v6803_v53 }
0x1e16   : > { %v6806_v18 = vpop.xlane.xlu0 %6805 }
0x1e17   : > { %9820 = vrcp.f32 %v6806_v18 }
0x1e19   : > { %v9815_v0 = vpop.eup %9814 }
0x1e1a   : > { %v6811_v20 = vmul.f32 %v9815_v0, %v9801_v35  ;;  %v9817_v62 = vpop.eup %9816  ;;  %v6662_v35 = vld [vmem:[%s11595_s6 + $0x18] sm:$0xff] }
0x1e1b   : > { %v6812_v19 = vmul.f32 %v9817_v62, %v11165_v31  ;;  %v6661_v31 = vld [vmem:[%s11595_s6 + $0x10] sm:$0xff] }
0x1e1c   : > { %9226 = vmatprep.mubr.msk.f32.mxu0 %vm1820_vm4, %v6811_v20  ;;  %v9430_v11 = vpack.c.bf16 %v6662_v35, %v6661_v31 }
0x1e1d   : > { %v9819_v16 = vpop.eup %9818 }
0x1e1e   : > { %v6813_v50 = vmul.f32 %v9819_v16, %v11170_v5  ;;  %9431 = vmatprep.subr.bf16.mxu1 %v9430_v11  ;;  %v6660_v5 = vld [vmem:[%s11595_s6 + $0x8] sm:$0xff]  ;;  %s8507_s6 = sshll.u32 %s10262_s0, 9  ;;  %s9998_s0 = smov [#allocation2]  }
0x1e1f   : > { %9433 = vmatpush3.bf16.msra.mxu1 %v9430_v11  ;;  %v9434_v27 = vpack.c.bf16 %v6660_v5, %v6659_v37  ;;  %v7457_v11 = vld [vmem:[%s11597_s1 + $0x10] sm:$0xff]  ;;  %s9883_s9 = sshll.u32 %s9998_s0, 4  ;;  %s9884_s9 = int_to_ptr.vmem [resolvable:$false] %s9883_s9 }
0x1e20   : > { %v7461_v37 = vld [vmem:[%s11597_s1 + $0x30] sm:$0xff]  ;;  %s9885_s13 = scalar_lea.vmem %s9884_s9, 1024 }
0x1e21   : > { %v9821_v12 = vpop.eup %9820  ;;  %9435 = vmatprep.subr.bf16.mxu1 %v9434_v27  ;;  %v9448_v5 = vpack.c.bf16 %v7461_v37, %v7457_v11  ;;  %v7797_v11 = vld [vmem:[%s11598_s8 + $0x110] sm:$0xff]  ;;  %v7798_v37 = vld [vmem:[%s11598_s8 + $0x118] sm:$0xff] }
0x1e22   : > { %v6814_v52 = vmul.f32 %v9821_v12, %v11174_v32 }
0x1e80   : > { %v7057_v25 = vpop.xlane.xlu0 %7056 }
0x1e81   : > { %v7054_v14 = vpop.xlane.xlu1 %7053 }
0x1e82   : > { %9822 = vrcp.f32 %v7054_v14 }
0x1e83   : > { %9824 = vrcp.f32 %v7057_v25 }
0x1e84   : > { %v7063_v3 = vpop.xlane.xlu0 %7062 }
0x1e85   : > { %v7060_v42 = vpop.xlane.xlu1 %7059 }
0x1e86   : > { %9826 = vrcp.f32 %v7060_v42 }
0x1e87   : > { %9828 = vrcp.f32 %v7063_v3 }
0x1e88   : > { %v7073_v46 = vpop.permute.xlu0 %7072 }
0x1e89   : > { %v6816_v15 = vpop.permute.xlu1 %6815 }
0x1e8a   : > { %9224 = vmatprep.subr.mxu0 %v6816_v15 }
0x1e8b   : > { %9225 = vmatpush3.msra.mxu0 %v6816_v15 }
0x1e8c   : > { %v9823_v51 = vpop.eup %9822  ;;  %9227 = vmatmul.mubr.msk.f32.vlgmr.msra.gmra.mrb[76].mxu0 %vm1820_vm4, %v6812_v19  ;;  %9240 = vmatprep.subr.mxu0 %v7073_v46 }
0x1e8d   : > { %9229 = vmatprep.mubr.msk.f32.mxu0 %vm1820_vm4, %v6813_v50  ;;  %9241 = vmatpush3.msra.mxu0 %v7073_v46  ;;  %v9825_v6 = vpop.eup %9824  ;;  %v7068_v54 = vmul.f32 %v9823_v51, %v9809_v30 }
0x1e8e   : > { %v7069_v47 = vmul.f32 %v9825_v6, %v9807_v29  ;;  %v7456_v6 = vld [vmem:[%s11597_s1 + $0x8] sm:$0xff] }
0x1e90   : > { %v9827_v41 = vpop.eup %9826  ;;  %9230 = vmatmul.mubr.msk.f32.gmra.mrb[78].mxu0 %vm1820_vm4, %v6814_v52 }
0x1e91   : > { %9242 = vmatprep.mubr.msk.f32.mxu0 %vm1820_vm4, %v7068_v54  ;;  %v9829_v56 = vpop.eup %9828  ;;  %v7070_v17 = vmul.f32 %v9827_v41, %v9813_v57  ;;  %v7460_v54 = vld [vmem:[%s11597_s1 + $0x28] sm:$0xff]  ;;  %v7458_v41 = vld [vmem:[%s11597_s1 + $0x18] sm:$0xff] }
0x1e92   : > { %v7071_v59 = vmul.f32 %v9829_v56, %v9811_v61  ;;  %v7462_v56 = vld [vmem:[%s11597_s1 + $0x38] sm:$0xff] }
0x1e93   : > { %v9446_v31 = vpack.c.bf16 %v7462_v56, %v7458_v41  ;;  %v7814_v41 = vld [vmem:[%s11598_s8 + $0x198] sm:$0xff] }
0x1e94   : > { %9243 = vmatmul.mubr.msk.f32.vlgmr.msra.gmra.mrb[80].mxu0 %vm1820_vm4, %v7069_v47  ;;  %v9438_v47 = vpack.c.bf16 %v7460_v54, %v7456_v6  ;;  %v7782_v6 = vld [vmem:[%s11598_s8 + $0x98] sm:$0xff]  ;;  %v7813_v54 = vld [vmem:[%s11598_s8 + $0x190] sm:$0xff] }
0x1e95   : > { %9245 = vmatprep.mubr.msk.f32.mxu0 %vm1820_vm4, %v7070_v17  ;;  %v7455_v17 = vld [vmem:[%s11597_s1] sm:$0xff] }
0x1e96   : > { %9439 = vmatprep.subr.bf16.mxu0 %v9438_v47 }
0x1e98   : > { %9246 = vmatmul.mubr.msk.f32.gmra.mrb[82].mxu0 %vm1820_vm4, %v7071_v59  ;;  %v7459_v59 = vld [vmem:[%s11597_s1 + $0x20] sm:$0xff] }
0x1e99   : > { %7569 = vmatprep.mubr.f32.mxu0 %v9989_v10  ;;  %v9440_v35 = vpack.c.bf16 %v7459_v59, %v7455_v17 }
0x1e9b   : > { %9441 = vmatpush1.bf16.msra.mxu0 %v9440_v35  ;;  %v7766_v35 = vld [vmem:[%s11598_s8 + $0x18] sm:$0xff] }
0x1f5f   : > { %v9228_v32 = vpop.f32.mrb[76].mxu0 }
0x1f60   : > { %v6896_v7 = vpop.f32.mrb[77].mxu0 }
0x1f63   : > { %v9231_v28 = vpop.f32.mrb[78].mxu0 }
0x1f64   : > { %v6906_v48 = vpop.f32.mrb[79].mxu0 }
0x1f67   : > { %v9244_v22 = vpop.f32.mrb[80].mxu0 }
0x1f68   : > { %v7153_v23 = vpop.f32.mrb[81].mxu0 }
0x1f69   : > { %9252 = vmatprep.mubr.msk.f32.mxu1 %vm1503_vm2, %v7153_v23  ;;  %v7467_v23 = vld [vmem:[%s11597_s1 + $0x60] sm:$0xff] }
0x1f6a   : > { %9253 = vmatmul.mubr.msk.f32.vlgmr.msra.gmra.mrb[76].mxu1 %vm1503_vm2, %v9244_v22  ;;  %v7463_v22 = vld [vmem:[%s11597_s1 + $0x40] sm:$0xff] }
0x1f6b   : > { %v9247_v8 = vpop.f32.mrb[82].mxu0  ;;  %9437 = vmatpush3.bf16.msra.mxu1 %v9434_v27  ;;  %v7464_v27 = vld [vmem:[%s11597_s1 + $0x48] sm:$0xff] }
0x1f6c   : > { %v7163_v4 = vpop.f32.mrb[83].mxu0  ;;  %9447 = vmatprep.subr.bf16.mxu1 %v9446_v31 }
0x1f6d   : > { %9255 = vmatprep.mubr.msk.f32.mxu1 %vm1503_vm2, %v7163_v4  ;;  %v9444_v4 = vpack.c.bf16 %v7467_v23, %v7463_v22  ;;  %v7816_v22 = vld [vmem:[%s11598_s8 + $0x1a8] sm:$0xff]  ;;  %v9492_v23 = vpack.c.bf16 %v7798_v37, %v7797_v11  ;;  %v7805_v11 = vld [vmem:[%s11598_s8 + $0x150] sm:$0xff]  ;;  %v7806_v37 = vld [vmem:[%s11598_s8 + $0x158] sm:$0xff] }
0x1f6e   : > { %9256 = vmatmul.mubr.msk.f32.gmra.mrb[78].mxu1 %vm1503_vm2, %v9247_v8 }
0x1f6f   : > { %9262 = vmatprep.mubr.msk.f32.mxu1 %vm1503_vm2, %v6896_v7  ;;  %v7466_v7 = vld [vmem:[%s11597_s1 + $0x58] sm:$0xff] }
0x1f72   : > { %9263 = vmatmul.mubr.msk.f32.vlgmr.msra.gmra.mrb[76].mxu1 %vm1503_vm2, %v9228_v32  ;;  %v7468_v32 = vld [vmem:[%s11597_s1 + $0x68] sm:$0xff] }
0x1f73   : > { %9265 = vmatprep.mubr.msk.f32.mxu1 %vm1503_vm2, %v6906_v48  ;;  %9449 = vmatpush1.bf16.msra.mxu1 %v9448_v5  ;;  %v7470_v48 = vld [vmem:[%s11597_s1 + $0x78] sm:$0xff] }
0x1f74   : > { %v9450_v8 = vpack.c.bf16 %v7470_v48, %v7466_v7  ;;  %v7783_v7 = vld [vmem:[%s11598_s8 + $0xa0] sm:$0xff] }
0x1f75   : > { %v7815_v48 = vld [vmem:[%s11598_s8 + $0x1a0] sm:$0xff] }
0x1f76   : > { %9266 = vmatmul.mubr.msk.f32.gmra.mrb[78].mxu1 %vm1503_vm2, %v9231_v28  ;;  %v9442_v28 = vpack.c.bf16 %v7468_v32, %v7464_v27  ;;  %9451 = vmatprep.subr.bf16.mxu1 %v9450_v8  ;;  %v9490_v32 = vpack.c.bf16 %v7814_v41, %v7813_v54  ;;  %v7789_v54 = vld [vmem:[%s11598_s8 + $0xd0] sm:$0xff]  ;;  %v7790_v41 = vld [vmem:[%s11598_s8 + $0xd8] sm:$0xff] }
0x1f77   : > { %7658 = vmatprep.mubr.f32.mxu1 %v9989_v10 }
0x1f78   : > { %9443 = vmatprep.subr.bf16.mxu0 %v9442_v28  ;;  %v7784_v28 = vld [vmem:[%s11598_s8 + $0xa8] sm:$0xff] }
0x1f79   : > { %9445 = vmatpush1.bf16.msra.mxu0 %v9444_v4 }
0x2045   : > { %v9264_v9 = vpop.f32.mrb[76].mxu1 }
0x2046   : > { %v7374_v43 = vadd.f32 %v9264_v9, %v8483_v45  ;;  %v7347_v49 = vpop.f32.mrb[77].mxu1  ;;  %v7469_v9 = vld [vmem:[%s11597_s1 + $0x70] sm:$0xff] }
0x2047   : > { %v7373_v39 = vadd.f32 %v8483_v45, %v7347_v49  ;;  %v7779_v49 = vld [vmem:[%s11598_s8 + $0x80] sm:$0xff] }
0x2048   : > { %v7378_v55 = vadd.f32 %v7374_v43, %v11096_v26 }
0x2049   : > { %v7377_v29 = vadd.f32 %v7373_v39, %v11094_v60  ;;  %v9267_v30 = vpop.f32.mrb[78].mxu1  ;;  %v7780_v39 = vld [vmem:[%s11598_s8 + $0x88] sm:$0xff] }
0x204a   : > { %v7376_v58 = vadd.f32 %v9267_v30, %v8483_v45  ;;  %v7357_v33 = vpop.f32.mrb[79].mxu1  ;;  %v7386_v61 = vsel %vm1398_vm0, %v7378_v55, 0.0  ;;  %v7812_v30 = vld [vmem:[%s11598_s8 + $0x188] sm:$0xff] }
0x204b   : > { %v7375_v57 = vadd.f32 %v8483_v45, %v7357_v33  ;;  %7387 = vadd.xlane.f32.xlu0 %v7386_v61  ;;  %v7383_v24 = vsel %vm1398_vm0, %v7377_v29, 0.0  ;;  %v7465_v45 = vld [vmem:[%s11597_s1 + $0x50] sm:$0xff] }
0x204c   : > { %v7380_v34 = vadd.f32 %v7376_v58, %v11104_v13  ;;  %7384 = vadd.xlane.f32.xlu1 %v7383_v24  ;;  %v9452_v43 = vpack.c.bf16 %v7469_v9, %v7465_v45  ;;  %v7767_v9 = vld [vmem:[%s11598_s8 + $0x20] sm:$0xff] }
0x204d   : > { %v7379_v40 = vadd.f32 %v7375_v57, %v11106_v44 }
0x204e   : > { %v7392_v0 = vsel %vm1398_vm0, %v7380_v34, 0.0  ;;  %9453 = vmatpush1.bf16.msra.mxu1 %v9452_v43  ;;  %v7768_v43 = vld [vmem:[%s11598_s8 + $0x28] sm:$0xff] }
0x204f   : > { %7393 = vadd.xlane.f32.xlu0 %v7392_v0  ;;  %v7389_v26 = vsel %vm1398_vm0, %v7379_v40, 0.0 }
0x2050   : > { %7390 = vadd.xlane.f32.xlu1 %v7389_v26 }
0x20d8   : > { %v7388_v60 = vpop.xlane.xlu0 %7387 }
0x20d9   : > { %v7396_v20 = vmul.f32 0.03125, %v7388_v60  ;;  %v7385_v21 = vpop.xlane.xlu1 %7384 }
0x20da   : > { %v7395_v53 = vmul.f32 0.03125, %v7385_v21 }
0x20db   : > { %v11220_v18 = vsub.f32 %v7378_v55, %v7396_v20  ;;  %v7811_v55 = vld [vmem:[%s11598_s8 + $0x180] sm:$0xff] }
0x20dc   : > { %v11222_v25 = vsub.f32 %v7377_v29, %v7395_v53  ;;  %v7394_v14 = vpop.xlane.xlu0 %7393  ;;  %v9454_v29 = vpack.c.bf16 %v7780_v39, %v7779_v49  ;;  %v9486_v58 = vpack.c.bf16 %v7812_v30, %v7811_v55  ;;  %v9462_v49 = vpack.c.bf16 %v7784_v28, %v7783_v7  ;;  %v7799_v55 = vld [vmem:[%s11598_s8 + $0x120] sm:$0xff] }
0x20dd   : > { %v7398_v3 = vmul.f32 0.03125, %v7394_v14  ;;  %v7391_v13 = vpop.xlane.xlu1 %7390  ;;  %v7404_v44 = vmul.f32 %v11220_v18, %v11220_v18  ;;  %v9494_v39 = vpack.c.bf16 %v7816_v22, %v7815_v48  ;;  %v7823_v7 = vld [vmem:[%s11598_s8 + $0x1e0] sm:$0xff]  ;;  %v7824_v48 = vld [vmem:[%s11598_s8 + $0x1e8] sm:$0xff] }
0x20de   : > { %v7397_v42 = vmul.f32 0.03125, %v7391_v13  ;;  %v7403_v62 = vmul.f32 %v11222_v25, %v11222_v25  ;;  %9455 = vmatprep.subr.bf16.mxu0 %v9454_v29  ;;  %9487 = vmatprep.subr.bf16.mxu1 %v9486_v58  ;;  %v8484_v13 = vld [vmem:[%s11599_s11] ss:$0 sm:$0xff]  ;;  %v7800_v29 = vld [vmem:[%s11598_s8 + $0x128] sm:$0xff]  ;;  %s11601_s11 = sld [smem:[#allocation36_spill]] }
0x20df   : > { %v11228_v16 = vsub.f32 %v7380_v34, %v7398_v3  ;;  %v7410_v15 = vsel %vm1398_vm0, %v7404_v44, 0.0  ;;  %v11262_v44 = vld [vmem:[%s11600_s5] ss:$0 sm:$0xff]  ;;  %s11602_s5 = sld [smem:[#allocation38_spill]] }
0x20e0   : > { %v11231_v19 = vsub.f32 %v7379_v40, %v7397_v42  ;;  %7411 = vadd.xlane.f32.xlu0 %v7410_v15  ;;  %v7407_v12 = vsel %vm1398_vm0, %v7403_v62, 0.0  ;;  %v7763_v15 = vld [vmem:[%s11598_s8] sm:$0xff] }
0x20e1   : > { %7408 = vadd.xlane.f32.xlu1 %v7407_v12  ;;  %v7406_v46 = vmul.f32 %v11228_v16, %v11228_v16  ;;  %v7764_v12 = vld [vmem:[%s11598_s8 + $0x8] sm:$0xff]  ;;  %v7775_v22 = vld [vmem:[%s11598_s8 + $0x60] sm:$0xff] }
0x20e2   : > { %v7405_v50 = vmul.f32 %v11231_v19, %v11231_v19  ;;  %v9456_v56 = vpack.c.bf16 %v7764_v12, %v7763_v15  ;;  %v7771_v15 = vld [vmem:[%s11598_s8 + $0x40] sm:$0xff]  ;;  %v7772_v12 = vld [vmem:[%s11598_s8 + $0x48] sm:$0xff] }
0x20e3   : > { %v7416_v51 = vsel %vm1398_vm0, %v7406_v46, 0.0  ;;  %v7795_v46 = vld [vmem:[%s11598_s8 + $0x100] sm:$0xff] }
0x20e4   : > { %7417 = vadd.xlane.f32.xlu0 %v7416_v51  ;;  %v7413_v52 = vsel %vm1398_vm0, %v7405_v50, 0.0  ;;  %v7796_v50 = vld [vmem:[%s11598_s8 + $0x108] sm:$0xff]  ;;  %v7781_v51 = vld [vmem:[%s11598_s8 + $0x90] sm:$0xff] }
0x20e5   : > { %7414 = vadd.xlane.f32.xlu1 %v7413_v52  ;;  %v9488_v31 = vpack.c.bf16 %v7796_v50, %v7795_v46  ;;  %v9458_v27 = vpack.c.bf16 %v7782_v6, %v7781_v51  ;;  %v9472_v50 = vpack.c.bf16 %v7772_v12, %v7771_v15  ;;  %v7803_v51 = vld [vmem:[%s11598_s8 + $0x140] sm:$0xff] }
0x216d   : > { %v7412_v33 = vpop.xlane.xlu0 %7411 }
0x216e   : > { %v7420_v61 = vmul.f32 0.03125, %v7412_v33  ;;  %v7409_v57 = vpop.xlane.xlu1 %7408  ;;  %v9496_v33 = vpack.c.bf16 %v7800_v29, %v7799_v55  ;;  %v7825_v55 = vld [vmem:[%s11598_s8 + $0x1f0] sm:$0xff] }
0x216f   : > { %v7419_v24 = vmul.f32 0.03125, %v7409_v57  ;;  %v7785_v57 = vld [vmem:[%s11598_s8 + $0xb0] sm:$0xff] }
0x2170   : > { %v7424_v34 = vadd.f32 1e-05, %v7420_v61 }
0x2171   : > { %v7423_v40 = vadd.f32 1e-05, %v7419_v24  ;;  %v7418_v0 = vpop.xlane.xlu0 %7417  ;;  %v7786_v24 = vld [vmem:[%s11598_s8 + $0xb8] sm:$0xff] }
0x2172   : > { %9830 = vrsqrt.f32 %v7424_v34  ;;  %v7422_v26 = vmul.f32 0.03125, %v7418_v0  ;;  %v7415_v60 = vpop.xlane.xlu1 %7414  ;;  %v7817_v34 = vld [vmem:[%s11598_s8 + $0x1b0] sm:$0xff] }
0x2173   : > { %9832 = vrsqrt.f32 %v7423_v40  ;;  %v7421_v20 = vmul.f32 0.03125, %v7415_v60  ;;  %v9466_v40 = vpack.c.bf16 %v7786_v24, %v7785_v57  ;;  %v7769_v0 = vld [vmem:[%s11598_s8 + $0x30] sm:$0xff] }
0x2174   : > { %v7426_v21 = vadd.f32 1e-05, %v7422_v26  ;;  %v7770_v26 = vld [vmem:[%s11598_s8 + $0x38] sm:$0xff] }
0x2175   : > { %v7425_v53 = vadd.f32 1e-05, %v7421_v20  ;;  %v9468_v20 = vpack.c.bf16 %v7770_v26, %v7769_v0  ;;  %v7471_v0 = vld [vmem:[%s11601_s11] sm:$0xf]  ;;  %s11603_s11 = sld [smem:[#allocation39_spill]] }
0x2176   : > { %v7476_v26 = vrot.slane %v7471_v0, %v10569_v38 }
0x2177   : > { %9834 = vrsqrt.f32 %v7425_v53  ;;  %v7802_v53 = vld [vmem:[%s11598_s8 + $0x138] sm:$0xff] }
0x2178   : > { %9836 = vrsqrt.f32 %v7426_v21  ;;  %v7801_v21 = vld [vmem:[%s11598_s8 + $0x130] sm:$0xff] }
0x217c   : > { %v9831_v14 = vpop.eup %9830 }
0x217d   : > { %v9833_v3 = vpop.eup %9832  ;;  %v7432_v62 = vmul.f32 %v9831_v14, %v11220_v18  ;;  %v9500_v14 = vpack.c.bf16 %v7802_v53, %v7801_v21  ;;  %v7488_v21 = vrot.slane %v7471_v0, %v4148_v2 }
0x217e   : > { %v7431_v42 = vmul.f32 %v9833_v3, %v11222_v25  ;;  %v7765_v25 = vld [vmem:[%s11598_s8 + $0x10] sm:$0xff]  ;;  %v7787_v3 = vld [vmem:[%s11598_s8 + $0xc0] sm:$0xff] }
0x217f   : > { %v7442_v17 = vmul.f32 %v8484_v13, %v7432_v62  ;;  %v7820_v62 = vld [vmem:[%s11598_s8 + $0x1c8] sm:$0xff] }
0x2180   : > { %v7441_v52 = vmul.f32 %v8484_v13, %v7431_v42 }
0x2181   : > { %v9835_v47 = vpop.eup %9834  ;;  %v11293_v8 = vadd.f32 %v11262_v44, %v7442_v17  ;;  %v7773_v17 = vld [vmem:[%s11598_s8 + $0x50] sm:$0xff] }
0x2182   : > { %v11276_v18 = vadd.f32 %v11262_v44, %v7441_v52  ;;  %v7433_v59 = vmul.f32 %v9835_v47, %v11231_v19  ;;  %v9837_v5 = vpop.eup %9836  ;;  %v9460_v19 = vpack.c.bf16 %v7766_v35, %v7765_v25  ;;  %v7804_v52 = vld [vmem:[%s11598_s8 + $0x148] sm:$0xff]  ;;  %v7821_v47 = vld [vmem:[%s11598_s8 + $0x1d0] sm:$0xff]  ;;  %v7822_v25 = vld [vmem:[%s11598_s8 + $0x1d8] sm:$0xff] }
0x2183   : > { %v7434_v45 = vmul.f32 %v9837_v5, %v11228_v16  ;;  %v9464_v16 = vpack.c.bf16 %v7768_v43, %v7767_v9  ;;  %v9504_v6 = vpack.c.bf16 %v7804_v52, %v7803_v51  ;;  %v9508_v5 = vpack.c.bf16 %v7806_v37, %v7805_v11  ;;  %v7808_v9 = vld [vmem:[%s11598_s8 + $0x168] sm:$0xff] }
0x2184   : > { %8486 = vmatmul.mubr.msk.f32.vlgmr.msra.gmra.mrb[84].mxu0 %vm1398_vm0, %v11276_v18  ;;  %8490 = vmatmul.mubr.msk.f32.vlgmr.msra.gmra.mrb[80].mxu1 %vm1398_vm0, %v11276_v18  ;;  %v7443_v4 = vmul.f32 %v8484_v13, %v7433_v59  ;;  %v7774_v59 = vld [vmem:[%s11598_s8 + $0x58] sm:$0xff] }
0x2185   : > { %7575 = vmatprep.mubr.f32.mxu0 %v9989_v10  ;;  %7664 = vmatprep.mubr.f32.mxu1 %v9989_v10  ;;  %v7444_v58 = vmul.f32 %v8484_v13, %v7434_v45  ;;  %v7788_v13 = vld [vmem:[%s11598_s8 + $0xc8] sm:$0xff]  ;;  %v9476_v35 = vpack.c.bf16 %v7774_v59, %v7773_v17  ;;  %v7807_v45 = vld [vmem:[%s11598_s8 + $0x160] sm:$0xff] }
0x2186   : > { %9457 = vmatpush3.bf16.msra.mxu0 %v9456_v56  ;;  %9489 = vmatpush3.bf16.msra.mxu1 %v9488_v31  ;;  %v11307_v30 = vadd.f32 %v11262_v44, %v7443_v4  ;;  %v9470_v42 = vpack.c.bf16 %v7788_v13, %v7787_v3  ;;  %v9474_v56 = vpack.c.bf16 %v7790_v41, %v7789_v54 }
0x2187   : > { %9459 = vmatprep.subr.bf16.mxu0 %v9458_v27  ;;  %9491 = vmatprep.subr.bf16.mxu1 %v9490_v32  ;;  %v11316_v61 = vadd.f32 %v11262_v44, %v7444_v58  ;;  %v7819_v44 = vld [vmem:[%s11598_s8 + $0x1c0] sm:$0xff]  ;;  %v9506_v31 = vpack.c.bf16 %v7822_v25, %v7821_v47  ;;  %v7792_v32 = vld [vmem:[%s11598_s8 + $0xe8] sm:$0xff]  ;;  %v9512_v43 = vpack.c.bf16 %v7808_v9, %v7807_v45  ;;  %v7777_v58 = vld [vmem:[%s11598_s8 + $0x70] sm:$0xff] }
0x2188   : > { %8487 = vmatmul.mubr.msk.f32.gmra.mrb[86].mxu0 %vm1398_vm0, %v11293_v8  ;;  %8491 = vmatmul.mubr.msk.f32.gmra.mrb[82].mxu1 %vm1398_vm0, %v11293_v8  ;;  %v9502_v46 = vpack.c.bf16 %v7820_v62, %v7819_v44  ;;  %v7791_v27 = vld [vmem:[%s11598_s8 + $0xe0] sm:$0xff] }
0x2189   : > { %7581 = vmatprep.mubr.f32.mxu0 %v9989_v10  ;;  %7670 = vmatprep.mubr.f32.mxu1 %v9989_v10  ;;  %v9478_v28 = vpack.c.bf16 %v7792_v32, %v7791_v27 }
0x218a   : > { %9461 = vmatpush3.bf16.msra.mxu0 %v9460_v19  ;;  %9493 = vmatpush3.bf16.msra.mxu1 %v9492_v23  ;;  %v7776_v19 = vld [vmem:[%s11598_s8 + $0x68] sm:$0xff]  ;;  %v9510_v23 = vpack.c.bf16 %v7824_v48, %v7823_v7 }
0x218b   : > { %9463 = vmatprep.subr.bf16.mxu0 %v9462_v49  ;;  %9495 = vmatprep.subr.bf16.mxu1 %v9494_v39  ;;  %v9480_v4 = vpack.c.bf16 %v7776_v19, %v7775_v22  ;;  %v7793_v49 = vld [vmem:[%s11598_s8 + $0xf0] sm:$0xff]  ;;  %v7794_v39 = vld [vmem:[%s11598_s8 + $0xf8] sm:$0xff] }
0x218c   : > { %8488 = vmatmul.mubr.msk.f32.gmra.mrb[88].mxu0 %vm1398_vm0, %v11307_v30  ;;  %8492 = vmatmul.mubr.msk.f32.gmra.mrb[84].mxu1 %vm1398_vm0, %v11307_v30  ;;  %v9482_v29 = vpack.c.bf16 %v7794_v39, %v7793_v49 }
0x218d   : > { %7587 = vmatprep.mubr.f32.mxu0 %v9989_v10  ;;  %7676 = vmatprep.mubr.f32.mxu1 %v9989_v10  ;;  %v7818_v10 = vld [vmem:[%s11598_s8 + $0x1b8] sm:$0xff] }
0x218e   : > { %9465 = vmatpush3.bf16.msra.mxu0 %v9464_v16  ;;  %9497 = vmatpush3.bf16.msra.mxu1 %v9496_v33  ;;  %v9498_v60 = vpack.c.bf16 %v7818_v10, %v7817_v34  ;;  %v7826_v16 = vld [vmem:[%s11598_s8 + $0x1f8] sm:$0xff]  ;;  %v7809_v34 = vld [vmem:[%s11598_s8 + $0x170] sm:$0xff] }
0x218f   : > { %9467 = vmatprep.subr.bf16.mxu0 %v9466_v40  ;;  %v7778_v33 = vld [vmem:[%s11598_s8 + $0x78] sm:$0xff]  ;;  %v9514_v57 = vpack.c.bf16 %v7826_v16, %v7825_v55 }
0x2190   : > { %8489 = vmatmul.mubr.msk.f32.gmra.mrb[90].mxu0 %vm1398_vm0, %v11316_v61  ;;  %8493 = vmatmul.mubr.msk.f32.gmra.mrb[86].mxu1 %vm1398_vm0, %v11316_v61  ;;  %v9484_v24 = vpack.c.bf16 %v7778_v33, %v7777_v58  ;;  %v7810_v40 = vld [vmem:[%s11598_s8 + $0x178] sm:$0xff] }
0x2191   : > { %9499 = vmatprep.subr.bf16.mxu1 %v9498_v60  ;;  %v9516_v10 = vpack.c.bf16 %v7810_v40, %v7809_v34  ;;  %v7484_v60 = vrot.slane %v7471_v0, %v4144_v63 }
0x2192   : > { %9469 = vmatpush3.bf16.msra.mxu0 %v9468_v20  ;;  %9501 = vmatpush3.bf16.msra.mxu1 %v9500_v14  ;;  %v7480_v20 = vrot.slane %v7471_v0, %v4140_v1 }
0x2193   : > { %9471 = vmatprep.subr.bf16.mxu0 %v9470_v42  ;;  %9503 = vmatprep.subr.bf16.mxu1 %v9502_v46 }
0x2196   : > { %9473 = vmatpush3.bf16.msra.mxu0 %v9472_v50  ;;  %9505 = vmatpush3.bf16.msra.mxu1 %v9504_v6 }
0x2197   : > { %9475 = vmatprep.subr.bf16.mxu0 %v9474_v56  ;;  %9507 = vmatprep.subr.bf16.mxu1 %v9506_v31 }
0x219a   : > { %9477 = vmatpush3.bf16.msra.mxu0 %v9476_v35  ;;  %9509 = vmatpush3.bf16.msra.mxu1 %v9508_v5 }
0x219b   : > { %9479 = vmatprep.subr.bf16.mxu0 %v9478_v28  ;;  %9511 = vmatprep.subr.bf16.mxu1 %v9510_v23 }
0x219e   : > { %9481 = vmatpush3.bf16.msra.mxu0 %v9480_v4  ;;  %9513 = vmatpush3.bf16.msra.mxu1 %v9512_v43 }
0x219f   : > { %9483 = vmatprep.subr.bf16.mxu0 %v9482_v29  ;;  %9515 = vmatprep.subr.bf16.mxu1 %v9514_v57 }
0x21a2   : > { %9485 = vmatpush3.bf16.msra.mxu0 %v9484_v24  ;;  %9517 = vmatpush3.bf16.msra.mxu1 %v9516_v10 }
0x2257   : > { %v7571_v53 = vpop.f32.mrb[84].mxu0  ;;  %v7660_v14 = vpop.f32.mrb[80].mxu1 }
0x2258   : > { %v7572_v3 = vadd.f32 %v7571_v53, %v7476_v26  ;;  %v11370_v13 = vadd.f32 %v7660_v14, %v7484_v60  ;;  %v7573_v44 = vpop.f32.mrb[85].mxu0  ;;  %v7662_v42 = vpop.f32.mrb[81].mxu1 }
0x2259   : > { %v7574_v62 = vadd.f32 %v7573_v44, %v7480_v20  ;;  %v7663_v15 = vadd.f32 %v7662_v42, %v7488_v21 }
0x225a   : > { %v7699_v12 = vmul.f32 0.70710677, %v7572_v3  ;;  %v7701_v38 = vmul.f32 0.70710677, %v11370_v13  ;;  %v7683_v58 = vmul.f32 0.5, %v7572_v3 }
0x225b   : > { %v7700_v46 = vmul.f32 0.70710677, %v7574_v62  ;;  %v7702_v63 = vmul.f32 0.70710677, %v7663_v15  ;;  %v7577_v50 = vpop.f32.mrb[86].mxu0  ;;  %v7666_v1 = vpop.f32.mrb[82].mxu1 }
0x225c   : > { %9838 = verf.f32 %v7699_v12  ;;  %v11373_v36 = vadd.f32 %v7577_v50, %v7476_v26  ;;  %v11375_v2 = vadd.f32 %v7666_v1, %v7484_v60  ;;  %v7579_v51 = vpop.f32.mrb[87].mxu0  ;;  %v7668_v52 = vpop.f32.mrb[83].mxu1  ;;  %v7684_v40 = vmul.f32 0.5, %v7574_v62 }
0x225d   : > { %9840 = verf.f32 %v7701_v38  ;;  %v11377_v6 = vadd.f32 %v7579_v51, %v7480_v20  ;;  %v11379_v54 = vadd.f32 %v7668_v52, %v7488_v21  ;;  %v7686_v0 = vmul.f32 0.5, %v7663_v15 }
0x225e   : > { %9842 = verf.f32 %v7700_v46  ;;  %v7703_v41 = vmul.f32 0.70710677, %v11373_v36  ;;  %v7705_v25 = vmul.f32 0.70710677, %v11375_v2  ;;  %v7687_v1 = vmul.f32 0.5, %v11373_v36 }
0x225f   : > { %9844 = verf.f32 %v7702_v63  ;;  %v7583_v47 = vpop.f32.mrb[88].mxu0  ;;  %v7672_v56 = vpop.f32.mrb[84].mxu1  ;;  %v7704_v17 = vmul.f32 0.70710677, %v11377_v6  ;;  %v7706_v59 = vmul.f32 0.70710677, %v11379_v54 }
0x2260   : > { %9846 = verf.f32 %v7703_v41  ;;  %v11385_v31 = vadd.f32 %v7583_v47, %v7476_v26  ;;  %v11387_v35 = vadd.f32 %v7672_v56, %v7484_v60  ;;  %v7585_v11 = vpop.f32.mrb[89].mxu0  ;;  %v7674_v37 = vpop.f32.mrb[85].mxu1  ;;  %v7688_v63 = vmul.f32 0.5, %v11377_v6 }
0x2261   : > { %9848 = verf.f32 %v7705_v25  ;;  %v11389_v5 = vadd.f32 %v7585_v11, %v7480_v20  ;;  %v11391_v27 = vadd.f32 %v7674_v37, %v7488_v21  ;;  %v7690_v51 = vmul.f32 0.5, %v11379_v54 }
0x2262   : > { %9850 = verf.f32 %v7704_v17  ;;  %v7707_v32 = vmul.f32 0.70710677, %v11385_v31  ;;  %v7709_v48 = vmul.f32 0.70710677, %v11387_v35  ;;  %v7689_v47 = vmul.f32 0.5, %v11375_v2 }
0x2263   : > { %v7589_v7 = vpop.f32.mrb[90].mxu0  ;;  %v7678_v28 = vpop.f32.mrb[86].mxu1  ;;  %9852 = verf.f32 %v7706_v59  ;;  %v7708_v22 = vmul.f32 0.70710677, %v11389_v5  ;;  %v7710_v23 = vmul.f32 0.70710677, %v11391_v27 }
0x2264   : > { %v7591_v19 = vpop.f32.mrb[91].mxu0  ;;  %9854 = verf.f32 %v7707_v32  ;;  %v11397_v4 = vadd.f32 %v7589_v7, %v7476_v26  ;;  %v7680_v45 = vpop.f32.mrb[87].mxu1  ;;  %v11399_v43 = vadd.f32 %v7678_v28, %v7484_v60  ;;  %v7692_v32 = vmul.f32 0.5, %v11389_v5 }
0x2265   : > { %9856 = verf.f32 %v7709_v48  ;;  %v11401_v49 = vadd.f32 %v7591_v19, %v7480_v20  ;;  %v11404_v29 = vadd.f32 %v7680_v45, %v7488_v21  ;;  %v7685_v21 = vmul.f32 0.5, %v11370_v13 }
0x2266   : > { %v9839_v9 = vpop.eup %9838  ;;  %9858 = verf.f32 %v7708_v22  ;;  %v7711_v55 = vmul.f32 0.70710677, %v11397_v4  ;;  %v7713_v57 = vmul.f32 0.70710677, %v11399_v43  ;;  %v7691_v54 = vmul.f32 0.5, %v11385_v31 }
0x2267   : > { %v9841_v39 = vpop.eup %9840  ;;  %v7731_v33 = vadd.f32 1.0, %v9839_v9  ;;  %9860 = verf.f32 %v7710_v23  ;;  %v7712_v60 = vmul.f32 0.70710677, %v11401_v49  ;;  %v7714_v53 = vmul.f32 0.70710677, %v11404_v29 }
0x2268   : > { %v9843_v16 = vpop.eup %9842  ;;  %v7733_v34 = vadd.f32 1.0, %v9841_v39  ;;  %9862 = verf.f32 %v7711_v55  ;;  %v7694_v48 = vmul.f32 0.5, %v11391_v27  ;;  %v7693_v19 = vmul.f32 0.5, %v11387_v35 }
0x2269   : > { %v9845_v24 = vpop.eup %9844  ;;  %v7732_v10 = vadd.f32 1.0, %v9843_v16  ;;  %9864 = verf.f32 %v7713_v57  ;;  %v7747_v44 = vmul.f32 %v7731_v33, %v7683_v58  ;;  %v7696_v31 = vmul.f32 0.5, %v11401_v49 }
0x226a   : > { %v7734_v26 = vadd.f32 1.0, %v9845_v24  ;;  %v9847_v20 = vpop.eup %9846  ;;  %9866 = verf.f32 %v7712_v60  ;;  %v7749_v38 = vmul.f32 %v7733_v34, %v7685_v21  ;;  %v7695_v27 = vmul.f32 0.5, %v11397_v4  ;;  %v8494_v60 = vld [vmem:[%s11602_s5] ss:$0 sm:$0xff]  ;;  %s1370_s5 = sand.u32 1, %s9933_s16  }
0x226b   : > { %v7748_v14 = vmul.f32 %v7732_v10, %v7684_v40  ;;  %v9849_v3 = vpop.eup %9848  ;;  %v7735_v62 = vadd.f32 1.0, %v9847_v20  ;;  %9868 = verf.f32 %v7714_v53  ;;  %v7698_v35 = vmul.f32 0.5, %v11404_v29 }
0x226c   : > { %v7750_v42 = vmul.f32 %v7734_v26, %v7686_v0  ;;  %v9851_v12 = vpop.eup %9850  ;;  %v7737_v46 = vadd.f32 1.0, %v9849_v3  ;;  %v7697_v24 = vmul.f32 0.5, %v11399_v43 }
0x226d   : > { %7898 = vmatprep.mubr.f32.mxu0 %v7748_v14  ;;  %v9853_v15 = vpop.eup %9852  ;;  %v7736_v50 = vadd.f32 1.0, %v9851_v12  ;;  %v7751_v11 = vmul.f32 %v7735_v62, %v7687_v1 }
0x226e   : > { %7983 = vmatprep.mubr.f32.mxu1 %v7750_v42  ;;  %7899 = vmatmul.mubr.f32.vlgmr.msra.gmra.mrb[92].mxu0 %v7747_v44  ;;  %v9855_v13 = vpop.eup %9854  ;;  %v7738_v52 = vadd.f32 1.0, %v9853_v15  ;;  %v7753_v28 = vmul.f32 %v7737_v46, %v7689_v47 }
0x226f   : > { %7984 = vmatmul.mubr.f32.vlgmr.msra.gmra.mrb[88].mxu1 %v7749_v38  ;;  %v9857_v41 = vpop.eup %9856  ;;  %v7752_v56 = vmul.f32 %v7736_v50, %v7688_v63  ;;  %v7739_v17 = vadd.f32 1.0, %v9855_v13 }
0x2270   : > { %v9859_v25 = vpop.eup %9858  ;;  %v7754_v59 = vmul.f32 %v7738_v52, %v7690_v51  ;;  %v7741_v6 = vadd.f32 1.0, %v9857_v41 }
0x2271   : > { %v9861_v37 = vpop.eup %9860  ;;  %v7740_v7 = vadd.f32 1.0, %v9859_v25  ;;  %7903 = vmatprep.mubr.f32.mxu0 %v7752_v56  ;;  %v7755_v9 = vmul.f32 %v7739_v17, %v7691_v54 }
0x2272   : > { %v9863_v36 = vpop.eup %9862  ;;  %v7742_v22 = vadd.f32 1.0, %v9861_v37  ;;  %7988 = vmatprep.mubr.f32.mxu1 %v7754_v59  ;;  %7904 = vmatmul.mubr.f32.gmra.mrb[94].mxu0 %v7751_v11  ;;  %v7757_v55 = vmul.f32 %v7741_v6, %v7693_v19 }
0x2273   : > { %v9865_v2 = vpop.eup %9864  ;;  %7989 = vmatmul.mubr.f32.gmra.mrb[90].mxu1 %v7753_v28  ;;  %v7756_v23 = vmul.f32 %v7740_v7, %v7692_v32  ;;  %v7743_v5 = vadd.f32 1.0, %v9863_v36 }
0x2274   : > { %v7758_v45 = vmul.f32 %v7742_v22, %v7694_v48  ;;  %v9867_v39 = vpop.eup %9866  ;;  %v7745_v58 = vadd.f32 1.0, %v9865_v2 }
0x2275   : > { %7908 = vmatprep.mubr.f32.mxu0 %v7756_v23  ;;  %v9869_v16 = vpop.eup %9868  ;;  %v7744_v33 = vadd.f32 1.0, %v9867_v39  ;;  %v7759_v10 = vmul.f32 %v7743_v5, %v7695_v27 }
0x2276   : > { %7993 = vmatprep.mubr.f32.mxu1 %v7758_v45  ;;  %7909 = vmatmul.mubr.f32.gmra.mrb[96].mxu0 %v7755_v9  ;;  %v7746_v57 = vadd.f32 1.0, %v9869_v16  ;;  %v7761_v0 = vmul.f32 %v7745_v58, %v7697_v24 }
0x2277   : > { %7994 = vmatmul.mubr.f32.gmra.mrb[92].mxu1 %v7757_v55  ;;  %v7760_v34 = vmul.f32 %v7744_v33, %v7696_v31 }
0x2278   : > { %v7762_v40 = vmul.f32 %v7746_v57, %v7698_v35 }
0x2279   : > { %7913 = vmatprep.mubr.f32.mxu0 %v7760_v34 }
0x227a   : > { %7998 = vmatprep.mubr.f32.mxu1 %v7762_v40  ;;  %7914 = vmatmul.mubr.f32.gmra.mrb[98].mxu0 %v7759_v10  ;;  %v8082_v40 = vld [vmem:[%s10229_s27] sm:$0xff]  ;;  %v8083_v10 = vld [vmem:[%s10229_s27 + $0x8] sm:$0xff] }
0x227b   : > { %7999 = vmatmul.mubr.f32.gmra.mrb[94].mxu1 %v7761_v0  ;;  %v9518_v0 = vpack.c.bf16 %v8083_v10, %v8082_v40 }
0x227d   : > { %9519 = vmatprep.subr.bf16.mxu0 %v9518_v0 }
0x227e   : > { %9521 = vmatpush3.bf16.msra.mxu0 %v9518_v0 }
0x2341   : > { %v8822_v49 = vpop.f32.mrb[92].mxu0 }
0x2342   : > { %v8866_v26 = vpop.f32.mrb[88].mxu1  ;;  %v8823_v20 = vpop.f32.mrb[93].mxu0 }
0x2343   : > { %v8824_v21 = vadd.f32 %v8823_v20, %v8822_v49  ;;  %v8867_v4 = vpop.f32.mrb[89].mxu1  ;;  %v8084_v49 = vld [vmem:[%s10229_s27 + $0x10] sm:$0xff] }
0x2344   : > { %v8868_v53 = vadd.f32 %v8867_v4, %v8866_v26  ;;  %v8085_v26 = vld [vmem:[%s10229_s27 + $0x18] sm:$0xff] }
0x2345   : > { %v7901_v29 = vadd.f32 %v8824_v21, %v8494_v60  ;;  %v8825_v14 = vpop.f32.mrb[94].mxu0 }
0x2346   : > { %v8869_v44 = vpop.f32.mrb[90].mxu1  ;;  %v8826_v43 = vpop.f32.mrb[95].mxu0 }
0x2347   : > { %v7986_v3 = vadd.f32 %v8868_v53, %v7901_v29  ;;  %v8827_v42 = vadd.f32 %v8826_v43, %v8825_v14  ;;  %v8870_v12 = vpop.f32.mrb[91].mxu1 }
0x2348   : > { %v8871_v38 = vadd.f32 %v8870_v12, %v8869_v44 }
0x2349   : > { %v8004_v62 = vadd.f32 %v7986_v3, %v11276_v18  ;;  %v7906_v15 = vadd.f32 %v8827_v42, %v8494_v60  ;;  %v8828_v46 = vpop.f32.mrb[96].mxu0 }
0x234a   : > { %v8872_v63 = vpop.f32.mrb[92].mxu1  ;;  %v8829_v50 = vpop.f32.mrb[97].mxu0 }
0x234b   : > { %v8010_v13 = vsel %vm1398_vm0, %v8004_v62, 0.0  ;;  %v7991_v1 = vadd.f32 %v8871_v38, %v7906_v15  ;;  %v8830_v51 = vadd.f32 %v8829_v50, %v8828_v46  ;;  %v8873_v52 = vpop.f32.mrb[93].mxu1 }
0x234c   : > { %8011 = vadd.xlane.f32.xlu1 %v8010_v13  ;;  %v8874_v41 = vadd.f32 %v8873_v52, %v8872_v63  ;;  %v8496_v63 = vld [vmem:[%s10224_s20] ss:$0 sm:$0xff] }
0x234d   : > { %v7911_v47 = vadd.f32 %v8830_v51, %v8494_v60  ;;  %v8005_v56 = vadd.f32 %v7991_v1, %v11293_v8  ;;  %v8831_v25 = vpop.f32.mrb[98].mxu0 }
0x234e   : > { %v8875_v59 = vpop.f32.mrb[94].mxu1  ;;  %v8832_v11 = vpop.f32.mrb[99].mxu0 }
0x234f   : > { %v7996_v17 = vadd.f32 %v8874_v41, %v7911_v47  ;;  %v8013_v18 = vsel %vm1398_vm0, %v8005_v56, 0.0  ;;  %v8833_v37 = vadd.f32 %v8832_v11, %v8831_v25  ;;  %v8876_v6 = vpop.f32.mrb[95].mxu1 }
0x2350   : > { %8014 = vadd.xlane.f32.xlu0 %v8013_v18  ;;  %v8877_v32 = vadd.f32 %v8876_v6, %v8875_v59  ;;  %v8497_v6 = vld [vmem:[%s11604_s4] ss:$0 sm:$0xff]  ;;  %s11453_s4 = scalar_lea.hbm %s10239_s12, %s8507_s6 }
0x2351   : > { %v8006_v7 = vadd.f32 %v7996_v17, %v11307_v30  ;;  %v7916_v28 = vadd.f32 %v8833_v37, %v8494_v60  ;;  %v9522_v60 = vpack.c.bf16 %v8085_v26, %v8084_v49 }
0x2353   : > { %v8016_v36 = vsel %vm1398_vm0, %v8006_v7, 0.0  ;;  %v8001_v54 = vadd.f32 %v8877_v32, %v7916_v28  ;;  %9523 = vmatprep.subr.bf16.mxu0 %v9522_v60 }
0x2354   : > { %8017 = vadd.xlane.f32.xlu1 %v8016_v36  ;;  %9525 = vmatpush3.bf16.msra.mxu0 %v9522_v60 }
0x2355   : > { %v8007_v48 = vadd.f32 %v8001_v54, %v11316_v61 }
0x2357   : > { %v8019_v8 = vsel %vm1398_vm0, %v8007_v48, 0.0 }
0x2358   : > { %8020 = vadd.xlane.f32.xlu0 %v8019_v8 }
0x23d9   : > { %v8012_v22 = vpop.xlane.xlu1 %8011 }
0x23da   : > { %v8022_v2 = vmul.f32 0.03125, %v8012_v22 }
0x23dc   : > { %v8026_v19 = vsub.f32 %v8004_v62, %v8022_v2  ;;  %v8495_v62 = vld [vmem:[%s11603_s11] ss:$0 sm:$0xff]  ;;  %s8320_s11 = sshll.u32 %s1370_s5, 5 }
0x23dd   : > { %v8015_v23 = vpop.xlane.xlu0 %8014  ;;  %s1372_s1 = scalar_lea.vmem [#allocation2], %s8320_s11  ;;  %s11457_s11 = scalar_lea.sflag [#allocation3], %s1370_s5 }
0x23de   : > { %v8030_v45 = vmul.f32 %v8026_v19, %v8026_v19  ;;  %v8023_v9 = vmul.f32 0.03125, %v8015_v23  ;;  %s8208_s3 = sshll.u32 %s1372_s1, 4  ;;  %s11450_s3 = int_to_ptr.vmem [resolvable:$true] %s8208_s3 }
0x23df   : > { %s9879_s8 = scalar_lea.vmem %s11450_s3, 512  ;;  %p9886_p0 = scmp.lt.s32.totalorder %s11450_s3, %s9884_s9 }
0x23e0   : > { %v8034_v39 = vsel %vm1398_vm0, %v8030_v45, 0.0  ;;  %v8027_v5 = vsub.f32 %v8005_v56, %v8023_v9  ;;  %p9880_p11 = scmp.ne.s32.totalorder %s11450_s3, %s9879_s8  ;;  %p9887_p1 = scmp.lt.s32.totalorder %s9885_s13, %s9879_s8 }
0x23e1   : > { %8035 = vadd.xlane.f32.xlu1 %v8034_v39  ;;  %v8018_v30 = vpop.xlane.xlu1 %8017 }
0x23e2   : > { %v8024_v55 = vmul.f32 0.03125, %v8018_v30  ;;  %v8031_v16 = vmul.f32 %v8027_v5, %v8027_v5  ;;  %p9881_p12 = pnand %p9880_p11, %p10279_p5  ;;  %p9888_p2 = por %p9887_p1, %p9886_p0 }
0x23e4   : > { %v8028_v58 = vsub.f32 %v8006_v7, %v8024_v55  ;;  %v8037_v61 = vsel %vm1398_vm0, %v8031_v16, 0.0  ;;  %p9882_p13 = pneg %p9881_p12 }
0x23e5   : > { %8038 = vadd.xlane.f32.xlu0 %v8037_v61  ;;  %v8021_v31 = vpop.xlane.xlu0 %8020 }
0x23e6   : > { %v8032_v33 = vmul.f32 %v8028_v58, %v8028_v58  ;;  %v8025_v27 = vmul.f32 0.03125, %v8021_v31  ;;  %p9889_p3 = pnand %p9888_p2, %p9882_p13 }
0x23e8   : > { %v8040_v35 = vsel %vm1398_vm0, %v8032_v33, 0.0  ;;  %v8029_v57 = vsub.f32 %v8007_v48, %v8025_v27 }
0x23e9   : > { %8041 = vadd.xlane.f32.xlu1 %v8040_v35 }
0x23ea   : > { %v8033_v24 = vmul.f32 %v8029_v57, %v8029_v57 }
0x23ec   : > { %v8043_v34 = vsel %vm1398_vm0, %v8033_v24, 0.0 }
0x23ed   : > { %8044 = vadd.xlane.f32.xlu0 %v8043_v34 }
0x246e   : > { %v8036_v20 = vpop.xlane.xlu1 %8035 }
0x246f   : > { %v8046_v21 = vmul.f32 0.03125, %v8036_v20 }
0x2471   : > { %v8050_v4 = vadd.f32 1e-05, %v8046_v21 }
0x2472   : > { %v8039_v53 = vpop.xlane.xlu0 %8038 }
0x2473   : > { %9870 = vrsqrt.f32 %v8050_v4  ;;  %v8047_v29 = vmul.f32 0.03125, %v8039_v53 }
0x2475   : > { %v8051_v14 = vadd.f32 1e-05, %v8047_v29 }
0x2476   : > { %v8042_v3 = vpop.xlane.xlu1 %8041 }
0x2477   : > { %9872 = vrsqrt.f32 %v8051_v14  ;;  %v8048_v44 = vmul.f32 0.03125, %v8042_v3 }
0x2479   : > { %v8052_v43 = vadd.f32 1e-05, %v8048_v44 }
0x247a   : > { %v8045_v42 = vpop.xlane.xlu0 %8044 }
0x247b   : > { %9874 = vrsqrt.f32 %v8052_v43  ;;  %v8049_v38 = vmul.f32 0.03125, %v8045_v42 }
0x247d   : > { %v9871_v12 = vpop.eup %9870  ;;  %v8053_v46 = vadd.f32 1e-05, %v8049_v38 }
0x247e   : > { %v8058_v15 = vmul.f32 %v9871_v12, %v8026_v19 }
0x247f   : > { %9876 = vrsqrt.f32 %v8053_v46 }
0x2480   : > { %v8068_v50 = vmul.f32 %v8495_v62, %v8058_v15 }
0x2481   : > { %v9873_v13 = vpop.eup %9872 }
0x2482   : > { %v8078_v1 = vadd.f32 %v8496_v63, %v8068_v50  ;;  %v8059_v51 = vmul.f32 %v9873_v13, %v8027_v5 }
0x2484   : > { %9276 = vmatprep.mubr.msk.f32.mxu0 %vm1398_vm0, %v8078_v1  ;;  %v8069_v52 = vmul.f32 %v8495_v62, %v8059_v51 }
0x2485   : > { %v9875_v41 = vpop.eup %9874 }
0x2486   : > { %v8079_v47 = vadd.f32 %v8496_v63, %v8069_v52  ;;  %v8060_v56 = vmul.f32 %v9875_v41, %v8028_v58 }
0x2488   : > { %9277 = vmatmul.mubr.msk.f32.vlgmr.msra.gmra.mrb[100].mxu0 %vm1398_vm0, %v8079_v47  ;;  %v8070_v25 = vmul.f32 %v8495_v62, %v8060_v56 }
0x2489   : > { %v9877_v17 = vpop.eup %9876 }
0x248a   : > { %v8080_v59 = vadd.f32 %v8496_v63, %v8070_v25  ;;  %v8061_v11 = vmul.f32 %v9877_v17, %v8029_v57 }
0x248c   : > { %9279 = vmatprep.mubr.msk.f32.mxu0 %vm1398_vm0, %v8080_v59  ;;  %v8071_v18 = vmul.f32 %v8495_v62, %v8061_v11 }
0x248e   : > { %v8081_v37 = vadd.f32 %v8496_v63, %v8071_v18 }
0x2490   : > { %9280 = vmatmul.mubr.msk.f32.gmra.mrb[102].mxu0 %vm1398_vm0, %v8081_v37 }
0x255b   : > { %v9278_v32 = vpop.f32.mrb[100].mxu0 }
0x255c   : > { %v8177_v7 = vadd.f32 %v9278_v32, %v8497_v6  ;;  %v8171_v28 = vpop.f32.mrb[101].mxu0 }
0x255d   : > { %v8172_v36 = vadd.f32 %v8497_v6, %v8171_v28 }
0x255e   : > { %8191 = vst.msk [vmem:[%s1372_s1 + $0x8] sm:$0xff] %vm1503_vm2, %v8177_v7 }
0x255f   : > { %8190 = vst.msk [vmem:[%s1372_s1] sm:$0xff] %vm1503_vm2, %v8172_v36 }
0x2563   : > { %v9281_v54 = vpop.f32.mrb[102].mxu0 }
0x2564   : > { %v8187_v48 = vadd.f32 %v9281_v54, %v8497_v6  ;;  %v8181_v8 = vpop.f32.mrb[103].mxu0 }
0x2565   : > { %v8182_v22 = vadd.f32 %v8497_v6, %v8181_v8 }
0x2566   : > { %8193 = vst.msk [vmem:[%s1372_s1 + $0x18] sm:$0xff] %vm1503_vm2, %v8187_v48 }
0x2567   : > { %8192 = vst.msk [vmem:[%s1372_s1 + $0x10] sm:$0xff] %vm1503_vm2, %v8182_v22 }
0x2568   : > { %9892 = shalt.err (!%p9889_p3)
}
0x2569   : > { %s9893_s6 = scalar_lea.hbm %s11453_s4, 512  ;;  %s9897_s1 = scalar_lea.hbm %s10239_s12, 1024 }
0x256a   : > { %p9894_p4 = scmp.ne.s32.totalorder %s11453_s4, %s9893_s6  ;;  %p9898_p9 = scmp.lt.u32.totalorder %s11453_s4, %s10239_s12 }
0x256b   : > { %p9899_p10 = scmp.lt.u32.totalorder %s9897_s1, %s9893_s6  ;;  %p9901_p12 = scmp.lt.u32.totalorder %s9893_s6, %s11453_s4 }
0x256c   : > { %p9895_p7 = pnand %p9894_p4, %p10279_p5 }
0x256d   : > { %p9900_p11 = por %p9899_p10, %p9898_p9 }
0x256e   : > { %p9896_p8 = pneg %p9895_p7 }
0x256f   : > { %p9902_p0 = por %p9901_p12, %p9900_p11 }
0x2571   : > { %p9903_p13 = pnand %p9902_p0, %p9896_p8 }
0x2573   : > { %9906 = shalt.err (!%p9903_p13)
}
0x2574   : > { %s9999_s9 = smov 128   ;;  %s10000_s13 = smov 8  }
0x2575   : > { %9542 = dma.vmem_to_hbm [thread:$0]  (%p10279_p5), %s11450_s3, 512, %s11453_s4, %s11457_s11, %s9999_s9, %s9999_s9, %s10000_s13  }
0x2576 PF: > { %p9548_p1 = scmp.ge.s32.totalorder %s9941_s22, 2  ;;  %s8223_s8 = sand.u32 1, %s9929_s15  }
0x2577   : > { %s8224_s5 = scalar_lea.sflag [#allocation3], %s8223_s8 }
0x2578   : > { %p9545_p2 = pnand %p9548_p1, %p10283_p6 }
0x257a   : > { %9924 = dma.done.wait (!%p9545_p2), %s8224_s5, 512  }
0x257b   : > { %9926 = vsyncadd (!%p9545_p2), %s8224_s5, 4294966784  ;;  %p103_p3 = scmp.ge.s32.totalorder %s10266_s26, 4   ;;  %s11605_s15 = smov %s9933_s16 }
0x257c   : > { %s11606_s16 = smov %s9937_s18  ;;  %s11607_s18 = smov %s10277_s2 }
0x257d   : > { %s11608_s22 = smov %s10266_s26  ;;  %105 = sbr.rel (!%p103_p3) target bundleno = 103 (0x67), region = 285 }
0x2584   :  { %8229 = vsyncpa [#allocation3], 1 }
0x2585   :  { %8231 = vsyncpa [#allocation3 + $0x1], 1 }

</bundles_post_ra>
